<compile_context>
chip_gen: v7x
topology: tpu7x:2x2x1
jax: 0.10.0
libtpu: 0.0.40
codegen_flags: <defaults>
</compile_context>

<pallas_src>
import functools

import jax
import jax.numpy as jnp
from jax.experimental import pallas as pl
from jax.experimental.pallas import tpu as pltpu


# ----------------------------------------------------------------------------
# Sizing helpers (per-generation VMEM budget, lane tile selection).
# ----------------------------------------------------------------------------
def _round_up(x, m):
    return ((x + m - 1) // m) * m


def _vmem_limit_bytes():
    """Per-generation scoped-VMEM budget (v5e/v6e: 128 MiB phys, v7x: 64 MiB)."""
    try:
        cap = int(pltpu.get_tpu_info().vmem_capacity_bytes)
    except Exception:  # conservative (v7x-sized) fallback
        cap = 64 * 1024 * 1024
    return max(32 * 1024 * 1024, min(cap - 16 * 1024 * 1024, 100 * 1024 * 1024))


def _pick_tile_s(s_big, c_in, c_out, off_max, vmem_limit):
    """Largest spatial lane tile (multiple of 128) whose working set fits."""
    halo = _round_up(off_max, 128)
    cap = max(128, _round_up(s_big, 128))
    for ts in (8192, 4096, 2048, 1024, 512, 256, 128):
        if ts > cap:
            continue
        sp_in = _round_up(s_big, ts) + halo
        need = (2 * c_in * sp_in * 2        # resident flattened input (dbl-buf, bf16)
                + 27 * c_out * c_in * 2     # resident tap weights (bf16)
                + c_in * (ts + halo) * 2    # in-kernel shifted window value
                + 3 * c_out * ts * 2        # output tile (double-buffered) + slack
                + c_out * ts * 4            # f32 accumulator
                + 2 * ts * 4)               # mask tile
        if need <= vmem_limit // 2:
            return ts
    # TODO(synk): volumes whose flattened per-sample input exceeds VMEM
    # residency need memory_space=pl.ANY + manual halo'd DMA per grid step.
    return 128


# ----------------------------------------------------------------------------
# Kernels.
# ----------------------------------------------------------------------------
def _accum_taps(x_ref, w_ref, s_idx, *, tile_s, win, tap_offsets):
    """sum_t W_t(bf16) @ X[:, base+off_t : base+off_t+TS](bf16) -> f32 (C_out, TS)."""
    base = pl.multiple_of(s_idx * tile_s, 128)        # lane-aligned dynamic start
    xw = x_ref[:, pl.ds(base, win)]                   # (C_in, TS + halo)
    acc = None
    for t, off in enumerate(tap_offsets):
        xt = xw[:, off:off + tile_s]                  # static lane shift per tap
        p = jnp.dot(w_ref[t], xt, preferred_element_type=jnp.float32)
        acc = p if acc is None else acc + p
    return acc


def _conv_affine_relu_kernel(x_ref, w_ref, b_ref, o_ref, *, tile_s, win, tap_offsets):
    """Fused conv + (folded affine) bias + ReLU (eval-BN / no-norm path)."""
    acc = _accum_taps(x_ref, w_ref, pl.program_id(1),
                      tile_s=tile_s, win=win, tap_offsets=tap_offsets)
    acc = acc + b_ref[...]
    o_ref[...] = jnp.maximum(acc, 0.0).astype(o_ref.dtype)


def _conv_moments_kernel(x_ref, w_ref, b_ref, m_ref, o_ref, sum_ref, sq_ref,
                         *, tile_s, win, tap_offsets):
    """IN phase 1: conv + bias -> un-normalized bf16 tile + masked sum / sumsq."""
    s_idx = pl.program_id(1)
    acc = _accum_taps(x_ref, w_ref, s_idx,
                      tile_s=tile_s, win=win, tap_offsets=tap_offsets)
    acc = acc + b_ref[...]
    o_ref[...] = acc.astype(o_ref.dtype)              # un-normalized activation

    @pl.when(s_idx == 0)
    def _():
        sum_ref[...] = jnp.zeros_like(sum_ref)
        sq_ref[...] = jnp.zeros_like(sq_ref)

    am = acc * m_ref[...]                              # single sweep for both moments
    sum_ref[...] += jnp.sum(am, axis=-1, keepdims=True)
    sq_ref[...] += jnp.sum(am * acc, axis=-1, keepdims=True)


def _scale_shift_relu_kernel(a_ref, sc_ref, sh_ref, o_ref):
    """IN phase 2: per-(sample, channel) normalize + ReLU (pure VPU)."""
    y = a_ref[...].astype(jnp.float32) * sc_ref[...] + sh_ref[...]
    o_ref[...] = jnp.maximum(y, 0.0).astype(o_ref.dtype)


# ----------------------------------------------------------------------------
# One Conv3d(k=3) + Norm + ReLU layer.
# ----------------------------------------------------------------------------
def _conv3d_norm_relu(x, w, b, *, padding, norm, eps=1e-5, bn_stats=None,
                      out_dtype=None):
    n, c_in, d, h, wd = x.shape
    c_out = w.shape[0]
    out_dtype = out_dtype if out_dtype is not None else x.dtype
    vmem_limit = _vmem_limit_bytes()

    # Zero-pad spatially once (cheap XLA pad; no 27x im2col tensor).
    xp = x if padding == 0 else jnp.pad(
        x, ((0, 0), (0, 0)) + ((padding, padding),) * 3)
    dp, hp, wp = d + 2 * padding, h + 2 * padding, wd + 2 * padding
    d_out, h_out, w_out = dp - 2, hp - 2, wp - 2

    # Conv evaluated over full padded (H, W) planes of the flattened axis so
    # that each tap is a contiguous lane slice at constant offset.
    s_big = d_out * hp * wp
    off_max = 2 * hp * wp + 2 * wp + 2
    halo = _round_up(off_max, 128)

    tile_s = _pick_tile_s(s_big, c_in, c_out, off_max, vmem_limit)
    n_s = pl.cdiv(s_big, tile_s)
    s_pad = n_s * tile_s
    sp_in = s_pad + halo
    win = tile_s + halo

    x_flat = xp.reshape(n, c_in, dp * hp * wp).astype(jnp.bfloat16)
    x_flat = jnp.pad(x_flat, ((0, 0), (0, 0), (0, sp_in - dp * hp * wp)))

    # Tap-major weights (27, C_out, C_in); order matches tap_offsets below.
    w_taps = jnp.transpose(w, (2, 3, 4, 0, 1)).reshape(27, c_out, c_in)
    w_taps = w_taps.astype(jnp.float32)
    bias = b.astype(jnp.float32)

    if norm == "BN":
        # Eval-mode BatchNorm is a per-channel affine -> fold into the GEMM.
        # TODO(synk): training-mode BatchNorm (batch statistics) would reuse
        # the two-phase IN path with the moments additionally reduced over N.
        gamma, beta, r_mean, r_var = bn_stats
        scale = gamma * jax.lax.rsqrt(r_var + eps)
        w_taps = w_taps * scale[None, :, None]
        bias = (bias - r_mean) * scale + beta

    w_taps = w_taps.astype(jnp.bfloat16)               # bf16 MXU operands
    bias2 = bias.reshape(c_out, 1)

    tap_offsets = tuple(kd * hp * wp + kh * wp + kw
                        for kd in range(3) for kh in range(3) for kw in range(3))

    grid = (n, n_s)
    x_spec = pl.BlockSpec((None, c_in, sp_in), lambda bi, si: (bi, 0, 0))
    w_spec = pl.BlockSpec((27, c_out, c_in), lambda bi, si: (0, 0, 0))
    b_spec = pl.BlockSpec((c_out, 1), lambda bi, si: (0, 0))
    o_spec = pl.BlockSpec((None, c_out, tile_s), lambda bi, si: (bi, 0, si))

    if norm != "IN":
        kernel = functools.partial(_conv_affine_relu_kernel, tile_s=tile_s,
                                   win=win, tap_offsets=tap_offsets)
        out = pl.pallas_call(
            kernel,
            out_shape=jax.ShapeDtypeStruct((n, c_out, s_pad), out_dtype),
            grid_spec=pltpu.PrefetchScalarGridSpec(
                num_scalar_prefetch=0, grid=grid,
                in_specs=[x_spec, w_spec, b_spec],
                out_specs=o_spec),
            compiler_params=pltpu.CompilerParams(
                dimension_semantics=("parallel", "parallel"),
                vmem_limit_bytes=vmem_limit),
        )(x_flat, w_taps, bias2)
    else:
        # InstanceNorm3d (affine=False, biased variance): two-phase scheme so
        # the statistics stay exact under spatial tiling.
        pos = jnp.arange(s_pad, dtype=jnp.int32)
        valid = ((pos < s_big)
                 & (pos % wp < w_out)
                 & ((pos // wp) % hp < h_out))
        mask = valid.astype(jnp.float32).reshape(1, s_pad)
        m_spec = pl.BlockSpec((1, tile_s), lambda bi, si: (0, si))
        stat_spec = pl.BlockSpec((None, c_out, 1), lambda bi, si: (bi, 0, 0))

        kernel = functools.partial(_conv_moments_kernel, tile_s=tile_s,
                                   win=win, tap_offsets=tap_offsets)
        act, ssum, ssq = pl.pallas_call(
            kernel,
            out_shape=(jax.ShapeDtypeStruct((n, c_out, s_pad), jnp.bfloat16),
                       jax.ShapeDtypeStruct((n, c_out, 1), jnp.float32),
                       jax.ShapeDtypeStruct((n, c_out, 1), jnp.float32)),
            grid_spec=pltpu.PrefetchScalarGridSpec(
                num_scalar_prefetch=0, grid=grid,
                in_specs=[x_spec, w_spec, b_spec, m_spec],
                out_specs=[o_spec, stat_spec, stat_spec]),
            compiler_params=pltpu.CompilerParams(
                dimension_semantics=("parallel", "arbitrary"),
                vmem_limit_bytes=vmem_limit),
        )(x_flat, w_taps, bias2, mask)

        # Tiny per-(sample, channel) reduction of the tile moments (wrapper).
        count = float(d_out * h_out * w_out)
        mean = ssum[:, :, 0] / count
        var = jnp.maximum(ssq[:, :, 0] / count - mean * mean, 0.0)
        rstd = jax.lax.rsqrt(var + eps)
        # NOTE: InstanceNorm3d(affine=True) would fold gamma/beta in here.
        scale = rstd.reshape(n, c_out, 1)
        shift = (-mean * rstd).reshape(n, c_out, 1)

        out = pl.pallas_call(
            _scale_shift_relu_kernel,
            out_shape=jax.ShapeDtypeStruct((n, c_out, s_pad), out_dtype),
            grid_spec=pltpu.PrefetchScalarGridSpec(
                num_scalar_prefetch=0, grid=grid,
                in_specs=[o_spec,
                          pl.BlockSpec((None, c_out, 1), lambda bi, si: (bi, 0, 0)),
                          pl.BlockSpec((None, c_out, 1), lambda bi, si: (bi, 0, 0))],
                out_specs=o_spec),
            compiler_params=pltpu.CompilerParams(
                dimension_semantics=("parallel", "parallel"),
                vmem_limit_bytes=vmem_limit),
        )(act, scale, shift)

    out = out[:, :, :s_big].reshape(n, c_out, d_out, hp, wp)
    return out[:, :, :, :h_out, :w_out]


def unet_conv_block(x, params, *, padding=1, norm="IN", eps=1e-5):
    """Pallas forward pass of UNetConvBlock: (Conv3d -> Norm -> ReLU) x 2."""
    y = _conv3d_norm_relu(x, params["w1"], params["b1"], padding=padding,
                          norm=norm, eps=eps, bn_stats=params.get("bn1"),
                          out_dtype=jnp.bfloat16)      # bf16 inter-layer activation
    y = _conv3d_norm_relu(y, params["w2"], params["b2"], padding=padding,
                          norm=norm, eps=eps, bn_stats=params.get("bn2"),
                          out_dtype=x.dtype)
    return y


# ----------------------------------------------------------------------------
# Pure-JAX reference (independent code path: lax.conv_general_dilated, f32).
# ----------------------------------------------------------------------------
def _reference_unet_conv_block(x, params, *, padding, norm, eps=1e-5):
    def conv(z, w, b):
        y = jax.lax.conv_general_dilated(
            z, w, window_strides=(1, 1, 1),
            padding=[(padding, padding)] * 3,
            dimension_numbers=("NCDHW", "OIDHW", "NCDHW"),
            precision=jax.lax.Precision.HIGHEST)
        return y + b[None, :, None, None, None]

    def apply_norm(y, bn_stats):
        if norm == "IN":
            mean = y.mean(axis=(2, 3, 4), keepdims=True)
            var = ((y - mean) ** 2).mean(axis=(2, 3, 4), keepdims=True)
            return (y - mean) / jnp.sqrt(var + eps)
        if norm == "BN":
            gamma, beta, r_mean, r_var = bn_stats
            rs = lambda a: a[None, :, None, None, None]
            return (y - rs(r_mean)) / jnp.sqrt(rs(r_var) + eps) * rs(gamma) + rs(beta)
        return y

    y = jax.nn.relu(apply_norm(conv(x, params["w1"], params["b1"]), params.get("bn1")))
    y = jax.nn.relu(apply_norm(conv(y, params["w2"], params["b2"]), params.get("bn2")))
    return y


if __name__ == "__main__":
    key = jax.random.PRNGKey(0)
    ks = jax.random.split(key, 9)
    n, c_in, c_out = 2, 4, 8
    d, h, w = 8, 16, 16

    # Keep inputs/weights exactly representable in bf16 so the comparison
    # isolates the kernel's mixed-precision policy rather than input rounding.
    grid = lambda a: a.astype(jnp.bfloat16).astype(jnp.float32)

    x = grid(jax.random.normal(ks[0], (n, c_in, d, h, w), jnp.float32))
    params = {
        "w1": grid(0.2 * jax.random.normal(ks[1], (c_out, c_in, 3, 3, 3), jnp.float32)),
        "b1": grid(0.3 * jax.random.normal(ks[2], (c_out,), jnp.float32)),
        "w2": grid(0.2 * jax.random.normal(ks[3], (c_out, c_out, 3, 3, 3), jnp.float32)),
        "b2": grid(0.3 * jax.random.normal(ks[4], (c_out,), jnp.float32)),
        "bn1": tuple(grid(v) for v in (
            1.0 + 0.1 * jax.random.normal(ks[5], (c_out,), jnp.float32),        # gamma
            0.1 * jax.random.normal(ks[6], (c_out,), jnp.float32),              # beta
            0.1 * jax.random.normal(ks[7], (c_out,), jnp.float32),              # running_mean
            0.5 + jnp.abs(jax.random.normal(ks[8], (c_out,), jnp.float32)))),   # running_var
    }
    params["bn2"] = params["bn1"]

    # Tolerance: the Pallas path runs bf16 MXU operands + a bf16 inter-layer
    # activation (per the performance review) against an f32 HIGHEST-precision
    # reference, so a few-percent disagreement on O(1) activations is expected.
    RTOL = ATOL = 5e-2

    # norm='IN', padding=1 (the common UNet configuration) -> two-phase IN path.
    out = jax.block_until_ready(unet_conv_block(x, params, padding=1, norm="IN"))
    ref = _reference_unet_conv_block(x, params, padding=1, norm="IN")
    assert out.shape == (n, c_out, d, h, w), out.shape
    assert bool(jnp.allclose(out, ref, rtol=RTOL, atol=ATOL)), \
        f"IN mismatch, max abs err {float(jnp.max(jnp.abs(out - ref)))}"

    # norm='BN' (eval-mode, folded) with padding=0 -> fully fused single-pass path.
    out_bn = jax.block_until_ready(unet_conv_block(x, params, padding=0, norm="BN"))
    ref_bn = _reference_unet_conv_block(x, params, padding=0, norm="BN")
    assert out_bn.shape == (n, c_out, d - 4, h - 4, w - 4), out_bn.shape
    assert bool(jnp.allclose(out_bn, ref_bn, rtol=RTOL, atol=ATOL)), \
        f"BN mismatch, max abs err {float(jnp.max(jnp.abs(out_bn - ref_bn)))}"

    print("KERNEL_OK")
</pallas_src>

<mosaic_0001>
module attributes {stable_mosaic.version = 11 : i64} {
  func.func @_conv_moments_kernel(%arg0: i32, %arg1: i32, %arg2: memref<1x4x4864xbf16, #tpu.memory_space<vmem>>, %arg3: memref<27x8x4xbf16, #tpu.memory_space<vmem>>, %arg4: memref<8x1xf32, #tpu.memory_space<vmem>>, %arg5: memref<1x2048xf32, #tpu.memory_space<vmem>>, %arg6: memref<1x8x2048xbf16, #tpu.memory_space<vmem>>, %arg7: memref<1x8x1xf32, #tpu.memory_space<vmem>>, %arg8: memref<1x8x1xf32, #tpu.memory_space<vmem>>) attributes {dimension_semantics = [#tpu.dimension_semantics<parallel>, #tpu.dimension_semantics<arbitrary>], iteration_bounds = array<i64: 2, 2>, scalar_prefetch = 0 : i64, scratch_operands = 0 : i64, tpu.core_type = #tpu.core_type<tc>, window_params = [{transform_indices = @transform_0, window_bounds = array<i64: 1, 4, 4864>}, {pipeline_mode = #tpu.pipeline_mode<synchronous>, transform_indices = @transform_1, window_bounds = array<i64: 27, 8, 4>}, {pipeline_mode = #tpu.pipeline_mode<synchronous>, transform_indices = @transform_2, window_bounds = array<i64: 8, 1>}, {transform_indices = @transform_3, window_bounds = array<i64: 1, 2048>}, {transform_indices = @transform_4, window_bounds = array<i64: 1, 8, 2048>}, {transform_indices = @transform_5, window_bounds = array<i64: 1, 8, 1>}, {transform_indices = @transform_6, window_bounds = array<i64: 1, 8, 1>}]} {
    %c2048_i32 = arith.constant 2048 : i32
    %0 = arith.muli %arg1, %c2048_i32 : i32
    %1 = tpu.assume_multiple %0, 128 : i32
    %c0 = arith.constant 0 : index
    %c0_0 = arith.constant 0 : index
    %2 = arith.index_cast %1 : i32 to index
    %3 = vector.load %arg2[%c0, %c0_0, %2] : memref<1x4x4864xbf16, #tpu.memory_space<vmem>>, vector<1x4x2816xbf16>
    %4 = vector.shape_cast %3 : vector<1x4x2816xbf16> to vector<4x2816xbf16>
    %5 = vector.extract_strided_slice %4 {offsets = [0, 0], sizes = [4, 2048], strides = [1, 1]} : vector<4x2816xbf16> to vector<4x2048xbf16>
    %c0_1 = arith.constant 0 : index
    %c0_2 = arith.constant 0 : index
    %c0_3 = arith.constant 0 : index
    %6 = vector.load %arg3[%c0_1, %c0_2, %c0_3] : memref<27x8x4xbf16, #tpu.memory_space<vmem>>, vector<1x8x4xbf16>
    %7 = vector.shape_cast %6 : vector<1x8x4xbf16> to vector<8x4xbf16>
    %cst = arith.constant dense<0.000000e+00> : vector<8x2048xf32>
    %8 = tpu.matmul %7, %5, %cst {dimension_numbers = #tpu.dot_dimension_numbers<[1], [0], [0], [1], [0, 0, 1, 1], [], []>} : vector<8x4xbf16>, vector<4x2048xbf16>, vector<8x2048xf32> -> vector<8x2048xf32>
    %9 = vector.extract_strided_slice %4 {offsets = [0, 1], sizes = [4, 2048], strides = [1, 1]} : vector<4x2816xbf16> to vector<4x2048xbf16>
    %c1 = arith.constant 1 : index
    %c0_4 = arith.constant 0 : index
    %c0_5 = arith.constant 0 : index
    %10 = vector.load %arg3[%c1, %c0_4, %c0_5] : memref<27x8x4xbf16, #tpu.memory_space<vmem>>, vector<1x8x4xbf16>
    %11 = vector.shape_cast %10 : vector<1x8x4xbf16> to vector<8x4xbf16>
    %cst_6 = arith.constant dense<0.000000e+00> : vector<8x2048xf32>
    %12 = tpu.matmul %11, %9, %cst_6 {dimension_numbers = #tpu.dot_dimension_numbers<[1], [0], [0], [1], [0, 0, 1, 1], [], []>} : vector<8x4xbf16>, vector<4x2048xbf16>, vector<8x2048xf32> -> vector<8x2048xf32>
    %13 = arith.addf %8, %12 : vector<8x2048xf32>
    %14 = vector.extract_strided_slice %4 {offsets = [0, 2], sizes = [4, 2048], strides = [1, 1]} : vector<4x2816xbf16> to vector<4x2048xbf16>
    %c2 = arith.constant 2 : index
    %c0_7 = arith.constant 0 : index
    %c0_8 = arith.constant 0 : index
    %15 = vector.load %arg3[%c2, %c0_7, %c0_8] : memref<27x8x4xbf16, #tpu.memory_space<vmem>>, vector<1x8x4xbf16>
    %16 = vector.shape_cast %15 : vector<1x8x4xbf16> to vector<8x4xbf16>
    %cst_9 = arith.constant dense<0.000000e+00> : vector<8x2048xf32>
    %17 = tpu.matmul %16, %14, %cst_9 {dimension_numbers = #tpu.dot_dimension_numbers<[1], [0], [0], [1], [0, 0, 1, 1], [], []>} : vector<8x4xbf16>, vector<4x2048xbf16>, vector<8x2048xf32> -> vector<8x2048xf32>
    %18 = arith.addf %13, %17 : vector<8x2048xf32>
    %19 = vector.extract_strided_slice %4 {offsets = [0, 18], sizes = [4, 2048], strides = [1, 1]} : vector<4x2816xbf16> to vector<4x2048xbf16>
    %c3 = arith.constant 3 : index
    %c0_10 = arith.constant 0 : index
    %c0_11 = arith.constant 0 : index
    %20 = vector.load %arg3[%c3, %c0_10, %c0_11] : memref<27x8x4xbf16, #tpu.memory_space<vmem>>, vector<1x8x4xbf16>
    %21 = vector.shape_cast %20 : vector<1x8x4xbf16> to vector<8x4xbf16>
    %cst_12 = arith.constant dense<0.000000e+00> : vector<8x2048xf32>
    %22 = tpu.matmul %21, %19, %cst_12 {dimension_numbers = #tpu.dot_dimension_numbers<[1], [0], [0], [1], [0, 0, 1, 1], [], []>} : vector<8x4xbf16>, vector<4x2048xbf16>, vector<8x2048xf32> -> vector<8x2048xf32>
    %23 = arith.addf %18, %22 : vector<8x2048xf32>
    %24 = vector.extract_strided_slice %4 {offsets = [0, 19], sizes = [4, 2048], strides = [1, 1]} : vector<4x2816xbf16> to vector<4x2048xbf16>
    %c4 = arith.constant 4 : index
    %c0_13 = arith.constant 0 : index
    %c0_14 = arith.constant 0 : index
    %25 = vector.load %arg3[%c4, %c0_13, %c0_14] : memref<27x8x4xbf16, #tpu.memory_space<vmem>>, vector<1x8x4xbf16>
    %26 = vector.shape_cast %25 : vector<1x8x4xbf16> to vector<8x4xbf16>
    %cst_15 = arith.constant dense<0.000000e+00> : vector<8x2048xf32>
    %27 = tpu.matmul %26, %24, %cst_15 {dimension_numbers = #tpu.dot_dimension_numbers<[1], [0], [0], [1], [0, 0, 1, 1], [], []>} : vector<8x4xbf16>, vector<4x2048xbf16>, vector<8x2048xf32> -> vector<8x2048xf32>
    %28 = arith.addf %23, %27 : vector<8x2048xf32>
    %29 = vector.extract_strided_slice %4 {offsets = [0, 20], sizes = [4, 2048], strides = [1, 1]} : vector<4x2816xbf16> to vector<4x2048xbf16>
    %c5 = arith.constant 5 : index
    %c0_16 = arith.constant 0 : index
    %c0_17 = arith.constant 0 : index
    %30 = vector.load %arg3[%c5, %c0_16, %c0_17] : memref<27x8x4xbf16, #tpu.memory_space<vmem>>, vector<1x8x4xbf16>
    %31 = vector.shape_cast %30 : vector<1x8x4xbf16> to vector<8x4xbf16>
    %cst_18 = arith.constant dense<0.000000e+00> : vector<8x2048xf32>
    %32 = tpu.matmul %31, %29, %cst_18 {dimension_numbers = #tpu.dot_dimension_numbers<[1], [0], [0], [1], [0, 0, 1, 1], [], []>} : vector<8x4xbf16>, vector<4x2048xbf16>, vector<8x2048xf32> -> vector<8x2048xf32>
    %33 = arith.addf %28, %32 : vector<8x2048xf32>
    %34 = vector.extract_strided_slice %4 {offsets = [0, 36], sizes = [4, 2048], strides = [1, 1]} : vector<4x2816xbf16> to vector<4x2048xbf16>
    %c6 = arith.constant 6 : index
    %c0_19 = arith.constant 0 : index
    %c0_20 = arith.constant 0 : index
    %35 = vector.load %arg3[%c6, %c0_19, %c0_20] : memref<27x8x4xbf16, #tpu.memory_space<vmem>>, vector<1x8x4xbf16>
    %36 = vector.shape_cast %35 : vector<1x8x4xbf16> to vector<8x4xbf16>
    %cst_21 = arith.constant dense<0.000000e+00> : vector<8x2048xf32>
    %37 = tpu.matmul %36, %34, %cst_21 {dimension_numbers = #tpu.dot_dimension_numbers<[1], [0], [0], [1], [0, 0, 1, 1], [], []>} : vector<8x4xbf16>, vector<4x2048xbf16>, vector<8x2048xf32> -> vector<8x2048xf32>
    %38 = arith.addf %33, %37 : vector<8x2048xf32>
    %39 = vector.extract_strided_slice %4 {offsets = [0, 37], sizes = [4, 2048], strides = [1, 1]} : vector<4x2816xbf16> to vector<4x2048xbf16>
    %c7 = arith.constant 7 : index
    %c0_22 = arith.constant 0 : index
    %c0_23 = arith.constant 0 : index
    %40 = vector.load %arg3[%c7, %c0_22, %c0_23] : memref<27x8x4xbf16, #tpu.memory_space<vmem>>, vector<1x8x4xbf16>
    %41 = vector.shape_cast %40 : vector<1x8x4xbf16> to vector<8x4xbf16>
    %cst_24 = arith.constant dense<0.000000e+00> : vector<8x2048xf32>
    %42 = tpu.matmul %41, %39, %cst_24 {dimension_numbers = #tpu.dot_dimension_numbers<[1], [0], [0], [1], [0, 0, 1, 1], [], []>} : vector<8x4xbf16>, vector<4x2048xbf16>, vector<8x2048xf32> -> vector<8x2048xf32>
    %43 = arith.addf %38, %42 : vector<8x2048xf32>
    %44 = vector.extract_strided_slice %4 {offsets = [0, 38], sizes = [4, 2048], strides = [1, 1]} : vector<4x2816xbf16> to vector<4x2048xbf16>
    %c8 = arith.constant 8 : index
    %c0_25 = arith.constant 0 : index
    %c0_26 = arith.constant 0 : index
    %45 = vector.load %arg3[%c8, %c0_25, %c0_26] : memref<27x8x4xbf16, #tpu.memory_space<vmem>>, vector<1x8x4xbf16>
    %46 = vector.shape_cast %45 : vector<1x8x4xbf16> to vector<8x4xbf16>
    %cst_27 = arith.constant dense<0.000000e+00> : vector<8x2048xf32>
    %47 = tpu.matmul %46, %44, %cst_27 {dimension_numbers = #tpu.dot_dimension_numbers<[1], [0], [0], [1], [0, 0, 1, 1], [], []>} : vector<8x4xbf16>, vector<4x2048xbf16>, vector<8x2048xf32> -> vector<8x2048xf32>
    %48 = arith.addf %43, %47 : vector<8x2048xf32>
    %49 = vector.extract_strided_slice %4 {offsets = [0, 324], sizes = [4, 2048], strides = [1, 1]} : vector<4x2816xbf16> to vector<4x2048xbf16>
    %c9 = arith.constant 9 : index
    %c0_28 = arith.constant 0 : index
    %c0_29 = arith.constant 0 : index
    %50 = vector.load %arg3[%c9, %c0_28, %c0_29] : memref<27x8x4xbf16, #tpu.memory_space<vmem>>, vector<1x8x4xbf16>
    %51 = vector.shape_cast %50 : vector<1x8x4xbf16> to vector<8x4xbf16>
    %cst_30 = arith.constant dense<0.000000e+00> : vector<8x2048xf32>
    %52 = tpu.matmul %51, %49, %cst_30 {dimension_numbers = #tpu.dot_dimension_numbers<[1], [0], [0], [1], [0, 0, 1, 1], [], []>} : vector<8x4xbf16>, vector<4x2048xbf16>, vector<8x2048xf32> -> vector<8x2048xf32>
    %53 = arith.addf %48, %52 : vector<8x2048xf32>
    %54 = vector.extract_strided_slice %4 {offsets = [0, 325], sizes = [4, 2048], strides = [1, 1]} : vector<4x2816xbf16> to vector<4x2048xbf16>
    %c10 = arith.constant 10 : index
    %c0_31 = arith.constant 0 : index
    %c0_32 = arith.constant 0 : index
    %55 = vector.load %arg3[%c10, %c0_31, %c0_32] : memref<27x8x4xbf16, #tpu.memory_space<vmem>>, vector<1x8x4xbf16>
    %56 = vector.shape_cast %55 : vector<1x8x4xbf16> to vector<8x4xbf16>
    %cst_33 = arith.constant dense<0.000000e+00> : vector<8x2048xf32>
    %57 = tpu.matmul %56, %54, %cst_33 {dimension_numbers = #tpu.dot_dimension_numbers<[1], [0], [0], [1], [0, 0, 1, 1], [], []>} : vector<8x4xbf16>, vector<4x2048xbf16>, vector<8x2048xf32> -> vector<8x2048xf32>
    %58 = arith.addf %53, %57 : vector<8x2048xf32>
    %59 = vector.extract_strided_slice %4 {offsets = [0, 326], sizes = [4, 2048], strides = [1, 1]} : vector<4x2816xbf16> to vector<4x2048xbf16>
    %c11 = arith.constant 11 : index
    %c0_34 = arith.constant 0 : index
    %c0_35 = arith.constant 0 : index
    %60 = vector.load %arg3[%c11, %c0_34, %c0_35] : memref<27x8x4xbf16, #tpu.memory_space<vmem>>, vector<1x8x4xbf16>
    %61 = vector.shape_cast %60 : vector<1x8x4xbf16> to vector<8x4xbf16>
    %cst_36 = arith.constant dense<0.000000e+00> : vector<8x2048xf32>
    %62 = tpu.matmul %61, %59, %cst_36 {dimension_numbers = #tpu.dot_dimension_numbers<[1], [0], [0], [1], [0, 0, 1, 1], [], []>} : vector<8x4xbf16>, vector<4x2048xbf16>, vector<8x2048xf32> -> vector<8x2048xf32>
    %63 = arith.addf %58, %62 : vector<8x2048xf32>
    %64 = vector.extract_strided_slice %4 {offsets = [0, 342], sizes = [4, 2048], strides = [1, 1]} : vector<4x2816xbf16> to vector<4x2048xbf16>
    %c12 = arith.constant 12 : index
    %c0_37 = arith.constant 0 : index
    %c0_38 = arith.constant 0 : index
    %65 = vector.load %arg3[%c12, %c0_37, %c0_38] : memref<27x8x4xbf16, #tpu.memory_space<vmem>>, vector<1x8x4xbf16>
    %66 = vector.shape_cast %65 : vector<1x8x4xbf16> to vector<8x4xbf16>
    %cst_39 = arith.constant dense<0.000000e+00> : vector<8x2048xf32>
    %67 = tpu.matmul %66, %64, %cst_39 {dimension_numbers = #tpu.dot_dimension_numbers<[1], [0], [0], [1], [0, 0, 1, 1], [], []>} : vector<8x4xbf16>, vector<4x2048xbf16>, vector<8x2048xf32> -> vector<8x2048xf32>
    %68 = arith.addf %63, %67 : vector<8x2048xf32>
    %69 = vector.extract_strided_slice %4 {offsets = [0, 343], sizes = [4, 2048], strides = [1, 1]} : vector<4x2816xbf16> to vector<4x2048xbf16>
    %c13 = arith.constant 13 : index
    %c0_40 = arith.constant 0 : index
    %c0_41 = arith.constant 0 : index
    %70 = vector.load %arg3[%c13, %c0_40, %c0_41] : memref<27x8x4xbf16, #tpu.memory_space<vmem>>, vector<1x8x4xbf16>
    %71 = vector.shape_cast %70 : vector<1x8x4xbf16> to vector<8x4xbf16>
    %cst_42 = arith.constant dense<0.000000e+00> : vector<8x2048xf32>
    %72 = tpu.matmul %71, %69, %cst_42 {dimension_numbers = #tpu.dot_dimension_numbers<[1], [0], [0], [1], [0, 0, 1, 1], [], []>} : vector<8x4xbf16>, vector<4x2048xbf16>, vector<8x2048xf32> -> vector<8x2048xf32>
    %73 = arith.addf %68, %72 : vector<8x2048xf32>
    %74 = vector.extract_strided_slice %4 {offsets = [0, 344], sizes = [4, 2048], strides = [1, 1]} : vector<4x2816xbf16> to vector<4x2048xbf16>
    %c14 = arith.constant 14 : index
    %c0_43 = arith.constant 0 : index
    %c0_44 = arith.constant 0 : index
    %75 = vector.load %arg3[%c14, %c0_43, %c0_44] : memref<27x8x4xbf16, #tpu.memory_space<vmem>>, vector<1x8x4xbf16>
    %76 = vector.shape_cast %75 : vector<1x8x4xbf16> to vector<8x4xbf16>
    %cst_45 = arith.constant dense<0.000000e+00> : vector<8x2048xf32>
    %77 = tpu.matmul %76, %74, %cst_45 {dimension_numbers = #tpu.dot_dimension_numbers<[1], [0], [0], [1], [0, 0, 1, 1], [], []>} : vector<8x4xbf16>, vector<4x2048xbf16>, vector<8x2048xf32> -> vector<8x2048xf32>
    %78 = arith.addf %73, %77 : vector<8x2048xf32>
    %79 = vector.extract_strided_slice %4 {offsets = [0, 360], sizes = [4, 2048], strides = [1, 1]} : vector<4x2816xbf16> to vector<4x2048xbf16>
    %c15 = arith.constant 15 : index
    %c0_46 = arith.constant 0 : index
    %c0_47 = arith.constant 0 : index
    %80 = vector.load %arg3[%c15, %c0_46, %c0_47] : memref<27x8x4xbf16, #tpu.memory_space<vmem>>, vector<1x8x4xbf16>
    %81 = vector.shape_cast %80 : vector<1x8x4xbf16> to vector<8x4xbf16>
    %cst_48 = arith.constant dense<0.000000e+00> : vector<8x2048xf32>
    %82 = tpu.matmul %81, %79, %cst_48 {dimension_numbers = #tpu.dot_dimension_numbers<[1], [0], [0], [1], [0, 0, 1, 1], [], []>} : vector<8x4xbf16>, vector<4x2048xbf16>, vector<8x2048xf32> -> vector<8x2048xf32>
    %83 = arith.addf %78, %82 : vector<8x2048xf32>
    %84 = vector.extract_strided_slice %4 {offsets = [0, 361], sizes = [4, 2048], strides = [1, 1]} : vector<4x2816xbf16> to vector<4x2048xbf16>
    %c16 = arith.constant 16 : index
    %c0_49 = arith.constant 0 : index
    %c0_50 = arith.constant 0 : index
    %85 = vector.load %arg3[%c16, %c0_49, %c0_50] : memref<27x8x4xbf16, #tpu.memory_space<vmem>>, vector<1x8x4xbf16>
    %86 = vector.shape_cast %85 : vector<1x8x4xbf16> to vector<8x4xbf16>
    %cst_51 = arith.constant dense<0.000000e+00> : vector<8x2048xf32>
    %87 = tpu.matmul %86, %84, %cst_51 {dimension_numbers = #tpu.dot_dimension_numbers<[1], [0], [0], [1], [0, 0, 1, 1], [], []>} : vector<8x4xbf16>, vector<4x2048xbf16>, vector<8x2048xf32> -> vector<8x2048xf32>
    %88 = arith.addf %83, %87 : vector<8x2048xf32>
    %89 = vector.extract_strided_slice %4 {offsets = [0, 362], sizes = [4, 2048], strides = [1, 1]} : vector<4x2816xbf16> to vector<4x2048xbf16>
    %c17 = arith.constant 17 : index
    %c0_52 = arith.constant 0 : index
    %c0_53 = arith.constant 0 : index
    %90 = vector.load %arg3[%c17, %c0_52, %c0_53] : memref<27x8x4xbf16, #tpu.memory_space<vmem>>, vector<1x8x4xbf16>
    %91 = vector.shape_cast %90 : vector<1x8x4xbf16> to vector<8x4xbf16>
    %cst_54 = arith.constant dense<0.000000e+00> : vector<8x2048xf32>
    %92 = tpu.matmul %91, %89, %cst_54 {dimension_numbers = #tpu.dot_dimension_numbers<[1], [0], [0], [1], [0, 0, 1, 1], [], []>} : vector<8x4xbf16>, vector<4x2048xbf16>, vector<8x2048xf32> -> vector<8x2048xf32>
    %93 = arith.addf %88, %92 : vector<8x2048xf32>
    %94 = vector.extract_strided_slice %4 {offsets = [0, 648], sizes = [4, 2048], strides = [1, 1]} : vector<4x2816xbf16> to vector<4x2048xbf16>
    %c18 = arith.constant 18 : index
    %c0_55 = arith.constant 0 : index
    %c0_56 = arith.constant 0 : index
    %95 = vector.load %arg3[%c18, %c0_55, %c0_56] : memref<27x8x4xbf16, #tpu.memory_space<vmem>>, vector<1x8x4xbf16>
    %96 = vector.shape_cast %95 : vector<1x8x4xbf16> to vector<8x4xbf16>
    %cst_57 = arith.constant dense<0.000000e+00> : vector<8x2048xf32>
    %97 = tpu.matmul %96, %94, %cst_57 {dimension_numbers = #tpu.dot_dimension_numbers<[1], [0], [0], [1], [0, 0, 1, 1], [], []>} : vector<8x4xbf16>, vector<4x2048xbf16>, vector<8x2048xf32> -> vector<8x2048xf32>
    %98 = arith.addf %93, %97 : vector<8x2048xf32>
    %99 = vector.extract_strided_slice %4 {offsets = [0, 649], sizes = [4, 2048], strides = [1, 1]} : vector<4x2816xbf16> to vector<4x2048xbf16>
    %c19 = arith.constant 19 : index
    %c0_58 = arith.constant 0 : index
    %c0_59 = arith.constant 0 : index
    %100 = vector.load %arg3[%c19, %c0_58, %c0_59] : memref<27x8x4xbf16, #tpu.memory_space<vmem>>, vector<1x8x4xbf16>
    %101 = vector.shape_cast %100 : vector<1x8x4xbf16> to vector<8x4xbf16>
    %cst_60 = arith.constant dense<0.000000e+00> : vector<8x2048xf32>
    %102 = tpu.matmul %101, %99, %cst_60 {dimension_numbers = #tpu.dot_dimension_numbers<[1], [0], [0], [1], [0, 0, 1, 1], [], []>} : vector<8x4xbf16>, vector<4x2048xbf16>, vector<8x2048xf32> -> vector<8x2048xf32>
    %103 = arith.addf %98, %102 : vector<8x2048xf32>
    %104 = vector.extract_strided_slice %4 {offsets = [0, 650], sizes = [4, 2048], strides = [1, 1]} : vector<4x2816xbf16> to vector<4x2048xbf16>
    %c20 = arith.constant 20 : index
    %c0_61 = arith.constant 0 : index
    %c0_62 = arith.constant 0 : index
    %105 = vector.load %arg3[%c20, %c0_61, %c0_62] : memref<27x8x4xbf16, #tpu.memory_space<vmem>>, vector<1x8x4xbf16>
    %106 = vector.shape_cast %105 : vector<1x8x4xbf16> to vector<8x4xbf16>
    %cst_63 = arith.constant dense<0.000000e+00> : vector<8x2048xf32>
    %107 = tpu.matmul %106, %104, %cst_63 {dimension_numbers = #tpu.dot_dimension_numbers<[1], [0], [0], [1], [0, 0, 1, 1], [], []>} : vector<8x4xbf16>, vector<4x2048xbf16>, vector<8x2048xf32> -> vector<8x2048xf32>
    %108 = arith.addf %103, %107 : vector<8x2048xf32>
    %109 = vector.extract_strided_slice %4 {offsets = [0, 666], sizes = [4, 2048], strides = [1, 1]} : vector<4x2816xbf16> to vector<4x2048xbf16>
    %c21 = arith.constant 21 : index
    %c0_64 = arith.constant 0 : index
    %c0_65 = arith.constant 0 : index
    %110 = vector.load %arg3[%c21, %c0_64, %c0_65] : memref<27x8x4xbf16, #tpu.memory_space<vmem>>, vector<1x8x4xbf16>
    %111 = vector.shape_cast %110 : vector<1x8x4xbf16> to vector<8x4xbf16>
    %cst_66 = arith.constant dense<0.000000e+00> : vector<8x2048xf32>
    %112 = tpu.matmul %111, %109, %cst_66 {dimension_numbers = #tpu.dot_dimension_numbers<[1], [0], [0], [1], [0, 0, 1, 1], [], []>} : vector<8x4xbf16>, vector<4x2048xbf16>, vector<8x2048xf32> -> vector<8x2048xf32>
    %113 = arith.addf %108, %112 : vector<8x2048xf32>
    %114 = vector.extract_strided_slice %4 {offsets = [0, 667], sizes = [4, 2048], strides = [1, 1]} : vector<4x2816xbf16> to vector<4x2048xbf16>
    %c22 = arith.constant 22 : index
    %c0_67 = arith.constant 0 : index
    %c0_68 = arith.constant 0 : index
    %115 = vector.load %arg3[%c22, %c0_67, %c0_68] : memref<27x8x4xbf16, #tpu.memory_space<vmem>>, vector<1x8x4xbf16>
    %116 = vector.shape_cast %115 : vector<1x8x4xbf16> to vector<8x4xbf16>
    %cst_69 = arith.constant dense<0.000000e+00> : vector<8x2048xf32>
    %117 = tpu.matmul %116, %114, %cst_69 {dimension_numbers = #tpu.dot_dimension_numbers<[1], [0], [0], [1], [0, 0, 1, 1], [], []>} : vector<8x4xbf16>, vector<4x2048xbf16>, vector<8x2048xf32> -> vector<8x2048xf32>
    %118 = arith.addf %113, %117 : vector<8x2048xf32>
    %119 = vector.extract_strided_slice %4 {offsets = [0, 668], sizes = [4, 2048], strides = [1, 1]} : vector<4x2816xbf16> to vector<4x2048xbf16>
    %c23 = arith.constant 23 : index
    %c0_70 = arith.constant 0 : index
    %c0_71 = arith.constant 0 : index
    %120 = vector.load %arg3[%c23, %c0_70, %c0_71] : memref<27x8x4xbf16, #tpu.memory_space<vmem>>, vector<1x8x4xbf16>
    %121 = vector.shape_cast %120 : vector<1x8x4xbf16> to vector<8x4xbf16>
    %cst_72 = arith.constant dense<0.000000e+00> : vector<8x2048xf32>
    %122 = tpu.matmul %121, %119, %cst_72 {dimension_numbers = #tpu.dot_dimension_numbers<[1], [0], [0], [1], [0, 0, 1, 1], [], []>} : vector<8x4xbf16>, vector<4x2048xbf16>, vector<8x2048xf32> -> vector<8x2048xf32>
    %123 = arith.addf %118, %122 : vector<8x2048xf32>
    %124 = vector.extract_strided_slice %4 {offsets = [0, 684], sizes = [4, 2048], strides = [1, 1]} : vector<4x2816xbf16> to vector<4x2048xbf16>
    %c24 = arith.constant 24 : index
    %c0_73 = arith.constant 0 : index
    %c0_74 = arith.constant 0 : index
    %125 = vector.load %arg3[%c24, %c0_73, %c0_74] : memref<27x8x4xbf16, #tpu.memory_space<vmem>>, vector<1x8x4xbf16>
    %126 = vector.shape_cast %125 : vector<1x8x4xbf16> to vector<8x4xbf16>
    %cst_75 = arith.constant dense<0.000000e+00> : vector<8x2048xf32>
    %127 = tpu.matmul %126, %124, %cst_75 {dimension_numbers = #tpu.dot_dimension_numbers<[1], [0], [0], [1], [0, 0, 1, 1], [], []>} : vector<8x4xbf16>, vector<4x2048xbf16>, vector<8x2048xf32> -> vector<8x2048xf32>
    %128 = arith.addf %123, %127 : vector<8x2048xf32>
    %129 = vector.extract_strided_slice %4 {offsets = [0, 685], sizes = [4, 2048], strides = [1, 1]} : vector<4x2816xbf16> to vector<4x2048xbf16>
    %c25 = arith.constant 25 : index
    %c0_76 = arith.constant 0 : index
    %c0_77 = arith.constant 0 : index
    %130 = vector.load %arg3[%c25, %c0_76, %c0_77] : memref<27x8x4xbf16, #tpu.memory_space<vmem>>, vector<1x8x4xbf16>
    %131 = vector.shape_cast %130 : vector<1x8x4xbf16> to vector<8x4xbf16>
    %cst_78 = arith.constant dense<0.000000e+00> : vector<8x2048xf32>
    %132 = tpu.matmul %131, %129, %cst_78 {dimension_numbers = #tpu.dot_dimension_numbers<[1], [0], [0], [1], [0, 0, 1, 1], [], []>} : vector<8x4xbf16>, vector<4x2048xbf16>, vector<8x2048xf32> -> vector<8x2048xf32>
    %133 = arith.addf %128, %132 : vector<8x2048xf32>
    %134 = vector.extract_strided_slice %4 {offsets = [0, 686], sizes = [4, 2048], strides = [1, 1]} : vector<4x2816xbf16> to vector<4x2048xbf16>
    %c26 = arith.constant 26 : index
    %c0_79 = arith.constant 0 : index
    %c0_80 = arith.constant 0 : index
    %135 = vector.load %arg3[%c26, %c0_79, %c0_80] : memref<27x8x4xbf16, #tpu.memory_space<vmem>>, vector<1x8x4xbf16>
    %136 = vector.shape_cast %135 : vector<1x8x4xbf16> to vector<8x4xbf16>
    %cst_81 = arith.constant dense<0.000000e+00> : vector<8x2048xf32>
    %137 = tpu.matmul %136, %134, %cst_81 {dimension_numbers = #tpu.dot_dimension_numbers<[1], [0], [0], [1], [0, 0, 1, 1], [], []>} : vector<8x4xbf16>, vector<4x2048xbf16>, vector<8x2048xf32> -> vector<8x2048xf32>
    %138 = arith.addf %133, %137 : vector<8x2048xf32>
    %c0_82 = arith.constant 0 : index
    %c0_83 = arith.constant 0 : index
    %139 = vector.load %arg4[%c0_82, %c0_83] : memref<8x1xf32, #tpu.memory_space<vmem>>, vector<8x1xf32>
    %140 = vector.broadcast %139 : vector<8x1xf32> to vector<8x2048xf32>
    %141 = arith.addf %138, %140 : vector<8x2048xf32>
    %142 = arith.truncf %141 : vector<8x2048xf32> to vector<8x2048xbf16>
    %c0_84 = arith.constant 0 : index
    %c0_85 = arith.constant 0 : index
    %c0_86 = arith.constant 0 : index
    %143 = vector.load %arg6[%c0_84, %c0_85, %c0_86] : memref<1x8x2048xbf16, #tpu.memory_space<vmem>>, vector<1x8x2048xbf16>
    %144 = vector.shape_cast %143 : vector<1x8x2048xbf16> to vector<8x2048xbf16>
    %145 = vector.shape_cast %142 : vector<8x2048xbf16> to vector<1x8x2048xbf16>
    tpu.vector_store %arg6[%c0_84, %c0_85, %c0_86], %145 {strides = array<i32>} : memref<1x8x2048xbf16, #tpu.memory_space<vmem>>, vector<1x8x2048xbf16>,
    %c0_i32 = arith.constant 0 : i32
    %146 = arith.cmpi eq, %arg1, %c0_i32 : i32
    %147 = arith.extui %146 : i1 to i32
    %c0_i32_87 = arith.constant 0 : i32
    %148 = arith.cmpi ne, %147, %c0_i32_87 : i32
    scf.if %148 {
      %cst_104 = arith.constant 0.000000e+00 : f32
      %169 = vector.broadcast %cst_104 : f32 to vector<8x1xf32>
      %c0_105 = arith.constant 0 : index
      %c0_106 = arith.constant 0 : index
      %c0_107 = arith.constant 0 : index
      %170 = vector.load %arg7[%c0_105, %c0_106, %c0_107] : memref<1x8x1xf32, #tpu.memory_space<vmem>>, vector<1x8x1xf32>
      %171 = vector.shape_cast %170 : vector<1x8x1xf32> to vector<8x1xf32>
      %172 = vector.shape_cast %169 : vector<8x1xf32> to vector<1x8x1xf32>
      tpu.vector_store %arg7[%c0_105, %c0_106, %c0_107], %172 {strides = array<i32>} : memref<1x8x1xf32, #tpu.memory_space<vmem>>, vector<1x8x1xf32>,
      %cst_108 = arith.constant 0.000000e+00 : f32
      %173 = vector.broadcast %cst_108 : f32 to vector<8x1xf32>
      %c0_109 = arith.constant 0 : index
      %c0_110 = arith.constant 0 : index
      %c0_111 = arith.constant 0 : index
      %174 = vector.load %arg8[%c0_109, %c0_110, %c0_111] : memref<1x8x1xf32, #tpu.memory_space<vmem>>, vector<1x8x1xf32>
      %175 = vector.shape_cast %174 : vector<1x8x1xf32> to vector<8x1xf32>
      %176 = vector.shape_cast %173 : vector<8x1xf32> to vector<1x8x1xf32>
      tpu.vector_store %arg8[%c0_109, %c0_110, %c0_111], %176 {strides = array<i32>} : memref<1x8x1xf32, #tpu.memory_space<vmem>>, vector<1x8x1xf32>,
    } else {
    }
    %c0_88 = arith.constant 0 : index
    %c0_89 = arith.constant 0 : index
    %149 = vector.load %arg5[%c0_88, %c0_89] : memref<1x2048xf32, #tpu.memory_space<vmem>>, vector<1x2048xf32>
    %150 = vector.broadcast %149 : vector<1x2048xf32> to vector<8x2048xf32>
    %151 = arith.mulf %141, %150 : vector<8x2048xf32>
    %c0_90 = arith.constant 0 : index
    %c0_91 = arith.constant 0 : index
    %c0_92 = arith.constant 0 : index
    %152 = vector.load %arg7[%c0_90, %c0_91, %c0_92] : memref<1x8x1xf32, #tpu.memory_space<vmem>>, vector<1x8x1xf32>
    %153 = vector.shape_cast %152 : vector<1x8x1xf32> to vector<8x1xf32>
    %cst_93 = arith.constant dense<0.000000e+00> : vector<8xf32>
    %154 = vector.multi_reduction <add>, %151, %cst_93 [1] : vector<8x2048xf32> to vector<8xf32>
    %155 = vector.shape_cast %154 : vector<8xf32> to vector<8x1xf32>
    %156 = arith.addf %153, %155 : vector<8x1xf32>
    %c0_94 = arith.constant 0 : index
    %c0_95 = arith.constant 0 : index
    %c0_96 = arith.constant 0 : index
    %157 = vector.load %arg7[%c0_94, %c0_95, %c0_96] : memref<1x8x1xf32, #tpu.memory_space<vmem>>, vector<1x8x1xf32>
    %158 = vector.shape_cast %157 : vector<1x8x1xf32> to vector<8x1xf32>
    %159 = vector.shape_cast %156 : vector<8x1xf32> to vector<1x8x1xf32>
    tpu.vector_store %arg7[%c0_94, %c0_95, %c0_96], %159 {strides = array<i32>} : memref<1x8x1xf32, #tpu.memory_space<vmem>>, vector<1x8x1xf32>,
    %c0_97 = arith.constant 0 : index
    %c0_98 = arith.constant 0 : index
    %c0_99 = arith.constant 0 : index
    %160 = vector.load %arg8[%c0_97, %c0_98, %c0_99] : memref<1x8x1xf32, #tpu.memory_space<vmem>>, vector<1x8x1xf32>
    %161 = vector.shape_cast %160 : vector<1x8x1xf32> to vector<8x1xf32>
    %162 = arith.mulf %151, %141 : vector<8x2048xf32>
    %cst_100 = arith.constant dense<0.000000e+00> : vector<8xf32>
    %163 = vector.multi_reduction <add>, %162, %cst_100 [1] : vector<8x2048xf32> to vector<8xf32>
    %164 = vector.shape_cast %163 : vector<8xf32> to vector<8x1xf32>
    %165 = arith.addf %161, %164 : vector<8x1xf32>
    %c0_101 = arith.constant 0 : index
    %c0_102 = arith.constant 0 : index
    %c0_103 = arith.constant 0 : index
    %166 = vector.load %arg8[%c0_101, %c0_102, %c0_103] : memref<1x8x1xf32, #tpu.memory_space<vmem>>, vector<1x8x1xf32>
    %167 = vector.shape_cast %166 : vector<1x8x1xf32> to vector<8x1xf32>
    %168 = vector.shape_cast %165 : vector<8x1xf32> to vector<1x8x1xf32>
    tpu.vector_store %arg8[%c0_101, %c0_102, %c0_103], %168 {strides = array<i32>} : memref<1x8x1xf32, #tpu.memory_space<vmem>>, vector<1x8x1xf32>,
    return
  }
  func.func @transform_0(%arg0: i32, %arg1: i32) -> (i32, i32, i32) {
    %c0_i32 = arith.constant 0 : i32
    %c0_i32_0 = arith.constant 0 : i32
    %c0_i32_1 = arith.constant 0 : i32
    return %arg0, %c0_i32, %c0_i32_0 : i32, i32, i32
  }
  func.func @transform_1(%arg0: i32, %arg1: i32) -> (i32, i32, i32) {
    %c0_i32 = arith.constant 0 : i32
    %c0_i32_0 = arith.constant 0 : i32
    %c0_i32_1 = arith.constant 0 : i32
    %c0_i32_2 = arith.constant 0 : i32
    return %c0_i32, %c0_i32_0, %c0_i32_1 : i32, i32, i32
  }
  func.func @transform_2(%arg0: i32, %arg1: i32) -> (i32, i32) {
    %c0_i32 = arith.constant 0 : i32
    %c0_i32_0 = arith.constant 0 : i32
    %c0_i32_1 = arith.constant 0 : i32
    return %c0_i32, %c0_i32_0 : i32, i32
  }
  func.func @transform_3(%arg0: i32, %arg1: i32) -> (i32, i32) {
    %c0_i32 = arith.constant 0 : i32
    %c0_i32_0 = arith.constant 0 : i32
    return %c0_i32, %arg1 : i32, i32
  }
  func.func @transform_4(%arg0: i32, %arg1: i32) -> (i32, i32, i32) {
    %c0_i32 = arith.constant 0 : i32
    %c0_i32_0 = arith.constant 0 : i32
    return %arg0, %c0_i32, %arg1 : i32, i32, i32
  }
  func.func @transform_5(%arg0: i32, %arg1: i32) -> (i32, i32, i32) {
    %c0_i32 = arith.constant 0 : i32
    %c0_i32_0 = arith.constant 0 : i32
    %c0_i32_1 = arith.constant 0 : i32
    return %arg0, %c0_i32, %c0_i32_0 : i32, i32, i32
  }
  func.func @transform_6(%arg0: i32, %arg1: i32) -> (i32, i32, i32) {
    %c0_i32 = arith.constant 0 : i32
    %c0_i32_0 = arith.constant 0 : i32
    %c0_i32_1 = arith.constant 0 : i32
    return %arg0, %c0_i32, %c0_i32_0 : i32, i32, i32
  }
}

</mosaic_0001>

<bundles_post_ra>
// kernel: tpu_custom_call.1
= control target key start
LH: loop header
LB: loop body
LE: loop exit
PB: predicated region body
PF: predicated region fallthrough
CT: control target
= control target key end

     0   :  { %s18149_s0 = inlined_call_operand.hbm [shape: bf16[2,4,4864], index: 0, kind: input, shape index: {}]   ;;  %s18150_s1 = inlined_call_operand.vmem [shape: bf16[27,8,4], index: 1, kind: input, shape index: {}]   ;;  %s18151_s2 = inlined_call_operand.vmem [shape: f32[8,1], index: 2, kind: input, shape index: {}]   ;;  %s18152_s3 = inlined_call_operand.vmem [shape: f32[1,4096], index: 3, kind: input, shape index: {}]   ;;  %s18153_s4 = inlined_call_operand.hbm [shape: bf16[2,8,4096], index: 4, kind: output, shape index: {0}]   ;;  %s18154_s5 = inlined_call_operand.vmem [shape: f32[2,8,1], index: 5, kind: output, shape index: {1}]   ;;  %s18155_s6 = inlined_call_operand.vmem [shape: f32[2,8,1], index: 6, kind: output, shape index: {2}]  }
   0x1   :  { %18164 = sst [smem:[#allocation14_spill]] %s18149_s0 }
   0x2   :  { %12 = vsyncpa [#allocation3], 0 }
   0x3   :  { %14 = vsyncpa [#allocation3 + $0x1], 0 }
   0x4   :  { %15 = vsyncpa [#allocation4], 0 }
   0x5   :  { %17 = vsyncpa [#allocation4 + $0x1], 0  ;;  %s13736_s21 = smov 0   ;;  %s13738_s22 = smov 0  }
   0x6   :  { %s13740_s23 = smov 0   ;;  %s13742_s24 = smov 0  }
   0x7   :  { %s13744_s25 = smov 0   ;;  %s13746_s26 = smov 0  }
   0x8   :  { %s13748_s27 = smov 0   ;;  %s13750_s28 = smov 0  }
   0x9   :  { %s13752_s29 = smov 0   ;;  %s13754_s30 = smov 0  }
   0xa   :  { %s13756_s7 = smov 0  }
   0xb LB: > { %18165 = sst [smem:[#allocation8_spill]] %s13648_s26  ;;  %s12880_s8 = sadd.s32 4294967295, %s13668_s7   ;;  %s13668_s7 = sphi %s13756_s7, %s23_s7   ;;  %s13664_s30 = sphi %s13754_s30, %s18186_s30   ;;  %s13660_s29 = sphi %s13752_s29, %s18185_s29   ;;  %s13656_s28 = sphi %s13750_s28, %s18184_s28   ;;  %s13652_s27 = sphi %s13748_s27, %s18183_s27   ;;  %s13648_s26 = sphi %s13746_s26, %s18182_s26   ;;  %s13644_s25 = sphi %s13744_s25, %s18191_s25   ;;  %s13640_s24 = sphi %s13742_s24, %s18190_s24   ;;  %s13636_s23 = sphi %s13740_s23, %s18189_s23   ;;  %s13632_s22 = sphi %s13738_s22, %s18188_s22   ;;  %s13628_s21 = sphi %s13736_s21, %s18187_s21  }
   0xc   : > { %18166 = sst [smem:[#allocation9_spill]] %s13660_s29  ;;  %s12881_s9 = sadd.s32 4294967294, %s13668_s7  }
   0xd   : > { %18167 = sst [smem:[#allocation10_spill]] %s13664_s30  ;;  %s32_s10 = sadd.s32 1, %s13660_s29 }
   0xe   : > { %s35_s11 = sadd.s32 1, %s13664_s30  ;;  %p33_p0 = scmp.ge.s32.totalorder %s32_s10, 2 }
   0xf   : > { %s42_s12 = sadd.s32 1, %s13648_s26  ;;  %p49_p1 = scmp.ne.s32.totalorder %s13648_s26, %s13644_s25 }
  0x10   : > { %p50_p2 = scmp.eq.s32.totalorder %s13668_s7, 0  ;;  %s18193_s10 = smov (%p33_p0, %s32_s10), 0 }
  0x11   : > { %18168 = sst [smem:[#allocation11_spill]] %s18193_s10  ;;  %s18195_s11 = smov (!%p33_p0, %s35_s11), %s13664_s30 }
  0x12   : > { %p13800_p3 = por %p50_p2, %p49_p1  ;;  %p55_p4 = scmp.ne.s32.totalorder %s13644_s25, %s13640_s24 }
  0x13   : > { %p37_p5 = scmp.ge.s32.totalorder %s18195_s11, 2  ;;  %p56_p6 = scmp.eq.s32.totalorder %s12880_s8, 0 }
  0x14   : > { %s134_s14 = ssub.s32 %s13660_s29, %s18193_s10  ;;  %s138_s15 = sadd.s32 1, %s13636_s23 }
  0x15   : > { %s18197_s11 = smov (%p37_p5, %s18195_s11), 0  ;;  %p13810_p7 = por %p56_p6, %p55_p4 }
  0x16   : > { %18170 = sst [smem:[#allocation12_spill]] %s18197_s11  ;;  %p148_p8 = scmp.ne.s32.totalorder %s13636_s23, %s13632_s22 }
  0x17   : > { %s39_s17 = ssub.s32 %s13664_s30, %s18197_s11  ;;  %p149_p9 = scmp.eq.s32.totalorder %s12880_s8, 3 }
  0x18   : > { %p40_p10 = scmp.eq.s32.totalorder %s39_s17, 0  ;;  %s135_s18 = sor.u32 %s134_s14, %s39_s17 }
  0x19   : > { %p136_p11 = scmp.eq.s32.totalorder %s135_s18, 0  ;;  %p13818_p12 = por %p149_p9, %p148_p8 }
  0x1a   : > { %s13823_s20 = scalar_select %p40_p10, %s13648_s26, %s42_s12  }
  0x1b   : > { %s18172_s19 = scalar_select %p13818_p12, 1, 0 }
  0x1c   : > { %18173 = sst [smem:[#allocation13_spill]] %s13823_s20  ;;  %p154_p13 = scmp.ne.s32.totalorder %s13632_s22, %s13628_s21 }
  0x1d   : > { %s13826_s24 = scalar_select %p136_p11, %s13636_s23, %s138_s15  }
  0x1e   : > { %p155_p0 = scmp.eq.s32.totalorder %s12881_s9, 3  ;;  %p13389_p1 = scmp.lt.s32.totalorder %s13668_s7, 4 }
  0x1f   : > { %s233_s11 = sand.u32 1, %s13648_s26   ;;  %s13375_s29 = smul.u32 1216, %s13664_s30 }
  0x20   : > { %p13831_p2 = por %p155_p0, %p154_p13  ;;  %s13374_s8 = smul.u32 76, %s233_s11 }
  0x21   : > { %p13839_p4 = pnand %p13389_p1, %p13800_p3  ;;  %s18176_s0 = sld [smem:[#allocation14_spill]] }
  0x22   : > { %s18174_s10 = scalar_select %p13831_p2, 1, 0 }
  0x23   : > { %s237_s17 = scalar_lea.vmem [#allocation2], %s13374_s8  ;;  %s234_s13 = scalar_lea.sflag [#allocation3], %s233_s11 }
  0x24   : > { %s245_s18 = sshll.u32 %s237_s17, 4  ;;  %p13518_p6 = pneg %p13839_p4  ;;  %s13849_s18 = int_to_ptr.vmem [resolvable:$true] %s245_s18 }
  0x27   : > { %s13847_s9 = scalar_lea.hbm %s18176_s0, %s13375_s29  ;;  %s13521_s15 = scalar_lea.hbm %s18176_s0, 2432 }
  0x28   : > { %s13516_s30 = scalar_lea.hbm %s13847_s9, 1216  ;;  %p13522_p10 = scmp.lt.u32.totalorder %s13847_s9, %s18176_s0 }
  0x29   : > { %p13517_p3 = scmp.ne.s32.totalorder %s13847_s9, %s13516_s30  ;;  %p13523_p11 = scmp.lt.u32.totalorder %s13521_s15, %s13516_s30 }
  0x2a   : > { %p13525_p0 = scmp.lt.u32.totalorder %s13516_s30, %s13847_s9 }
  0x2b   : > { %p13519_p8 = pnand %p13518_p6, %p13517_p3  ;;  %p13524_p13 = por %p13523_p11, %p13522_p10 }
  0x2d   : > { %p13520_p9 = pneg %p13519_p8  ;;  %p13526_p1 = por %p13525_p0, %p13524_p13 }
  0x2f   : > { %p13527_p5 = pnand %p13526_p1, %p13520_p9 }
  0x31   : > { %13530 = shalt.err (!%p13527_p5)
}
  0x32   : > { %s13531_s11 = scalar_lea.vmem %s13849_s18, 1216  ;;  %s13670_s8 = smov [#allocation2]  }
  0x33   : > { %p13532_p3 = scmp.ne.s32.totalorder %s13849_s18, %s13531_s11  ;;  %s13536_s17 = sshll.u32 %s13670_s8, 4  ;;  %s13537_s17 = int_to_ptr.vmem [resolvable:$false] %s13536_s17 }
  0x34   : > { %s13538_s26 = scalar_lea.vmem %s13537_s17, 2432  ;;  %p13539_p12 = scmp.lt.s32.totalorder %s13849_s18, %s13537_s17 }
  0x35   : > { %p13534_p8 = pnand %p13532_p3, %p13518_p6  ;;  %p13540_p10 = scmp.lt.s32.totalorder %s13538_s26, %s13531_s11 }
  0x37   : > { %p13535_p2 = pneg %p13534_p8  ;;  %p13541_p11 = por %p13540_p10, %p13539_p12 }
  0x39   : > { %p13542_p13 = pnand %p13541_p11, %p13535_p2 }
  0x3b   : > { %13545 = shalt.err (!%p13542_p13)
}
  0x3c   : > { %13384 = dma.hbm_to_vmem [thread:$0]  (!%p13839_p4), %s13847_s9, 1216, %s13849_s18, %s234_s13  }
  0x3d   : > { %p258_p5 = scmp.lt.s32.totalorder %s13668_s7, 5  ;;  %p18177_p9 = scmp.ge.s32.totalorder %s13668_s7, 1 }
  0x3f   : > { %p259_p6 = pnand %p18177_p9, %p258_p5 }
  0x40   : > { %s264_s30 = sand.u32 (!%p259_p6), 1, %s13644_s25  }
  0x41   : > { %262 = sbr.rel (%p259_p6) target bundleno = 1491 (0x5d3), region = 36  ;;  %s265_s12 = scalar_lea.sflag (!%p259_p6), [#allocation3], %s264_s30 }
  0x42   : > { %s13376_s20 = smul.u32 (!%p259_p6), 76, %s264_s30 }
  0x44   : > { %s268_s29 = scalar_lea.vmem (!%p259_p6), [#allocation2], %s13376_s20 }
  0x48   : > { %13619 = dma.done.wait (%p13810_p7), %s265_s12, 1216  }
  0x49   : > { %13621 = vsyncadd (%p13810_p7), %s265_s12, 4294966080  ;;  %s12890_s14 = sshll.u32 %s13652_s27, 11  ;;  %v347_v0 = vlaneseq  ;;  %v13671_v1 = vmov 1983009808   ;;  %s13893_s16 = sshll.u32 %s13652_s27, 4  ;;  %v13673_v17 = vmov 0  }
  0x4a   : > { %s325_s9 = sshra.s32 %s12890_s14, 7  ;;  %v345_v2 = vunpack.c.l.s4 %v13671_v1  ;;  %p315_p7 = scmp.lt.s32.totalorder %s13656_s28, 1  ;;  %554 = vmatprep.mubr.bf16.mxu0 %v13673_v17  ;;  %595 = vmatprep.mubr.bf16.mxu1 %v13673_v17  ;;  %vm452_vm0 = vcmask 1039360   ;;  %vm473_vm1 = vcmask 1041408   ;;  %v14071_v43 = vld [vmem:[%s18150_s1 + $0x4] sm:$0xf] }
  0x4b   : > { %s12891_s18 = sshll.u32 %s325_s9, 1  ;;  %v13885_v3 = vshrl.u32 %v347_v0, 7  ;;  %p310_p12 = scmp.lt.s32.totalorder %s13893_s16, 31  ;;  %13508 = vset.pattern.permute.xlu0 %v13673_v17  ;;  %vm469_vm2 = vcmask 31744   ;;  %vm1265_vm3 = vcmask 1031168   ;;  %vm1713_vm4 = vcmask 900096  }
  0x4c   : > { %v346_v4 = vunpack.c.0.s8 %v345_v2  ;;  %s13887_s13 = scalar_lea.vmem %s268_s29, %s12891_s18 [#allocation2]  ;;  %s18162_s11 = smov 127   ;;  %vm2161_vm5 = vcmask 891904   ;;  %vm2609_vm6 = vcmask 883712   ;;  %vm3057_vm7 = vcmask 752640  }
  0x4d   : > { %v329_v6 = vld [vmem:[%s13887_s13] sm:$0xff]  ;;  %v330_v7 = vld [vmem:[%s13887_s13 + $0x8] sm:$0xff]  ;;  %s316_s15 = scalar_select %p315_p7, %s13656_s28, 1  ;;  %v331_v20 = vld [vmem:[%s13887_s13 + $0x10] sm:$0xff]  ;;  %vm3505_vm8 = vcmask 744448   ;;  %vm3953_vm9 = vcmask 736256  }
  0x4e   : > { %v349_v5 = vsub.s32 %v346_v4, %v13885_v3  ;;  %v333_v9 = vld [vmem:[%s13887_s13 + $0x20] sm:$0xff]  ;;  %s311_s8 = scalar_select %p310_p12, %s13893_s16, 31  ;;  %v343_v12 = vcombine.high %v329_v6, %v329_v6  ;;  %v360_v15 = vcombine.high %v330_v7, %v330_v7  ;;  %v377_v22 = vcombine.high %v331_v20, %v331_v20  ;;  %v332_v26 = vld [vmem:[%s13887_s13 + $0x18] sm:$0xff] }
  0x4f   : > { %v4367_v11 = vcombine.high %v333_v9, %v333_v9  ;;  %s12888_s17 = sshll.u32 %s316_s15, 3  ;;  %s18178_s15 = smov 127   ;;  %v394_v28 = vcombine.high %v332_v26, %v332_v26  ;;  %vm4410_vm10 = vcmask 490496   ;;  %vm4858_vm11 = vcmask 482304  }
  0x50   : > { %v13896_v8 = vrot.slane %v329_v6, %v349_v5  ;;  %v13901_v10 = vrot.slane %v330_v7, %v349_v5  ;;  %s13911_s20 = scalar_lea.vmem %s18152_s3, %s311_s8  ;;  %s13916_s14 = scalar_lea.vmem %s18154_s5, %s12888_s17  ;;  %v13918_v14 = vrot.slane %v343_v12, %v349_v5  ;;  %v13940_v19 = vrot.slane %v360_v15, %v349_v5 }
  0x51   : > { %v13906_v13 = vrot.slane %v4367_v11, %v349_v5  ;;  %v13951_v23 = vrot.slane %v331_v20, %v349_v5  ;;  %v13961_v25 = vrot.slane %v377_v22, %v349_v5  ;;  %v13972_v29 = vrot.slane %v332_v26, %v349_v5  ;;  %s13674_s8 = smov 126   ;;  %s13676_s26 = smov 109  }
  0x52   : > { %418 = vrot.lane.b32.xlu0 %v13896_v8, %s18162_s11  ;;  %s13923_s11 = scalar_lea.vmem %s18155_s6, %s12888_s17  ;;  %v13929_v16 = vcombine.high %v13896_v8, %v13896_v8  ;;  %v13934_v18 = vcombine.high %v13901_v10, %v13901_v10  ;;  %422 = vrot.lane.b32.xlu1 %v13918_v14, %s18178_s15  ;;  %v13949_v21 = vcombine.high %v13918_v14, %v13918_v14  ;;  %s13675_s17 = smov 110   ;;  %vm5306_vm12 = vcmask 474112  }
  0x53   : > { %v13959_v24 = vcombine.high %v13940_v19, %v13940_v19  ;;  %v13970_v27 = vcombine.high %v13951_v23, %v13951_v23  ;;  %v13980_v30 = vcombine.high %v13961_v25, %v13961_v25  ;;  %v13982_v31 = vrot.slane %v394_v28, %v349_v5  ;;  %s13677_s29 = smov 108   ;;  %s13688_s12 = smov 23  }
  0x54   : > { %v13990_v32 = vcombine.high %v13972_v29, %v13972_v29  ;;  %v13992_v33 = vrot.slane %v333_v9, %v349_v5  ;;  %v854_v28 = vsel %vm473_vm1, %v13896_v8, 0  ;;  %vm5754_vm13 = vcmask 343040   ;;  %s13689_s18 = smov 22   ;;  %p13359_p2 = scmp.ne.s32.totalorder %s13652_s27, 0 }
  0x55   : > { %v14000_v34 = vcombine.high %v13982_v31, %v13982_v31  ;;  %vm6202_vm14 = vcmask 334848   ;;  %vm6650_vm15 = vcmask 326656  }
  0x56   : > { %426 = vrot.lane.b32.xlu0 %v13901_v10, %s18178_s15  ;;  %428 = vrot.lane.b32.xlu1 %v13934_v18, %s18178_s15 }
  0x5a   : > { %420 = vrot.lane.b32.xlu0 %v13929_v16, %s18178_s15  ;;  %424 = vrot.lane.b32.xlu1 %v13949_v21, %s18178_s15 }
  0x5e   : > { %430 = vrot.lane.b32.xlu0 %v13940_v19, %s18178_s15  ;;  %432 = vrot.lane.b32.xlu1 %v13959_v24, %s18178_s15 }
  0x62   : > { %434 = vrot.lane.b32.xlu0 %v13951_v23, %s18178_s15  ;;  %436 = vrot.lane.b32.xlu1 %v13970_v27, %s18178_s15 }
  0x66   : > { %438 = vrot.lane.b32.xlu0 %v13961_v25, %s18178_s15  ;;  %440 = vrot.lane.b32.xlu1 %v13980_v30, %s18178_s15 }
  0x6a   : > { %442 = vrot.lane.b32.xlu0 %v13972_v29, %s18178_s15  ;;  %444 = vrot.lane.b32.xlu1 %v13990_v32, %s18178_s15 }
  0x6e   : > { %446 = vrot.lane.b32.xlu0 %v13982_v31, %s18178_s15  ;;  %448 = vrot.lane.b32.xlu1 %v14000_v34, %s18178_s15 }
  0x72   : > { %450 = vrot.lane.b32.xlu0 %v13992_v33, %s18178_s15  ;;  %1231 = vrot.lane.b32.xlu1 %v13896_v8, %s13674_s8  ;;  %s13678_s15 = smov 92  }
  0x76   : > { %1233 = vrot.lane.b32.xlu0 %v13929_v16, %s13674_s8  ;;  %1235 = vrot.lane.b32.xlu1 %v13918_v14, %s13674_s8 }
  0x7a   : > { %1237 = vrot.lane.b32.xlu0 %v13949_v21, %s13674_s8  ;;  %1239 = vrot.lane.b32.xlu1 %v13901_v10, %s13674_s8 }
  0x7e   : > { %1241 = vrot.lane.b32.xlu0 %v13934_v18, %s13674_s8  ;;  %1243 = vrot.lane.b32.xlu1 %v13940_v19, %s13674_s8 }
  0x82   : > { %1245 = vrot.lane.b32.xlu0 %v13959_v24, %s13674_s8  ;;  %1247 = vrot.lane.b32.xlu1 %v13951_v23, %s13674_s8 }
  0x86   : > { %1249 = vrot.lane.b32.xlu0 %v13970_v27, %s13674_s8  ;;  %1251 = vrot.lane.b32.xlu1 %v13961_v25, %s13674_s8 }
  0x8a   : > { %1253 = vrot.lane.b32.xlu0 %v13980_v30, %s13674_s8  ;;  %1255 = vrot.lane.b32.xlu1 %v13972_v29, %s13674_s8 }
  0x8e   : > { %1257 = vrot.lane.b32.xlu0 %v13990_v32, %s13674_s8  ;;  %1259 = vrot.lane.b32.xlu1 %v13982_v31, %s13674_s8 }
  0x92   : > { %1261 = vrot.lane.b32.xlu0 %v14000_v34, %s13674_s8  ;;  %1263 = vrot.lane.b32.xlu1 %v13992_v33, %s13674_s8 }
  0x96   : > { %1679 = vrot.lane.b32.xlu0 %v13896_v8, %s13675_s17  ;;  %1681 = vrot.lane.b32.xlu1 %v13929_v16, %s13675_s17 }
  0x9a   : > { %1683 = vrot.lane.b32.xlu0 %v13918_v14, %s13675_s17  ;;  %1685 = vrot.lane.b32.xlu1 %v13949_v21, %s13675_s17 }
  0x9e   : > { %1687 = vrot.lane.b32.xlu0 %v13901_v10, %s13675_s17  ;;  %1689 = vrot.lane.b32.xlu1 %v13934_v18, %s13675_s17 }
  0xa2   : > { %1691 = vrot.lane.b32.xlu0 %v13940_v19, %s13675_s17  ;;  %1693 = vrot.lane.b32.xlu1 %v13959_v24, %s13675_s17 }
  0xa6   : > { %1695 = vrot.lane.b32.xlu0 %v13951_v23, %s13675_s17  ;;  %1697 = vrot.lane.b32.xlu1 %v13970_v27, %s13675_s17 }
  0xaa   : > { %1699 = vrot.lane.b32.xlu0 %v13961_v25, %s13675_s17  ;;  %1701 = vrot.lane.b32.xlu1 %v13980_v30, %s13675_s17 }
  0xae   : > { %1703 = vrot.lane.b32.xlu0 %v13972_v29, %s13675_s17  ;;  %1705 = vrot.lane.b32.xlu1 %v13990_v32, %s13675_s17 }
  0xb2   : > { %1707 = vrot.lane.b32.xlu0 %v13982_v31, %s13675_s17  ;;  %1709 = vrot.lane.b32.xlu1 %v14000_v34, %s13675_s17 }
  0xb6   : > { %1711 = vrot.lane.b32.xlu0 %v13992_v33, %s13675_s17  ;;  %2127 = vrot.lane.b32.xlu1 %v13896_v8, %s13676_s26  ;;  %s13687_s17 = smov 24  }
  0xba   : > { %2129 = vrot.lane.b32.xlu0 %v13929_v16, %s13676_s26  ;;  %2131 = vrot.lane.b32.xlu1 %v13918_v14, %s13676_s26 }
  0xbe   : > { %2133 = vrot.lane.b32.xlu0 %v13949_v21, %s13676_s26  ;;  %2135 = vrot.lane.b32.xlu1 %v13901_v10, %s13676_s26 }
  0xc2   : > { %2137 = vrot.lane.b32.xlu0 %v13934_v18, %s13676_s26  ;;  %2139 = vrot.lane.b32.xlu1 %v13940_v19, %s13676_s26 }
  0xc4   : > { %v419_v35 = vpop.permute.xlu0 %418  ;;  %v423_v37 = vpop.permute.xlu1 %422 }
  0xc6   : > { %2141 = vrot.lane.b32.xlu0 %v13959_v24, %s13676_s26  ;;  %2143 = vrot.lane.b32.xlu1 %v13951_v23, %s13676_s26 }
  0xc8   : > { %v427_v36 = vpop.permute.xlu0 %426  ;;  %v429_v39 = vpop.permute.xlu1 %428 }
  0xc9   : > { %v457_v45 = vsel %vm452_vm0, %v427_v36, %v429_v39 }
  0xca   : > { %2145 = vrot.lane.b32.xlu0 %v13970_v27, %s13676_s26  ;;  %2147 = vrot.lane.b32.xlu1 %v13961_v25, %s13676_s26  ;;  %v487_v51 = vsel %vm473_vm1, %v457_v45, 0  ;;  %v872_v45 = vsel %vm473_vm1, %v13940_v19, 0 }
  0xcc   : > { %v421_v38 = vpop.permute.xlu0 %420  ;;  %v425_v46 = vpop.permute.xlu1 %424 }
  0xcd   : > { %v454_v40 = vsel %vm452_vm0, %v421_v38, %v423_v37  ;;  %v453_v41 = vsel %vm452_vm0, %v419_v35, %v421_v38  ;;  %v456_v48 = vsel %vm452_vm0, %v425_v46, %v427_v36  ;;  %v455_v49 = vsel %vm452_vm0, %v423_v37, %v425_v46 }
  0xce   : > { %12893 = vmatprep.subr.msk.bf16.mxu0 %vm473_vm1, %v454_v40  ;;  %2149 = vrot.lane.b32.xlu0 %v13980_v30, %s13676_s26  ;;  %v475_v42 = vsel %vm473_vm1, %v453_v41, 0  ;;  %v481_v50 = vsel %vm473_vm1, %v455_v49, 0  ;;  %v860_v38 = vsel %vm473_vm1, %v13918_v14, 0  ;;  %v866_v41 = vsel %vm473_vm1, %v13901_v10, 0 }
  0xcf   : > { %523 = vmatpush1.bf16.msra.mxu0 %v475_v42  ;;  %2151 = vrot.lane.b32.xlu1 %v13972_v29, %s13676_s26 }
  0xd0   : > { %v431_v44 = vpop.permute.xlu0 %430  ;;  %12895 = vmatprep.subr.msk.bf16.mxu1 %vm473_vm1, %v456_v48  ;;  %v433_v53 = vpop.permute.xlu1 %432 }
  0xd1   : > { %v458_v47 = vsel %vm452_vm0, %v429_v39, %v431_v44  ;;  %564 = vmatpush1.bf16.msra.mxu1 %v481_v50  ;;  %v459_v54 = vsel %vm452_vm0, %v431_v44, %v433_v53  ;;  %v14175_v39 = vld [vmem:[%s18150_s1] sm:$0xf] }
  0xd2   : > { %12894 = vmatmul.mubr.msk.bf16.vlgmr.msra.gmra.mrb[0].mxu0 %vm469_vm2, %v14071_v43  ;;  %12897 = vmatprep.subr.msk.bf16.mxu0 %vm473_vm1, %v458_v47  ;;  %v493_v56 = vsel %vm473_vm1, %v459_v54, 0  ;;  %v878_v47 = vsel %vm473_vm1, %v13951_v23, 0 }
  0xd3   : > { %2153 = vrot.lane.b32.xlu0 %v13990_v32, %s13676_s26  ;;  %605 = vmatpush1.bf16.msra.mxu0 %v487_v51  ;;  %v884_v51 = vsel %vm473_vm1, %v13961_v25, 0 }
  0xd4   : > { %v435_v52 = vpop.permute.xlu0 %434  ;;  %636 = vmatprep.mubr.bf16.mxu0 %v13673_v17  ;;  %2155 = vrot.lane.b32.xlu1 %v13982_v31, %s13676_s26  ;;  %v437_v58 = vpop.permute.xlu1 %436 }
  0xd5   : > { %v460_v55 = vsel %vm452_vm0, %v433_v53, %v435_v52  ;;  %12896 = vmatmul.mubr.msk.bf16.vlgmr.msra.gmra.mrb[0].mxu1 %vm469_vm2, %v14071_v43  ;;  %v461_v59 = vsel %vm452_vm0, %v435_v52, %v437_v58  ;;  %v890_v53 = vsel %vm473_vm1, %v13972_v29, 0 }
  0xd6   : > { %12899 = vmatprep.subr.msk.bf16.mxu1 %vm473_vm1, %v460_v55  ;;  %677 = vmatprep.mubr.bf16.mxu1 %v13673_v17  ;;  %v499_v61 = vsel %vm473_vm1, %v461_v59, 0 }
  0xd7   : > { %2157 = vrot.lane.b32.xlu0 %v14000_v34, %s13676_s26  ;;  %646 = vmatpush1.bf16.msra.mxu1 %v493_v56 }
  0xd8   : > { %v439_v57 = vpop.permute.xlu0 %438  ;;  %2159 = vrot.lane.b32.xlu1 %v13992_v33, %s13676_s26  ;;  %v441_v63 = vpop.permute.xlu1 %440  ;;  %s13679_s26 = smov 91  }
  0xd9   : > { %v462_v60 = vsel %vm452_vm0, %v437_v58, %v439_v57  ;;  %v463_v0 = vsel %vm452_vm0, %v439_v57, %v441_v63  ;;  %v896_v58 = vsel %vm473_vm1, %v13982_v31, 0 }
  0xda   : > { %12898 = vmatmul.mubr.msk.bf16.vlgmr.msra.gmra.mrb[4].mxu0 %vm469_vm2, %v14071_v43  ;;  %12901 = vmatprep.subr.msk.bf16.mxu0 %vm473_vm1, %v462_v60  ;;  %v505_v2 = vsel %vm473_vm1, %v463_v0, 0 }
  0xdb   : > { %2575 = vrot.lane.b32.xlu0 %v13896_v8, %s13677_s29  ;;  %687 = vmatpush1.bf16.msra.mxu0 %v499_v61 }
  0xdc   : > { %v443_v62 = vpop.permute.xlu0 %442  ;;  %718 = vmatprep.mubr.bf16.mxu0 %v13673_v17  ;;  %2577 = vrot.lane.b32.xlu1 %v13929_v16, %s13677_s29  ;;  %v445_v5 = vpop.permute.xlu1 %444 }
  0xdd   : > { %v464_v1 = vsel %vm452_vm0, %v441_v63, %v443_v62  ;;  %12900 = vmatmul.mubr.msk.bf16.vlgmr.msra.gmra.mrb[4].mxu1 %vm469_vm2, %v14071_v43  ;;  %v465_v6 = vsel %vm452_vm0, %v443_v62, %v445_v5 }
  0xde   : > { %12903 = vmatprep.subr.msk.bf16.mxu1 %vm473_vm1, %v464_v1  ;;  %759 = vmatprep.mubr.bf16.mxu1 %v13673_v17  ;;  %v511_v9 = vsel %vm473_vm1, %v465_v6, 0 }
  0xdf   : > { %2579 = vrot.lane.b32.xlu0 %v13918_v14, %s13677_s29  ;;  %728 = vmatpush1.bf16.msra.mxu1 %v505_v2 }
  0xe0   : > { %v447_v4 = vpop.permute.xlu0 %446  ;;  %2581 = vrot.lane.b32.xlu1 %v13949_v21, %s13677_s29  ;;  %v449_v12 = vpop.permute.xlu1 %448 }
  0xe1   : > { %v466_v7 = vsel %vm452_vm0, %v445_v5, %v447_v4  ;;  %v467_v15 = vsel %vm452_vm0, %v447_v4, %v449_v12 }
  0xe2   : > { %12902 = vmatmul.mubr.msk.bf16.vlgmr.msra.gmra.mrb[8].mxu0 %vm469_vm2, %v14071_v43  ;;  %12905 = vmatprep.subr.msk.bf16.mxu0 %vm473_vm1, %v466_v7  ;;  %v517_v22 = vsel %vm473_vm1, %v467_v15, 0  ;;  %v14313_v7 = vld [vmem:[%s18150_s1 + $0x8] sm:$0xf] }
  0xe3   : > { %2583 = vrot.lane.b32.xlu0 %v13901_v10, %s13677_s29  ;;  %769 = vmatpush1.bf16.msra.mxu0 %v511_v9 }
  0xe4   : > { %v451_v11 = vpop.permute.xlu0 %450  ;;  %800 = vmatprep.mubr.bf16.mxu0 %v13673_v17  ;;  %12909 = vmatprep.subr.msk.bf16.mxu0 %vm473_vm1, %v13929_v16  ;;  %v14148_v35 = vpop.permute.xlu1 %1231 }
  0xe5   : > { %v468_v20 = vsel %vm452_vm0, %v449_v12, %v451_v11  ;;  %2585 = vrot.lane.b32.xlu1 %v13934_v18, %s13677_s29  ;;  %12904 = vmatmul.mubr.msk.bf16.vlgmr.msra.gmra.mrb[8].mxu1 %vm469_vm2, %v14071_v43  ;;  %vm7098_vm0 = vcmask 195584  }
  0xe6   : > { %12907 = vmatprep.subr.msk.bf16.mxu1 %vm473_vm1, %v468_v20  ;;  %841 = vmatprep.mubr.bf16.mxu1 %v13673_v17 }
  0xe7   : > { %2587 = vrot.lane.b32.xlu0 %v13940_v19, %s13677_s29  ;;  %810 = vmatpush1.bf16.msra.mxu1 %v517_v22 }
  0xe8   : > { %v14144_v26 = vpop.permute.xlu0 %1233  ;;  %12911 = vmatprep.subr.msk.bf16.mxu1 %vm473_vm1, %v13949_v21  ;;  %v14162_v37 = vpop.permute.xlu1 %1235 }
  0xe9   : > { %2589 = vrot.lane.b32.xlu1 %v13959_v24, %s13677_s29  ;;  %v1267_v55 = vsel %vm1265_vm3, %v14144_v26, %v14162_v37  ;;  %v1266_v59 = vsel %vm1265_vm3, %v14148_v35, %v14144_v26 }
  0xea   : > { %12906 = vmatmul.mubr.msk.bf16.vlgmr.msra.gmra.mrb[12].mxu0 %vm469_vm2, %v14071_v43  ;;  %v1286_v63 = vsel %vm473_vm1, %v1266_v59, 0 }
  0xeb   : > { %902 = vmatpush1.bf16.msra.mxu0 %v854_v28  ;;  %2591 = vrot.lane.b32.xlu0 %v13951_v23, %s13677_s29 }
  0xec   : > { %v14159_v36 = vpop.permute.xlu0 %1237  ;;  %933 = vmatprep.mubr.bf16.mxu0 %v13673_v17  ;;  %12913 = vmatprep.subr.msk.bf16.mxu0 %vm473_vm1, %v13934_v18  ;;  %v14183_v42 = vpop.permute.xlu1 %1239 }
  0xed   : > { %2593 = vrot.lane.b32.xlu1 %v13970_v27, %s13677_s29  ;;  %12908 = vmatmul.mubr.msk.bf16.vlgmr.msra.gmra.mrb[12].mxu1 %vm469_vm2, %v14071_v43  ;;  %v1269_v60 = vsel %vm1265_vm3, %v14159_v36, %v14183_v42  ;;  %v1268_v1 = vsel %vm1265_vm3, %v14162_v37, %v14159_v36 }
  0xee   : > { %943 = vmatpush1.bf16.msra.mxu1 %v860_v38  ;;  %974 = vmatprep.mubr.bf16.mxu1 %v13673_v17  ;;  %v1292_v6 = vsel %vm473_vm1, %v1268_v1, 0 }
  0xef   : > { %2595 = vrot.lane.b32.xlu0 %v13961_v25, %s13677_s29  ;;  %12915 = vmatprep.subr.msk.bf16.mxu1 %vm473_vm1, %v13959_v24 }
  0xf0   : > { %v14179_v40 = vpop.permute.xlu0 %1241  ;;  %v14197_v44 = vpop.permute.xlu1 %1243 }
  0xf1   : > { %2597 = vrot.lane.b32.xlu1 %v13980_v30, %s13677_s29  ;;  %v1271_v0 = vsel %vm1265_vm3, %v14179_v40, %v14197_v44  ;;  %v1270_v5 = vsel %vm1265_vm3, %v14183_v42, %v14179_v40 }
  0xf2   : > { %12910 = vmatmul.mubr.msk.bf16.vlgmr.msra.gmra.mrb[16].mxu0 %vm469_vm2, %v14175_v39  ;;  %v1298_v15 = vsel %vm473_vm1, %v1270_v5, 0 }
  0xf3   : > { %984 = vmatpush1.bf16.msra.mxu0 %v866_v41  ;;  %2599 = vrot.lane.b32.xlu0 %v13972_v29, %s13677_s29 }
  0xf4   : > { %v14194_v43 = vpop.permute.xlu0 %1245  ;;  %1015 = vmatprep.mubr.bf16.mxu0 %v13673_v17  ;;  %12917 = vmatprep.subr.msk.bf16.mxu0 %vm473_vm1, %v13970_v27  ;;  %v14213_v48 = vpop.permute.xlu1 %1247 }
  0xf5   : > { %2601 = vrot.lane.b32.xlu1 %v13990_v32, %s13677_s29  ;;  %12912 = vmatmul.mubr.msk.bf16.vlgmr.msra.gmra.mrb[16].mxu1 %vm469_vm2, %v14175_v39  ;;  %v1273_v9 = vsel %vm1265_vm3, %v14194_v43, %v14213_v48  ;;  %v1272_v22 = vsel %vm1265_vm3, %v14197_v44, %v14194_v43 }
  0xf6   : > { %1025 = vmatpush1.bf16.msra.mxu1 %v872_v45  ;;  %1056 = vmatprep.mubr.bf16.mxu1 %v13673_v17  ;;  %v1304_v36 = vsel %vm473_vm1, %v1272_v22, 0 }
  0xf7   : > { %2603 = vrot.lane.b32.xlu0 %v13982_v31, %s13677_s29  ;;  %12919 = vmatprep.subr.msk.bf16.mxu1 %vm473_vm1, %v13980_v30 }
  0xf8   : > { %v14209_v46 = vpop.permute.xlu0 %1249  ;;  %v14227_v50 = vpop.permute.xlu1 %1251 }
  0xf9   : > { %2605 = vrot.lane.b32.xlu1 %v14000_v34, %s13677_s29  ;;  %v1275_v20 = vsel %vm1265_vm3, %v14209_v46, %v14227_v50  ;;  %v1274_v35 = vsel %vm1265_vm3, %v14213_v48, %v14209_v46 }
  0xfa   : > { %12914 = vmatmul.mubr.msk.bf16.vlgmr.msra.gmra.mrb[20].mxu0 %vm469_vm2, %v14175_v39  ;;  %v1310_v40 = vsel %vm473_vm1, %v1274_v35, 0 }
  0xfb   : > { %1066 = vmatpush1.bf16.msra.mxu0 %v878_v47  ;;  %2607 = vrot.lane.b32.xlu0 %v13992_v33, %s13677_s29  ;;  %s13680_s29 = smov 90  }
  0xfc   : > { %v14224_v49 = vpop.permute.xlu0 %1253  ;;  %1097 = vmatprep.mubr.bf16.mxu0 %v13673_v17  ;;  %12921 = vmatprep.subr.msk.bf16.mxu0 %vm473_vm1, %v13990_v32  ;;  %v14243_v54 = vpop.permute.xlu1 %1255 }
  0xfd   : > { %3023 = vrot.lane.b32.xlu1 %v13896_v8, %s13678_s15  ;;  %12916 = vmatmul.mubr.msk.bf16.vlgmr.msra.gmra.mrb[20].mxu1 %vm469_vm2, %v14175_v39  ;;  %v1277_v37 = vsel %vm1265_vm3, %v14224_v49, %v14243_v54  ;;  %v1276_v42 = vsel %vm1265_vm3, %v14227_v50, %v14224_v49 }
  0xfe   : > { %1107 = vmatpush1.bf16.msra.mxu1 %v884_v51  ;;  %1138 = vmatprep.mubr.bf16.mxu1 %v13673_v17  ;;  %v1316_v46 = vsel %vm473_vm1, %v1276_v42, 0 }
  0xff   : > { %3025 = vrot.lane.b32.xlu0 %v13929_v16, %s13678_s15  ;;  %12923 = vmatprep.subr.msk.bf16.mxu1 %vm473_vm1, %v14000_v34 }
 0x100   : > { %v14239_v52 = vpop.permute.xlu0 %1257  ;;  %v14260_v57 = vpop.permute.xlu1 %1259 }
 0x101   : > { %3027 = vrot.lane.b32.xlu1 %v13918_v14, %s13678_s15  ;;  %v1279_v41 = vsel %vm1265_vm3, %v14239_v52, %v14260_v57  ;;  %v1278_v45 = vsel %vm1265_vm3, %v14243_v54, %v14239_v52 }
 0x102   : > { %12918 = vmatmul.mubr.msk.bf16.vlgmr.msra.gmra.mrb[24].mxu0 %vm469_vm2, %v14175_v39  ;;  %v1322_v50 = vsel %vm473_vm1, %v1278_v45, 0 }
 0x103   : > { %1148 = vmatpush1.bf16.msra.mxu0 %v890_v53  ;;  %3029 = vrot.lane.b32.xlu0 %v13949_v21, %s13678_s15 }
 0x104   : > { %12926 = vmatprep.subr.msk.bf16.mxu0 %vm473_vm1, %v1267_v55  ;;  %v14258_v56 = vpop.permute.xlu0 %1261  ;;  %1179 = vmatprep.mubr.bf16.mxu0 %v13673_v17  ;;  %v14280_v62 = vpop.permute.xlu1 %1263 }
 0x105   : > { %3031 = vrot.lane.b32.xlu1 %v13901_v10, %s13678_s15  ;;  %12920 = vmatmul.mubr.msk.bf16.vlgmr.msra.gmra.mrb[24].mxu1 %vm469_vm2, %v14175_v39  ;;  %v1281_v47 = vsel %vm1265_vm3, %v14258_v56, %v14280_v62  ;;  %v1280_v52 = vsel %vm1265_vm3, %v14260_v57, %v14258_v56  ;;  %vm7546_vm3 = vcmask 187392  }
 0x106   : > { %1189 = vmatpush1.bf16.msra.mxu1 %v896_v58  ;;  %1220 = vmatprep.mubr.bf16.mxu1 %v13673_v17  ;;  %v1328_v56 = vsel %vm473_vm1, %v1280_v52, 0 }
 0x107   : > { %3033 = vrot.lane.b32.xlu0 %v13934_v18, %s13678_s15  ;;  %12928 = vmatprep.subr.msk.bf16.mxu1 %vm473_vm1, %v1269_v60 }
 0x108   : > { %v14277_v61 = vpop.permute.xlu0 %1679  ;;  %v14299_v4 = vpop.permute.xlu1 %1681 }
 0x109   : > { %3035 = vrot.lane.b32.xlu1 %v13940_v19, %s13678_s15  ;;  %v1714_v55 = vsel %vm1713_vm4, %v14277_v61, %v14299_v4 }
 0x10a   : > { %12922 = vmatmul.mubr.msk.bf16.vlgmr.msra.gmra.mrb[28].mxu0 %vm469_vm2, %v14175_v39  ;;  %v1734_v60 = vsel %vm473_vm1, %v1714_v55, 0 }
 0x10b   : > { %1334 = vmatpush1.bf16.msra.mxu0 %v1286_v63  ;;  %3037 = vrot.lane.b32.xlu0 %v13959_v24, %s13678_s15 }
 0x10c   : > { %12930 = vmatprep.subr.msk.bf16.mxu0 %vm473_vm1, %v1271_v0  ;;  %v14297_v2 = vpop.permute.xlu0 %1683  ;;  %1365 = vmatprep.mubr.bf16.mxu0 %v13673_v17  ;;  %v14323_v12 = vpop.permute.xlu1 %1685 }
 0x10d   : > { %3039 = vrot.lane.b32.xlu1 %v13951_v23, %s13678_s15  ;;  %12924 = vmatmul.mubr.msk.bf16.vlgmr.msra.gmra.mrb[28].mxu1 %vm469_vm2, %v14175_v39  ;;  %v1715_v51 = vsel %vm1713_vm4, %v14299_v4, %v14297_v2  ;;  %v1716_v62 = vsel %vm1713_vm4, %v14297_v2, %v14323_v12  ;;  %v14470_v4 = vld [vmem:[%s18150_s1 + $0xc] sm:$0xf] }
 0x10e   : > { %1375 = vmatpush1.bf16.msra.mxu1 %v1292_v6  ;;  %1406 = vmatprep.mubr.bf16.mxu1 %v13673_v17  ;;  %v1740_v2 = vsel %vm473_vm1, %v1716_v62, 0  ;;  %v14625_v62 = vld [vmem:[%s18150_s1 + $0x10] sm:$0xf] }
 0x10f   : > { %3041 = vrot.lane.b32.xlu0 %v13970_v27, %s13678_s15  ;;  %12932 = vmatprep.subr.msk.bf16.mxu1 %vm473_vm1, %v1273_v9 }
 0x110   : > { %v14320_v11 = vpop.permute.xlu0 %1687  ;;  %v14342_v28 = vpop.permute.xlu1 %1689 }
 0x111   : > { %3043 = vrot.lane.b32.xlu1 %v13961_v25, %s13678_s15  ;;  %v1717_v57 = vsel %vm1713_vm4, %v14323_v12, %v14320_v11  ;;  %v1718_v1 = vsel %vm1713_vm4, %v14320_v11, %v14342_v28 }
 0x112   : > { %12927 = vmatmul.mubr.msk.bf16.vlgmr.msra.gmra.mrb[32].mxu0 %vm469_vm2, %v14313_v7  ;;  %v1746_v9 = vsel %vm473_vm1, %v1718_v1, 0 }
 0x113   : > { %1416 = vmatpush1.bf16.msra.mxu0 %v1298_v15  ;;  %3045 = vrot.lane.b32.xlu0 %v13980_v30, %s13678_s15 }
 0x114   : > { %12934 = vmatprep.subr.msk.bf16.mxu0 %vm473_vm1, %v1275_v20  ;;  %v14340_v26 = vpop.permute.xlu0 %1691  ;;  %1447 = vmatprep.mubr.bf16.mxu0 %v13673_v17  ;;  %v14361_v39 = vpop.permute.xlu1 %1693 }
 0x115   : > { %3047 = vrot.lane.b32.xlu1 %v13972_v29, %s13678_s15  ;;  %12929 = vmatmul.mubr.msk.bf16.vlgmr.msra.gmra.mrb[32].mxu1 %vm469_vm2, %v14313_v7  ;;  %v1719_v61 = vsel %vm1713_vm4, %v14342_v28, %v14340_v26  ;;  %v1720_v12 = vsel %vm1713_vm4, %v14340_v26, %v14361_v39 }
 0x116   : > { %1457 = vmatpush1.bf16.msra.mxu1 %v1304_v36  ;;  %1488 = vmatprep.mubr.bf16.mxu1 %v13673_v17  ;;  %v1752_v26 = vsel %vm473_vm1, %v1720_v12, 0 }
 0x117   : > { %3049 = vrot.lane.b32.xlu0 %v13990_v32, %s13678_s15  ;;  %12936 = vmatprep.subr.msk.bf16.mxu1 %vm473_vm1, %v1277_v37 }
 0x118   : > { %v14358_v38 = vpop.permute.xlu0 %1695  ;;  %v14380_v44 = vpop.permute.xlu1 %1697 }
 0x119   : > { %3051 = vrot.lane.b32.xlu1 %v13982_v31, %s13678_s15  ;;  %v1721_v5 = vsel %vm1713_vm4, %v14361_v39, %v14358_v38  ;;  %v1722_v22 = vsel %vm1713_vm4, %v14358_v38, %v14380_v44 }
 0x11a   : > { %12931 = vmatmul.mubr.msk.bf16.vlgmr.msra.gmra.mrb[36].mxu0 %vm469_vm2, %v14313_v7  ;;  %v1758_v37 = vsel %vm473_vm1, %v1722_v22, 0 }
 0x11b   : > { %1498 = vmatpush1.bf16.msra.mxu0 %v1310_v40  ;;  %3053 = vrot.lane.b32.xlu0 %v14000_v34, %s13678_s15 }
 0x11c   : > { %12938 = vmatprep.subr.msk.bf16.mxu0 %vm473_vm1, %v1279_v41  ;;  %v14378_v43 = vpop.permute.xlu0 %1699  ;;  %1529 = vmatprep.mubr.bf16.mxu0 %v13673_v17  ;;  %v14399_v49 = vpop.permute.xlu1 %1701 }
 0x11d   : > { %3055 = vrot.lane.b32.xlu1 %v13992_v33, %s13678_s15  ;;  %12933 = vmatmul.mubr.msk.bf16.vlgmr.msra.gmra.mrb[36].mxu1 %vm469_vm2, %v14313_v7  ;;  %v1723_v11 = vsel %vm1713_vm4, %v14380_v44, %v14378_v43  ;;  %v1724_v39 = vsel %vm1713_vm4, %v14378_v43, %v14399_v49  ;;  %s13681_s15 = smov 60  }
 0x11e   : > { %1539 = vmatpush1.bf16.msra.mxu1 %v1316_v46  ;;  %1570 = vmatprep.mubr.bf16.mxu1 %v13673_v17  ;;  %v1764_v43 = vsel %vm473_vm1, %v1724_v39, 0 }
 0x11f   : > { %3471 = vrot.lane.b32.xlu0 %v13896_v8, %s13679_s26  ;;  %12940 = vmatprep.subr.msk.bf16.mxu1 %vm473_vm1, %v1281_v47 }
 0x120   : > { %v14396_v48 = vpop.permute.xlu0 %1703  ;;  %v14418_v54 = vpop.permute.xlu1 %1705 }
 0x121   : > { %3473 = vrot.lane.b32.xlu1 %v13929_v16, %s13679_s26  ;;  %v1725_v28 = vsel %vm1713_vm4, %v14399_v49, %v14396_v48  ;;  %v1726_v42 = vsel %vm1713_vm4, %v14396_v48, %v14418_v54 }
 0x122   : > { %12935 = vmatmul.mubr.msk.bf16.vlgmr.msra.gmra.mrb[40].mxu0 %vm469_vm2, %v14313_v7  ;;  %v1770_v47 = vsel %vm473_vm1, %v1726_v42, 0 }
 0x123   : > { %1580 = vmatpush1.bf16.msra.mxu0 %v1322_v50  ;;  %3475 = vrot.lane.b32.xlu0 %v13918_v14, %s13679_s26 }
 0x124   : > { %12943 = vmatprep.subr.msk.bf16.mxu0 %vm473_vm1, %v1715_v51  ;;  %v14416_v53 = vpop.permute.xlu0 %1707  ;;  %1611 = vmatprep.mubr.bf16.mxu0 %v13673_v17  ;;  %v14437_v59 = vpop.permute.xlu1 %1709 }
 0x125   : > { %3477 = vrot.lane.b32.xlu1 %v13949_v21, %s13679_s26  ;;  %12937 = vmatmul.mubr.msk.bf16.vlgmr.msra.gmra.mrb[40].mxu1 %vm469_vm2, %v14313_v7  ;;  %v1727_v38 = vsel %vm1713_vm4, %v14418_v54, %v14416_v53  ;;  %v1728_v49 = vsel %vm1713_vm4, %v14416_v53, %v14437_v59 }
 0x126   : > { %1621 = vmatpush1.bf16.msra.mxu1 %v1328_v56  ;;  %1652 = vmatprep.mubr.bf16.mxu1 %v13673_v17 }
 0x127   : > { %3479 = vrot.lane.b32.xlu0 %v13901_v10, %s13679_s26  ;;  %12945 = vmatprep.subr.msk.bf16.mxu1 %vm473_vm1, %v1717_v57 }
 0x128   : > { %v14434_v58 = vpop.permute.xlu0 %1711  ;;  %v14456_v0 = vpop.permute.xlu1 %2127 }
 0x129   : > { %3481 = vrot.lane.b32.xlu1 %v13934_v18, %s13679_s26  ;;  %v1729_v44 = vsel %vm1713_vm4, %v14437_v59, %v14434_v58  ;;  %vm7994_vm4 = vcmask 179200  }
 0x12a   : > { %12939 = vmatmul.mubr.msk.bf16.vlgmr.msra.gmra.mrb[44].mxu0 %vm469_vm2, %v14313_v7 }
 0x12b   : > { %1782 = vmatpush1.bf16.msra.mxu0 %v1734_v60  ;;  %3483 = vrot.lane.b32.xlu0 %v13940_v19, %s13679_s26 }
 0x12c   : > { %12947 = vmatprep.subr.msk.bf16.mxu0 %vm473_vm1, %v1719_v61  ;;  %v14454_v63 = vpop.permute.xlu0 %2129  ;;  %1813 = vmatprep.mubr.bf16.mxu0 %v13673_v17 }
 0x12d   : > { %3485 = vrot.lane.b32.xlu1 %v13959_v24, %s13679_s26  ;;  %12941 = vmatmul.mubr.msk.bf16.vlgmr.msra.gmra.mrb[44].mxu1 %vm469_vm2, %v14313_v7  ;;  %v14480_v7 = vpop.permute.xlu1 %2131 }
 0x12e   : > { %1823 = vmatpush1.bf16.msra.mxu1 %v1740_v2  ;;  %1854 = vmatprep.mubr.bf16.mxu1 %v13673_v17  ;;  %v2163_v48 = vsel %vm2161_vm5, %v14454_v63, %v14480_v7 }
 0x12f   : > { %3487 = vrot.lane.b32.xlu0 %v13951_v23, %s13679_s26  ;;  %12949 = vmatprep.subr.msk.bf16.mxu1 %vm473_vm1, %v1721_v5 }
 0x130   : > { %v14477_v6 = vpop.permute.xlu0 %2133 }
 0x131   : > { %3489 = vrot.lane.b32.xlu1 %v13970_v27, %s13679_s26  ;;  %v14499_v20 = vpop.permute.xlu1 %2135  ;;  %v2164_v57 = vsel %vm2161_vm5, %v14480_v7, %v14477_v6 }
 0x132   : > { %12944 = vmatmul.mubr.msk.bf16.vlgmr.msra.gmra.mrb[48].mxu0 %vm469_vm2, %v14470_v4  ;;  %v2165_v52 = vsel %vm2161_vm5, %v14477_v6, %v14499_v20  ;;  %v2188_v61 = vsel %vm473_vm1, %v2164_v57, 0  ;;  %v14767_v57 = vld [vmem:[%s18150_s1 + $0x14] sm:$0xf] }
 0x133   : > { %1864 = vmatpush1.bf16.msra.mxu0 %v1746_v9  ;;  %3491 = vrot.lane.b32.xlu0 %v13961_v25, %s13679_s26 }
 0x134   : > { %12951 = vmatprep.subr.msk.bf16.mxu0 %vm473_vm1, %v1723_v11  ;;  %v14497_v15 = vpop.permute.xlu0 %2137  ;;  %1895 = vmatprep.mubr.bf16.mxu0 %v13673_v17 }
 0x135   : > { %3493 = vrot.lane.b32.xlu1 %v13980_v30, %s13679_s26  ;;  %12946 = vmatmul.mubr.msk.bf16.vlgmr.msra.gmra.mrb[48].mxu1 %vm469_vm2, %v14470_v4  ;;  %v14518_v36 = vpop.permute.xlu1 %2139  ;;  %v2166_v60 = vsel %vm2161_vm5, %v14499_v20, %v14497_v15 }
 0x136   : > { %1905 = vmatpush1.bf16.msra.mxu1 %v1752_v26  ;;  %1936 = vmatprep.mubr.bf16.mxu1 %v13673_v17  ;;  %v2167_v56 = vsel %vm2161_vm5, %v14497_v15, %v14518_v36  ;;  %v2194_v2 = vsel %vm473_vm1, %v2166_v60, 0 }
 0x137   : > { %3495 = vrot.lane.b32.xlu0 %v13972_v29, %s13679_s26  ;;  %12953 = vmatprep.subr.msk.bf16.mxu1 %vm473_vm1, %v1725_v28 }
 0x138   : > { %v14515_v35 = vpop.permute.xlu0 %2141 }
 0x139   : > { %3497 = vrot.lane.b32.xlu1 %v13990_v32, %s13679_s26  ;;  %v14537_v41 = vpop.permute.xlu1 %2143  ;;  %v2168_v5 = vsel %vm2161_vm5, %v14518_v36, %v14515_v35 }
 0x13a   : > { %12948 = vmatmul.mubr.msk.bf16.vlgmr.msra.gmra.mrb[52].mxu0 %vm469_vm2, %v14470_v4  ;;  %v2200_v11 = vsel %vm473_vm1, %v2168_v5, 0 }
 0x13b   : > { %1946 = vmatpush1.bf16.msra.mxu0 %v1758_v37  ;;  %3499 = vrot.lane.b32.xlu0 %v13982_v31, %s13679_s26 }
 0x13c   : > { %12955 = vmatprep.subr.msk.bf16.mxu0 %vm473_vm1, %v1727_v38  ;;  %v14535_v40 = vpop.permute.xlu0 %2145  ;;  %1977 = vmatprep.mubr.bf16.mxu0 %v13673_v17 }
 0x13d   : > { %3501 = vrot.lane.b32.xlu1 %v14000_v34, %s13679_s26  ;;  %12950 = vmatmul.mubr.msk.bf16.vlgmr.msra.gmra.mrb[52].mxu1 %vm469_vm2, %v14470_v4  ;;  %v14556_v46 = vpop.permute.xlu1 %2147  ;;  %v2170_v9 = vsel %vm2161_vm5, %v14537_v41, %v14535_v40 }
 0x13e   : > { %1987 = vmatpush1.bf16.msra.mxu1 %v1764_v43  ;;  %2018 = vmatprep.mubr.bf16.mxu1 %v13673_v17  ;;  %v2206_v22 = vsel %vm473_vm1, %v2170_v9, 0 }
 0x13f   : > { %3503 = vrot.lane.b32.xlu0 %v13992_v33, %s13679_s26  ;;  %12957 = vmatprep.subr.msk.bf16.mxu1 %vm473_vm1, %v1729_v44  ;;  %s13682_s26 = smov 59  }
 0x140   : > { %v14553_v45 = vpop.permute.xlu0 %2149 }
 0x141   : > { %3919 = vrot.lane.b32.xlu1 %v13896_v8, %s13680_s29  ;;  %v14573_v50 = vpop.permute.xlu1 %2151  ;;  %v2162_v8 = vsel %vm2161_vm5, %v14456_v0, %v14454_v63  ;;  %v2169_v63 = vsel %vm2161_vm5, %v14515_v35, %v14537_v41  ;;  %v2172_v28 = vsel %vm2161_vm5, %v14556_v46, %v14553_v45 }
 0x142   : > { %12952 = vmatmul.mubr.msk.bf16.vlgmr.msra.gmra.mrb[56].mxu0 %vm469_vm2, %v14470_v4  ;;  %v2182_v55 = vsel %vm473_vm1, %v2162_v8, 0  ;;  %v2173_v12 = vsel %vm2161_vm5, %v14553_v45, %v14573_v50  ;;  %v2212_v38 = vsel %vm473_vm1, %v2172_v28, 0  ;;  %v14835_v28 = vcombine.high %v13992_v33, %v13992_v33 }
 0x143   : > { %2028 = vmatpush1.bf16.msra.mxu0 %v1770_v47  ;;  %3921 = vrot.lane.b32.xlu0 %v13929_v16, %s13680_s29  ;;  %v1776_v16 = vsel %vm473_vm1, %v1728_v49, 0 }
 0x144   : > { %12960 = vmatprep.subr.msk.bf16.mxu0 %vm473_vm1, %v2163_v48  ;;  %2059 = vmatprep.mubr.bf16.mxu0 %v13673_v17 }
 0x145   : > { %v14576_v51 = vpop.permute.xlu0 %2153  ;;  %3923 = vrot.lane.b32.xlu1 %v13918_v14, %s13680_s29  ;;  %12954 = vmatmul.mubr.msk.bf16.vlgmr.msra.gmra.mrb[56].mxu1 %vm469_vm2, %v14470_v4 }
 0x146   : > { %2069 = vmatpush1.bf16.msra.mxu1 %v1776_v16  ;;  %v14592_v53 = vpop.permute.xlu1 %2155  ;;  %2100 = vmatprep.mubr.bf16.mxu1 %v13673_v17  ;;  %v2174_v37 = vsel %vm2161_vm5, %v14573_v50, %v14576_v51 }
 0x147   : > { %3925 = vrot.lane.b32.xlu0 %v13949_v21, %s13680_s29  ;;  %12962 = vmatprep.subr.msk.bf16.mxu1 %vm473_vm1, %v2165_v52  ;;  %v2175_v26 = vsel %vm2161_vm5, %v14576_v51, %v14592_v53  ;;  %v2218_v42 = vsel %vm473_vm1, %v2174_v37, 0 }
 0x149   : > { %v14595_v54 = vpop.permute.xlu0 %2157  ;;  %3927 = vrot.lane.b32.xlu1 %v13901_v10, %s13680_s29 }
 0x14a   : > { %12956 = vmatmul.mubr.msk.bf16.vlgmr.msra.gmra.mrb[60].mxu0 %vm469_vm2, %v14470_v4  ;;  %v2160_v58 = vpop.permute.xlu1 %2159  ;;  %v2176_v44 = vsel %vm2161_vm5, %v14592_v53, %v14595_v54 }
 0x14b   : > { %2230 = vmatpush1.bf16.msra.mxu0 %v2182_v55  ;;  %3929 = vrot.lane.b32.xlu0 %v13934_v18, %s13680_s29  ;;  %v2177_v39 = vsel %vm2161_vm5, %v14595_v54, %v2160_v58  ;;  %v2224_v48 = vsel %vm473_vm1, %v2176_v44, 0 }
 0x14c   : > { %12964 = vmatprep.subr.msk.bf16.mxu0 %vm473_vm1, %v2167_v56  ;;  %2261 = vmatprep.mubr.bf16.mxu0 %v13673_v17 }
 0x14d   : > { %v14612_v59 = vpop.permute.xlu0 %2575  ;;  %3931 = vrot.lane.b32.xlu1 %v13940_v19, %s13680_s29  ;;  %12958 = vmatmul.mubr.msk.bf16.vlgmr.msra.gmra.mrb[60].mxu1 %vm469_vm2, %v14470_v4  ;;  %v2171_v4 = vsel %vm2161_vm5, %v14535_v40, %v14556_v46  ;;  %vm8452_vm5 = vcmask 982016  }
 0x14e   : > { %2271 = vmatpush1.bf16.msra.mxu1 %v2188_v61  ;;  %v2578_v0 = vpop.permute.xlu1 %2577  ;;  %2302 = vmatprep.mubr.bf16.mxu1 %v13673_v17 }
 0x14f   : > { %3933 = vrot.lane.b32.xlu0 %v13959_v24, %s13680_s29  ;;  %12966 = vmatprep.subr.msk.bf16.mxu1 %vm473_vm1, %v2169_v63  ;;  %v2610_v47 = vsel %vm2609_vm6, %v14612_v59, %v2578_v0 }
 0x150   : > { %v2630_v8 = vsel %vm473_vm1, %v2610_v47, 0 }
 0x151   : > { %v14634_v1 = vpop.permute.xlu0 %2579  ;;  %3935 = vrot.lane.b32.xlu1 %v13951_v23, %s13680_s29 }
 0x152   : > { %12961 = vmatmul.mubr.msk.bf16.vlgmr.msra.gmra.mrb[64].mxu0 %vm469_vm2, %v14625_v62  ;;  %v14650_v6 = vpop.permute.xlu1 %2581  ;;  %v2611_v43 = vsel %vm2609_vm6, %v2578_v0, %v14634_v1 }
 0x153   : > { %2312 = vmatpush1.bf16.msra.mxu0 %v2194_v2  ;;  %3937 = vrot.lane.b32.xlu0 %v13970_v27, %s13680_s29  ;;  %v2612_v52 = vsel %vm2609_vm6, %v14634_v1, %v14650_v6 }
 0x154   : > { %12968 = vmatprep.subr.msk.bf16.mxu0 %vm473_vm1, %v2171_v4  ;;  %2343 = vmatprep.mubr.bf16.mxu0 %v13673_v17  ;;  %v2636_v56 = vsel %vm473_vm1, %v2612_v52, 0 }
 0x155   : > { %v14653_v7 = vpop.permute.xlu0 %2583  ;;  %3939 = vrot.lane.b32.xlu1 %v13961_v25, %s13680_s29  ;;  %12963 = vmatmul.mubr.msk.bf16.vlgmr.msra.gmra.mrb[64].mxu1 %vm469_vm2, %v14625_v62 }
 0x156   : > { %2353 = vmatpush1.bf16.msra.mxu1 %v2200_v11  ;;  %2384 = vmatprep.mubr.bf16.mxu1 %v13673_v17  ;;  %v2613_v49 = vsel %vm2609_vm6, %v14650_v6, %v14653_v7 }
 0x157   : > { %3941 = vrot.lane.b32.xlu0 %v13980_v30, %s13680_s29  ;;  %12970 = vmatprep.subr.msk.bf16.mxu1 %vm473_vm1, %v2173_v12  ;;  %v2586_v15 = vpop.permute.xlu1 %2585 }
 0x158   : > { %v2614_v55 = vsel %vm2609_vm6, %v14653_v7, %v2586_v15 }
 0x159   : > { %v14670_v20 = vpop.permute.xlu0 %2587  ;;  %3943 = vrot.lane.b32.xlu1 %v13972_v29, %s13680_s29  ;;  %v2642_v61 = vsel %vm473_vm1, %v2614_v55, 0 }
 0x15a   : > { %12965 = vmatmul.mubr.msk.bf16.vlgmr.msra.gmra.mrb[68].mxu0 %vm469_vm2, %v14625_v62  ;;  %v2615_v16 = vsel %vm2609_vm6, %v2586_v15, %v14670_v20 }
 0x15b   : > { %2394 = vmatpush1.bf16.msra.mxu0 %v2206_v22  ;;  %3945 = vrot.lane.b32.xlu0 %v13990_v32, %s13680_s29  ;;  %v14686_v35 = vpop.permute.xlu1 %2589 }
 0x15c   : > { %12972 = vmatprep.subr.msk.bf16.mxu0 %vm473_vm1, %v2175_v26  ;;  %2425 = vmatprep.mubr.bf16.mxu0 %v13673_v17  ;;  %v2616_v63 = vsel %vm2609_vm6, %v14670_v20, %v14686_v35 }
 0x15d   : > { %v14689_v36 = vpop.permute.xlu0 %2591  ;;  %3947 = vrot.lane.b32.xlu1 %v13982_v31, %s13680_s29  ;;  %12967 = vmatmul.mubr.msk.bf16.vlgmr.msra.gmra.mrb[68].mxu1 %vm469_vm2, %v14625_v62  ;;  %v2648_v4 = vsel %vm473_vm1, %v2616_v63, 0 }
 0x15e   : > { %2435 = vmatpush1.bf16.msra.mxu1 %v2212_v38  ;;  %2466 = vmatprep.mubr.bf16.mxu1 %v13673_v17  ;;  %v2617_v58 = vsel %vm2609_vm6, %v14686_v35, %v14689_v36 }
 0x15f   : > { %3949 = vrot.lane.b32.xlu0 %v14000_v34, %s13680_s29  ;;  %12974 = vmatprep.subr.msk.bf16.mxu1 %vm473_vm1, %v2177_v39  ;;  %v2594_v40 = vpop.permute.xlu1 %2593 }
 0x160   : > { %v2618_v2 = vsel %vm2609_vm6, %v14689_v36, %v2594_v40 }
 0x161   : > { %v14705_v41 = vpop.permute.xlu0 %2595  ;;  %3951 = vrot.lane.b32.xlu1 %v13992_v33, %s13680_s29  ;;  %v2654_v9 = vsel %vm473_vm1, %v2618_v2, 0  ;;  %s13683_s29 = smov 58  }
 0x162   : > { %12969 = vmatmul.mubr.msk.bf16.vlgmr.msra.gmra.mrb[72].mxu0 %vm469_vm2, %v14625_v62 }
 0x163   : > { %2476 = vmatpush1.bf16.msra.mxu0 %v2218_v42  ;;  %4376 = vrot.lane.b32.xlu0 %v13918_v14, %s13681_s15  ;;  %v14720_v45 = vpop.permute.xlu1 %2597 }
 0x164   : > { %12977 = vmatprep.subr.msk.bf16.mxu0 %vm473_vm1, %v2611_v43  ;;  %2507 = vmatprep.mubr.bf16.mxu0 %v13673_v17  ;;  %v2620_v12 = vsel %vm2609_vm6, %v14705_v41, %v14720_v45 }
 0x165   : > { %v14723_v46 = vpop.permute.xlu0 %2599  ;;  %4378 = vrot.lane.b32.xlu1 %v13949_v21, %s13681_s15  ;;  %12971 = vmatmul.mubr.msk.bf16.vlgmr.msra.gmra.mrb[72].mxu1 %vm469_vm2, %v14625_v62  ;;  %v2660_v26 = vsel %vm473_vm1, %v2620_v12, 0 }
 0x166   : > { %2517 = vmatpush1.bf16.msra.mxu1 %v2224_v48  ;;  %2548 = vmatprep.mubr.bf16.mxu1 %v13673_v17  ;;  %v2621_v5 = vsel %vm2609_vm6, %v14720_v45, %v14723_v46 }
 0x167   : > { %4380 = vrot.lane.b32.xlu0 %v13901_v10, %s13681_s15  ;;  %12979 = vmatprep.subr.msk.bf16.mxu1 %vm473_vm1, %v2613_v49  ;;  %v2602_v50 = vpop.permute.xlu1 %2601 }
 0x168   : > { %v2622_v22 = vsel %vm2609_vm6, %v14723_v46, %v2602_v50 }
 0x169   : > { %v14739_v51 = vpop.permute.xlu0 %2603  ;;  %4382 = vrot.lane.b32.xlu1 %v13934_v18, %s13681_s15  ;;  %v2666_v38 = vsel %vm473_vm1, %v2622_v22, 0 }
 0x16a   : > { %12973 = vmatmul.mubr.msk.bf16.vlgmr.msra.gmra.mrb[76].mxu0 %vm469_vm2, %v14625_v62  ;;  %v2623_v11 = vsel %vm2609_vm6, %v2602_v50, %v14739_v51 }
 0x16b   : > { %2678 = vmatpush1.bf16.msra.mxu0 %v2630_v8  ;;  %4384 = vrot.lane.b32.xlu0 %v13940_v19, %s13681_s15  ;;  %v14754_v53 = vpop.permute.xlu1 %2605 }
 0x16c   : > { %12981 = vmatprep.subr.msk.bf16.mxu0 %vm473_vm1, %v2615_v16  ;;  %2709 = vmatprep.mubr.bf16.mxu0 %v13673_v17 }
 0x16d   : > { %v2608_v54 = vpop.permute.xlu0 %2607  ;;  %4386 = vrot.lane.b32.xlu1 %v13959_v24, %s13681_s15  ;;  %12975 = vmatmul.mubr.msk.bf16.vlgmr.msra.gmra.mrb[76].mxu1 %vm469_vm2, %v14625_v62  ;;  %v2619_v62 = vsel %vm2609_vm6, %v2594_v40, %v14705_v41  ;;  %v2624_v40 = vsel %vm2609_vm6, %v14739_v51, %v14754_v53 }
 0x16e   : > { %2719 = vmatpush1.bf16.msra.mxu1 %v2636_v56  ;;  %2750 = vmatprep.mubr.bf16.mxu1 %v13673_v17  ;;  %v2625_v35 = vsel %vm2609_vm6, %v14754_v53, %v2608_v54  ;;  %v2672_v44 = vsel %vm473_vm1, %v2624_v40, 0  ;;  %v14900_v53 = vld [vmem:[%s18150_s1 + $0x18] sm:$0xf]  ;;  %vm8900_vm6 = vcmask 973824  }
 0x16f   : > { %4388 = vrot.lane.b32.xlu0 %v13951_v23, %s13681_s15  ;;  %12983 = vmatprep.subr.msk.bf16.mxu1 %vm473_vm1, %v2617_v58  ;;  %v3024_v59 = vpop.permute.xlu1 %3023 }
 0x171   : > { %v3026_v60 = vpop.permute.xlu0 %3025  ;;  %4390 = vrot.lane.b32.xlu1 %v13970_v27, %s13681_s15 }
 0x172   : > { %12978 = vmatmul.mubr.msk.bf16.vlgmr.msra.gmra.mrb[80].mxu0 %vm469_vm2, %v14767_v57  ;;  %v3058_v43 = vsel %vm3057_vm7, %v3024_v59, %v3026_v60 }
 0x173   : > { %2760 = vmatpush1.bf16.msra.mxu0 %v2642_v61  ;;  %4392 = vrot.lane.b32.xlu0 %v13961_v25, %s13681_s15  ;;  %v14789_v0 = vpop.permute.xlu1 %3027  ;;  %v3078_v48 = vsel %vm473_vm1, %v3058_v43, 0 }
 0x174   : > { %12985 = vmatprep.subr.msk.bf16.mxu0 %vm473_vm1, %v2619_v62  ;;  %2791 = vmatprep.mubr.bf16.mxu0 %v13673_v17  ;;  %v3059_v39 = vsel %vm3057_vm7, %v3026_v60, %v14789_v0 }
 0x175   : > { %v14792_v1 = vpop.permute.xlu0 %3029  ;;  %4394 = vrot.lane.b32.xlu1 %v13980_v30, %s13681_s15  ;;  %12980 = vmatmul.mubr.msk.bf16.vlgmr.msra.gmra.mrb[80].mxu1 %vm469_vm2, %v14767_v57 }
 0x176   : > { %2801 = vmatpush1.bf16.msra.mxu1 %v2648_v4  ;;  %2832 = vmatprep.mubr.bf16.mxu1 %v13673_v17  ;;  %v3060_v50 = vsel %vm3057_vm7, %v14789_v0, %v14792_v1 }
 0x177   : > { %4396 = vrot.lane.b32.xlu0 %v13972_v29, %s13681_s15  ;;  %12987 = vmatprep.subr.msk.bf16.mxu1 %vm473_vm1, %v2621_v5  ;;  %v3032_v6 = vpop.permute.xlu1 %3031  ;;  %v3084_v52 = vsel %vm473_vm1, %v3060_v50, 0 }
 0x178   : > { %v3061_v45 = vsel %vm3057_vm7, %v14792_v1, %v3032_v6 }
 0x179   : > { %v3034_v7 = vpop.permute.xlu0 %3033  ;;  %4398 = vrot.lane.b32.xlu1 %v13990_v32, %s13681_s15 }
 0x17a   : > { %12982 = vmatmul.mubr.msk.bf16.vlgmr.msra.gmra.mrb[84].mxu0 %vm469_vm2, %v14767_v57  ;;  %v3062_v16 = vsel %vm3057_vm7, %v3032_v6, %v3034_v7 }
 0x17b   : > { %2842 = vmatpush1.bf16.msra.mxu0 %v2654_v9  ;;  %4400 = vrot.lane.b32.xlu0 %v13982_v31, %s13681_s15  ;;  %v14821_v15 = vpop.permute.xlu1 %3035 }
 0x17c   : > { %12989 = vmatprep.subr.msk.bf16.mxu0 %vm473_vm1, %v2623_v11  ;;  %2873 = vmatprep.mubr.bf16.mxu0 %v13673_v17  ;;  %v3063_v49 = vsel %vm3057_vm7, %v3034_v7, %v14821_v15 }
 0x17d   : > { %v14824_v20 = vpop.permute.xlu0 %3037  ;;  %4402 = vrot.lane.b32.xlu1 %v14000_v34, %s13681_s15  ;;  %12984 = vmatmul.mubr.msk.bf16.vlgmr.msra.gmra.mrb[84].mxu1 %vm469_vm2, %v14767_v57 }
 0x17e   : > { %2883 = vmatpush1.bf16.msra.mxu1 %v2660_v26  ;;  %2914 = vmatprep.mubr.bf16.mxu1 %v13673_v17  ;;  %v3064_v59 = vsel %vm3057_vm7, %v14821_v15, %v14824_v20 }
 0x17f   : > { %4404 = vrot.lane.b32.xlu0 %v13992_v33, %s13681_s15  ;;  %12991 = vmatprep.subr.msk.bf16.mxu1 %vm473_vm1, %v2625_v35  ;;  %v3040_v36 = vpop.permute.xlu1 %3039  ;;  %v3096_v63 = vsel %vm473_vm1, %v3064_v59, 0  ;;  %v15043_v59 = vld [vmem:[%s18150_s1 + $0x1c] sm:$0xf] }
 0x180   : > { %v3065_v54 = vsel %vm3057_vm7, %v14824_v20, %v3040_v36 }
 0x181   : > { %v3042_v37 = vpop.permute.xlu0 %3041  ;;  %4406 = vrot.lane.b32.xlu1 %v14835_v28, %s13681_s15 }
 0x182   : > { %12986 = vmatmul.mubr.msk.bf16.vlgmr.msra.gmra.mrb[88].mxu0 %vm469_vm2, %v14767_v57  ;;  %v3066_v62 = vsel %vm3057_vm7, %v3040_v36, %v3042_v37 }
 0x183   : > { %2924 = vmatpush1.bf16.msra.mxu0 %v2666_v38  ;;  %4408 = vrot.lane.b32.xlu0 %v13906_v13, %s13681_s15  ;;  %v14856_v41 = vpop.permute.xlu1 %3043  ;;  %v3102_v4 = vsel %vm473_vm1, %v3066_v62, 0  ;;  %s13684_s15 = smov 42  }
 0x184   : > { %12994 = vmatprep.subr.msk.bf16.mxu0 %vm473_vm1, %v3059_v39  ;;  %2955 = vmatprep.mubr.bf16.mxu0 %v13673_v17  ;;  %v3067_v58 = vsel %vm3057_vm7, %v3042_v37, %v14856_v41 }
 0x185   : > { %v14859_v42 = vpop.permute.xlu0 %3045  ;;  %4824 = vrot.lane.b32.xlu1 %v13918_v14, %s13682_s26  ;;  %12988 = vmatmul.mubr.msk.bf16.vlgmr.msra.gmra.mrb[88].mxu1 %vm469_vm2, %v14767_v57 }
 0x186   : > { %2965 = vmatpush1.bf16.msra.mxu1 %v2672_v44  ;;  %2996 = vmatprep.mubr.bf16.mxu1 %v13673_v17  ;;  %v3068_v6 = vsel %vm3057_vm7, %v14856_v41, %v14859_v42 }
 0x187   : > { %4826 = vrot.lane.b32.xlu0 %v13949_v21, %s13682_s26  ;;  %12996 = vmatprep.subr.msk.bf16.mxu1 %vm473_vm1, %v3061_v45  ;;  %v3048_v46 = vpop.permute.xlu1 %3047  ;;  %v3108_v12 = vsel %vm473_vm1, %v3068_v6, 0 }
 0x188   : > { %v3069_v0 = vsel %vm3057_vm7, %v14859_v42, %v3048_v46 }
 0x189   : > { %v3050_v47 = vpop.permute.xlu0 %3049  ;;  %4828 = vrot.lane.b32.xlu1 %v13901_v10, %s13682_s26 }
 0x18a   : > { %12990 = vmatmul.mubr.msk.bf16.vlgmr.msra.gmra.mrb[92].mxu0 %vm469_vm2, %v14767_v57  ;;  %v3070_v11 = vsel %vm3057_vm7, %v3048_v46, %v3050_v47 }
 0x18b   : > { %3126 = vmatpush1.bf16.msra.mxu0 %v3078_v48  ;;  %4830 = vrot.lane.b32.xlu0 %v13934_v18, %s13682_s26  ;;  %v14886_v51 = vpop.permute.xlu1 %3051  ;;  %v3114_v26 = vsel %vm473_vm1, %v3070_v11, 0 }
 0x18c   : > { %12998 = vmatprep.subr.msk.bf16.mxu0 %vm473_vm1, %v3063_v49  ;;  %3157 = vmatprep.mubr.bf16.mxu0 %v13673_v17  ;;  %v3071_v5 = vsel %vm3057_vm7, %v3050_v47, %v14886_v51 }
 0x18d   : > { %v14889_v8 = vpop.permute.xlu0 %3053  ;;  %4832 = vrot.lane.b32.xlu1 %v13940_v19, %s13682_s26  ;;  %12992 = vmatmul.mubr.msk.bf16.vlgmr.msra.gmra.mrb[92].mxu1 %vm469_vm2, %v14767_v57  ;;  %v3090_v57 = vsel %vm473_vm1, %v3062_v16, 0 }
 0x18e   : > { %3167 = vmatpush1.bf16.msra.mxu1 %v3084_v52  ;;  %3198 = vmatprep.mubr.bf16.mxu1 %v13673_v17  ;;  %v3072_v36 = vsel %vm3057_vm7, %v14886_v51, %v14889_v8 }
 0x18f   : > { %4834 = vrot.lane.b32.xlu0 %v13959_v24, %s13682_s26  ;;  %13000 = vmatprep.subr.msk.bf16.mxu1 %vm473_vm1, %v3065_v54  ;;  %v3056_v55 = vpop.permute.xlu1 %3055  ;;  %v3120_v42 = vsel %vm473_vm1, %v3072_v36, 0 }
 0x190   : > { %v3073_v15 = vsel %vm3057_vm7, %v14889_v8, %v3056_v55  ;;  %vm9348_vm7 = vcmask 965632  }
 0x191   : > { %v3472_v56 = vpop.permute.xlu0 %3471  ;;  %4836 = vrot.lane.b32.xlu1 %v13951_v23, %s13682_s26 }
 0x192   : > { %12995 = vmatmul.mubr.msk.bf16.vlgmr.msra.gmra.mrb[96].mxu0 %vm469_vm2, %v14900_v53 }
 0x193   : > { %3208 = vmatpush1.bf16.msra.mxu0 %v3090_v57  ;;  %4838 = vrot.lane.b32.xlu0 %v13970_v27, %s13682_s26  ;;  %v3474_v60 = vpop.permute.xlu1 %3473 }
 0x194   : > { %13002 = vmatprep.subr.msk.bf16.mxu0 %vm473_vm1, %v3067_v58  ;;  %3239 = vmatprep.mubr.bf16.mxu0 %v13673_v17  ;;  %v3506_v41 = vsel %vm3505_vm8, %v3472_v56, %v3474_v60 }
 0x195   : > { %v14922_v61 = vpop.permute.xlu0 %3475  ;;  %4840 = vrot.lane.b32.xlu1 %v13961_v25, %s13682_s26  ;;  %12997 = vmatmul.mubr.msk.bf16.vlgmr.msra.gmra.mrb[96].mxu1 %vm469_vm2, %v14900_v53  ;;  %v3526_v48 = vsel %vm473_vm1, %v3506_v41, 0 }
 0x196   : > { %3249 = vmatpush1.bf16.msra.mxu1 %v3096_v63  ;;  %3280 = vmatprep.mubr.bf16.mxu1 %v13673_v17  ;;  %v3507_v35 = vsel %vm3505_vm8, %v3474_v60, %v14922_v61 }
 0x197   : > { %4842 = vrot.lane.b32.xlu0 %v13980_v30, %s13682_s26  ;;  %13004 = vmatprep.subr.msk.bf16.mxu1 %vm473_vm1, %v3069_v0  ;;  %v3478_v1 = vpop.permute.xlu1 %3477 }
 0x198   : > { %v3508_v8 = vsel %vm3505_vm8, %v14922_v61, %v3478_v1 }
 0x199   : > { %v14936_v2 = vpop.permute.xlu0 %3479  ;;  %4844 = vrot.lane.b32.xlu1 %v13972_v29, %s13682_s26  ;;  %v3532_v58 = vsel %vm473_vm1, %v3508_v8, 0 }
 0x19a   : > { %12999 = vmatmul.mubr.msk.bf16.vlgmr.msra.gmra.mrb[100].mxu0 %vm469_vm2, %v14900_v53  ;;  %v3509_v44 = vsel %vm3505_vm8, %v3478_v1, %v14936_v2 }
 0x19b   : > { %3290 = vmatpush1.bf16.msra.mxu0 %v3102_v4  ;;  %4846 = vrot.lane.b32.xlu0 %v13990_v32, %s13682_s26  ;;  %v3482_v7 = vpop.permute.xlu1 %3481 }
 0x19c   : > { %13006 = vmatprep.subr.msk.bf16.mxu0 %vm473_vm1, %v3071_v5  ;;  %3321 = vmatprep.mubr.bf16.mxu0 %v13673_v17  ;;  %v3510_v57 = vsel %vm3505_vm8, %v14936_v2, %v3482_v7 }
 0x19d   : > { %v14952_v9 = vpop.permute.xlu0 %3483  ;;  %4848 = vrot.lane.b32.xlu1 %v13982_v31, %s13682_s26  ;;  %13001 = vmatmul.mubr.msk.bf16.vlgmr.msra.gmra.mrb[100].mxu1 %vm469_vm2, %v14900_v53  ;;  %v3538_v1 = vsel %vm473_vm1, %v3510_v57, 0 }
 0x19e   : > { %3331 = vmatpush1.bf16.msra.mxu1 %v3108_v12  ;;  %3362 = vmatprep.mubr.bf16.mxu1 %v13673_v17  ;;  %v3511_v50 = vsel %vm3505_vm8, %v3482_v7, %v14952_v9 }
 0x19f   : > { %4850 = vrot.lane.b32.xlu0 %v14000_v34, %s13682_s26  ;;  %13008 = vmatprep.subr.msk.bf16.mxu1 %vm473_vm1, %v3073_v15  ;;  %v14965_v20 = vpop.permute.xlu1 %3485 }
 0x1a0   : > { %v3512_v6 = vsel %vm3505_vm8, %v14952_v9, %v14965_v20 }
 0x1a1   : > { %v14968_v22 = vpop.permute.xlu0 %3487  ;;  %4852 = vrot.lane.b32.xlu1 %v13992_v33, %s13682_s26  ;;  %v3544_v9 = vsel %vm473_vm1, %v3512_v6, 0 }
 0x1a2   : > { %13003 = vmatmul.mubr.msk.bf16.vlgmr.msra.gmra.mrb[104].mxu0 %vm469_vm2, %v14900_v53  ;;  %v3513_v62 = vsel %vm3505_vm8, %v14965_v20, %v14968_v22 }
 0x1a3   : > { %3372 = vmatpush1.bf16.msra.mxu0 %v3114_v26  ;;  %4854 = vrot.lane.b32.xlu0 %v14835_v28, %s13682_s26  ;;  %v14983_v37 = vpop.permute.xlu1 %3489 }
 0x1a4   : > { %13011 = vmatprep.subr.msk.bf16.mxu0 %vm473_vm1, %v3507_v35  ;;  %3403 = vmatprep.mubr.bf16.mxu0 %v13673_v17  ;;  %v3514_v35 = vsel %vm3505_vm8, %v14968_v22, %v14983_v37 }
 0x1a5   : > { %v14986_v38 = vpop.f32.mrb[0].mxu0  ;;  %v14988_v39 = vpop.permute.xlu0 %3491  ;;  %4856 = vrot.lane.b32.xlu1 %v13906_v13, %s13682_s26  ;;  %13005 = vmatmul.mubr.msk.bf16.vlgmr.msra.gmra.mrb[104].mxu1 %vm469_vm2, %v14900_v53  ;;  %s13685_s26 = smov 41  }
 0x1a6   : > { %v14990_v40 = vpop.f32.mrb[1].mxu0  ;;  %3413 = vmatpush1.bf16.msra.mxu1 %v3120_v42  ;;  %3444 = vmatprep.mubr.bf16.mxu1 %v13673_v17  ;;  %v3515_v4 = vsel %vm3505_vm8, %v14983_v37, %v14988_v39 }
 0x1a7   : > { %v560_v43 = vpop.f32.mrb[2].mxu0  ;;  %5272 = vrot.lane.b32.xlu0 %v13918_v14, %s13683_s29  ;;  %13013 = vmatprep.subr.msk.bf16.mxu1 %vm473_vm1, %v3509_v44  ;;  %v15003_v46 = vpop.permute.xlu1 %3493 }
 0x1a8   : > { %v561_v45 = vpop.f32.mrb[3].mxu0  ;;  %v15011_v49 = vpop.f32.mrb[0].mxu1  ;;  %v3550_v43 = vsel %vm473_vm1, %v3514_v35, 0 }
 0x1a9   : > { %v15006_v47 = vpop.permute.xlu0 %3495  ;;  %5274 = vrot.lane.b32.xlu1 %v13949_v21, %s13683_s29  ;;  %v15017_v51 = vpop.f32.mrb[1].mxu1 }
 0x1aa   : > { %13007 = vmatmul.mubr.msk.bf16.vlgmr.msra.gmra.mrb[108].mxu0 %vm469_vm2, %v14900_v53  ;;  %v601_v16 = vpop.f32.mrb[2].mxu1  ;;  %v3517_v36 = vsel %vm3505_vm8, %v15003_v46, %v15006_v47 }
 0x1ab   : > { %3574 = vmatpush1.bf16.msra.mxu0 %v3526_v48  ;;  %5276 = vrot.lane.b32.xlu0 %v13901_v10, %s13683_s29  ;;  %v15024_v52 = vpop.permute.xlu1 %3497  ;;  %v602_v60 = vpop.f32.mrb[3].mxu1 }
 0x1ac   : > { %13015 = vmatprep.subr.msk.bf16.mxu0 %vm473_vm1, %v3511_v50  ;;  %3605 = vmatprep.mubr.bf16.mxu0 %v13673_v17  ;;  %v3516_v50 = vsel %vm3505_vm8, %v14988_v39, %v15003_v46 }
 0x1ad   : > { %v15027_v54 = vpop.f32.mrb[4].mxu0  ;;  %v15029_v55 = vpop.permute.xlu0 %3499  ;;  %5278 = vrot.lane.b32.xlu1 %v13934_v18, %s13683_s29  ;;  %13009 = vmatmul.mubr.msk.bf16.vlgmr.msra.gmra.mrb[108].mxu1 %vm469_vm2, %v14900_v53  ;;  %v3556_v39 = vsel %vm473_vm1, %v3516_v50, 0 }
 0x1ae   : > { %v15031_v56 = vpop.f32.mrb[5].mxu0  ;;  %3615 = vmatpush1.bf16.msra.mxu1 %v3532_v58  ;;  %3646 = vmatprep.mubr.bf16.mxu1 %v13673_v17  ;;  %v3519_v45 = vsel %vm3505_vm8, %v15024_v52, %v15029_v55 }
 0x1af   : > { %v642_v61 = vpop.f32.mrb[6].mxu0  ;;  %5280 = vrot.lane.b32.xlu0 %v13940_v19, %s13683_s29  ;;  %13017 = vmatprep.subr.msk.bf16.mxu1 %vm473_vm1, %v3513_v62  ;;  %v15051_v53 = vpop.permute.xlu1 %3501 }
 0x1b0   : > { %v643_v63 = vpop.f32.mrb[7].mxu0  ;;  %v15057_v2 = vpop.f32.mrb[4].mxu1  ;;  %v3518_v61 = vsel %vm3505_vm8, %v15006_v47, %v15024_v52 }
 0x1b1   : > { %v3504_v0 = vpop.permute.xlu0 %3503  ;;  %5282 = vrot.lane.b32.xlu1 %v13959_v24, %s13683_s29  ;;  %v15064_v5 = vpop.f32.mrb[5].mxu1 }
 0x1b2   : > { %13012 = vmatmul.mubr.msk.bf16.vlgmr.msra.gmra.mrb[112].mxu0 %vm469_vm2, %v15043_v59  ;;  %v683_v7 = vpop.f32.mrb[6].mxu1  ;;  %v3521_v62 = vsel %vm3505_vm8, %v15051_v53, %v3504_v0  ;;  %v3562_v0 = vsel %vm473_vm1, %v3518_v61, 0 }
 0x1b3   : > { %3656 = vmatpush1.bf16.msra.mxu0 %v3538_v1  ;;  %5284 = vrot.lane.b32.xlu0 %v13951_v23, %s13683_s29  ;;  %v15072_v11 = vpop.permute.xlu1 %3919  ;;  %v684_v26 = vpop.f32.mrb[7].mxu1 }
 0x1b4   : > { %13019 = vmatprep.subr.msk.bf16.mxu0 %vm473_vm1, %v3515_v4  ;;  %3687 = vmatprep.mubr.bf16.mxu0 %v13673_v17  ;;  %v3520_v26 = vsel %vm3505_vm8, %v15029_v55, %v15051_v53  ;;  %vm9796_vm8 = vcmask 834560  }
 0x1b5   : > { %v15075_v12 = vpop.f32.mrb[8].mxu0  ;;  %v15077_v15 = vpop.permute.xlu0 %3921  ;;  %5286 = vrot.lane.b32.xlu1 %v13970_v27, %s13683_s29  ;;  %13014 = vmatmul.mubr.msk.bf16.vlgmr.msra.gmra.mrb[112].mxu1 %vm469_vm2, %v15043_v59  ;;  %v3568_v53 = vsel %vm473_vm1, %v3520_v26, 0 }
 0x1b6   : > { %v15087_v20 = vpop.f32.mrb[9].mxu0  ;;  %3697 = vmatpush1.bf16.msra.mxu1 %v3544_v9  ;;  %3728 = vmatprep.mubr.bf16.mxu1 %v13673_v17  ;;  %v3954_v55 = vsel %vm3953_vm9, %v15072_v11, %v15077_v15 }
 0x1b7   : > { %5288 = vrot.lane.b32.xlu0 %v13961_v25, %s13683_s29  ;;  %v724_v41 = vpop.f32.mrb[10].mxu0  ;;  %13021 = vmatprep.subr.msk.bf16.mxu1 %vm473_vm1, %v3517_v36  ;;  %v15095_v22 = vpop.permute.xlu1 %3923 }
 0x1b8   : > { %v725_v37 = vpop.f32.mrb[11].mxu0  ;;  %v15103_v44 = vpop.f32.mrb[8].mxu1  ;;  %v3955_v6 = vsel %vm3953_vm9, %v15077_v15, %v15095_v22 }
 0x1b9   : > { %v15098_v42 = vpop.permute.xlu0 %3925  ;;  %5290 = vrot.lane.b32.xlu1 %v13980_v30, %s13683_s29  ;;  %v15110_v48 = vpop.f32.mrb[9].mxu1 }
 0x1ba   : > { %13016 = vmatmul.mubr.msk.bf16.vlgmr.msra.gmra.mrb[116].mxu0 %vm469_vm2, %v15043_v59  ;;  %v765_v8 = vpop.f32.mrb[10].mxu1 }
 0x1bb   : > { %3738 = vmatpush1.bf16.msra.mxu0 %v3550_v43  ;;  %5292 = vrot.lane.b32.xlu0 %v13972_v29, %s13683_s29  ;;  %v15118_v16 = vpop.permute.xlu1 %3927  ;;  %v766_v60 = vpop.f32.mrb[11].mxu1 }
 0x1bc   : > { %13023 = vmatprep.subr.msk.bf16.mxu0 %vm473_vm1, %v3519_v45  ;;  %3769 = vmatprep.mubr.bf16.mxu0 %v13673_v17 }
 0x1bd   : > { %v15120_v57 = vpop.f32.mrb[12].mxu0  ;;  %v15123_v58 = vpop.permute.xlu0 %3929  ;;  %5294 = vrot.lane.b32.xlu1 %v13990_v32, %s13683_s29  ;;  %13018 = vmatmul.mubr.msk.bf16.vlgmr.msra.gmra.mrb[116].mxu1 %vm469_vm2, %v15043_v59 }
 0x1be   : > { %v15133_v46 = vpop.f32.mrb[13].mxu0  ;;  %3779 = vmatpush1.bf16.msra.mxu1 %v3556_v39  ;;  %3810 = vmatprep.mubr.bf16.mxu1 %v13673_v17  ;;  %v3974_v39 = vsel %vm473_vm1, %v3954_v55, 0  ;;  %v15232_v55 = vld [vmem:[%s18150_s1 + $0x20] sm:$0xf] }
 0x1bf   : > { %5296 = vrot.lane.b32.xlu0 %v13982_v31, %s13683_s29  ;;  %v806_v63 = vpop.f32.mrb[14].mxu0  ;;  %13025 = vmatprep.subr.msk.bf16.mxu1 %vm473_vm1, %v3521_v62  ;;  %v15140_v47 = vpop.permute.xlu1 %3931 }
 0x1c0   : > { %v807_v52 = vpop.f32.mrb[15].mxu0  ;;  %v15148_v4 = vpop.f32.mrb[12].mxu1  ;;  %v3959_v63 = vsel %vm3953_vm9, %v15123_v58, %v15140_v47 }
 0x1c1   : > { %v15143_v1 = vpop.permute.xlu0 %3933  ;;  %5298 = vrot.lane.b32.xlu1 %v14000_v34, %s13683_s29  ;;  %v15155_v7 = vpop.f32.mrb[13].mxu1  ;;  %v3956_v52 = vsel %vm3953_vm9, %v15095_v22, %v15098_v42 }
 0x1c2   : > { %13020 = vmatmul.mubr.msk.bf16.vlgmr.msra.gmra.mrb[120].mxu0 %vm469_vm2, %v15043_v59  ;;  %v847_v35 = vpop.f32.mrb[14].mxu1 }
 0x1c3   : > { %3820 = vmatpush1.bf16.msra.mxu0 %v3562_v0  ;;  %5300 = vrot.lane.b32.xlu0 %v13992_v33, %s13683_s29  ;;  %v15163_v9 = vpop.permute.xlu1 %3935  ;;  %v848_v43 = vpop.f32.mrb[15].mxu1 }
 0x1c4   : > { %13028 = vmatprep.subr.msk.bf16.mxu0 %vm473_vm1, %v3955_v6  ;;  %3851 = vmatprep.mubr.bf16.mxu0 %v13673_v17 }
 0x1c5   : > { %v935_v36 = vpop.f32.mrb[16].mxu0  ;;  %v15166_v41 = vpop.permute.xlu0 %3937  ;;  %5302 = vrot.lane.b32.xlu1 %v14835_v28, %s13683_s29  ;;  %13022 = vmatmul.mubr.msk.bf16.vlgmr.msra.gmra.mrb[120].mxu1 %vm469_vm2, %v15043_v59 }
 0x1c6   : > { %v15169_v37 = vadd.f32 %v935_v36, %v14986_v38  ;;  %v937_v45 = vpop.f32.mrb[17].mxu0  ;;  %3861 = vmatpush1.bf16.msra.mxu1 %v3568_v53  ;;  %v3957_v38 = vsel %vm3953_vm9, %v15098_v42, %v15118_v16  ;;  %3892 = vmatprep.mubr.bf16.mxu1 %v13673_v17  ;;  %v3980_v42 = vsel %vm473_vm1, %v3956_v52, 0 }
 0x1c7   : > { %5304 = vrot.lane.b32.xlu0 %v13906_v13, %s13683_s29  ;;  %v15185_v50 = vadd.f32 %v937_v45, %v14990_v40  ;;  %v939_v11 = vpop.f32.mrb[18].mxu0  ;;  %13030 = vmatprep.subr.msk.bf16.mxu1 %vm473_vm1, %v3957_v38  ;;  %v15188_v15 = vpop.permute.xlu1 %3939  ;;  %s13686_s29 = smov 40  }
 0x1c8   : > { %v940_v8 = vpop.f32.mrb[19].mxu0  ;;  %v976_v60 = vpop.f32.mrb[16].mxu1 }
 0x1c9   : > { %v15191_v61 = vpop.permute.xlu0 %3941  ;;  %v15197_v62 = vadd.f32 %v976_v60, %v15011_v49  ;;  %v978_v40 = vpop.f32.mrb[17].mxu1  ;;  %5720 = vrot.lane.b32.xlu1 %v13918_v14, %s13684_s15  ;;  %v3963_v60 = vsel %vm3953_vm9, %v15166_v41, %v15188_v15 }
 0x1ca   : > { %13024 = vmatmul.mubr.msk.bf16.vlgmr.msra.gmra.mrb[124].mxu0 %vm469_vm2, %v15043_v59  ;;  %v15208_v0 = vadd.f32 %v978_v40, %v15017_v51  ;;  %v980_v49 = vpop.f32.mrb[18].mxu1  ;;  %v3958_v51 = vsel %vm3953_vm9, %v15118_v16, %v15123_v58 }
 0x1cb   : > { %4022 = vmatpush1.bf16.msra.mxu0 %v3974_v39  ;;  %5722 = vrot.lane.b32.xlu0 %v13949_v21, %s13684_s15  ;;  %v15213_v6 = vpop.permute.xlu1 %3943  ;;  %v981_v22 = vpop.f32.mrb[19].mxu1  ;;  %v3986_v11 = vsel %vm473_vm1, %v3958_v51, 0  ;;  %v3960_v39 = vsel %vm3953_vm9, %v15140_v47, %v15143_v1 }
 0x1cc   : > { %13032 = vmatprep.subr.msk.bf16.mxu0 %vm473_vm1, %v3959_v63  ;;  %4053 = vmatprep.mubr.bf16.mxu0 %v13673_v17  ;;  %v3992_v47 = vsel %vm473_vm1, %v3960_v39, 0 }
 0x1cd   : > { %v1017_v26 = vpop.f32.mrb[20].mxu0  ;;  %v15216_v35 = vpop.permute.xlu0 %3945  ;;  %5724 = vrot.lane.b32.xlu1 %v13901_v10, %s13684_s15  ;;  %13026 = vmatmul.mubr.msk.bf16.vlgmr.msra.gmra.mrb[124].mxu1 %vm469_vm2, %v15043_v59 }
 0x1ce   : > { %v15219_v36 = vadd.f32 %v1017_v26, %v15027_v54  ;;  %v1019_v43 = vpop.f32.mrb[21].mxu0  ;;  %4063 = vmatpush1.bf16.msra.mxu1 %v3980_v42  ;;  %v3961_v54 = vsel %vm3953_vm9, %v15143_v1, %v15163_v9  ;;  %4094 = vmatprep.mubr.bf16.mxu1 %v13673_v17 }
 0x1cf   : > { %5726 = vrot.lane.b32.xlu0 %v13934_v18, %s13684_s15  ;;  %v15240_v16 = vadd.f32 %v1019_v43, %v15031_v56  ;;  %v1021_v59 = vpop.f32.mrb[22].mxu0  ;;  %13034 = vmatprep.subr.msk.bf16.mxu1 %vm473_vm1, %v3961_v54  ;;  %v15243_v58 = vpop.permute.xlu1 %3947 }
 0x1d0   : > { %v1022_v53 = vpop.f32.mrb[23].mxu0  ;;  %v1058_v45 = vpop.f32.mrb[20].mxu1 }
 0x1d1   : > { %v15246_v38 = vpop.permute.xlu0 %3949  ;;  %v15252_v8 = vadd.f32 %v1058_v45, %v15057_v2  ;;  %v1060_v56 = vpop.f32.mrb[21].mxu1  ;;  %5728 = vrot.lane.b32.xlu1 %v13940_v19, %s13684_s15  ;;  %v3967_v45 = vsel %vm3953_vm9, %v15216_v35, %v15243_v58 }
 0x1d2   : > { %13029 = vmatmul.mubr.msk.bf16.vlgmr.msra.gmra.mrb[128].mxu0 %vm469_vm2, %v15232_v55  ;;  %v15263_v40 = vadd.f32 %v1060_v56, %v15064_v5  ;;  %v1062_v2 = vpop.f32.mrb[22].mxu1  ;;  %v3962_v5 = vsel %vm3953_vm9, %v15163_v9, %v15166_v41 }
 0x1d3   : > { %4104 = vmatpush1.bf16.msra.mxu0 %v3986_v11  ;;  %5730 = vrot.lane.b32.xlu0 %v13959_v24, %s13684_s15  ;;  %v3952_v63 = vpop.permute.xlu1 %3951  ;;  %v1063_v22 = vpop.f32.mrb[23].mxu1  ;;  %v3998_v59 = vsel %vm473_vm1, %v3962_v5, 0  ;;  %v3964_v11 = vsel %vm3953_vm9, %v15188_v15, %v15191_v61 }
 0x1d4   : > { %13036 = vmatprep.subr.msk.bf16.mxu0 %vm473_vm1, %v3963_v60  ;;  %4135 = vmatprep.mubr.bf16.mxu0 %v13673_v17  ;;  %v3969_v5 = vsel %vm3953_vm9, %v15246_v38, %v3952_v63 }
 0x1d5   : > { %v1099_v52 = vpop.f32.mrb[24].mxu0  ;;  %v15269_v49 = vpop.permute.xlu0 %4376  ;;  %5732 = vrot.lane.b32.xlu1 %v13951_v23, %s13684_s15  ;;  %13031 = vmatmul.mubr.msk.bf16.vlgmr.msra.gmra.mrb[128].mxu1 %vm469_vm2, %v15232_v55 }
 0x1d6   : > { %v15272_v26 = vadd.f32 %v1099_v52, %v15075_v12  ;;  %v1101_v1 = vpop.f32.mrb[25].mxu0  ;;  %4145 = vmatpush1.bf16.msra.mxu1 %v3992_v47  ;;  %v3965_v12 = vsel %vm3953_vm9, %v15191_v61, %v15213_v6  ;;  %4176 = vmatprep.mubr.bf16.mxu1 %v13673_v17  ;;  %v4004_v61 = vsel %vm473_vm1, %v3964_v11, 0 }
 0x1d7   : > { %5734 = vrot.lane.b32.xlu0 %v13970_v27, %s13684_s15  ;;  %v15288_v51 = vadd.f32 %v1101_v1, %v15087_v20  ;;  %v1103_v9 = vpop.f32.mrb[26].mxu0  ;;  %13038 = vmatprep.subr.msk.bf16.mxu1 %vm473_vm1, %v3965_v12  ;;  %v4379_v41 = vpop.permute.xlu1 %4378 }
 0x1d8   : > { %v1104_v42 = vpop.f32.mrb[27].mxu0  ;;  %v1140_v43 = vpop.f32.mrb[24].mxu1 }
 0x1d9   : > { %v15292_v54 = vpop.permute.xlu0 %4380  ;;  %v15298_v53 = vadd.f32 %v1140_v43, %v15103_v44  ;;  %v1142_v20 = vpop.f32.mrb[25].mxu1  ;;  %5736 = vrot.lane.b32.xlu1 %v13961_v25, %s13684_s15  ;;  %v3968_v43 = vsel %vm3953_vm9, %v15243_v58, %v15246_v38 }
 0x1da   : > { %13033 = vmatmul.mubr.msk.bf16.vlgmr.msra.gmra.mrb[132].mxu0 %vm469_vm2, %v15232_v55  ;;  %v15309_v56 = vadd.f32 %v1142_v20, %v15110_v48  ;;  %v1144_v44 = vpop.f32.mrb[26].mxu1  ;;  %v3966_v48 = vsel %vm3953_vm9, %v15213_v6, %v15216_v35  ;;  %v4412_v42 = vsel %vm4410_vm10, %v4379_v41, %v15292_v54  ;;  %v4016_v38 = vsel %vm473_vm1, %v3968_v43, 0 }
 0x1db   : > { %4186 = vmatpush1.bf16.msra.mxu0 %v3998_v59  ;;  %5738 = vrot.lane.b32.xlu0 %v13980_v30, %s13684_s15  ;;  %v15314_v60 = vpop.permute.xlu1 %4382  ;;  %v1145_v15 = vpop.f32.mrb[27].mxu1  ;;  %v4010_v63 = vsel %vm473_vm1, %v3966_v48, 0  ;;  %vm10244_vm9 = vcmask 826368  }
 0x1dc   : > { %13040 = vmatprep.subr.msk.bf16.mxu0 %vm473_vm1, %v3967_v45  ;;  %4217 = vmatprep.mubr.bf16.mxu0 %v13673_v17 }
 0x1dd   : > { %v1181_v39 = vpop.f32.mrb[28].mxu0  ;;  %v15317_v2 = vpop.permute.xlu0 %4384  ;;  %5740 = vrot.lane.b32.xlu1 %v13972_v29, %s13684_s15  ;;  %13035 = vmatmul.mubr.msk.bf16.vlgmr.msra.gmra.mrb[132].mxu1 %vm469_vm2, %v15232_v55 }
 0x1de   : > { %v15320_v52 = vadd.f32 %v1181_v39, %v15120_v57  ;;  %v1183_v22 = vpop.f32.mrb[29].mxu0  ;;  %4227 = vmatpush1.bf16.msra.mxu1 %v4004_v61  ;;  %4258 = vmatprep.mubr.bf16.mxu1 %v13673_v17  ;;  %v4414_v15 = vsel %vm4410_vm10, %v15314_v60, %v15317_v2 }
 0x1df   : > { %5742 = vrot.lane.b32.xlu0 %v13990_v32, %s13684_s15  ;;  %v15335_v57 = vadd.f32 %v1183_v22, %v15133_v46  ;;  %v1185_v6 = vpop.f32.mrb[30].mxu0  ;;  %13042 = vmatprep.subr.msk.bf16.mxu1 %vm473_vm1, %v3969_v5  ;;  %v4387_v35 = vpop.permute.xlu1 %4386 }
 0x1e0   : > { %v1186_v47 = vpop.f32.mrb[31].mxu0  ;;  %v1222_v1 = vpop.f32.mrb[28].mxu1 }
 0x1e1   : > { %v15339_v12 = vpop.permute.xlu0 %4388  ;;  %v15345_v9 = vadd.f32 %v1222_v1, %v15148_v4  ;;  %v1224_v46 = vpop.f32.mrb[29].mxu1  ;;  %5744 = vrot.lane.b32.xlu1 %v13982_v31, %s13684_s15  ;;  %v4413_v1 = vsel %vm4410_vm10, %v15292_v54, %v15314_v60 }
 0x1e2   : > { %13037 = vmatmul.mubr.msk.bf16.vlgmr.msra.gmra.mrb[136].mxu0 %vm469_vm2, %v15232_v55  ;;  %v15355_v59 = vadd.f32 %v1224_v46, %v15155_v7  ;;  %v1226_v4 = vpop.f32.mrb[30].mxu1  ;;  %v4411_v7 = vsel %vm4410_vm10, %v15269_v49, %v4379_v41  ;;  %v4416_v47 = vsel %vm4410_vm10, %v4387_v35, %v15339_v12  ;;  %v4437_v60 = vsel %vm473_vm1, %v4413_v1, 0 }
 0x1e3   : > { %4268 = vmatpush1.bf16.msra.mxu0 %v4010_v63  ;;  %5746 = vrot.lane.b32.xlu0 %v14000_v34, %s13684_s15  ;;  %v15360_v20 = vpop.permute.xlu1 %4390  ;;  %v1227_v58 = vpop.f32.mrb[31].mxu1  ;;  %v4431_v5 = vsel %vm473_vm1, %v4411_v7, 0 }
 0x1e4   : > { %13045 = vmatprep.subr.msk.bf16.mxu0 %vm473_vm1, %v4412_v42  ;;  %4299 = vmatprep.mubr.bf16.mxu0 %v13673_v17  ;;  %v15424_v58 = vld [vmem:[%s18150_s1 + $0x24] sm:$0xf] }
 0x1e5   : > { %v1367_v45 = vpop.f32.mrb[32].mxu0  ;;  %v15363_v11 = vpop.permute.xlu0 %4392  ;;  %5748 = vrot.lane.b32.xlu1 %v13992_v33, %s13684_s15  ;;  %13039 = vmatmul.mubr.msk.bf16.vlgmr.msra.gmra.mrb[136].mxu1 %vm469_vm2, %v15232_v55 }
 0x1e6   : > { %v15366_v44 = vadd.f32 %v1367_v45, %v15169_v37  ;;  %v1369_v39 = vpop.f32.mrb[33].mxu0  ;;  %4309 = vmatpush1.bf16.msra.mxu1 %v4016_v38  ;;  %4340 = vmatprep.mubr.bf16.mxu1 %v13673_v17 }
 0x1e7   : > { %5750 = vrot.lane.b32.xlu0 %v14835_v28, %s13684_s15  ;;  %v15381_v37 = vadd.f32 %v1369_v39, %v15185_v50  ;;  %v1371_v49 = vpop.f32.mrb[34].mxu0  ;;  %13047 = vmatprep.subr.msk.bf16.mxu1 %vm473_vm1, %v4414_v15  ;;  %v4395_v41 = vpop.permute.xlu1 %4394 }
 0x1e8   : > { %v1372_v48 = vpop.f32.mrb[35].mxu0  ;;  %v1408_v61 = vpop.f32.mrb[32].mxu1 }
 0x1e9   : > { %v15385_v22 = vpop.permute.xlu0 %4396  ;;  %v15391_v6 = vadd.f32 %v1408_v61, %v15197_v62  ;;  %v1410_v50 = vpop.f32.mrb[33].mxu1  ;;  %5752 = vrot.lane.b32.xlu1 %v13906_v13, %s13684_s15  ;;  %v4417_v61 = vsel %vm4410_vm10, %v15339_v12, %v15360_v20  ;;  %s294_s15 = sand.u32 1, %s13632_s22  }
 0x1ea   : > { %13041 = vmatmul.mubr.msk.bf16.vlgmr.msra.gmra.mrb[140].mxu0 %vm469_vm2, %v15232_v55  ;;  %v15401_v63 = vadd.f32 %v1410_v50, %v15208_v0  ;;  %v1412_v62 = vpop.f32.mrb[34].mxu1  ;;  %v4415_v0 = vsel %vm4410_vm10, %v15317_v2, %v4387_v35  ;;  %v4420_v48 = vsel %vm4410_vm10, %v4395_v41, %v15385_v22  ;;  %v4449_v12 = vsel %vm473_vm1, %v4417_v61, 0  ;;  %s12886_s8 = sshll.u32 %s294_s15, 6 }
 0x1eb   : > { %4479 = vmatpush1.bf16.msra.mxu0 %v4431_v5  ;;  %6168 = vrot.lane.b32.xlu0 %v13918_v14, %s13685_s26  ;;  %v15406_v46 = vpop.permute.xlu1 %4398  ;;  %v1413_v54 = vpop.f32.mrb[35].mxu1  ;;  %v4443_v15 = vsel %vm473_vm1, %v4415_v0, 0 }
 0x1ec   : > { %13049 = vmatprep.subr.msk.bf16.mxu0 %vm473_vm1, %v4416_v47  ;;  %4510 = vmatprep.mubr.bf16.mxu0 %v13673_v17 }
 0x1ed   : > { %v1449_v42 = vpop.f32.mrb[36].mxu0  ;;  %v15409_v43 = vpop.permute.xlu0 %4400  ;;  %6170 = vrot.lane.b32.xlu1 %v13949_v21, %s13685_s26  ;;  %13043 = vmatmul.mubr.msk.bf16.vlgmr.msra.gmra.mrb[140].mxu1 %vm469_vm2, %v15232_v55 }
 0x1ee   : > { %v15412_v4 = vadd.f32 %v1449_v42, %v15219_v36  ;;  %v1451_v45 = vpop.f32.mrb[37].mxu0  ;;  %4520 = vmatpush1.bf16.msra.mxu1 %v4437_v60  ;;  %v4418_v36 = vsel %vm4410_vm10, %v15360_v20, %v15363_v11  ;;  %4551 = vmatprep.mubr.bf16.mxu1 %v13673_v17  ;;  %v4422_v54 = vsel %vm4410_vm10, %v15406_v46, %v15409_v43 }
 0x1ef   : > { %6172 = vrot.lane.b32.xlu0 %v13901_v10, %s13685_s26  ;;  %v15432_v2 = vadd.f32 %v1451_v45, %v15240_v16  ;;  %v1453_v55 = vpop.f32.mrb[38].mxu0  ;;  %13051 = vmatprep.subr.msk.bf16.mxu1 %vm473_vm1, %v4418_v36  ;;  %v4403_v35 = vpop.permute.xlu1 %4402 }
 0x1f0   : > { %v1454_v7 = vpop.f32.mrb[39].mxu0  ;;  %v1490_v38 = vpop.f32.mrb[36].mxu1 }
 0x1f1   : > { %v15436_v39 = vpop.permute.xlu0 %4404  ;;  %v15442_v49 = vadd.f32 %v1490_v38, %v15252_v8  ;;  %v1492_v16 = vpop.f32.mrb[37].mxu1  ;;  %6174 = vrot.lane.b32.xlu1 %v13934_v18, %s13685_s26  ;;  %v4421_v38 = vsel %vm4410_vm10, %v15385_v22, %v15406_v46 }
 0x1f2   : > { %13046 = vmatmul.mubr.msk.bf16.vlgmr.msra.gmra.mrb[144].mxu0 %vm469_vm2, %v15424_v58  ;;  %v15452_v5 = vadd.f32 %v1492_v16, %v15263_v40  ;;  %v1494_v8 = vpop.f32.mrb[38].mxu1  ;;  %v4419_v40 = vsel %vm4410_vm10, %v15363_v11, %v4395_v41  ;;  %v4461_v22 = vsel %vm473_vm1, %v4421_v38, 0 }
 0x1f3   : > { %4561 = vmatpush1.bf16.msra.mxu0 %v4443_v15  ;;  %6176 = vrot.lane.b32.xlu0 %v13940_v19, %s13685_s26  ;;  %v15457_v50 = vpop.permute.xlu1 %4406  ;;  %v1495_v42 = vpop.f32.mrb[39].mxu1  ;;  %v4455_v36 = vsel %vm473_vm1, %v4419_v40, 0 }
 0x1f4   : > { %13053 = vmatprep.subr.msk.bf16.mxu0 %vm473_vm1, %v4420_v48  ;;  %4592 = vmatprep.mubr.bf16.mxu0 %v13673_v17 }
 0x1f5   : > { %v1531_v47 = vpop.f32.mrb[40].mxu0  ;;  %v4409_v1 = vpop.permute.xlu0 %4408  ;;  %6178 = vrot.lane.b32.xlu1 %v13959_v24, %s13685_s26  ;;  %13048 = vmatmul.mubr.msk.bf16.vlgmr.msra.gmra.mrb[144].mxu1 %vm469_vm2, %v15424_v58 }
 0x1f6   : > { %v15461_v62 = vadd.f32 %v1531_v47, %v15272_v26  ;;  %v1533_v20 = vpop.f32.mrb[41].mxu0  ;;  %4602 = vmatpush1.bf16.msra.mxu1 %v4449_v12  ;;  %4633 = vmatprep.mubr.bf16.mxu1 %v13673_v17  ;;  %v4426_v42 = vsel %vm4410_vm10, %v15457_v50, %v4409_v1 }
 0x1f7   : > { %6180 = vrot.lane.b32.xlu0 %v13951_v23, %s13685_s26  ;;  %v15476_v26 = vadd.f32 %v1533_v20, %v15288_v51  ;;  %v1535_v11 = vpop.f32.mrb[42].mxu0  ;;  %13055 = vmatprep.subr.msk.bf16.mxu1 %vm473_vm1, %v4422_v54  ;;  %v4825_v41 = vpop.permute.xlu1 %4824  ;;  %v4424_v51 = vsel %vm4410_vm10, %v4403_v35, %v15436_v39 }
 0x1f8   : > { %v1536_v0 = vpop.f32.mrb[43].mxu0  ;;  %v1572_v60 = vpop.f32.mrb[40].mxu1 }
 0x1f9   : > { %v4827_v45 = vpop.permute.xlu0 %4826  ;;  %v15484_v55 = vadd.f32 %v1572_v60, %v15298_v53  ;;  %v1574_v7 = vpop.f32.mrb[41].mxu1  ;;  %6182 = vrot.lane.b32.xlu1 %v13970_v27, %s13685_s26  ;;  %v4425_v0 = vsel %vm4410_vm10, %v15436_v39, %v15457_v50 }
 0x1fa   : > { %13050 = vmatmul.mubr.msk.bf16.vlgmr.msra.gmra.mrb[148].mxu0 %vm469_vm2, %v15424_v58  ;;  %v15494_v15 = vadd.f32 %v1574_v7, %v15309_v56  ;;  %v1576_v53 = vpop.f32.mrb[42].mxu1  ;;  %v4423_v56 = vsel %vm4410_vm10, %v15409_v43, %v4403_v35  ;;  %v4473_v50 = vsel %vm473_vm1, %v4425_v0, 0  ;;  %vm10692_vm10 = vcmask 818176  }
 0x1fb   : > { %4643 = vmatpush1.bf16.msra.mxu0 %v4455_v36  ;;  %6184 = vrot.lane.b32.xlu0 %v13961_v25, %s13685_s26  ;;  %v15499_v16 = vpop.permute.xlu1 %4828  ;;  %v1577_v47 = vpop.f32.mrb[43].mxu1  ;;  %v4467_v1 = vsel %vm473_vm1, %v4423_v56, 0 }
 0x1fc   : > { %13057 = vmatprep.subr.msk.bf16.mxu0 %vm473_vm1, %v4424_v51  ;;  %4674 = vmatprep.mubr.bf16.mxu0 %v13673_v17  ;;  %v4860_v11 = vsel %vm4858_vm11, %v4827_v45, %v15499_v16 }
 0x1fd   : > { %v1613_v48 = vpop.f32.mrb[44].mxu0  ;;  %v4831_v61 = vpop.permute.xlu0 %4830  ;;  %6186 = vrot.lane.b32.xlu1 %v13980_v30, %s13685_s26  ;;  %13052 = vmatmul.mubr.msk.bf16.vlgmr.msra.gmra.mrb[148].mxu1 %vm469_vm2, %v15424_v58 }
 0x1fe   : > { %v15503_v8 = vadd.f32 %v1613_v48, %v15320_v52  ;;  %v1615_v46 = vpop.f32.mrb[45].mxu0  ;;  %4684 = vmatpush1.bf16.msra.mxu1 %v4461_v22  ;;  %4715 = vmatprep.mubr.bf16.mxu1 %v13673_v17 }
 0x1ff   : > { %6188 = vrot.lane.b32.xlu0 %v13972_v29, %s13685_s26  ;;  %v15517_v52 = vadd.f32 %v1615_v46, %v15335_v57  ;;  %v1617_v43 = vpop.f32.mrb[46].mxu0  ;;  %13059 = vmatprep.subr.msk.bf16.mxu1 %vm473_vm1, %v4426_v42  ;;  %v4833_v35 = vpop.permute.xlu1 %4832 }
 0x200   : > { %v1618_v40 = vpop.f32.mrb[47].mxu0  ;;  %v1654_v12 = vpop.f32.mrb[44].mxu1  ;;  %v4862_v48 = vsel %vm4858_vm11, %v4831_v61, %v4833_v35 }
 0x201   : > { %v4835_v20 = vpop.permute.xlu0 %4834  ;;  %v15525_v54 = vadd.f32 %v1654_v12, %v15345_v9  ;;  %v1656_v57 = vpop.f32.mrb[45].mxu1  ;;  %6190 = vrot.lane.b32.xlu1 %v13990_v32, %s13685_s26  ;;  %v4861_v40 = vsel %vm4858_vm11, %v15499_v16, %v4831_v61 }
 0x202   : > { %13054 = vmatmul.mubr.msk.bf16.vlgmr.msra.gmra.mrb[152].mxu0 %vm469_vm2, %v15424_v58  ;;  %v15535_v60 = vadd.f32 %v1656_v57, %v15355_v59  ;;  %v1658_v9 = vpop.f32.mrb[46].mxu1  ;;  %v4859_v59 = vsel %vm4858_vm11, %v4825_v41, %v4827_v45  ;;  %v4885_v61 = vsel %vm473_vm1, %v4861_v40, 0 }
 0x203   : > { %4725 = vmatpush1.bf16.msra.mxu0 %v4467_v1  ;;  %6192 = vrot.lane.b32.xlu0 %v13982_v31, %s13685_s26  ;;  %v15540_v36 = vpop.permute.xlu1 %4836  ;;  %v1659_v39 = vpop.f32.mrb[47].mxu1  ;;  %v4879_v46 = vsel %vm473_vm1, %v4859_v59, 0 }
 0x204   : > { %13062 = vmatprep.subr.msk.bf16.mxu0 %vm473_vm1, %v4860_v11  ;;  %4756 = vmatprep.mubr.bf16.mxu0 %v13673_v17 }
 0x205   : > { %v1815_v7 = vpop.f32.mrb[48].mxu0  ;;  %v15543_v51 = vpop.permute.xlu0 %4838  ;;  %6194 = vrot.lane.b32.xlu1 %v14000_v34, %s13685_s26  ;;  %13056 = vmatmul.mubr.msk.bf16.vlgmr.msra.gmra.mrb[152].mxu1 %vm469_vm2, %v15424_v58 }
 0x206   : > { %v15546_v38 = vadd.f32 %v1815_v7, %v15366_v44  ;;  %v1817_v53 = vpop.f32.mrb[49].mxu0  ;;  %4766 = vmatpush1.bf16.msra.mxu1 %v4473_v50  ;;  %4797 = vmatprep.mubr.bf16.mxu1 %v13673_v17  ;;  %v15597_v7 = vld [vmem:[%s18150_s1 + $0x28] sm:$0xf] }
 0x207   : > { %6196 = vrot.lane.b32.xlu0 %v13992_v33, %s13685_s26  ;;  %v15558_v44 = vadd.f32 %v1817_v53, %v15381_v37  ;;  %v1819_v47 = vpop.f32.mrb[50].mxu0  ;;  %13064 = vmatprep.subr.msk.bf16.mxu1 %vm473_vm1, %v4862_v48  ;;  %v4841_v41 = vpop.permute.xlu1 %4840  ;;  %v4864_v37 = vsel %vm4858_vm11, %v4835_v20, %v15540_v36 }
 0x208   : > { %v1820_v45 = vpop.f32.mrb[51].mxu0  ;;  %v1856_v56 = vpop.f32.mrb[48].mxu1 }
 0x209   : > { %v4843_v22 = vpop.permute.xlu0 %4842  ;;  %v15566_v42 = vadd.f32 %v1856_v56, %v15391_v6  ;;  %v1858_v43 = vpop.f32.mrb[49].mxu1  ;;  %6198 = vrot.lane.b32.xlu1 %v14835_v28, %s13685_s26  ;;  %v4865_v45 = vsel %vm4858_vm11, %v15540_v36, %v15543_v51 }
 0x20a   : > { %13058 = vmatmul.mubr.msk.bf16.vlgmr.msra.gmra.mrb[156].mxu0 %vm469_vm2, %v15424_v58  ;;  %v15575_v12 = vadd.f32 %v1858_v43, %v15401_v63  ;;  %v1860_v6 = vpop.f32.mrb[50].mxu1  ;;  %v4863_v63 = vsel %vm4858_vm11, %v4833_v35, %v4835_v20  ;;  %v4867_v36 = vsel %vm4858_vm11, %v4841_v41, %v4843_v22 }
 0x20b   : > { %4927 = vmatpush1.bf16.msra.mxu0 %v4879_v46  ;;  %6200 = vrot.lane.b32.xlu0 %v13906_v13, %s13685_s26  ;;  %v15580_v1 = vpop.permute.xlu1 %4844  ;;  %v1861_v16 = vpop.f32.mrb[51].mxu1  ;;  %v4891_v53 = vsel %vm473_vm1, %v4863_v63, 0 }
 0x20c   : > { %13066 = vmatprep.subr.msk.bf16.mxu0 %vm473_vm1, %v4864_v37  ;;  %4958 = vmatprep.mubr.bf16.mxu0 %v13673_v17 }
 0x20d   : > { %v1897_v57 = vpop.f32.mrb[52].mxu0  ;;  %v15583_v11 = vpop.permute.xlu0 %4846  ;;  %6616 = vrot.lane.b32.xlu1 %v13918_v14, %s13686_s29  ;;  %13060 = vmatmul.mubr.msk.bf16.vlgmr.msra.gmra.mrb[156].mxu1 %vm469_vm2, %v15424_v58 }
 0x20e   : > { %v15586_v0 = vadd.f32 %v1897_v57, %v15412_v4  ;;  %v1899_v9 = vpop.f32.mrb[53].mxu0  ;;  %4968 = vmatpush1.bf16.msra.mxu1 %v4885_v61  ;;  %v4866_v4 = vsel %vm4858_vm11, %v15543_v51, %v4841_v41  ;;  %4999 = vmatprep.mubr.bf16.mxu1 %v13673_v17 }
 0x20f   : > { %6618 = vrot.lane.b32.xlu0 %v13949_v21, %s13686_s29  ;;  %v15604_v35 = vadd.f32 %v1899_v9, %v15432_v2  ;;  %v1901_v20 = vpop.f32.mrb[54].mxu0  ;;  %13068 = vmatprep.subr.msk.bf16.mxu1 %vm473_vm1, %v4866_v4  ;;  %v4849_v58 = vpop.permute.xlu1 %4848  ;;  %v4868_v2 = vsel %vm4858_vm11, %v4843_v22, %v15580_v1  ;;  %v4903_v9 = vsel %vm473_vm1, %v4867_v36, 0 }
 0x210   : > { %v1902_v39 = vpop.f32.mrb[55].mxu0  ;;  %v1938_v59 = vpop.f32.mrb[52].mxu1  ;;  %v4870_v57 = vsel %vm4858_vm11, %v15583_v11, %v4849_v58 }
 0x211   : > { %v4851_v50 = vpop.permute.xlu0 %4850  ;;  %v15612_v48 = vadd.f32 %v1938_v59, %v15442_v49  ;;  %v1940_v47 = vpop.f32.mrb[53].mxu1  ;;  %6620 = vrot.lane.b32.xlu1 %v13901_v10, %s13686_s29  ;;  %v4869_v39 = vsel %vm4858_vm11, %v15580_v1, %v15583_v11 }
 0x212   : > { %13063 = vmatmul.mubr.msk.bf16.vlgmr.msra.gmra.mrb[160].mxu0 %vm469_vm2, %v15597_v7  ;;  %v15622_v56 = vadd.f32 %v1940_v47, %v15452_v5  ;;  %v1942_v49 = vpop.f32.mrb[54].mxu1  ;;  %v4897_v5 = vsel %vm473_vm1, %v4865_v45, 0  ;;  %v4871_v1 = vsel %vm4858_vm11, %v4849_v58, %v4851_v50 }
 0x213   : > { %5009 = vmatpush1.bf16.msra.mxu0 %v4891_v53  ;;  %6622 = vrot.lane.b32.xlu0 %v13934_v18, %s13686_s29  ;;  %v15627_v46 = vpop.permute.xlu1 %4852  ;;  %v1943_v6 = vpop.f32.mrb[55].mxu1 }
 0x214   : > { %13070 = vmatprep.subr.msk.bf16.mxu0 %vm473_vm1, %v4868_v2  ;;  %5040 = vmatprep.mubr.bf16.mxu0 %v13673_v17 }
 0x215   : > { %v1979_v43 = vpop.f32.mrb[56].mxu0  ;;  %v4855_v37 = vpop.permute.xlu0 %4854  ;;  %6624 = vrot.lane.b32.xlu1 %v13940_v19, %s13686_s29  ;;  %13065 = vmatmul.mubr.msk.bf16.vlgmr.msra.gmra.mrb[160].mxu1 %vm469_vm2, %v15597_v7 }
 0x216   : > { %v15631_v40 = vadd.f32 %v1979_v43, %v15461_v62  ;;  %v1981_v51 = vpop.f32.mrb[57].mxu0  ;;  %5050 = vmatpush1.bf16.msra.mxu1 %v4897_v5  ;;  %5081 = vmatprep.mubr.bf16.mxu1 %v13673_v17 }
 0x217   : > { %6626 = vrot.lane.b32.xlu0 %v13959_v24, %s13686_s29  ;;  %v15644_v62 = vadd.f32 %v1981_v51, %v15476_v26  ;;  %v1983_v41 = vpop.f32.mrb[58].mxu0  ;;  %13072 = vmatprep.subr.msk.bf16.mxu1 %vm473_vm1, %v4870_v57  ;;  %v4857_v22 = vpop.permute.xlu1 %4856  ;;  %v4872_v26 = vsel %vm4858_vm11, %v4851_v50, %v15627_v46  ;;  %v4915_v51 = vsel %vm473_vm1, %v4871_v1, 0 }
 0x218   : > { %v1984_v16 = vpop.f32.mrb[59].mxu0  ;;  %v2020_v63 = vpop.f32.mrb[56].mxu1  ;;  %v4874_v43 = vsel %vm4858_vm11, %v4855_v37, %v4857_v22  ;;  %v4873_v22 = vsel %vm4858_vm11, %v15627_v46, %v4855_v37  ;;  %vm11140_vm11 = vcmask 687104  }
 0x219   : > { %v5273_v61 = vpop.permute.xlu0 %5272  ;;  %v15652_v4 = vadd.f32 %v2020_v63, %v15484_v55  ;;  %v2022_v20 = vpop.f32.mrb[57].mxu1  ;;  %6628 = vrot.lane.b32.xlu1 %v13951_v23, %s13686_s29 }
 0x21a   : > { %13067 = vmatmul.mubr.msk.bf16.vlgmr.msra.gmra.mrb[164].mxu0 %vm469_vm2, %v15597_v7  ;;  %v15662_v59 = vadd.f32 %v2022_v20, %v15494_v15  ;;  %v2024_v55 = vpop.f32.mrb[58].mxu1  ;;  %v4909_v15 = vsel %vm473_vm1, %v4869_v39, 0 }
 0x21b   : > { %5091 = vmatpush1.bf16.msra.mxu0 %v4903_v9  ;;  %6630 = vrot.lane.b32.xlu0 %v13970_v27, %s13686_s29  ;;  %v5275_v53 = vpop.permute.xlu1 %5274  ;;  %v2025_v49 = vpop.f32.mrb[59].mxu1 }
 0x21c   : > { %13074 = vmatprep.subr.msk.bf16.mxu0 %vm473_vm1, %v4872_v26  ;;  %5122 = vmatprep.mubr.bf16.mxu0 %v13673_v17  ;;  %v5307_v46 = vsel %vm5306_vm12, %v5273_v61, %v5275_v53 }
 0x21d   : > { %v2061_v47 = vpop.f32.mrb[60].mxu0  ;;  %v5277_v2 = vpop.permute.xlu0 %5276  ;;  %6632 = vrot.lane.b32.xlu1 %v13961_v25, %s13686_s29  ;;  %13069 = vmatmul.mubr.msk.bf16.vlgmr.msra.gmra.mrb[164].mxu1 %vm469_vm2, %v15597_v7 }
 0x21e   : > { %v15669_v45 = vadd.f32 %v2061_v47, %v15503_v8  ;;  %v2063_v11 = vpop.f32.mrb[61].mxu0  ;;  %5132 = vmatpush1.bf16.msra.mxu1 %v4909_v15  ;;  %5163 = vmatprep.mubr.bf16.mxu1 %v13673_v17  ;;  %v5308_v41 = vsel %vm5306_vm12, %v5275_v53, %v5277_v2  ;;  %v5327_v15 = vsel %vm473_vm1, %v5307_v46, 0 }
 0x21f   : > { %6634 = vrot.lane.b32.xlu0 %v13980_v30, %s13686_s29  ;;  %v15681_v8 = vadd.f32 %v2063_v11, %v15517_v52  ;;  %v2065_v6 = vpop.f32.mrb[62].mxu0  ;;  %13076 = vmatprep.subr.msk.bf16.mxu1 %vm473_vm1, %v4874_v43  ;;  %v5279_v58 = vpop.permute.xlu1 %5278 }
 0x220   : > { %v2066_v50 = vpop.f32.mrb[63].mxu0  ;;  %v2102_v36 = vpop.f32.mrb[60].mxu1  ;;  %v5309_v6 = vsel %vm5306_vm12, %v5277_v2, %v5279_v58 }
 0x221   : > { %v5281_v5 = vpop.permute.xlu0 %5280  ;;  %v15689_v57 = vadd.f32 %v2102_v36, %v15525_v54  ;;  %v2104_v52 = vpop.f32.mrb[61].mxu1  ;;  %6636 = vrot.lane.b32.xlu1 %v13972_v29, %s13686_s29 }
 0x222   : > { %13071 = vmatmul.mubr.msk.bf16.vlgmr.msra.gmra.mrb[168].mxu0 %vm469_vm2, %v15597_v7  ;;  %v15697_v16 = vadd.f32 %v2104_v52, %v15535_v60  ;;  %v2106_v54 = vpop.f32.mrb[62].mxu1  ;;  %v4921_v60 = vsel %vm473_vm1, %v4873_v22, 0  ;;  %v5310_v55 = vsel %vm5306_vm12, %v5279_v58, %v5281_v5 }
 0x223   : > { %5173 = vmatpush1.bf16.msra.mxu0 %v4915_v51  ;;  %6638 = vrot.lane.b32.xlu0 %v13990_v32, %s13686_s29  ;;  %v5283_v63 = vpop.permute.xlu1 %5282  ;;  %v2107_v39 = vpop.f32.mrb[63].mxu1  ;;  %v15754_v54 = vld [vmem:[%s18150_s1 + $0x2c] sm:$0xf] }
 0x224   : > { %13079 = vmatprep.subr.msk.bf16.mxu0 %vm473_vm1, %v5308_v41  ;;  %5204 = vmatprep.mubr.bf16.mxu0 %v13673_v17  ;;  %v5311_v2 = vsel %vm5306_vm12, %v5281_v5, %v5283_v63 }
 0x225   : > { %v2263_v9 = vpop.f32.mrb[64].mxu0  ;;  %v15703_v20 = vpop.permute.xlu0 %5284  ;;  %6640 = vrot.lane.b32.xlu1 %v13982_v31, %s13686_s29  ;;  %13073 = vmatmul.mubr.msk.bf16.vlgmr.msra.gmra.mrb[168].mxu1 %vm469_vm2, %v15597_v7 }
 0x226   : > { %v15706_v26 = vadd.f32 %v2263_v9, %v15546_v38  ;;  %v2265_v37 = vpop.f32.mrb[65].mxu0  ;;  %5214 = vmatpush1.bf16.msra.mxu1 %v4921_v60  ;;  %5245 = vmatprep.mubr.bf16.mxu1 %v13673_v17  ;;  %v5339_v60 = vsel %vm473_vm1, %v5311_v2, 0 }
 0x227   : > { %6642 = vrot.lane.b32.xlu0 %v14000_v34, %s13686_s29  ;;  %v15718_v38 = vadd.f32 %v2265_v37, %v15558_v44  ;;  %v2267_v47 = vpop.f32.mrb[66].mxu0  ;;  %13081 = vmatprep.subr.msk.bf16.mxu1 %vm473_vm1, %v5310_v55  ;;  %v5287_v61 = vpop.permute.xlu1 %5286  ;;  %v5312_v44 = vsel %vm5306_vm12, %v5283_v63, %v15703_v20 }
 0x228   : > { %v2268_v53 = vpop.f32.mrb[67].mxu0  ;;  %v2304_v49 = vpop.f32.mrb[64].mxu1  ;;  %v5313_v47 = vsel %vm5306_vm12, %v15703_v20, %v5287_v61 }
 0x229   : > { %v5289_v1 = vpop.permute.xlu0 %5288  ;;  %v15726_v11 = vadd.f32 %v2304_v49, %v15566_v42  ;;  %v2306_v43 = vpop.f32.mrb[65].mxu1  ;;  %6644 = vrot.lane.b32.xlu1 %v13992_v33, %s13686_s29 }
 0x22a   : > { %13075 = vmatmul.mubr.msk.bf16.vlgmr.msra.gmra.mrb[172].mxu0 %vm469_vm2, %v15597_v7  ;;  %v15734_v50 = vadd.f32 %v2306_v43, %v15575_v12  ;;  %v2308_v42 = vpop.f32.mrb[66].mxu1  ;;  %v5333_v12 = vsel %vm473_vm1, %v5309_v6, 0 }
 0x22b   : > { %5375 = vmatpush1.bf16.msra.mxu0 %v5327_v15  ;;  %6646 = vrot.lane.b32.xlu0 %v14835_v28, %s13686_s29  ;;  %v5291_v36 = vpop.permute.xlu1 %5290  ;;  %v2309_v22 = vpop.f32.mrb[67].mxu1 }
 0x22c   : > { %13083 = vmatprep.subr.msk.bf16.mxu0 %vm473_vm1, %v5312_v44  ;;  %5406 = vmatprep.mubr.bf16.mxu0 %v13673_v17  ;;  %v5315_v20 = vsel %vm5306_vm12, %v5289_v1, %v5291_v36 }
 0x22d   : > { %v2345_v51 = vpop.f32.mrb[68].mxu0  ;;  %v15740_v52 = vpop.permute.xlu0 %5292  ;;  %6648 = vrot.lane.b32.xlu1 %v13906_v13, %s13686_s29  ;;  %13077 = vmatmul.mubr.msk.bf16.vlgmr.msra.gmra.mrb[172].mxu1 %vm469_vm2, %v15597_v7 }
 0x22e   : > { %v15743_v41 = vadd.f32 %v2345_v51, %v15586_v0  ;;  %v2347_v58 = vpop.f32.mrb[69].mxu0  ;;  %5416 = vmatpush1.bf16.msra.mxu1 %v5333_v12  ;;  %v5314_v0 = vsel %vm5306_vm12, %v5287_v61, %v5289_v1  ;;  %5447 = vmatprep.mubr.bf16.mxu1 %v13673_v17  ;;  %v5351_v12 = vsel %vm473_vm1, %v5315_v20, 0 }
 0x22f   : > { %7064 = vrot.lane.b32.xlu0 %v13918_v14, %s13687_s17  ;;  %v15760_v5 = vadd.f32 %v2347_v58, %v15604_v35  ;;  %v2349_v63 = vpop.f32.mrb[70].mxu0  ;;  %13085 = vmatprep.subr.msk.bf16.mxu1 %vm473_vm1, %v5314_v0  ;;  %v5295_v7 = vpop.permute.xlu1 %5294  ;;  %v5316_v35 = vsel %vm5306_vm12, %v5291_v36, %v15740_v52 }
 0x230   : > { %v2350_v9 = vpop.f32.mrb[71].mxu0  ;;  %v2386_v39 = vpop.f32.mrb[68].mxu1  ;;  %v5317_v63 = vsel %vm5306_vm12, %v15740_v52, %v5295_v7 }
 0x231   : > { %v5297_v46 = vpop.permute.xlu0 %5296  ;;  %v15768_v37 = vadd.f32 %v2386_v39, %v15612_v48  ;;  %v2388_v55 = vpop.f32.mrb[69].mxu1  ;;  %7066 = vrot.lane.b32.xlu1 %v13949_v21, %s13687_s17 }
 0x232   : > { %13080 = vmatmul.mubr.msk.bf16.vlgmr.msra.gmra.mrb[176].mxu0 %vm469_vm2, %v15754_v54  ;;  %v15777_v53 = vadd.f32 %v2388_v55, %v15622_v56  ;;  %v2390_v48 = vpop.f32.mrb[70].mxu1  ;;  %v5345_v56 = vsel %vm473_vm1, %v5313_v47, 0  ;;  %v5318_v42 = vsel %vm5306_vm12, %v5295_v7, %v5297_v46 }
 0x233   : > { %5457 = vmatpush1.bf16.msra.mxu0 %v5339_v60  ;;  %7068 = vrot.lane.b32.xlu0 %v13901_v10, %s13687_s17  ;;  %v5299_v49 = vpop.permute.xlu1 %5298  ;;  %v2391_v6 = vpop.f32.mrb[71].mxu1 }
 0x234   : > { %13087 = vmatprep.subr.msk.bf16.mxu0 %vm473_vm1, %v5316_v35  ;;  %5488 = vmatprep.mubr.bf16.mxu0 %v13673_v17  ;;  %v5319_v52 = vsel %vm5306_vm12, %v5297_v46, %v5299_v49 }
 0x235   : > { %v2427_v15 = vpop.f32.mrb[72].mxu0  ;;  %v5301_v43 = vpop.permute.xlu0 %5300  ;;  %7070 = vrot.lane.b32.xlu1 %v13934_v18, %s13687_s17  ;;  %13082 = vmatmul.mubr.msk.bf16.vlgmr.msra.gmra.mrb[176].mxu1 %vm469_vm2, %v15754_v54 }
 0x236   : > { %v15784_v44 = vadd.f32 %v2427_v15, %v15631_v40  ;;  %v2429_v61 = vpop.f32.mrb[73].mxu0  ;;  %5498 = vmatpush1.bf16.msra.mxu1 %v5345_v56  ;;  %5529 = vmatprep.mubr.bf16.mxu1 %v13673_v17  ;;  %v5363_v56 = vsel %vm473_vm1, %v5319_v52, 0 }
 0x237   : > { %7072 = vrot.lane.b32.xlu0 %v13940_v19, %s13687_s17  ;;  %v15796_v40 = vadd.f32 %v2429_v61, %v15644_v62  ;;  %v2431_v51 = vpop.f32.mrb[74].mxu0  ;;  %13089 = vmatprep.subr.msk.bf16.mxu1 %vm473_vm1, %v5318_v42  ;;  %v5303_v1 = vpop.permute.xlu1 %5302  ;;  %v5320_v62 = vsel %vm5306_vm12, %v5299_v49, %v5301_v43 }
 0x238   : > { %v2432_v36 = vpop.f32.mrb[75].mxu0  ;;  %v2468_v22 = vpop.f32.mrb[72].mxu1  ;;  %v5321_v51 = vsel %vm5306_vm12, %v5301_v43, %v5303_v1 }
 0x239   : > { %v5305_v2 = vpop.permute.xlu0 %5304  ;;  %v15804_v58 = vadd.f32 %v2468_v22, %v15652_v4  ;;  %v2470_v0 = vpop.f32.mrb[73].mxu1  ;;  %7074 = vrot.lane.b32.xlu1 %v13959_v24, %s13687_s17 }
 0x23a   : > { %13084 = vmatmul.mubr.msk.bf16.vlgmr.msra.gmra.mrb[180].mxu0 %vm469_vm2, %v15754_v54  ;;  %v15812_v9 = vadd.f32 %v2470_v0, %v15662_v59  ;;  %v2472_v4 = vpop.f32.mrb[74].mxu1  ;;  %v5357_v59 = vsel %vm473_vm1, %v5317_v63, 0  ;;  %v5322_v48 = vsel %vm5306_vm12, %v5303_v1, %v5305_v2  ;;  %v5369_v1 = vsel %vm473_vm1, %v5321_v51, 0 }
 0x23b   : > { %5539 = vmatpush1.bf16.msra.mxu0 %v5351_v12  ;;  %7076 = vrot.lane.b32.xlu0 %v13951_v23, %s13687_s17  ;;  %v5721_v39 = vpop.permute.xlu1 %5720  ;;  %v2473_v47 = vpop.f32.mrb[75].mxu1  ;;  %vm11588_vm12 = vcmask 678912  }
 0x23c   : > { %13091 = vmatprep.subr.msk.bf16.mxu0 %vm473_vm1, %v5320_v62  ;;  %5570 = vmatprep.mubr.bf16.mxu0 %v13673_v17 }
 0x23d   : > { %v2509_v60 = vpop.f32.mrb[76].mxu0  ;;  %v5723_v55 = vpop.permute.xlu0 %5722  ;;  %7078 = vrot.lane.b32.xlu1 %v13970_v27, %s13687_s17  ;;  %13086 = vmatmul.mubr.msk.bf16.vlgmr.msra.gmra.mrb[180].mxu1 %vm469_vm2, %v15754_v54 }
 0x23e   : > { %v15819_v35 = vadd.f32 %v2509_v60, %v15669_v45  ;;  %v2511_v7 = vpop.f32.mrb[77].mxu0  ;;  %5580 = vmatpush1.bf16.msra.mxu1 %v5357_v59  ;;  %5611 = vmatprep.mubr.bf16.mxu1 %v13673_v17 }
 0x23f   : > { %7080 = vrot.lane.b32.xlu0 %v13961_v25, %s13687_s17  ;;  %v15831_v45 = vadd.f32 %v2511_v7, %v15681_v8  ;;  %v2513_v15 = vpop.f32.mrb[78].mxu0  ;;  %13093 = vmatprep.subr.msk.bf16.mxu1 %vm473_vm1, %v5322_v48  ;;  %v5725_v46 = vpop.permute.xlu1 %5724 }
 0x240   : > { %v2514_v49 = vpop.f32.mrb[79].mxu0  ;;  %v2550_v6 = vpop.f32.mrb[76].mxu1  ;;  %v5756_v42 = vsel %vm5754_vm13, %v5723_v55, %v5725_v46 }
 0x241   : > { %v5727_v20 = vpop.permute.xlu0 %5726  ;;  %v15839_v61 = vadd.f32 %v2550_v6, %v15689_v57  ;;  %v2552_v8 = vpop.f32.mrb[77].mxu1  ;;  %7082 = vrot.lane.b32.xlu1 %v13980_v30, %s13687_s17 }
 0x242   : > { %13088 = vmatmul.mubr.msk.bf16.vlgmr.msra.gmra.mrb[184].mxu0 %vm469_vm2, %v15754_v54  ;;  %v15846_v36 = vadd.f32 %v2552_v8, %v15697_v16  ;;  %v2554_v22 = vpop.f32.mrb[78].mxu1  ;;  %v5755_v16 = vsel %vm5754_vm13, %v5721_v39, %v5723_v55  ;;  %v5757_v48 = vsel %vm5754_vm13, %v5725_v46, %v5727_v20 }
 0x243   : > { %5621 = vmatpush1.bf16.msra.mxu0 %v5363_v56  ;;  %7084 = vrot.lane.b32.xlu0 %v13972_v29, %s13687_s17  ;;  %v5729_v57 = vpop.permute.xlu1 %5728  ;;  %v2555_v43 = vpop.f32.mrb[79].mxu1  ;;  %v5775_v52 = vsel %vm473_vm1, %v5755_v16, 0  ;;  %v15899_v22 = vld [vmem:[%s18150_s1 + $0x30] sm:$0xf] }
 0x244   : > { %13096 = vmatprep.subr.msk.bf16.mxu0 %vm473_vm1, %v5756_v42  ;;  %5652 = vmatprep.mubr.bf16.mxu0 %v13673_v17  ;;  %v5758_v62 = vsel %vm5754_vm13, %v5727_v20, %v5729_v57  ;;  %v5781_v20 = vsel %vm473_vm1, %v5757_v48, 0 }
 0x245   : > { %v2711_v2 = vpop.f32.mrb[80].mxu0  ;;  %v5731_v12 = vpop.permute.xlu0 %5730  ;;  %7086 = vrot.lane.b32.xlu1 %v13990_v32, %s13687_s17  ;;  %13090 = vmatmul.mubr.msk.bf16.vlgmr.msra.gmra.mrb[184].mxu1 %vm469_vm2, %v15754_v54 }
 0x246   : > { %v15853_v0 = vadd.f32 %v2711_v2, %v15706_v26  ;;  %v2713_v63 = vpop.f32.mrb[81].mxu0  ;;  %5662 = vmatpush1.bf16.msra.mxu1 %v5369_v1  ;;  %5693 = vmatprep.mubr.bf16.mxu1 %v13673_v17 }
 0x247   : > { %7088 = vrot.lane.b32.xlu0 %v13982_v31, %s13687_s17  ;;  %v15865_v26 = vadd.f32 %v2713_v63, %v15718_v38  ;;  %v2715_v4 = vpop.f32.mrb[82].mxu0  ;;  %13098 = vmatprep.subr.msk.bf16.mxu1 %vm473_vm1, %v5758_v62  ;;  %v5733_v39 = vpop.permute.xlu1 %5732 }
 0x248   : > { %v2716_v60 = vpop.f32.mrb[83].mxu0  ;;  %v2752_v55 = vpop.f32.mrb[80].mxu1  ;;  %v5760_v38 = vsel %vm5754_vm13, %v5731_v12, %v5733_v39 }
 0x249   : > { %v5735_v47 = vpop.permute.xlu0 %5734  ;;  %v15873_v59 = vadd.f32 %v2752_v55, %v15726_v11  ;;  %v2754_v7 = vpop.f32.mrb[81].mxu1  ;;  %7090 = vrot.lane.b32.xlu1 %v14000_v34, %s13687_s17 }
 0x24a   : > { %13092 = vmatmul.mubr.msk.bf16.vlgmr.msra.gmra.mrb[188].mxu0 %vm469_vm2, %v15754_v54  ;;  %v15880_v15 = vadd.f32 %v2754_v7, %v15734_v50  ;;  %v2756_v49 = vpop.f32.mrb[82].mxu1  ;;  %v5759_v50 = vsel %vm5754_vm13, %v5729_v57, %v5731_v12  ;;  %v5761_v63 = vsel %vm5754_vm13, %v5733_v39, %v5735_v47 }
 0x24b   : > { %5823 = vmatpush1.bf16.msra.mxu0 %v5775_v52  ;;  %7092 = vrot.lane.b32.xlu0 %v13992_v33, %s13687_s17  ;;  %v5737_v11 = vpop.permute.xlu1 %5736  ;;  %v2757_v46 = vpop.f32.mrb[83].mxu1  ;;  %v5787_v43 = vsel %vm473_vm1, %v5759_v50, 0 }
 0x24c   : > { %13100 = vmatprep.subr.msk.bf16.mxu0 %vm473_vm1, %v5760_v38  ;;  %5854 = vmatprep.mubr.bf16.mxu0 %v13673_v17  ;;  %v5762_v42 = vsel %vm5754_vm13, %v5735_v47, %v5737_v11  ;;  %v5793_v47 = vsel %vm473_vm1, %v5761_v63, 0 }
 0x24d   : > { %v2793_v6 = vpop.f32.mrb[84].mxu0  ;;  %v5739_v56 = vpop.permute.xlu0 %5738  ;;  %7094 = vrot.lane.b32.xlu1 %v14835_v28, %s13687_s17  ;;  %13094 = vmatmul.mubr.msk.bf16.vlgmr.msra.gmra.mrb[188].mxu1 %vm469_vm2, %v15754_v54 }
 0x24e   : > { %v15887_v8 = vadd.f32 %v2793_v6, %v15743_v41  ;;  %v2795_v51 = vpop.f32.mrb[85].mxu0  ;;  %5864 = vmatpush1.bf16.msra.mxu1 %v5781_v20  ;;  %5895 = vmatprep.mubr.bf16.mxu1 %v13673_v17 }
 0x24f   : > { %7096 = vrot.lane.b32.xlu0 %v13906_v13, %s13687_s17  ;;  %v15904_v41 = vadd.f32 %v2795_v51, %v15760_v5  ;;  %v2797_v57 = vpop.f32.mrb[86].mxu0  ;;  %13102 = vmatprep.subr.msk.bf16.mxu1 %vm473_vm1, %v5762_v42  ;;  %v5741_v2 = vpop.permute.xlu1 %5740  ;;  %s13690_s17 = smov 120  }
 0x250   : > { %v2798_v54 = vpop.f32.mrb[87].mxu0  ;;  %v2834_v12 = vpop.f32.mrb[84].mxu1  ;;  %v5764_v5 = vsel %vm5754_vm13, %v5739_v56, %v5741_v2 }
 0x251   : > { %v5743_v62 = vpop.permute.xlu0 %5742  ;;  %v15912_v16 = vadd.f32 %v2834_v12, %v15768_v37  ;;  %v2836_v1 = vpop.f32.mrb[85].mxu1  ;;  %7512 = vrot.lane.b32.xlu1 %v13918_v14, %s13688_s12 }
 0x252   : > { %13097 = vmatmul.mubr.msk.bf16.vlgmr.msra.gmra.mrb[192].mxu0 %vm469_vm2, %v15899_v22  ;;  %v15919_v4 = vadd.f32 %v2836_v1, %v15777_v53  ;;  %v2838_v37 = vpop.f32.mrb[86].mxu1  ;;  %v5763_v53 = vsel %vm5754_vm13, %v5737_v11, %v5739_v56  ;;  %v5765_v51 = vsel %vm5754_vm13, %v5741_v2, %v5743_v62 }
 0x253   : > { %5905 = vmatpush1.bf16.msra.mxu0 %v5787_v43  ;;  %7514 = vrot.lane.b32.xlu0 %v13949_v21, %s13688_s12  ;;  %v5745_v60 = vpop.permute.xlu1 %5744  ;;  %v2839_v39 = vpop.f32.mrb[87].mxu1  ;;  %v5799_v46 = vsel %vm473_vm1, %v5763_v53, 0 }
 0x254   : > { %13104 = vmatprep.subr.msk.bf16.mxu0 %vm473_vm1, %v5764_v5  ;;  %5936 = vmatprep.mubr.bf16.mxu0 %v13673_v17  ;;  %v5766_v38 = vsel %vm5754_vm13, %v5743_v62, %v5745_v60  ;;  %v5805_v62 = vsel %vm473_vm1, %v5765_v51, 0 }
 0x255   : > { %v2875_v55 = vpop.f32.mrb[88].mxu0  ;;  %v5747_v52 = vpop.permute.xlu0 %5746  ;;  %7516 = vrot.lane.b32.xlu1 %v13901_v10, %s13688_s12  ;;  %13099 = vmatmul.mubr.msk.bf16.vlgmr.msra.gmra.mrb[192].mxu1 %vm469_vm2, %v15899_v22 }
 0x256   : > { %v15926_v7 = vadd.f32 %v2875_v55, %v15784_v44  ;;  %v2877_v48 = vpop.f32.mrb[89].mxu0  ;;  %5946 = vmatpush1.bf16.msra.mxu1 %v5793_v47  ;;  %5977 = vmatprep.mubr.bf16.mxu1 %v13673_v17 }
 0x257   : > { %7518 = vrot.lane.b32.xlu0 %v13934_v18, %s13688_s12  ;;  %v15938_v44 = vadd.f32 %v2877_v48, %v15796_v40  ;;  %v2879_v49 = vpop.f32.mrb[90].mxu0  ;;  %13106 = vmatprep.subr.msk.bf16.mxu1 %vm473_vm1, %v5766_v38  ;;  %v5749_v11 = vpop.permute.xlu1 %5748 }
 0x258   : > { %v2880_v6 = vpop.f32.mrb[91].mxu0  ;;  %v2916_v56 = vpop.f32.mrb[88].mxu1  ;;  %v5768_v40 = vsel %vm5754_vm13, %v5747_v52, %v5749_v11 }
 0x259   : > { %v5751_v42 = vpop.permute.xlu0 %5750  ;;  %v15946_v50 = vadd.f32 %v2916_v56, %v15804_v58  ;;  %v2918_v20 = vpop.f32.mrb[89].mxu1  ;;  %7520 = vrot.lane.b32.xlu1 %v13940_v19, %s13688_s12 }
 0x25a   : > { %13101 = vmatmul.mubr.msk.bf16.vlgmr.msra.gmra.mrb[196].mxu0 %vm469_vm2, %v15899_v22  ;;  %v15953_v57 = vadd.f32 %v2918_v20, %v15812_v9  ;;  %v2920_v54 = vpop.f32.mrb[90].mxu1  ;;  %v5767_v9 = vsel %vm5754_vm13, %v5745_v60, %v5747_v52  ;;  %v5769_v48 = vsel %vm5754_vm13, %v5749_v11, %v5751_v42 }
 0x25b   : > { %5987 = vmatpush1.bf16.msra.mxu0 %v5799_v46  ;;  %7522 = vrot.lane.b32.xlu0 %v13959_v24, %s13688_s12  ;;  %v5753_v58 = vpop.permute.xlu1 %5752  ;;  %v2921_v2 = vpop.f32.mrb[91].mxu1  ;;  %v5811_v39 = vsel %vm473_vm1, %v5767_v9, 0 }
 0x25c   : > { %13108 = vmatprep.subr.msk.bf16.mxu0 %vm473_vm1, %v5768_v40  ;;  %6018 = vmatprep.mubr.bf16.mxu0 %v13673_v17  ;;  %v5770_v43 = vsel %vm5754_vm13, %v5751_v42, %v5753_v58  ;;  %vm12036_vm13 = vcmask 670720  }
 0x25d   : > { %v2957_v12 = vpop.f32.mrb[92].mxu0  ;;  %v6169_v1 = vpop.permute.xlu0 %6168  ;;  %7524 = vrot.lane.b32.xlu1 %v13951_v23, %s13688_s12  ;;  %13103 = vmatmul.mubr.msk.bf16.vlgmr.msra.gmra.mrb[196].mxu1 %vm469_vm2, %v15899_v22 }
 0x25e   : > { %v15961_v5 = vadd.f32 %v2957_v12, %v15819_v35  ;;  %v2959_v63 = vpop.f32.mrb[93].mxu0  ;;  %6028 = vmatpush1.bf16.msra.mxu1 %v5805_v62  ;;  %6059 = vmatprep.mubr.bf16.mxu1 %v13673_v17 }
 0x25f   : > { %7526 = vrot.lane.b32.xlu0 %v13970_v27, %s13688_s12  ;;  %v15972_v37 = vadd.f32 %v2959_v63, %v15831_v45  ;;  %v2961_v35 = vpop.f32.mrb[94].mxu0  ;;  %13110 = vmatprep.subr.msk.bf16.mxu1 %vm473_vm1, %v5770_v43  ;;  %v6171_v60 = vpop.permute.xlu1 %6170 }
 0x260   : > { %v2962_v55 = vpop.f32.mrb[95].mxu0  ;;  %v2998_v52 = vpop.f32.mrb[92].mxu1  ;;  %v6203_v11 = vsel %vm6202_vm14, %v6169_v1, %v6171_v60 }
 0x261   : > { %v6173_v38 = vpop.permute.xlu0 %6172  ;;  %v15980_v53 = vadd.f32 %v2998_v52, %v15839_v61  ;;  %v3000_v45 = vpop.f32.mrb[93].mxu1  ;;  %7528 = vrot.lane.b32.xlu1 %v13961_v25, %s13688_s12  ;;  %v6223_v2 = vsel %vm473_vm1, %v6203_v11, 0 }
 0x262   : > { %13105 = vmatmul.mubr.msk.bf16.vlgmr.msra.gmra.mrb[200].mxu0 %vm469_vm2, %v15899_v22  ;;  %v6204_v47 = vsel %vm6202_vm14, %v6171_v60, %v6173_v38  ;;  %v15987_v49 = vadd.f32 %v3000_v45, %v15846_v36  ;;  %v3002_v6 = vpop.f32.mrb[94].mxu1  ;;  %v5817_v36 = vsel %vm473_vm1, %v5769_v48, 0 }
 0x263   : > { %6069 = vmatpush1.bf16.msra.mxu0 %v5811_v39  ;;  %7530 = vrot.lane.b32.xlu0 %v13980_v30, %s13688_s12  ;;  %v6175_v61 = vpop.permute.xlu1 %6174  ;;  %v3003_v40 = vpop.f32.mrb[95].mxu1  ;;  %v16040_v6 = vld [vmem:[%s18150_s1 + $0x34] sm:$0xf] }
 0x264   : > { %13113 = vmatprep.subr.msk.bf16.mxu0 %vm473_vm1, %v6204_v47  ;;  %6100 = vmatprep.mubr.bf16.mxu0 %v13673_v17  ;;  %v6205_v63 = vsel %vm6202_vm14, %v6173_v38, %v6175_v61 }
 0x265   : > { %v3159_v56 = vpop.f32.mrb[96].mxu0  ;;  %v6177_v46 = vpop.permute.xlu0 %6176  ;;  %7532 = vrot.lane.b32.xlu1 %v13972_v29, %s13688_s12  ;;  %13107 = vmatmul.mubr.msk.bf16.vlgmr.msra.gmra.mrb[200].mxu1 %vm469_vm2, %v15899_v22 }
 0x266   : > { %v15994_v20 = vadd.f32 %v3159_v56, %v15853_v0  ;;  %v3161_v42 = vpop.f32.mrb[97].mxu0  ;;  %v6206_v51 = vsel %vm6202_vm14, %v6175_v61, %v6177_v46  ;;  %6110 = vmatpush1.bf16.msra.mxu1 %v5817_v36  ;;  %6141 = vmatprep.mubr.bf16.mxu1 %v13673_v17 }
 0x267   : > { %7534 = vrot.lane.b32.xlu0 %v13990_v32, %s13688_s12  ;;  %v16006_v0 = vadd.f32 %v3161_v42, %v15865_v26  ;;  %v3163_v54 = vpop.f32.mrb[98].mxu0  ;;  %13115 = vmatprep.subr.msk.bf16.mxu1 %vm473_vm1, %v6206_v51  ;;  %v6179_v58 = vpop.permute.xlu1 %6178 }
 0x268   : > { %v3164_v12 = vpop.f32.mrb[99].mxu0  ;;  %v3200_v43 = vpop.f32.mrb[96].mxu1  ;;  %v6207_v38 = vsel %vm6202_vm14, %v6177_v46, %v6179_v58 }
 0x269   : > { %v6181_v1 = vpop.permute.xlu0 %6180  ;;  %v16014_v9 = vadd.f32 %v3200_v43, %v15873_v59  ;;  %v3202_v62 = vpop.f32.mrb[97].mxu1  ;;  %7536 = vrot.lane.b32.xlu1 %v13982_v31, %s13688_s12  ;;  %v6235_v11 = vsel %vm473_vm1, %v6207_v38, 0 }
 0x26a   : > { %13109 = vmatmul.mubr.msk.bf16.vlgmr.msra.gmra.mrb[204].mxu0 %vm469_vm2, %v15899_v22  ;;  %v6208_v26 = vsel %vm6202_vm14, %v6179_v58, %v6181_v1  ;;  %v16021_v35 = vadd.f32 %v3202_v62, %v15880_v15  ;;  %v3204_v60 = vpop.f32.mrb[98].mxu1  ;;  %v6229_v15 = vsel %vm473_vm1, %v6205_v63, 0 }
 0x26b   : > { %6271 = vmatpush1.bf16.msra.mxu0 %v6223_v2  ;;  %7538 = vrot.lane.b32.xlu0 %v14000_v34, %s13688_s12  ;;  %v6183_v59 = vpop.permute.xlu1 %6182  ;;  %v3205_v45 = vpop.f32.mrb[99].mxu1 }
 0x26c   : > { %13117 = vmatprep.subr.msk.bf16.mxu0 %vm473_vm1, %v6208_v26  ;;  %6302 = vmatprep.mubr.bf16.mxu0 %v13673_v17  ;;  %v6209_v51 = vsel %vm6202_vm14, %v6181_v1, %v6183_v59 }
 0x26d   : > { %v3241_v55 = vpop.f32.mrb[100].mxu0  ;;  %v6185_v52 = vpop.permute.xlu0 %6184  ;;  %7540 = vrot.lane.b32.xlu1 %v13992_v33, %s13688_s12  ;;  %13111 = vmatmul.mubr.msk.bf16.vlgmr.msra.gmra.mrb[204].mxu1 %vm469_vm2, %v15899_v22 }
 0x26e   : > { %v16028_v39 = vadd.f32 %v3241_v55, %v15887_v8  ;;  %v3243_v47 = vpop.f32.mrb[101].mxu0  ;;  %v6210_v48 = vsel %vm6202_vm14, %v6183_v59, %v6185_v52  ;;  %6312 = vmatpush1.bf16.msra.mxu1 %v6229_v15  ;;  %6343 = vmatprep.mubr.bf16.mxu1 %v13673_v17 }
 0x26f   : > { %7542 = vrot.lane.b32.xlu0 %v14835_v28, %s13688_s12  ;;  %v16045_v8 = vadd.f32 %v3243_v47, %v15904_v41  ;;  %v3245_v61 = vpop.f32.mrb[102].mxu0  ;;  %13119 = vmatprep.subr.msk.bf16.mxu1 %vm473_vm1, %v6210_v48  ;;  %v6187_v22 = vpop.permute.xlu1 %6186 }
 0x270   : > { %v3246_v56 = vpop.f32.mrb[103].mxu0  ;;  %v3282_v46 = vpop.f32.mrb[100].mxu1  ;;  %v6211_v1 = vsel %vm6202_vm14, %v6185_v52, %v6187_v22 }
 0x271   : > { %v6189_v40 = vpop.permute.xlu0 %6188  ;;  %v16053_v36 = vadd.f32 %v3282_v46, %v15912_v16  ;;  %v3284_v42 = vpop.f32.mrb[101].mxu1  ;;  %7544 = vrot.lane.b32.xlu1 %v13906_v13, %s13688_s12  ;;  %v6247_v52 = vsel %vm473_vm1, %v6211_v1, 0  ;;  %s13691_s12 = smov 119  }
 0x272   : > { %13114 = vmatmul.mubr.msk.bf16.vlgmr.msra.gmra.mrb[208].mxu0 %vm469_vm2, %v16040_v6  ;;  %v6212_v41 = vsel %vm6202_vm14, %v6187_v22, %v6189_v40  ;;  %v16060_v54 = vadd.f32 %v3284_v42, %v15919_v4  ;;  %v3286_v16 = vpop.f32.mrb[102].mxu1 }
 0x273   : > { %6353 = vmatpush1.bf16.msra.mxu0 %v6235_v11  ;;  %7960 = vrot.lane.b32.xlu0 %v13918_v14, %s13689_s18  ;;  %v6191_v58 = vpop.permute.xlu1 %6190  ;;  %v3287_v62 = vpop.f32.mrb[103].mxu1  ;;  %v6241_v14 = vsel %vm473_vm1, %v6209_v51, 0 }
 0x274   : > { %13121 = vmatprep.subr.msk.bf16.mxu0 %vm473_vm1, %v6212_v41  ;;  %6384 = vmatprep.mubr.bf16.mxu0 %v13673_v17  ;;  %v6213_v38 = vsel %vm6202_vm14, %v6189_v40, %v6191_v58 }
 0x275   : > { %v3323_v12 = vpop.f32.mrb[104].mxu0  ;;  %v6193_v43 = vpop.permute.xlu0 %6192  ;;  %7962 = vrot.lane.b32.xlu1 %v13949_v21, %s13689_s18  ;;  %13116 = vmatmul.mubr.msk.bf16.vlgmr.msra.gmra.mrb[208].mxu1 %vm469_vm2, %v16040_v6  ;;  %v6253_v40 = vsel %vm473_vm1, %v6213_v38, 0 }
 0x276   : > { %v16067_v2 = vadd.f32 %v3323_v12, %v15926_v7  ;;  %v3325_v4 = vpop.f32.mrb[105].mxu0  ;;  %v6214_v26 = vsel %vm6202_vm14, %v6191_v58, %v6193_v43  ;;  %6394 = vmatpush1.bf16.msra.mxu1 %v6241_v14  ;;  %6425 = vmatprep.mubr.bf16.mxu1 %v13673_v17 }
 0x277   : > { %7964 = vrot.lane.b32.xlu0 %v13901_v10, %s13689_s18  ;;  %v16079_v7 = vadd.f32 %v3325_v4, %v15938_v44  ;;  %v3327_v63 = vpop.f32.mrb[106].mxu0  ;;  %13123 = vmatprep.subr.msk.bf16.mxu1 %vm473_vm1, %v6214_v26  ;;  %v6195_v60 = vpop.permute.xlu1 %6194 }
 0x278   : > { %v3328_v21 = vpop.f32.mrb[107].mxu0  ;;  %v3364_v59 = vpop.f32.mrb[104].mxu1  ;;  %v6215_v46 = vsel %vm6202_vm14, %v6193_v43, %v6195_v60 }
 0x279   : > { %v6197_v55 = vpop.permute.xlu0 %6196  ;;  %v16087_v45 = vadd.f32 %v3364_v59, %v15946_v50  ;;  %v3366_v10 = vpop.f32.mrb[105].mxu1  ;;  %7966 = vrot.lane.b32.xlu1 %v13934_v18, %s13689_s18  ;;  %v6259_v12 = vsel %vm473_vm1, %v6215_v46, 0 }
 0x27a   : > { %13118 = vmatmul.mubr.msk.bf16.vlgmr.msra.gmra.mrb[212].mxu0 %vm469_vm2, %v16040_v6  ;;  %v6216_v44 = vsel %vm6202_vm14, %v6195_v60, %v6197_v55  ;;  %v16094_v15 = vadd.f32 %v3366_v10, %v15953_v57  ;;  %v3368_v47 = vpop.f32.mrb[106].mxu1 }
 0x27b   : > { %6435 = vmatpush1.bf16.msra.mxu0 %v6247_v52  ;;  %7968 = vrot.lane.b32.xlu0 %v13940_v19, %s13689_s18  ;;  %v6199_v50 = vpop.permute.xlu1 %6198  ;;  %v3369_v56 = vpop.f32.mrb[107].mxu1 }
 0x27c   : > { %13125 = vmatprep.subr.msk.bf16.mxu0 %vm473_vm1, %v6216_v44  ;;  %6466 = vmatprep.mubr.bf16.mxu0 %v13673_v17 }
 0x27d   : > { %v3405_v48 = vpop.f32.mrb[108].mxu0  ;;  %v6201_v61 = vpop.permute.xlu0 %6200  ;;  %7970 = vrot.lane.b32.xlu1 %v13959_v24, %s13689_s18  ;;  %13120 = vmatmul.mubr.msk.bf16.vlgmr.msra.gmra.mrb[212].mxu1 %vm469_vm2, %v16040_v6 }
 0x27e   : > { %v16101_v22 = vadd.f32 %v3405_v48, %v15961_v5  ;;  %v6218_v57 = vsel %vm6202_vm14, %v6199_v50, %v6201_v61  ;;  %v3407_v11 = vpop.f32.mrb[109].mxu0  ;;  %6476 = vmatpush1.bf16.msra.mxu1 %v6253_v40  ;;  %6507 = vmatprep.mubr.bf16.mxu1 %v13673_v17 }
 0x27f   : > { %7972 = vrot.lane.b32.xlu0 %v13951_v23, %s13689_s18  ;;  %v16113_v5 = vadd.f32 %v3407_v11, %v15972_v37  ;;  %v3409_v42 = vpop.f32.mrb[110].mxu0  ;;  %13127 = vmatprep.subr.msk.bf16.mxu1 %vm473_vm1, %v6218_v57  ;;  %v6617_v41 = vpop.permute.xlu1 %6616  ;;  %v6217_v37 = vsel %vm6202_vm14, %v6197_v55, %v6199_v50 }
 0x280   : > { %v3410_v51 = vpop.f32.mrb[111].mxu0  ;;  %v3446_v16 = vpop.f32.mrb[108].mxu1 }
 0x281   : > { %v6619_v58 = vpop.permute.xlu0 %6618  ;;  %v16121_v43 = vadd.f32 %v3446_v16, %v15980_v53  ;;  %v3448_v62 = vpop.f32.mrb[109].mxu1  ;;  %7974 = vrot.lane.b32.xlu1 %v13970_v27, %s13689_s18 }
 0x282   : > { %13122 = vmatmul.mubr.msk.bf16.vlgmr.msra.gmra.mrb[216].mxu0 %vm469_vm2, %v16040_v6  ;;  %v16127_v1 = vadd.f32 %v3448_v62, %v15987_v49  ;;  %v3450_v14 = vpop.f32.mrb[110].mxu1  ;;  %v6265_v49 = vsel %vm473_vm1, %v6217_v37, 0  ;;  %v6651_v55 = vsel %vm6650_vm15, %v6617_v41, %v6619_v58 }
 0x283   : > { %6517 = vmatpush1.bf16.msra.mxu0 %v6259_v12  ;;  %7976 = vrot.lane.b32.xlu0 %v13961_v25, %s13689_s18  ;;  %v6621_v4 = vpop.permute.xlu1 %6620  ;;  %v3451_v21 = vpop.f32.mrb[111].mxu1  ;;  %v6671_v61 = vsel %vm473_vm1, %v6651_v55, 0 }
 0x284   : > { %6548 = vmatprep.mubr.bf16.mxu0 %v13673_v17  ;;  %v6652_v63 = vsel %vm6650_vm15, %v6619_v58, %v6621_v4  ;;  %v16178_v58 = vld [vmem:[%s18150_s1 + $0x38] sm:$0xf] }
 0x285   : > { %v3607_v53 = vpop.f32.mrb[112].mxu0  ;;  %v6623_v26 = vpop.permute.xlu0 %6622  ;;  %7978 = vrot.lane.b32.xlu1 %v13980_v30, %s13689_s18  ;;  %13124 = vmatmul.mubr.msk.bf16.vlgmr.msra.gmra.mrb[216].mxu1 %vm469_vm2, %v16040_v6 }
 0x286   : > { %v16134_v60 = vadd.f32 %v3607_v53, %v15994_v20  ;;  %v3609_v59 = vpop.f32.mrb[113].mxu0  ;;  %6558 = vmatpush1.bf16.msra.mxu1 %v6265_v49  ;;  %13130 = vmatprep.subr.msk.bf16.mxu0 %vm473_vm1, %v6652_v63  ;;  %v6653_v56 = vsel %vm6650_vm15, %v6621_v4, %v6623_v26 }
 0x287   : > { %v16144_v52 = vadd.f32 %v3609_v59, %v16006_v0  ;;  %v3611_v20 = vpop.f32.mrb[114].mxu0  ;;  %7980 = vrot.lane.b32.xlu0 %v13972_v29, %s13689_s18  ;;  %v6625_v10 = vpop.permute.xlu1 %6624  ;;  %6589 = vmatprep.mubr.bf16.mxu1 %v13673_v17 }
 0x288   : > { %v3612_v44 = vpop.f32.mrb[115].mxu0  ;;  %v3648_v38 = vpop.f32.mrb[112].mxu1  ;;  %v6654_v50 = vsel %vm6650_vm15, %v6623_v26, %v6625_v10 }
 0x289   : > { %v6627_v47 = vpop.permute.xlu0 %6626  ;;  %v16153_v48 = vadd.f32 %v3648_v38, %v16014_v9  ;;  %v3650_v0 = vpop.f32.mrb[113].mxu1  ;;  %7982 = vrot.lane.b32.xlu1 %v13990_v32, %s13689_s18  ;;  %13132 = vmatprep.subr.msk.bf16.mxu1 %vm473_vm1, %v6654_v50 }
 0x28a   : > { %13126 = vmatmul.mubr.msk.bf16.vlgmr.msra.gmra.mrb[220].mxu0 %vm469_vm2, %v16040_v6  ;;  %v16161_v46 = vadd.f32 %v3650_v0, %v16021_v35  ;;  %v3652_v57 = vpop.f32.mrb[114].mxu1  ;;  %v6677_v35 = vsel %vm473_vm1, %v6653_v56, 0  ;;  %v6655_v12 = vsel %vm6650_vm15, %v6625_v10, %v6627_v47 }
 0x28b   : > { %6719 = vmatpush1.bf16.msra.mxu0 %v6671_v61  ;;  %6750 = vmatprep.mubr.bf16.mxu0 %v13673_v17  ;;  %v6629_v9 = vpop.permute.xlu1 %6628  ;;  %v3653_v51 = vpop.f32.mrb[115].mxu1  ;;  %v6683_v63 = vsel %vm473_vm1, %v6655_v12, 0 }
 0x28c   : > { %7984 = vrot.lane.b32.xlu0 %v13982_v31, %s13689_s18  ;;  %v6656_v42 = vsel %vm6650_vm15, %v6627_v47, %v6629_v9 }
 0x28d   : > { %v3689_v40 = vpop.f32.mrb[116].mxu0  ;;  %v6631_v11 = vpop.permute.xlu0 %6630  ;;  %7986 = vrot.lane.b32.xlu1 %v14000_v34, %s13689_s18  ;;  %13128 = vmatmul.mubr.msk.bf16.vlgmr.msra.gmra.mrb[220].mxu1 %vm469_vm2, %v16040_v6 }
 0x28e   : > { %v16168_v41 = vadd.f32 %v3689_v40, %v16028_v39  ;;  %v3691_v16 = vpop.f32.mrb[117].mxu0  ;;  %6760 = vmatpush1.bf16.msra.mxu1 %v6677_v35  ;;  %13134 = vmatprep.subr.msk.bf16.mxu0 %vm473_vm1, %v6656_v42  ;;  %v6657_v21 = vsel %vm6650_vm15, %v6629_v9, %v6631_v11 }
 0x28f   : > { %v16183_v39 = vadd.f32 %v3691_v16, %v16045_v8  ;;  %v3693_v62 = vpop.f32.mrb[118].mxu0  ;;  %v6633_v6 = vpop.permute.xlu1 %6632  ;;  %6791 = vmatprep.mubr.bf16.mxu1 %v13673_v17 }
 0x290   : > { %7988 = vrot.lane.b32.xlu0 %v13992_v33, %s13689_s18  ;;  %v3694_v37 = vpop.f32.mrb[119].mxu0  ;;  %v3730_v14 = vpop.f32.mrb[116].mxu1  ;;  %v6658_v53 = vsel %vm6650_vm15, %v6631_v11, %v6633_v6 }
 0x291   : > { %v6635_v4 = vpop.permute.xlu0 %6634  ;;  %v16192_v26 = vadd.f32 %v3730_v14, %v16053_v36  ;;  %v3732_v8 = vpop.f32.mrb[117].mxu1  ;;  %7990 = vrot.lane.b32.xlu1 %v14835_v28, %s13689_s18  ;;  %13136 = vmatprep.subr.msk.bf16.mxu1 %vm473_vm1, %v6658_v53 }
 0x292   : > { %13131 = vmatmul.mubr.msk.bf16.vlgmr.msra.gmra.mrb[224].mxu0 %vm469_vm2, %v16178_v58  ;;  %v16200_v49 = vadd.f32 %v3732_v8, %v16060_v54  ;;  %v3734_v59 = vpop.f32.mrb[118].mxu1  ;;  %v6689_v54 = vsel %vm473_vm1, %v6657_v21, 0  ;;  %v6659_v50 = vsel %vm6650_vm15, %v6633_v6, %v6635_v4 }
 0x293   : > { %6801 = vmatpush1.bf16.msra.mxu0 %v6683_v63  ;;  %6832 = vmatprep.mubr.bf16.mxu0 %v13673_v17  ;;  %v6637_v36 = vpop.permute.xlu1 %6636  ;;  %v3735_v38 = vpop.f32.mrb[119].mxu1  ;;  %v6695_v42 = vsel %vm473_vm1, %v6659_v50, 0 }
 0x294   : > { %7992 = vrot.lane.b32.xlu0 %v13906_v13, %s13689_s18  ;;  %v6660_v10 = vsel %vm6650_vm15, %v6635_v4, %v6637_v36  ;;  %s13692_s18 = smov 118  }
 0x295   : > { %v3771_v55 = vpop.f32.mrb[120].mxu0  ;;  %v6639_v20 = vpop.permute.xlu0 %6638  ;;  %8418 = vrot.lane.b32.xlu1 %v13934_v18, %s13690_s17  ;;  %13133 = vmatmul.mubr.msk.bf16.vlgmr.msra.gmra.mrb[224].mxu1 %vm469_vm2, %v16178_v58 }
 0x296   : > { %v16207_v44 = vadd.f32 %v3771_v55, %v16067_v2  ;;  %v3773_v47 = vpop.f32.mrb[121].mxu0  ;;  %6842 = vmatpush1.bf16.msra.mxu1 %v6689_v54  ;;  %13138 = vmatprep.subr.msk.bf16.mxu0 %vm473_vm1, %v6660_v10  ;;  %v6661_v51 = vsel %vm6650_vm15, %v6637_v36, %v6639_v20 }
 0x297   : > { %v16217_v0 = vadd.f32 %v3773_v47, %v16079_v7  ;;  %v3775_v2 = vpop.f32.mrb[122].mxu0  ;;  %v6641_v61 = vpop.permute.xlu1 %6640  ;;  %6873 = vmatprep.mubr.bf16.mxu1 %v13673_v17 }
 0x298   : > { %8420 = vrot.lane.b32.xlu0 %v13940_v19, %s13690_s17  ;;  %v3776_v56 = vpop.f32.mrb[123].mxu0  ;;  %v3812_v57 = vpop.f32.mrb[120].mxu1  ;;  %v6662_v40 = vsel %vm6650_vm15, %v6639_v20, %v6641_v61 }
 0x299   : > { %v6643_v9 = vpop.permute.xlu0 %6642  ;;  %v16226_v11 = vadd.f32 %v3812_v57, %v16087_v45  ;;  %v3814_v7 = vpop.f32.mrb[121].mxu1  ;;  %8422 = vrot.lane.b32.xlu1 %v13959_v24, %s13690_s17  ;;  %13140 = vmatprep.subr.msk.bf16.mxu1 %vm473_vm1, %v6662_v40 }
 0x29a   : > { %13135 = vmatmul.mubr.msk.bf16.vlgmr.msra.gmra.mrb[228].mxu0 %vm469_vm2, %v16178_v58  ;;  %v16234_v35 = vadd.f32 %v3814_v7, %v16094_v15  ;;  %v3816_v16 = vpop.f32.mrb[122].mxu1  ;;  %v6701_v15 = vsel %vm473_vm1, %v6661_v51, 0  ;;  %v6663_v53 = vsel %vm6650_vm15, %v6641_v61, %v6643_v9 }
 0x29b   : > { %6883 = vmatpush1.bf16.msra.mxu0 %v6695_v42  ;;  %6914 = vmatprep.mubr.bf16.mxu0 %v13673_v17  ;;  %v6645_v45 = vpop.permute.xlu1 %6644  ;;  %v3817_v14 = vpop.f32.mrb[123].mxu1  ;;  %v6707_v10 = vsel %vm473_vm1, %v6663_v53, 0 }
 0x29c   : > { %8424 = vrot.lane.b32.xlu0 %v13951_v23, %s13690_s17  ;;  %v6664_v6 = vsel %vm6650_vm15, %v6643_v9, %v6645_v45 }
 0x29d   : > { %v3853_v12 = vpop.f32.mrb[124].mxu0  ;;  %v6647_v62 = vpop.permute.xlu0 %6646  ;;  %8426 = vrot.lane.b32.xlu1 %v13970_v27, %s13690_s17  ;;  %13137 = vmatmul.mubr.msk.bf16.vlgmr.msra.gmra.mrb[228].mxu1 %vm469_vm2, %v16178_v58 }
 0x29e   : > { %v16241_v37 = vadd.f32 %v3853_v12, %v16101_v22  ;;  %v3855_v4 = vpop.f32.mrb[125].mxu0  ;;  %6924 = vmatpush1.bf16.msra.mxu1 %v6701_v15  ;;  %13142 = vmatprep.subr.msk.bf16.mxu0 %vm473_vm1, %v6664_v6  ;;  %v6665_v38 = vsel %vm6650_vm15, %v6645_v45, %v6647_v62 }
 0x29f   : > { %v16251_v8 = vadd.f32 %v3855_v4, %v16113_v5  ;;  %v3857_v22 = vpop.f32.mrb[126].mxu0  ;;  %v6649_v63 = vpop.permute.xlu1 %6648  ;;  %6955 = vmatprep.mubr.bf16.mxu1 %v13673_v17 }
 0x2a0   : > { %8428 = vrot.lane.b32.xlu0 %v13961_v25, %s13690_s17  ;;  %v3858_v21 = vpop.f32.mrb[127].mxu0  ;;  %v6666_v59 = vsel %vm6650_vm15, %v6647_v62, %v6649_v63  ;;  %v3894_v36 = vpop.f32.mrb[124].mxu1 }
 0x2a1   : > { %v7065_v55 = vpop.permute.xlu0 %7064  ;;  %v16260_v20 = vadd.f32 %v3894_v36, %v16121_v43  ;;  %v3896_v5 = vpop.f32.mrb[125].mxu1  ;;  %8430 = vrot.lane.b32.xlu1 %v13980_v30, %s13690_s17  ;;  %13144 = vmatprep.subr.msk.bf16.mxu1 %vm473_vm1, %v6666_v59 }
 0x2a2   : > { %13139 = vmatmul.mubr.msk.bf16.vlgmr.msra.gmra.mrb[232].mxu0 %vm469_vm2, %v16178_v58  ;;  %v16268_v54 = vadd.f32 %v3896_v5, %v16127_v1  ;;  %v3898_v47 = vpop.f32.mrb[126].mxu1  ;;  %v6713_v1 = vsel %vm473_vm1, %v6665_v38, 0  ;;  %v16319_v5 = vcombine.high %v13906_v13, %v13906_v13 }
 0x2a3   : > { %6965 = vmatpush1.bf16.msra.mxu0 %v6707_v10  ;;  %6996 = vmatprep.mubr.bf16.mxu0 %v13673_v17  ;;  %v7067_v43 = vpop.permute.xlu1 %7066  ;;  %v3899_v56 = vpop.f32.mrb[127].mxu1 }
 0x2a4   : > { %8432 = vrot.lane.b32.xlu0 %v13972_v29, %s13690_s17  ;;  %v7099_v57 = vsel %vm7098_vm0, %v7065_v55, %v7067_v43 }
 0x2a5   : > { %v4055_v50 = vpop.f32.mrb[128].mxu0  ;;  %v7069_v2 = vpop.permute.xlu0 %7068  ;;  %8434 = vrot.lane.b32.xlu1 %v13990_v32, %s13690_s17  ;;  %13141 = vmatmul.mubr.msk.bf16.vlgmr.msra.gmra.mrb[232].mxu1 %vm469_vm2, %v16178_v58  ;;  %v7119_v12 = vsel %vm473_vm1, %v7099_v57, 0 }
 0x2a6   : > { %v16274_v61 = vadd.f32 %v4055_v50, %v16134_v60  ;;  %v4057_v9 = vpop.f32.mrb[129].mxu0  ;;  %v7100_v40 = vsel %vm7098_vm0, %v7067_v43, %v7069_v2  ;;  %7006 = vmatpush1.bf16.msra.mxu1 %v6713_v1  ;;  %7037 = vmatprep.mubr.bf16.mxu1 %v13673_v17 }
 0x2a7   : > { %v16284_v7 = vadd.f32 %v4057_v9, %v16144_v52  ;;  %13147 = vmatprep.subr.msk.bf16.mxu0 %vm473_vm1, %v7100_v40  ;;  %v4059_v60 = vpop.f32.mrb[130].mxu0  ;;  %v7071_v42 = vpop.permute.xlu1 %7070 }
 0x2a8   : > { %8436 = vrot.lane.b32.xlu0 %v13982_v31, %s13690_s17  ;;  %v4060_v51 = vpop.f32.mrb[131].mxu0  ;;  %v4096_v16 = vpop.f32.mrb[128].mxu1  ;;  %v7101_v14 = vsel %vm7098_vm0, %v7069_v2, %v7071_v42 }
 0x2a9   : > { %v7073_v45 = vpop.permute.xlu0 %7072  ;;  %v16294_v52 = vadd.f32 %v4096_v16, %v16153_v48  ;;  %v4098_v62 = vpop.f32.mrb[129].mxu1  ;;  %8438 = vrot.lane.b32.xlu1 %v14000_v34, %s13690_s17 }
 0x2aa   : > { %13143 = vmatmul.mubr.msk.bf16.vlgmr.msra.gmra.mrb[236].mxu0 %vm469_vm2, %v16178_v58  ;;  %v7102_v6 = vsel %vm7098_vm0, %v7071_v42, %v7073_v45  ;;  %v16301_v15 = vadd.f32 %v4098_v62, %v16161_v46  ;;  %v4100_v4 = vpop.f32.mrb[130].mxu1  ;;  %v7125_v46 = vsel %vm473_vm1, %v7101_v14, 0 }
 0x2ab   : > { %7167 = vmatpush1.bf16.msra.mxu0 %v7119_v12  ;;  %13149 = vmatprep.subr.msk.bf16.mxu1 %vm473_vm1, %v7102_v6  ;;  %v7075_v48 = vpop.permute.xlu1 %7074  ;;  %v4101_v21 = vpop.f32.mrb[131].mxu1 }
 0x2ac   : > { %7198 = vmatprep.mubr.bf16.mxu0 %v13673_v17  ;;  %8440 = vrot.lane.b32.xlu0 %v13992_v33, %s13690_s17  ;;  %v7103_v59 = vsel %vm7098_vm0, %v7073_v45, %v7075_v48 }
 0x2ad   : > { %v4137_v53 = vpop.f32.mrb[132].mxu0  ;;  %v7077_v22 = vpop.permute.xlu0 %7076  ;;  %8442 = vrot.lane.b32.xlu1 %v14835_v28, %s13690_s17  ;;  %13145 = vmatmul.mubr.msk.bf16.vlgmr.msra.gmra.mrb[236].mxu1 %vm469_vm2, %v16178_v58  ;;  %v16331_v58 = vld.sshfl [vmem:[%s13887_s13 + $0x28] sm:$0x33 pattern:$0x76325410] }
 0x2ae   : > { %v16308_v63 = vadd.f32 %v4137_v53, %v16168_v41  ;;  %v4139_v36 = vpop.f32.mrb[133].mxu0  ;;  %v7104_v55 = vsel %vm7098_vm0, %v7075_v48, %v7077_v22  ;;  %v16324_v41 = vld [vmem:[%s18150_s1 + $0x3c] sm:$0xf]  ;;  %7208 = vmatpush1.bf16.msra.mxu1 %v7125_v46  ;;  %7239 = vmatprep.mubr.bf16.mxu1 %v13673_v17  ;;  %v16347_v9 = vcombine.high %v16331_v58, %v16331_v58 }
 0x2af   : > { %v16327_v10 = vadd.f32 %v4139_v36, %v16183_v39  ;;  %13151 = vmatprep.subr.msk.bf16.mxu0 %vm473_vm1, %v7104_v55  ;;  %v4141_v38 = vpop.f32.mrb[134].mxu0  ;;  %v7079_v47 = vpop.permute.xlu1 %7078  ;;  %v7131_v39 = vsel %vm473_vm1, %v7103_v59, 0 }
 0x2b0   : > { %8444 = vrot.lane.b32.xlu0 %v13906_v13, %s13690_s17  ;;  %v4142_v43 = vpop.f32.mrb[135].mxu0  ;;  %v4178_v50 = vpop.f32.mrb[132].mxu1  ;;  %v7105_v40 = vsel %vm7098_vm0, %v7077_v22, %v7079_v47 }
 0x2b1   : > { %v7081_v2 = vpop.permute.xlu0 %7080  ;;  %v16340_v56 = vadd.f32 %v4178_v50, %v16192_v26  ;;  %v4180_v57 = vpop.f32.mrb[133].mxu1  ;;  %8446 = vrot.lane.b32.xlu1 %v16319_v5, %s13690_s17 }
 0x2b2   : > { %13148 = vmatmul.mubr.msk.bf16.vlgmr.msra.gmra.mrb[240].mxu0 %vm469_vm2, %v16324_v41  ;;  %v7106_v1 = vsel %vm7098_vm0, %v7079_v47, %v7081_v2  ;;  %v16351_v60 = vadd.f32 %v4180_v57, %v16200_v49  ;;  %v4182_v26 = vpop.f32.mrb[134].mxu1  ;;  %v7137_v49 = vsel %vm473_vm1, %v7105_v40, 0 }
 0x2b3   : > { %7249 = vmatpush1.bf16.msra.mxu0 %v7131_v39  ;;  %13153 = vmatprep.subr.msk.bf16.mxu1 %vm473_vm1, %v7106_v1  ;;  %v7083_v42 = vpop.permute.xlu1 %7082  ;;  %v4183_v12 = vpop.f32.mrb[135].mxu1 }
 0x2b4   : > { %7280 = vmatprep.mubr.bf16.mxu0 %v13673_v17  ;;  %8448 = vrot.lane.b32.xlu0 %v16331_v58, %s13690_s17  ;;  %v7107_v62 = vsel %vm7098_vm0, %v7081_v2, %v7083_v42 }
 0x2b5   : > { %v4219_v51 = vpop.f32.mrb[136].mxu0  ;;  %v7085_v16 = vpop.permute.xlu0 %7084  ;;  %8450 = vrot.lane.b32.xlu1 %v16347_v9, %s13690_s17  ;;  %13150 = vmatmul.mubr.msk.bf16.vlgmr.msra.gmra.mrb[240].mxu1 %vm469_vm2, %v16324_v41  ;;  %v7143_v59 = vsel %vm473_vm1, %v7107_v62, 0  ;;  %s13693_s17 = smov 102  }
 0x2b6   : > { %v16358_v45 = vadd.f32 %v4219_v51, %v16207_v44  ;;  %v4221_v6 = vpop.f32.mrb[137].mxu0  ;;  %v7108_v14 = vsel %vm7098_vm0, %v7083_v42, %v7085_v16  ;;  %7290 = vmatpush1.bf16.msra.mxu1 %v7137_v49  ;;  %7321 = vmatprep.mubr.bf16.mxu1 %v13673_v17 }
 0x2b7   : > { %v16368_v4 = vadd.f32 %v4221_v6, %v16217_v0  ;;  %13155 = vmatprep.subr.msk.bf16.mxu0 %vm473_vm1, %v7108_v14  ;;  %v4223_v44 = vpop.f32.mrb[138].mxu0  ;;  %v7087_v48 = vpop.permute.xlu1 %7086 }
 0x2b8   : > { %8866 = vrot.lane.b32.xlu0 %v13934_v18, %s13691_s12  ;;  %v4224_v53 = vpop.f32.mrb[139].mxu0  ;;  %v4260_v22 = vpop.f32.mrb[136].mxu1  ;;  %v7109_v55 = vsel %vm7098_vm0, %v7085_v16, %v7087_v48 }
 0x2b9   : > { %v7089_v21 = vpop.permute.xlu0 %7088  ;;  %v16378_v0 = vadd.f32 %v4260_v22, %v16226_v11  ;;  %v4262_v46 = vpop.f32.mrb[137].mxu1  ;;  %8868 = vrot.lane.b32.xlu1 %v13940_v19, %s13691_s12 }
 0x2ba   : > { %13152 = vmatmul.mubr.msk.bf16.vlgmr.msra.gmra.mrb[244].mxu0 %vm469_vm2, %v16324_v41  ;;  %v7110_v36 = vsel %vm7098_vm0, %v7087_v48, %v7089_v21  ;;  %v16385_v38 = vadd.f32 %v4262_v46, %v16234_v35  ;;  %v4264_v47 = vpop.f32.mrb[138].mxu1  ;;  %v7149_v35 = vsel %vm473_vm1, %v7109_v55, 0 }
 0x2bb   : > { %7331 = vmatpush1.bf16.msra.mxu0 %v7143_v59  ;;  %13157 = vmatprep.subr.msk.bf16.mxu1 %vm473_vm1, %v7110_v36  ;;  %v7091_v11 = vpop.permute.xlu1 %7090  ;;  %v4265_v39 = vpop.f32.mrb[139].mxu1 }
 0x2bc   : > { %7362 = vmatprep.mubr.bf16.mxu0 %v13673_v17  ;;  %8870 = vrot.lane.b32.xlu0 %v13959_v24, %s13691_s12  ;;  %v7111_v57 = vsel %vm7098_vm0, %v7089_v21, %v7091_v11 }
 0x2bd   : > { %v4301_v43 = vpop.f32.mrb[140].mxu0  ;;  %v7093_v50 = vpop.permute.xlu0 %7092  ;;  %8872 = vrot.lane.b32.xlu1 %v13951_v23, %s13691_s12  ;;  %13154 = vmatmul.mubr.msk.bf16.vlgmr.msra.gmra.mrb[244].mxu1 %vm469_vm2, %v16324_v41  ;;  %v7155_v62 = vsel %vm473_vm1, %v7111_v57, 0 }
 0x2be   : > { %v16392_v2 = vadd.f32 %v4301_v43, %v16241_v37  ;;  %v4303_v1 = vpop.f32.mrb[141].mxu0  ;;  %v7112_v40 = vsel %vm7098_vm0, %v7091_v11, %v7093_v50  ;;  %7372 = vmatpush1.bf16.msra.mxu1 %v7149_v35  ;;  %7403 = vmatprep.mubr.bf16.mxu1 %v13673_v17 }
 0x2bf   : > { %v16402_v26 = vadd.f32 %v4303_v1, %v16251_v8  ;;  %13159 = vmatprep.subr.msk.bf16.mxu0 %vm473_vm1, %v7112_v40  ;;  %v4305_v37 = vpop.f32.mrb[142].mxu0  ;;  %v7095_v42 = vpop.permute.xlu1 %7094 }
 0x2c0   : > { %8874 = vrot.lane.b32.xlu0 %v13970_v27, %s13691_s12  ;;  %v4306_v51 = vpop.f32.mrb[143].mxu0  ;;  %v4342_v16 = vpop.f32.mrb[140].mxu1  ;;  %v7113_v14 = vsel %vm7098_vm0, %v7093_v50, %v7095_v42 }
 0x2c1   : > { %v7097_v12 = vpop.permute.xlu0 %7096  ;;  %v16412_v8 = vadd.f32 %v4342_v16, %v16260_v20  ;;  %v4344_v6 = vpop.f32.mrb[141].mxu1  ;;  %8876 = vrot.lane.b32.xlu1 %v13961_v25, %s13691_s12 }
 0x2c2   : > { %13156 = vmatmul.mubr.msk.bf16.vlgmr.msra.gmra.mrb[248].mxu0 %vm469_vm2, %v16324_v41  ;;  %v7114_v49 = vsel %vm7098_vm0, %v7095_v42, %v7097_v12  ;;  %v16419_v44 = vadd.f32 %v4344_v6, %v16268_v54  ;;  %v4346_v48 = vpop.f32.mrb[142].mxu1  ;;  %v7161_v54 = vsel %vm473_vm1, %v7113_v14, 0 }
 0x2c3   : > { %7413 = vmatpush1.bf16.msra.mxu0 %v7155_v62  ;;  %13161 = vmatprep.subr.msk.bf16.mxu1 %vm473_vm1, %v7114_v49  ;;  %v7513_v20 = vpop.permute.xlu1 %7512  ;;  %v4347_v59 = vpop.f32.mrb[143].mxu1  ;;  %v16468_v49 = vld [vmem:[%s18150_s1 + $0x40] sm:$0xf] }
 0x2c4   : > { %7444 = vmatprep.mubr.bf16.mxu0 %v13673_v17  ;;  %8878 = vrot.lane.b32.xlu0 %v13980_v30, %s13691_s12 }
 0x2c5   : > { %v4512_v53 = vpop.f32.mrb[144].mxu0  ;;  %v7515_v22 = vpop.permute.xlu0 %7514  ;;  %8880 = vrot.lane.b32.xlu1 %v13972_v29, %s13691_s12  ;;  %13158 = vmatmul.mubr.msk.bf16.vlgmr.msra.gmra.mrb[248].mxu1 %vm469_vm2, %v16324_v41 }
 0x2c6   : > { %v16426_v21 = vadd.f32 %v4512_v53, %v16274_v61  ;;  %v4514_v46 = vpop.f32.mrb[145].mxu0  ;;  %v7547_v36 = vsel %vm7546_vm3, %v7513_v20, %v7515_v22  ;;  %7454 = vmatpush1.bf16.msra.mxu1 %v7161_v54  ;;  %7485 = vmatprep.mubr.bf16.mxu1 %v13673_v17 }
 0x2c7   : > { %v16435_v55 = vadd.f32 %v4514_v46, %v16284_v7  ;;  %v4516_v47 = vpop.f32.mrb[146].mxu0  ;;  %v7517_v61 = vpop.permute.xlu1 %7516  ;;  %v7567_v35 = vsel %vm473_vm1, %v7547_v36, 0 }
 0x2c8   : > { %8882 = vrot.lane.b32.xlu0 %v13990_v32, %s13691_s12  ;;  %v4517_v11 = vpop.f32.mrb[147].mxu0  ;;  %v4553_v43 = vpop.f32.mrb[144].mxu1  ;;  %v7548_v39 = vsel %vm7546_vm3, %v7515_v22, %v7517_v61 }
 0x2c9   : > { %v7519_v50 = vpop.permute.xlu0 %7518  ;;  %v16444_v57 = vadd.f32 %v4553_v43, %v16294_v52  ;;  %v4555_v7 = vpop.f32.mrb[145].mxu1  ;;  %8884 = vrot.lane.b32.xlu1 %v13982_v31, %s13691_s12  ;;  %13164 = vmatprep.subr.msk.bf16.mxu0 %vm473_vm1, %v7548_v39 }
 0x2ca   : > { %13160 = vmatmul.mubr.msk.bf16.vlgmr.msra.gmra.mrb[252].mxu0 %vm469_vm2, %v16324_v41  ;;  %v16451_v1 = vadd.f32 %v4555_v7, %v16301_v15  ;;  %v4557_v40 = vpop.f32.mrb[146].mxu1  ;;  %v7549_v37 = vsel %vm7546_vm3, %v7517_v61, %v7519_v50 }
 0x2cb   : > { %7615 = vmatpush1.bf16.msra.mxu0 %v7567_v35  ;;  %7646 = vmatprep.mubr.bf16.mxu0 %v13673_v17  ;;  %v7521_v52 = vpop.permute.xlu1 %7520  ;;  %v4558_v62 = vpop.f32.mrb[147].mxu1 }
 0x2cc   : > { %8886 = vrot.lane.b32.xlu0 %v14000_v34, %s13691_s12  ;;  %v7550_v16 = vsel %vm7546_vm3, %v7519_v50, %v7521_v52 }
 0x2cd   : > { %v4594_v42 = vpop.f32.mrb[148].mxu0  ;;  %v7523_v51 = vpop.permute.xlu0 %7522  ;;  %8888 = vrot.lane.b32.xlu1 %v13992_v33, %s13691_s12  ;;  %13162 = vmatmul.mubr.msk.bf16.vlgmr.msra.gmra.mrb[252].mxu1 %vm469_vm2, %v16324_v41 }
 0x2ce   : > { %v16459_v12 = vadd.f32 %v4594_v42, %v16308_v63  ;;  %v4596_v15 = vpop.f32.mrb[149].mxu0  ;;  %v7551_v6 = vsel %vm7546_vm3, %v7521_v52, %v7523_v51  ;;  %13166 = vmatprep.subr.msk.bf16.mxu1 %vm473_vm1, %v7550_v16  ;;  %v7573_v63 = vsel %vm473_vm1, %v7549_v37, 0  ;;  %7687 = vmatprep.mubr.bf16.mxu1 %v13673_v17 }
 0x2cf   : > { %v16474_v14 = vadd.f32 %v4596_v15, %v16327_v10  ;;  %v4598_v48 = vpop.f32.mrb[150].mxu0  ;;  %7656 = vmatpush1.bf16.msra.mxu1 %v7573_v63  ;;  %v7525_v41 = vpop.permute.xlu1 %7524  ;;  %v7579_v46 = vsel %vm473_vm1, %v7551_v6, 0 }
 0x2d0   : > { %8890 = vrot.lane.b32.xlu0 %v14835_v28, %s13691_s12  ;;  %v4599_v20 = vpop.f32.mrb[151].mxu0  ;;  %v4635_v53 = vpop.f32.mrb[148].mxu1  ;;  %v7552_v59 = vsel %vm7546_vm3, %v7523_v51, %v7525_v41 }
 0x2d1   : > { %v7527_v22 = vpop.permute.xlu0 %7526  ;;  %v16483_v54 = vadd.f32 %v4635_v53, %v16340_v56  ;;  %v4637_v10 = vpop.f32.mrb[149].mxu1  ;;  %8892 = vrot.lane.b32.xlu1 %v13906_v13, %s13691_s12  ;;  %13168 = vmatprep.subr.msk.bf16.mxu0 %vm473_vm1, %v7552_v59 }
 0x2d2   : > { %13165 = vmatmul.mubr.msk.bf16.vlgmr.msra.gmra.mrb[0].mxu0 %vm469_vm2, %v16468_v49  ;;  %v16490_v36 = vadd.f32 %v4637_v10, %v16351_v60  ;;  %v4639_v47 = vpop.f32.mrb[150].mxu1  ;;  %v7553_v61 = vsel %vm7546_vm3, %v7525_v41, %v7527_v22 }
 0x2d3   : > { %7697 = vmatpush1.bf16.msra.mxu0 %v7579_v46  ;;  %7728 = vmatprep.mubr.bf16.mxu0 %v13673_v17  ;;  %v7529_v56 = vpop.permute.xlu1 %7528  ;;  %v4640_v7 = vpop.f32.mrb[151].mxu1  ;;  %v7585_v40 = vsel %vm473_vm1, %v7553_v61, 0 }
 0x2d4   : > { %8894 = vrot.lane.b32.xlu0 %v16319_v5, %s13691_s12  ;;  %v7554_v50 = vsel %vm7546_vm3, %v7527_v22, %v7529_v56 }
 0x2d5   : > { %v4676_v11 = vpop.f32.mrb[152].mxu0  ;;  %v7531_v43 = vpop.permute.xlu0 %7530  ;;  %8896 = vrot.lane.b32.xlu1 %v16331_v58, %s13691_s12  ;;  %13167 = vmatmul.mubr.msk.bf16.vlgmr.msra.gmra.mrb[0].mxu1 %vm469_vm2, %v16468_v49 }
 0x2d6   : > { %v16498_v39 = vadd.f32 %v4676_v11, %v16358_v45  ;;  %v4678_v60 = vpop.f32.mrb[153].mxu0  ;;  %v7555_v35 = vsel %vm7546_vm3, %v7529_v56, %v7531_v43  ;;  %13170 = vmatprep.subr.msk.bf16.mxu1 %vm473_vm1, %v7554_v50  ;;  %7769 = vmatprep.mubr.bf16.mxu1 %v13673_v17 }
 0x2d7   : > { %v16508_v37 = vadd.f32 %v4678_v60, %v16368_v4  ;;  %v4680_v52 = vpop.f32.mrb[154].mxu0  ;;  %7738 = vmatpush1.bf16.msra.mxu1 %v7585_v40  ;;  %v7533_v45 = vpop.permute.xlu1 %7532  ;;  %v7591_v6 = vsel %vm473_vm1, %v7555_v35, 0 }
 0x2d8   : > { %8898 = vrot.lane.b32.xlu0 %v16347_v9, %s13691_s12  ;;  %v4681_v42 = vpop.f32.mrb[155].mxu0  ;;  %v4717_v51 = vpop.f32.mrb[152].mxu1  ;;  %v7556_v62 = vsel %vm7546_vm3, %v7531_v43, %v7533_v45  ;;  %s13694_s12 = smov 101  }
 0x2d9   : > { %v7535_v16 = vpop.permute.xlu0 %7534  ;;  %v16517_v15 = vadd.f32 %v4717_v51, %v16378_v0  ;;  %v4719_v4 = vpop.f32.mrb[153].mxu1  ;;  %9314 = vrot.lane.b32.xlu1 %v13934_v18, %s13692_s18  ;;  %13172 = vmatprep.subr.msk.bf16.mxu0 %vm473_vm1, %v7556_v62 }
 0x2da   : > { %13169 = vmatmul.mubr.msk.bf16.vlgmr.msra.gmra.mrb[4].mxu0 %vm469_vm2, %v16468_v49  ;;  %v16524_v63 = vadd.f32 %v4719_v4, %v16385_v38  ;;  %v4721_v48 = vpop.f32.mrb[154].mxu1  ;;  %v7557_v41 = vsel %vm7546_vm3, %v7533_v45, %v7535_v16 }
 0x2db   : > { %7779 = vmatpush1.bf16.msra.mxu0 %v7591_v6  ;;  %7810 = vmatprep.mubr.bf16.mxu0 %v13673_v17  ;;  %v7537_v0 = vpop.permute.xlu1 %7536  ;;  %v4722_v10 = vpop.f32.mrb[155].mxu1  ;;  %v7597_v47 = vsel %vm473_vm1, %v7557_v41, 0 }
 0x2dc   : > { %9316 = vrot.lane.b32.xlu0 %v13940_v19, %s13692_s18  ;;  %v7558_v22 = vsel %vm7546_vm3, %v7535_v16, %v7537_v0 }
 0x2dd   : > { %v4758_v20 = vpop.f32.mrb[156].mxu0  ;;  %v7539_v53 = vpop.permute.xlu0 %7538  ;;  %9318 = vrot.lane.b32.xlu1 %v13959_v24, %s13692_s18  ;;  %13171 = vmatmul.mubr.msk.bf16.vlgmr.msra.gmra.mrb[4].mxu1 %vm469_vm2, %v16468_v49 }
 0x2de   : > { %v16532_v59 = vadd.f32 %v4758_v20, %v16392_v2  ;;  %v4760_v38 = vpop.f32.mrb[157].mxu0  ;;  %v7559_v46 = vsel %vm7546_vm3, %v7537_v0, %v7539_v53  ;;  %13174 = vmatprep.subr.msk.bf16.mxu1 %vm473_vm1, %v7558_v22  ;;  %7851 = vmatprep.mubr.bf16.mxu1 %v13673_v17 }
 0x2df   : > { %v16542_v61 = vadd.f32 %v4760_v38, %v16402_v26  ;;  %v4762_v56 = vpop.f32.mrb[158].mxu0  ;;  %7820 = vmatpush1.bf16.msra.mxu1 %v7597_v47  ;;  %v7541_v2 = vpop.permute.xlu1 %7540  ;;  %v7603_v35 = vsel %vm473_vm1, %v7559_v46, 0 }
 0x2e0   : > { %9320 = vrot.lane.b32.xlu0 %v13951_v23, %s13692_s18  ;;  %v4763_v11 = vpop.f32.mrb[159].mxu0  ;;  %v4799_v43 = vpop.f32.mrb[156].mxu1  ;;  %v7560_v7 = vsel %vm7546_vm3, %v7539_v53, %v7541_v2 }
 0x2e1   : > { %v7543_v50 = vpop.permute.xlu0 %7542  ;;  %v16551_v60 = vadd.f32 %v4799_v43, %v16412_v8  ;;  %v4801_v26 = vpop.f32.mrb[157].mxu1  ;;  %9322 = vrot.lane.b32.xlu1 %v13970_v27, %s13692_s18  ;;  %13176 = vmatprep.subr.msk.bf16.mxu0 %vm473_vm1, %v7560_v7 }
 0x2e2   : > { %13173 = vmatmul.mubr.msk.bf16.vlgmr.msra.gmra.mrb[8].mxu0 %vm469_vm2, %v16468_v49  ;;  %v16558_v40 = vadd.f32 %v4801_v26, %v16419_v44  ;;  %v4803_v52 = vpop.f32.mrb[158].mxu1  ;;  %v7561_v45 = vsel %vm7546_vm3, %v7541_v2, %v7543_v50 }
 0x2e3   : > { %7861 = vmatpush1.bf16.msra.mxu0 %v7603_v35  ;;  %7892 = vmatprep.mubr.bf16.mxu0 %v13673_v17  ;;  %v7545_v8 = vpop.permute.xlu1 %7544  ;;  %v4804_v62 = vpop.f32.mrb[159].mxu1  ;;  %v7609_v6 = vsel %vm473_vm1, %v7561_v45, 0  ;;  %v16609_v35 = vld [vmem:[%s18150_s1 + $0x44] sm:$0xf] }
 0x2e4   : > { %9324 = vrot.lane.b32.xlu0 %v13961_v25, %s13692_s18  ;;  %v7562_v51 = vsel %vm7546_vm3, %v7543_v50, %v7545_v8 }
 0x2e5   : > { %v4960_v42 = vpop.f32.mrb[160].mxu0  ;;  %v7961_v16 = vpop.permute.xlu0 %7960  ;;  %9326 = vrot.lane.b32.xlu1 %v13980_v30, %s13692_s18  ;;  %13175 = vmatmul.mubr.msk.bf16.vlgmr.msra.gmra.mrb[8].mxu1 %vm469_vm2, %v16468_v49 }
 0x2e6   : > { %v16566_v4 = vadd.f32 %v4960_v42, %v16426_v21  ;;  %v4962_v44 = vpop.f32.mrb[161].mxu0  ;;  %13178 = vmatprep.subr.msk.bf16.mxu1 %vm473_vm1, %v7562_v51  ;;  %7933 = vmatprep.mubr.bf16.mxu1 %v13673_v17 }
 0x2e7   : > { %v4964_v48 = vpop.f32.mrb[162].mxu0  ;;  %v16576_v41 = vadd.f32 %v4962_v44, %v16435_v55  ;;  %7902 = vmatpush1.bf16.msra.mxu1 %v7609_v6  ;;  %v7963_v21 = vpop.permute.xlu1 %7962 }
 0x2e8   : > { %9328 = vrot.lane.b32.xlu0 %v13972_v29, %s13692_s18  ;;  %v4965_v0 = vpop.f32.mrb[163].mxu0  ;;  %v7995_v20 = vsel %vm7994_vm4, %v7961_v16, %v7963_v21  ;;  %v5001_v53 = vpop.f32.mrb[160].mxu1 }
 0x2e9   : > { %v7965_v22 = vpop.permute.xlu0 %7964  ;;  %v5003_v10 = vpop.f32.mrb[161].mxu1  ;;  %9330 = vrot.lane.b32.xlu1 %v13990_v32, %s13692_s18  ;;  %v16588_v38 = vadd.f32 %v5001_v53, %v16444_v57  ;;  %v8015_v46 = vsel %vm473_vm1, %v7995_v20, 0 }
 0x2ea   : > { %13177 = vmatmul.mubr.msk.bf16.vlgmr.msra.gmra.mrb[12].mxu0 %vm469_vm2, %v16468_v49  ;;  %v7996_v55 = vsel %vm7994_vm4, %v7963_v21, %v7965_v22  ;;  %v5005_v47 = vpop.f32.mrb[162].mxu1  ;;  %v16593_v56 = vadd.f32 %v5003_v10, %v16451_v1 }
 0x2eb   : > { %8094 = vmatprep.mubr.bf16.mxu0 %v13673_v17  ;;  %13181 = vmatprep.subr.msk.bf16.mxu0 %vm473_vm1, %v7996_v55  ;;  %v7967_v2 = vpop.permute.xlu1 %7966  ;;  %v5006_v7 = vpop.f32.mrb[163].mxu1 }
 0x2ec   : > { %9332 = vrot.lane.b32.xlu0 %v13982_v31, %s13692_s18  ;;  %8063 = vmatpush1.bf16.msra.mxu0 %v8015_v46  ;;  %v7997_v43 = vsel %vm7994_vm4, %v7965_v22, %v7967_v2 }
 0x2ed   : > { %v5042_v11 = vpop.f32.mrb[164].mxu0  ;;  %v7969_v50 = vpop.permute.xlu0 %7968  ;;  %9334 = vrot.lane.b32.xlu1 %v14000_v34, %s13692_s18  ;;  %13179 = vmatmul.mubr.msk.bf16.vlgmr.msra.gmra.mrb[12].mxu1 %vm469_vm2, %v16468_v49  ;;  %v8021_v52 = vsel %vm473_vm1, %v7997_v43, 0 }
 0x2ee   : > { %v16599_v57 = vadd.f32 %v5042_v11, %v16459_v12  ;;  %v5044_v1 = vpop.f32.mrb[165].mxu0  ;;  %v7998_v26 = vsel %vm7994_vm4, %v7967_v2, %v7969_v50  ;;  %8135 = vmatprep.mubr.bf16.mxu1 %v13673_v17 }
 0x2ef   : > { %13183 = vmatprep.subr.msk.bf16.mxu1 %vm473_vm1, %v7998_v26  ;;  %v5046_v12 = vpop.f32.mrb[166].mxu0  ;;  %v16615_v45 = vadd.f32 %v5044_v1, %v16474_v14  ;;  %v7971_v49 = vpop.permute.xlu1 %7970 }
 0x2f0   : > { %9336 = vrot.lane.b32.xlu0 %v13992_v33, %s13692_s18  ;;  %8104 = vmatpush1.bf16.msra.mxu1 %v8021_v52  ;;  %v5047_v8 = vpop.f32.mrb[167].mxu0  ;;  %v7999_v42 = vsel %vm7994_vm4, %v7969_v50, %v7971_v49  ;;  %v5083_v51 = vpop.f32.mrb[164].mxu1 }
 0x2f1   : > { %v7973_v16 = vpop.permute.xlu0 %7972  ;;  %v5085_v62 = vpop.f32.mrb[165].mxu1  ;;  %9338 = vrot.lane.b32.xlu1 %v14835_v28, %s13692_s18  ;;  %v16627_v44 = vadd.f32 %v5083_v51, %v16483_v54  ;;  %v8027_v6 = vsel %vm473_vm1, %v7999_v42, 0 }
 0x2f2   : > { %13182 = vmatmul.mubr.msk.bf16.vlgmr.msra.gmra.mrb[16].mxu0 %vm469_vm2, %v16609_v35  ;;  %v8000_v14 = vsel %vm7994_vm4, %v7971_v49, %v7973_v16  ;;  %v5087_v48 = vpop.f32.mrb[166].mxu1  ;;  %v16632_v21 = vadd.f32 %v5085_v62, %v16490_v36 }
 0x2f3   : > { %8176 = vmatprep.mubr.bf16.mxu0 %v13673_v17  ;;  %13185 = vmatprep.subr.msk.bf16.mxu0 %vm473_vm1, %v8000_v14  ;;  %v7975_v0 = vpop.permute.xlu1 %7974  ;;  %v5088_v10 = vpop.f32.mrb[167].mxu1 }
 0x2f4   : > { %9340 = vrot.lane.b32.xlu0 %v13906_v13, %s13692_s18  ;;  %8145 = vmatpush1.bf16.msra.mxu0 %v8027_v6  ;;  %v8001_v53 = vsel %vm7994_vm4, %v7973_v16, %v7975_v0 }
 0x2f5   : > { %v5124_v20 = vpop.f32.mrb[168].mxu0  ;;  %v7977_v22 = vpop.permute.xlu0 %7976  ;;  %9342 = vrot.lane.b32.xlu1 %v16319_v5, %s13692_s18  ;;  %13184 = vmatmul.mubr.msk.bf16.vlgmr.msra.gmra.mrb[16].mxu1 %vm469_vm2, %v16609_v35  ;;  %v8033_v46 = vsel %vm473_vm1, %v8001_v53, 0 }
 0x2f6   : > { %v16638_v54 = vadd.f32 %v5124_v20, %v16498_v39  ;;  %v5126_v36 = vpop.f32.mrb[169].mxu0  ;;  %v8002_v55 = vsel %vm7994_vm4, %v7975_v0, %v7977_v22  ;;  %8217 = vmatprep.mubr.bf16.mxu1 %v13673_v17 }
 0x2f7   : > { %13187 = vmatprep.subr.msk.bf16.mxu1 %vm473_vm1, %v8002_v55  ;;  %v5128_v47 = vpop.f32.mrb[170].mxu0  ;;  %v16649_v2 = vadd.f32 %v5126_v36, %v16508_v37  ;;  %v7979_v39 = vpop.permute.xlu1 %7978 }
 0x2f8   : > { %9344 = vrot.lane.b32.xlu0 %v16331_v58, %s13692_s18  ;;  %8186 = vmatpush1.bf16.msra.mxu1 %v8033_v46  ;;  %v5129_v11 = vpop.f32.mrb[171].mxu0  ;;  %v8003_v43 = vsel %vm7994_vm4, %v7977_v22, %v7979_v39  ;;  %v5165_v50 = vpop.f32.mrb[168].mxu1 }
 0x2f9   : > { %v7981_v7 = vpop.permute.xlu0 %7980  ;;  %v5167_v1 = vpop.f32.mrb[169].mxu1  ;;  %9346 = vrot.lane.b32.xlu1 %v16347_v9, %s13692_s18  ;;  %v16660_v37 = vadd.f32 %v5165_v50, %v16517_v15  ;;  %v8039_v8 = vsel %vm473_vm1, %v8003_v43, 0  ;;  %s13695_s18 = smov 100  }
 0x2fa   : > { %13186 = vmatmul.mubr.msk.bf16.vlgmr.msra.gmra.mrb[20].mxu0 %vm469_vm2, %v16609_v35  ;;  %v8004_v26 = vsel %vm7994_vm4, %v7979_v39, %v7981_v7  ;;  %v5169_v52 = vpop.f32.mrb[170].mxu1  ;;  %v16664_v12 = vadd.f32 %v5167_v1, %v16524_v63 }
 0x2fb   : > { %8258 = vmatprep.mubr.bf16.mxu0 %v13673_v17  ;;  %13189 = vmatprep.subr.msk.bf16.mxu0 %vm473_vm1, %v8004_v26  ;;  %v7983_v49 = vpop.permute.xlu1 %7982  ;;  %v5170_v15 = vpop.f32.mrb[171].mxu1 }
 0x2fc   : > { %9762 = vrot.lane.b32.xlu0 %v13934_v18, %s13693_s17  ;;  %v8005_v51 = vsel %vm7994_vm4, %v7981_v7, %v7983_v49  ;;  %8227 = vmatpush1.bf16.msra.mxu0 %v8039_v8 }
 0x2fd   : > { %v5206_v42 = vpop.f32.mrb[172].mxu0  ;;  %9764 = vrot.lane.b32.xlu1 %v13940_v19, %s13693_s17  ;;  %13188 = vmatmul.mubr.msk.bf16.vlgmr.msra.gmra.mrb[20].mxu1 %vm469_vm2, %v16609_v35  ;;  %v8045_v20 = vsel %vm473_vm1, %v8005_v51, 0 }
 0x2fe   : > { %v5208_v16 = vpop.f32.mrb[173].mxu0  ;;  %v16672_v62 = vadd.f32 %v5206_v42, %v16532_v59  ;;  %v7985_v63 = vpop.permute.xlu0 %7984  ;;  %8299 = vmatprep.mubr.bf16.mxu1 %v13673_v17 }
 0x2ff   : > { %v5210_v14 = vpop.f32.mrb[174].mxu0  ;;  %v16679_v6 = vadd.f32 %v5208_v16, %v16542_v61  ;;  %v8006_v48 = vsel %vm7994_vm4, %v7983_v49, %v7985_v63  ;;  %v7987_v59 = vpop.permute.xlu1 %7986 }
 0x300   : > { %v5211_v0 = vpop.f32.mrb[175].mxu0  ;;  %9766 = vrot.lane.b32.xlu0 %v13959_v24, %s13693_s17  ;;  %13191 = vmatprep.subr.msk.bf16.mxu1 %vm473_vm1, %v8006_v48  ;;  %v8007_v53 = vsel %vm7994_vm4, %v7985_v63, %v7987_v59  ;;  %v5247_v22 = vpop.f32.mrb[172].mxu1 }
 0x301   : > { %8268 = vmatpush1.bf16.msra.mxu1 %v8045_v20  ;;  %v5249_v10 = vpop.f32.mrb[173].mxu1  ;;  %9768 = vrot.lane.b32.xlu1 %v13951_v23, %s13693_s17  ;;  %v16694_v36 = vadd.f32 %v5247_v22, %v16551_v60  ;;  %v8051_v11 = vsel %vm473_vm1, %v8007_v53, 0 }
 0x302   : > { %13190 = vmatmul.mubr.msk.bf16.vlgmr.msra.gmra.mrb[24].mxu0 %vm469_vm2, %v16609_v35  ;;  %v7989_v61 = vpop.permute.xlu0 %7988  ;;  %v5251_v46 = vpop.f32.mrb[174].mxu1  ;;  %v16698_v47 = vadd.f32 %v5249_v10, %v16558_v40 }
 0x303   : > { %8340 = vmatprep.mubr.bf16.mxu0 %v13673_v17  ;;  %v8008_v55 = vsel %vm7994_vm4, %v7987_v59, %v7989_v61  ;;  %v7991_v39 = vpop.permute.xlu1 %7990  ;;  %v5252_v7 = vpop.f32.mrb[175].mxu1 }
 0x304   : > { %9770 = vrot.lane.b32.xlu0 %v13970_v27, %s13693_s17  ;;  %13193 = vmatprep.subr.msk.bf16.mxu0 %vm473_vm1, %v8008_v55  ;;  %v8009_v50 = vsel %vm7994_vm4, %v7989_v61, %v7991_v39 }
 0x305   : > { %v5408_v43 = vpop.f32.mrb[176].mxu0  ;;  %8309 = vmatpush1.bf16.msra.mxu0 %v8051_v11  ;;  %9772 = vrot.lane.b32.xlu1 %v13961_v25, %s13693_s17  ;;  %v8057_v42 = vsel %vm473_vm1, %v8009_v50, 0 }
 0x306   : > { %v16706_v60 = vadd.f32 %v5408_v43, %v16566_v4  ;;  %v5410_v1 = vpop.f32.mrb[177].mxu0  ;;  %v7993_v26 = vpop.permute.xlu0 %7992  ;;  %13192 = vmatmul.mubr.msk.bf16.vlgmr.msra.gmra.mrb[24].mxu1 %vm469_vm2, %v16609_v35 }
 0x307   : > { %v16713_v40 = vadd.f32 %v5410_v1, %v16576_v41  ;;  %v5412_v52 = vpop.f32.mrb[178].mxu0  ;;  %v8010_v49 = vsel %vm7994_vm4, %v7991_v39, %v7993_v26  ;;  %8381 = vmatprep.mubr.bf16.mxu1 %v13673_v17  ;;  %v8419_v4 = vpop.permute.xlu1 %8418 }
 0x308   : > { %v5413_v8 = vpop.f32.mrb[179].mxu0  ;;  %9774 = vrot.lane.b32.xlu0 %v13980_v30, %s13693_s17  ;;  %13195 = vmatprep.subr.msk.bf16.mxu1 %vm473_vm1, %v8010_v49  ;;  %v5449_v51 = vpop.f32.mrb[176].mxu1 }
 0x309   : > { %8350 = vmatpush1.bf16.msra.mxu1 %v8057_v42  ;;  %v16724_v41 = vadd.f32 %v5449_v51, %v16588_v38  ;;  %v5451_v16 = vpop.f32.mrb[177].mxu1  ;;  %9776 = vrot.lane.b32.xlu1 %v13972_v29, %s13693_s17 }
 0x30a   : > { %13194 = vmatmul.mubr.msk.bf16.vlgmr.msra.gmra.mrb[28].mxu0 %vm469_vm2, %v16609_v35  ;;  %v8421_v15 = vpop.permute.xlu0 %8420  ;;  %v16730_v63 = vadd.f32 %v5451_v16, %v16593_v56  ;;  %v5453_v14 = vpop.f32.mrb[178].mxu1 }
 0x30b   : > { %8552 = vmatprep.mubr.bf16.mxu0 %v13673_v17  ;;  %v8453_v48 = vsel %vm8452_vm5, %v8419_v4, %v8421_v15  ;;  %v8423_v0 = vpop.permute.xlu1 %8422  ;;  %v5454_v53 = vpop.f32.mrb[179].mxu1 }
 0x30c   : > { %9778 = vrot.lane.b32.xlu0 %v13990_v32, %s13693_s17  ;;  %v8454_v38 = vsel %vm8452_vm5, %v8421_v15, %v8423_v0 }
 0x30d   : > { %v5490_v59 = vpop.f32.mrb[180].mxu0  ;;  %9780 = vrot.lane.b32.xlu1 %v13982_v31, %s13693_s17  ;;  %13199 = vmatprep.subr.msk.bf16.mxu0 %vm473_vm1, %v8454_v38 }
 0x30e   : > { %v16737_v20 = vadd.f32 %v5490_v59, %v16599_v57  ;;  %v5492_v22 = vpop.f32.mrb[181].mxu0  ;;  %v8425_v61 = vpop.permute.xlu0 %8424  ;;  %13196 = vmatmul.mubr.msk.bf16.vlgmr.msra.gmra.mrb[28].mxu1 %vm469_vm2, %v16609_v35  ;;  %v8473_v57 = vsel %vm473_vm1, %v8453_v48, 0  ;;  %v16755_v35 = vld [vmem:[%s18150_s1 + $0x48] sm:$0xf] }
 0x30f   : > { %v16744_v56 = vadd.f32 %v5492_v22, %v16615_v45  ;;  %v5494_v10 = vpop.f32.mrb[182].mxu0  ;;  %v8455_v55 = vsel %vm8452_vm5, %v8423_v0, %v8425_v61  ;;  %8593 = vmatprep.mubr.bf16.mxu1 %v13673_v17  ;;  %8521 = vmatpush1.bf16.msra.mxu0 %v8473_v57  ;;  %v8427_v39 = vpop.permute.xlu1 %8426 }
 0x310   : > { %v5495_v46 = vpop.f32.mrb[183].mxu0  ;;  %9782 = vrot.lane.b32.xlu0 %v14000_v34, %s13693_s17  ;;  %v5531_v45 = vpop.f32.mrb[180].mxu1  ;;  %v8456_v11 = vsel %vm8452_vm5, %v8425_v61, %v8427_v39  ;;  %v8479_v1 = vsel %vm473_vm1, %v8455_v55, 0 }
 0x311   : > { %v16759_v43 = vadd.f32 %v5531_v45, %v16627_v44  ;;  %v5533_v7 = vpop.f32.mrb[181].mxu1  ;;  %9784 = vrot.lane.b32.xlu1 %v13992_v33, %s13693_s17  ;;  %13201 = vmatprep.subr.msk.bf16.mxu1 %vm473_vm1, %v8456_v11 }
 0x312   : > { %v8429_v50 = vpop.permute.xlu0 %8428  ;;  %v16766_v26 = vadd.f32 %v5533_v7, %v16632_v21  ;;  %8562 = vmatpush1.bf16.msra.mxu1 %v8479_v1  ;;  %13200 = vmatmul.mubr.msk.bf16.vlgmr.msra.gmra.mrb[32].mxu0 %vm469_vm2, %v16755_v35  ;;  %v5535_v52 = vpop.f32.mrb[182].mxu1 }
 0x313   : > { %v8457_v44 = vsel %vm8452_vm5, %v8427_v39, %v8429_v50  ;;  %v8431_v49 = vpop.permute.xlu1 %8430  ;;  %8634 = vmatprep.mubr.bf16.mxu0 %v13673_v17  ;;  %v5536_v21 = vpop.f32.mrb[183].mxu1 }
 0x314   : > { %9786 = vrot.lane.b32.xlu0 %v14835_v28, %s13693_s17  ;;  %v8458_v4 = vsel %vm8452_vm5, %v8429_v50, %v8431_v49 }
 0x315   : > { %v5572_v8 = vpop.f32.mrb[184].mxu0  ;;  %9788 = vrot.lane.b32.xlu1 %v13906_v13, %s13693_s17  ;;  %13203 = vmatprep.subr.msk.bf16.mxu0 %vm473_vm1, %v8458_v4 }
 0x316   : > { %v16776_v42 = vadd.f32 %v5572_v8, %v16638_v54  ;;  %v5574_v51 = vpop.f32.mrb[185].mxu0  ;;  %v8433_v15 = vpop.permute.xlu0 %8432  ;;  %13202 = vmatmul.mubr.msk.bf16.vlgmr.msra.gmra.mrb[32].mxu1 %vm469_vm2, %v16755_v35  ;;  %v8485_v54 = vsel %vm473_vm1, %v8457_v44, 0 }
 0x317   : > { %v16783_v16 = vadd.f32 %v5574_v51, %v16649_v2  ;;  %v5576_v14 = vpop.f32.mrb[186].mxu0  ;;  %v8459_v48 = vsel %vm8452_vm5, %v8431_v49, %v8433_v15  ;;  %8675 = vmatprep.mubr.bf16.mxu1 %v13673_v17  ;;  %8603 = vmatpush1.bf16.msra.mxu0 %v8485_v54  ;;  %v8435_v59 = vpop.permute.xlu1 %8434 }
 0x318   : > { %v5577_v0 = vpop.f32.mrb[187].mxu0  ;;  %9790 = vrot.lane.b32.xlu0 %v16319_v5, %s13693_s17  ;;  %v5613_v38 = vpop.f32.mrb[184].mxu1  ;;  %v8460_v53 = vsel %vm8452_vm5, %v8433_v15, %v8435_v59  ;;  %v8491_v10 = vsel %vm473_vm1, %v8459_v48, 0 }
 0x319   : > { %v16793_v2 = vadd.f32 %v5613_v38, %v16660_v37  ;;  %v5615_v61 = vpop.f32.mrb[185].mxu1  ;;  %9792 = vrot.lane.b32.xlu1 %v16331_v58, %s13693_s17  ;;  %13205 = vmatprep.subr.msk.bf16.mxu1 %vm473_vm1, %v8460_v53 }
 0x31a   : > { %v8437_v22 = vpop.permute.xlu0 %8436  ;;  %v16800_v55 = vadd.f32 %v5615_v61, %v16664_v12  ;;  %8644 = vmatpush1.bf16.msra.mxu1 %v8491_v10  ;;  %13204 = vmatmul.mubr.msk.bf16.vlgmr.msra.gmra.mrb[36].mxu0 %vm469_vm2, %v16755_v35  ;;  %v5617_v57 = vpop.f32.mrb[186].mxu1 }
 0x31b   : > { %v8461_v37 = vsel %vm8452_vm5, %v8435_v59, %v8437_v22  ;;  %v8439_v46 = vpop.permute.xlu1 %8438  ;;  %8716 = vmatprep.mubr.bf16.mxu0 %v13673_v17  ;;  %v5618_v12 = vpop.f32.mrb[187].mxu1 }
 0x31c   : > { %9794 = vrot.lane.b32.xlu0 %v16347_v9, %s13693_s17  ;;  %v8462_v58 = vsel %vm8452_vm5, %v8437_v22, %v8439_v46  ;;  %s13696_s17 = smov 84  }
 0x31d   : > { %v5654_v39 = vpop.f32.mrb[188].mxu0  ;;  %10210 = vrot.lane.b32.xlu1 %v13934_v18, %s13694_s12  ;;  %13207 = vmatprep.subr.msk.bf16.mxu0 %vm473_vm1, %v8462_v58 }
 0x31e   : > { %v16810_v45 = vadd.f32 %v5654_v39, %v16672_v62  ;;  %v5656_v11 = vpop.f32.mrb[189].mxu0  ;;  %v8441_v50 = vpop.permute.xlu0 %8440  ;;  %13206 = vmatmul.mubr.msk.bf16.vlgmr.msra.gmra.mrb[36].mxu1 %vm469_vm2, %v16755_v35  ;;  %v8497_v62 = vsel %vm473_vm1, %v8461_v37, 0 }
 0x31f   : > { %v16817_v7 = vadd.f32 %v5656_v11, %v16679_v6  ;;  %v5658_v1 = vpop.f32.mrb[190].mxu0  ;;  %v8463_v52 = vsel %vm8452_vm5, %v8439_v46, %v8441_v50  ;;  %8757 = vmatprep.mubr.bf16.mxu1 %v13673_v17  ;;  %8685 = vmatpush1.bf16.msra.mxu0 %v8497_v62  ;;  %v8443_v49 = vpop.permute.xlu1 %8442 }
 0x320   : > { %v5659_v44 = vpop.f32.mrb[191].mxu0  ;;  %10212 = vrot.lane.b32.xlu0 %v13940_v19, %s13694_s12  ;;  %v5695_v8 = vpop.f32.mrb[188].mxu1  ;;  %v8464_v4 = vsel %vm8452_vm5, %v8441_v50, %v8443_v49  ;;  %v8503_v15 = vsel %vm473_vm1, %v8463_v52, 0 }
 0x321   : > { %v16827_v6 = vadd.f32 %v5695_v8, %v16694_v36  ;;  %v5697_v51 = vpop.f32.mrb[189].mxu1  ;;  %10214 = vrot.lane.b32.xlu1 %v13959_v24, %s13694_s12  ;;  %13209 = vmatprep.subr.msk.bf16.mxu1 %vm473_vm1, %v8464_v4 }
 0x322   : > { %v8445_v21 = vpop.permute.xlu0 %8444  ;;  %v16834_v14 = vadd.f32 %v5697_v51, %v16698_v47  ;;  %8726 = vmatpush1.bf16.msra.mxu1 %v8503_v15  ;;  %13208 = vmatmul.mubr.msk.bf16.vlgmr.msra.gmra.mrb[40].mxu0 %vm469_vm2, %v16755_v35  ;;  %v5699_v48 = vpop.f32.mrb[190].mxu1 }
 0x323   : > { %v8465_v36 = vsel %vm8452_vm5, %v8443_v49, %v8445_v21  ;;  %v8447_v54 = vpop.permute.xlu1 %8446  ;;  %8798 = vmatprep.mubr.bf16.mxu0 %v13673_v17  ;;  %v5700_v47 = vpop.f32.mrb[191].mxu1 }
 0x324   : > { %10216 = vrot.lane.b32.xlu0 %v13951_v23, %s13694_s12  ;;  %v8466_v59 = vsel %vm8452_vm5, %v8445_v21, %v8447_v54 }
 0x325   : > { %v5856_v0 = vpop.f32.mrb[192].mxu0  ;;  %10218 = vrot.lane.b32.xlu1 %v13970_v27, %s13694_s12  ;;  %13211 = vmatprep.subr.msk.bf16.mxu0 %vm473_vm1, %v8466_v59 }
 0x326   : > { %v16844_v38 = vadd.f32 %v5856_v0, %v16706_v60  ;;  %v5858_v53 = vpop.f32.mrb[193].mxu0  ;;  %v8449_v22 = vpop.permute.xlu0 %8448  ;;  %13210 = vmatmul.mubr.msk.bf16.vlgmr.msra.gmra.mrb[40].mxu1 %vm469_vm2, %v16755_v35  ;;  %v8509_v60 = vsel %vm473_vm1, %v8465_v36, 0 }
 0x327   : > { %v16851_v61 = vadd.f32 %v5858_v53, %v16713_v40  ;;  %v5860_v10 = vpop.f32.mrb[194].mxu0  ;;  %v8467_v57 = vsel %vm8452_vm5, %v8447_v54, %v8449_v22  ;;  %8839 = vmatprep.mubr.bf16.mxu1 %v13673_v17  ;;  %8767 = vmatpush1.bf16.msra.mxu0 %v8509_v60  ;;  %v8451_v46 = vpop.permute.xlu1 %8450 }
 0x328   : > { %v5861_v37 = vpop.f32.mrb[195].mxu0  ;;  %10220 = vrot.lane.b32.xlu0 %v13961_v25, %s13694_s12  ;;  %v8468_v39 = vsel %vm8452_vm5, %v8449_v22, %v8451_v46  ;;  %v5897_v58 = vpop.f32.mrb[192].mxu1  ;;  %v8515_v50 = vsel %vm473_vm1, %v8467_v57, 0 }
 0x329   : > { %v16861_v40 = vadd.f32 %v5897_v58, %v16724_v41  ;;  %v5899_v11 = vpop.f32.mrb[193].mxu1  ;;  %10222 = vrot.lane.b32.xlu1 %v13980_v30, %s13694_s12  ;;  %13213 = vmatprep.subr.msk.bf16.mxu1 %vm473_vm1, %v8468_v39 }
 0x32a   : > { %v8867_v12 = vpop.permute.xlu0 %8866  ;;  %v16868_v1 = vadd.f32 %v5899_v11, %v16730_v63  ;;  %8808 = vmatpush1.bf16.msra.mxu1 %v8515_v50  ;;  %13212 = vmatmul.mubr.msk.bf16.vlgmr.msra.gmra.mrb[44].mxu0 %vm469_vm2, %v16755_v35  ;;  %v5901_v52 = vpop.f32.mrb[194].mxu1 }
 0x32b   : > { %v8869_v41 = vpop.permute.xlu1 %8868  ;;  %9000 = vmatprep.mubr.bf16.mxu0 %v13673_v17  ;;  %v5902_v8 = vpop.f32.mrb[195].mxu1 }
 0x32c   : > { %10224 = vrot.lane.b32.xlu0 %v13972_v29, %s13694_s12  ;;  %v8901_v44 = vsel %vm8900_vm6, %v8867_v12, %v8869_v41 }
 0x32d   : > { %v5938_v62 = vpop.f32.mrb[196].mxu0  ;;  %10226 = vrot.lane.b32.xlu1 %v13990_v32, %s13694_s12  ;;  %v8921_v36 = vsel %vm473_vm1, %v8901_v44, 0 }
 0x32e   : > { %v16877_v49 = vadd.f32 %v5938_v62, %v16737_v20  ;;  %v5940_v63 = vpop.f32.mrb[197].mxu0  ;;  %v8871_v4 = vpop.permute.xlu0 %8870  ;;  %13214 = vmatmul.mubr.msk.bf16.vlgmr.msra.gmra.mrb[44].mxu1 %vm469_vm2, %v16755_v35 }
 0x32f   : > { %v16884_v21 = vadd.f32 %v5940_v63, %v16744_v56  ;;  %v5942_v51 = vpop.f32.mrb[198].mxu0  ;;  %v8902_v15 = vsel %vm8900_vm6, %v8869_v41, %v8871_v4  ;;  %9041 = vmatprep.mubr.bf16.mxu1 %v13673_v17  ;;  %v8873_v20 = vpop.permute.xlu1 %8872  ;;  %v16895_v56 = vld [vmem:[%s18150_s1 + $0x4c] sm:$0xf] }
 0x330   : > { %v5943_v48 = vpop.f32.mrb[199].mxu0  ;;  %10228 = vrot.lane.b32.xlu0 %v13982_v31, %s13694_s12  ;;  %13216 = vmatprep.subr.msk.bf16.mxu0 %vm473_vm1, %v8902_v15  ;;  %v5979_v54 = vpop.f32.mrb[196].mxu1  ;;  %v8903_v35 = vsel %vm8900_vm6, %v8871_v4, %v8873_v20 }
 0x331   : > { %8969 = vmatpush1.bf16.msra.mxu0 %v8921_v36  ;;  %v16899_v0 = vadd.f32 %v5979_v54, %v16759_v43  ;;  %v5981_v47 = vpop.f32.mrb[197].mxu1  ;;  %10230 = vrot.lane.b32.xlu1 %v14000_v34, %s13694_s12  ;;  %v8927_v37 = vsel %vm473_vm1, %v8903_v35, 0  ;;  %v16942_v48 = vld.sshfl [vmem:[%s13887_s13 + $0x28] sm:$0x33 pattern:$0x76325410] }
 0x332   : > { %v8875_v59 = vpop.permute.xlu0 %8874  ;;  %v16904_v53 = vadd.f32 %v5981_v47, %v16766_v26  ;;  %v5983_v10 = vpop.f32.mrb[198].mxu1 }
 0x333   : > { %v8904_v22 = vsel %vm8900_vm6, %v8873_v20, %v8875_v59  ;;  %v8877_v57 = vpop.permute.xlu1 %8876  ;;  %v5984_v46 = vpop.f32.mrb[199].mxu1 }
 0x334   : > { %10232 = vrot.lane.b32.xlu0 %v13992_v33, %s13694_s12  ;;  %13217 = vmatmul.mubr.msk.bf16.vlgmr.msra.gmra.mrb[48].mxu0 %vm469_vm2, %v16895_v56  ;;  %v8905_v60 = vsel %vm8900_vm6, %v8875_v59, %v8877_v57 }
 0x335   : > { %v6020_v43 = vpop.f32.mrb[200].mxu0  ;;  %13218 = vmatprep.subr.msk.bf16.mxu1 %vm473_vm1, %v8904_v22  ;;  %9082 = vmatprep.mubr.bf16.mxu0 %v13673_v17  ;;  %v8933_v41 = vsel %vm473_vm1, %v8905_v60, 0 }
 0x336   : > { %v16915_v26 = vadd.f32 %v6020_v43, %v16776_v42  ;;  %v6022_v39 = vpop.f32.mrb[201].mxu0  ;;  %9010 = vmatpush1.bf16.msra.mxu1 %v8927_v37  ;;  %v8879_v58 = vpop.permute.xlu0 %8878  ;;  %10234 = vrot.lane.b32.xlu1 %v14835_v28, %s13694_s12 }
 0x337   : > { %v16921_v12 = vadd.f32 %v6022_v39, %v16783_v16  ;;  %v6024_v11 = vpop.f32.mrb[202].mxu0  ;;  %v8906_v50 = vsel %vm8900_vm6, %v8877_v57, %v8879_v58  ;;  %v8881_v42 = vpop.permute.xlu1 %8880 }
 0x338   : > { %v6025_v52 = vpop.f32.mrb[203].mxu0  ;;  %10236 = vrot.lane.b32.xlu0 %v13906_v13, %s13694_s12  ;;  %13220 = vmatprep.subr.msk.bf16.mxu0 %vm473_vm1, %v8906_v50  ;;  %v6061_v62 = vpop.f32.mrb[200].mxu1  ;;  %v8907_v16 = vsel %vm8900_vm6, %v8879_v58, %v8881_v42 }
 0x339   : > { %13219 = vmatmul.mubr.msk.bf16.vlgmr.msra.gmra.mrb[48].mxu1 %vm469_vm2, %v16895_v56  ;;  %9051 = vmatpush1.bf16.msra.mxu0 %v8933_v41  ;;  %v16932_v44 = vadd.f32 %v6061_v62, %v16793_v2  ;;  %v6063_v63 = vpop.f32.mrb[201].mxu1 }
 0x33a   : > { %v8883_v8 = vpop.permute.xlu0 %8882  ;;  %10238 = vrot.lane.b32.xlu1 %v16319_v5, %s13694_s12  ;;  %9123 = vmatprep.mubr.bf16.mxu1 %v13673_v17  ;;  %v16938_v4 = vadd.f32 %v6063_v63, %v16800_v55  ;;  %v6065_v15 = vpop.f32.mrb[202].mxu1  ;;  %v8939_v55 = vsel %vm473_vm1, %v8907_v16, 0 }
 0x33b   : > { %v8908_v51 = vsel %vm8900_vm6, %v8881_v42, %v8883_v8  ;;  %v8885_v2 = vpop.permute.xlu1 %8884  ;;  %v6066_v35 = vpop.f32.mrb[203].mxu1 }
 0x33c   : > { %10240 = vrot.lane.b32.xlu0 %v16942_v48, %s13694_s12  ;;  %13221 = vmatmul.mubr.msk.bf16.vlgmr.msra.gmra.mrb[52].mxu0 %vm469_vm2, %v16895_v56  ;;  %v8909_v36 = vsel %vm8900_vm6, %v8883_v8, %v8885_v2 }
 0x33d   : > { %v6102_v20 = vpop.f32.mrb[204].mxu0  ;;  %13222 = vmatprep.subr.msk.bf16.mxu1 %vm473_vm1, %v8908_v51  ;;  %9164 = vmatprep.mubr.bf16.mxu0 %v13673_v17  ;;  %v8945_v60 = vsel %vm473_vm1, %v8909_v36, 0 }
 0x33e   : > { %v16952_v54 = vadd.f32 %v6102_v20, %v16810_v45  ;;  %v6104_v59 = vpop.f32.mrb[205].mxu0  ;;  %9092 = vmatpush1.bf16.msra.mxu1 %v8939_v55  ;;  %v8887_v47 = vpop.permute.xlu0 %8886  ;;  %10242 = vrot.lane.b32.xlu1 %v16347_v9, %s13694_s12  ;;  %s13697_s12 = smov 83  }
 0x33f   : > { %v16958_v22 = vadd.f32 %v6104_v59, %v16817_v7  ;;  %v6106_v10 = vpop.f32.mrb[206].mxu0  ;;  %v8910_v57 = vsel %vm8900_vm6, %v8885_v2, %v8887_v47  ;;  %v8889_v45 = vpop.permute.xlu1 %8888 }
 0x340   : > { %v6107_v43 = vpop.f32.mrb[207].mxu0  ;;  %10658 = vrot.lane.b32.xlu0 %v13934_v18, %s13695_s18  ;;  %13224 = vmatprep.subr.msk.bf16.mxu0 %vm473_vm1, %v8910_v57  ;;  %v6143_v37 = vpop.f32.mrb[204].mxu1  ;;  %v8911_v7 = vsel %vm8900_vm6, %v8887_v47, %v8889_v45 }
 0x341   : > { %13223 = vmatmul.mubr.msk.bf16.vlgmr.msra.gmra.mrb[52].mxu1 %vm469_vm2, %v16895_v56  ;;  %9133 = vmatpush1.bf16.msra.mxu0 %v8945_v60  ;;  %v16969_v46 = vadd.f32 %v6143_v37, %v16827_v6  ;;  %v6145_v58 = vpop.f32.mrb[205].mxu1  ;;  %v8951_v62 = vsel %vm473_vm1, %v8911_v7, 0 }
 0x342   : > { %v8891_v39 = vpop.permute.xlu0 %8890  ;;  %10660 = vrot.lane.b32.xlu1 %v13940_v19, %s13695_s18  ;;  %9205 = vmatprep.mubr.bf16.mxu1 %v13673_v17  ;;  %v16975_v11 = vadd.f32 %v6145_v58, %v16834_v14  ;;  %v6147_v52 = vpop.f32.mrb[206].mxu1 }
 0x343   : > { %v8912_v50 = vsel %vm8900_vm6, %v8889_v45, %v8891_v39  ;;  %v8893_v6 = vpop.permute.xlu1 %8892  ;;  %v6148_v16 = vpop.f32.mrb[207].mxu1 }
 0x344   : > { %10662 = vrot.lane.b32.xlu0 %v13959_v24, %s13695_s18  ;;  %13225 = vmatmul.mubr.msk.bf16.vlgmr.msra.gmra.mrb[56].mxu0 %vm469_vm2, %v16895_v56  ;;  %v8913_v41 = vsel %vm8900_vm6, %v8891_v39, %v8893_v6 }
 0x345   : > { %v6304_v42 = vpop.f32.mrb[208].mxu0  ;;  %13226 = vmatprep.subr.msk.bf16.mxu1 %vm473_vm1, %v8912_v50  ;;  %9246 = vmatprep.mubr.bf16.mxu0 %v13673_v17  ;;  %v8957_v36 = vsel %vm473_vm1, %v8913_v41, 0 }
 0x346   : > { %v16986_v14 = vadd.f32 %v6304_v42, %v16844_v38  ;;  %v6306_v8 = vpop.f32.mrb[209].mxu0  ;;  %9174 = vmatpush1.bf16.msra.mxu1 %v8951_v62  ;;  %v8895_v63 = vpop.permute.xlu0 %8894  ;;  %10664 = vrot.lane.b32.xlu1 %v13951_v23, %s13695_s18 }
 0x347   : > { %v16992_v51 = vadd.f32 %v6306_v8, %v16851_v61  ;;  %v6308_v15 = vpop.f32.mrb[210].mxu0  ;;  %v8914_v2 = vsel %vm8900_vm6, %v8893_v6, %v8895_v63  ;;  %v8897_v38 = vpop.permute.xlu1 %8896 }
 0x348   : > { %v6309_v20 = vpop.f32.mrb[211].mxu0  ;;  %10666 = vrot.lane.b32.xlu0 %v13970_v27, %s13695_s18  ;;  %13228 = vmatprep.subr.msk.bf16.mxu0 %vm473_vm1, %v8914_v2  ;;  %v6345_v55 = vpop.f32.mrb[208].mxu1  ;;  %v8915_v61 = vsel %vm8900_vm6, %v8895_v63, %v8897_v38 }
 0x349   : > { %13227 = vmatmul.mubr.msk.bf16.vlgmr.msra.gmra.mrb[56].mxu1 %vm469_vm2, %v16895_v56  ;;  %9215 = vmatpush1.bf16.msra.mxu0 %v8957_v36  ;;  %v17003_v35 = vadd.f32 %v6345_v55, %v16861_v40  ;;  %v6347_v47 = vpop.f32.mrb[209].mxu1  ;;  %v8963_v60 = vsel %vm473_vm1, %v8915_v61, 0 }
 0x34a   : > { %v8899_v59 = vpop.permute.xlu0 %8898  ;;  %10668 = vrot.lane.b32.xlu1 %v13961_v25, %s13695_s18  ;;  %9287 = vmatprep.mubr.bf16.mxu1 %v13673_v17  ;;  %v17010_v57 = vadd.f32 %v6347_v47, %v16868_v1  ;;  %v6349_v43 = vpop.f32.mrb[210].mxu1 }
 0x34b   : > { %v8916_v10 = vsel %vm8900_vm6, %v8897_v38, %v8899_v59  ;;  %v9315_v40 = vpop.permute.xlu1 %9314  ;;  %v6350_v7 = vpop.f32.mrb[211].mxu1 }
 0x34c   : > { %10670 = vrot.lane.b32.xlu0 %v13980_v30, %s13695_s18  ;;  %13229 = vmatmul.mubr.msk.bf16.vlgmr.msra.gmra.mrb[60].mxu0 %vm469_vm2, %v16895_v56 }
 0x34d   : > { %v6386_v45 = vpop.f32.mrb[212].mxu0  ;;  %13230 = vmatprep.subr.msk.bf16.mxu1 %vm473_vm1, %v8916_v10  ;;  %9448 = vmatprep.mubr.bf16.mxu0 %v13673_v17 }
 0x34e   : > { %v17019_v37 = vadd.f32 %v6386_v45, %v16877_v49  ;;  %v6388_v1 = vpop.f32.mrb[213].mxu0  ;;  %9256 = vmatpush1.bf16.msra.mxu1 %v8963_v60  ;;  %v9317_v39 = vpop.permute.xlu0 %9316  ;;  %10672 = vrot.lane.b32.xlu1 %v13972_v29, %s13695_s18 }
 0x34f   : > { %v17025_v58 = vadd.f32 %v6388_v1, %v16884_v21  ;;  %v6390_v50 = vpop.f32.mrb[214].mxu0  ;;  %v9349_v52 = vsel %vm9348_vm7, %v9315_v40, %v9317_v39  ;;  %v9319_v49 = vpop.permute.xlu1 %9318 }
 0x350   : > { %v6391_v6 = vpop.f32.mrb[215].mxu0  ;;  %10674 = vrot.lane.b32.xlu0 %v13990_v32, %s13695_s18  ;;  %v6427_v42 = vpop.f32.mrb[212].mxu1  ;;  %v9350_v41 = vsel %vm9348_vm7, %v9317_v39, %v9319_v49  ;;  %v9369_v8 = vsel %vm473_vm1, %v9349_v52, 0 }
 0x351   : > { %13231 = vmatmul.mubr.msk.bf16.vlgmr.msra.gmra.mrb[60].mxu1 %vm469_vm2, %v16895_v56  ;;  %v17034_v62 = vadd.f32 %v6427_v42, %v16899_v0  ;;  %v6429_v21 = vpop.f32.mrb[213].mxu1  ;;  %13233 = vmatprep.subr.msk.bf16.mxu0 %vm473_vm1, %v9350_v41  ;;  %v17046_v56 = vld [vmem:[%s18150_s1 + $0x50] sm:$0xf] }
 0x352   : > { %v9321_v16 = vpop.permute.xlu0 %9320  ;;  %10676 = vrot.lane.b32.xlu1 %v13982_v31, %s13695_s18  ;;  %v17041_v63 = vadd.f32 %v6429_v21, %v16904_v53  ;;  %9417 = vmatpush1.bf16.msra.mxu0 %v9369_v8  ;;  %v6431_v0 = vpop.f32.mrb[214].mxu1 }
 0x353   : > { %9489 = vmatprep.mubr.bf16.mxu1 %v13673_v17  ;;  %v9351_v15 = vsel %vm9348_vm7, %v9319_v49, %v9321_v16  ;;  %v9323_v2 = vpop.permute.xlu1 %9322  ;;  %v6432_v36 = vpop.f32.mrb[215].mxu1 }
 0x354   : > { %10678 = vrot.lane.b32.xlu0 %v14000_v34, %s13695_s18  ;;  %v9352_v38 = vsel %vm9348_vm7, %v9321_v16, %v9323_v2 }
 0x355   : > { %v6468_v20 = vpop.f32.mrb[216].mxu0  ;;  %13234 = vmatmul.mubr.msk.bf16.vlgmr.msra.gmra.mrb[64].mxu0 %vm469_vm2, %v17046_v56  ;;  %13235 = vmatprep.subr.msk.bf16.mxu1 %vm473_vm1, %v9352_v38 }
 0x356   : > { %v17054_v53 = vadd.f32 %v6468_v20, %v16915_v26  ;;  %v6470_v55 = vpop.f32.mrb[217].mxu0  ;;  %v9325_v61 = vpop.permute.xlu0 %9324  ;;  %10680 = vrot.lane.b32.xlu1 %v13992_v33, %s13695_s18  ;;  %v9375_v26 = vsel %vm473_vm1, %v9351_v15, 0  ;;  %9530 = vmatprep.mubr.bf16.mxu0 %v13673_v17 }
 0x357   : > { %v17061_v59 = vadd.f32 %v6470_v55, %v16921_v12  ;;  %v6472_v47 = vpop.f32.mrb[218].mxu0  ;;  %v9353_v10 = vsel %vm9348_vm7, %v9323_v2, %v9325_v61  ;;  %9458 = vmatpush1.bf16.msra.mxu1 %v9375_v26  ;;  %v9327_v40 = vpop.permute.xlu1 %9326 }
 0x358   : > { %v6473_v43 = vpop.f32.mrb[219].mxu0  ;;  %10682 = vrot.lane.b32.xlu0 %v14835_v28, %s13695_s18  ;;  %v6509_v45 = vpop.f32.mrb[216].mxu1  ;;  %v9354_v60 = vsel %vm9348_vm7, %v9325_v61, %v9327_v40  ;;  %v9381_v39 = vsel %vm473_vm1, %v9353_v10, 0 }
 0x359   : > { %v17071_v12 = vadd.f32 %v6509_v45, %v16932_v44  ;;  %v6511_v1 = vpop.f32.mrb[217].mxu1  ;;  %13237 = vmatprep.subr.msk.bf16.mxu0 %vm473_vm1, %v9354_v60 }
 0x35a   : > { %v9329_v7 = vpop.permute.xlu0 %9328  ;;  %10684 = vrot.lane.b32.xlu1 %v13906_v13, %s13695_s18  ;;  %v17078_v50 = vadd.f32 %v6511_v1, %v16938_v4  ;;  %13236 = vmatmul.mubr.msk.bf16.vlgmr.msra.gmra.mrb[64].mxu1 %vm469_vm2, %v17046_v56  ;;  %v6513_v52 = vpop.f32.mrb[218].mxu1 }
 0x35b   : > { %9499 = vmatpush1.bf16.msra.mxu0 %v9381_v39  ;;  %v9355_v44 = vsel %vm9348_vm7, %v9327_v40, %v9329_v7  ;;  %v9331_v6 = vpop.permute.xlu1 %9330  ;;  %9571 = vmatprep.mubr.bf16.mxu1 %v13673_v17  ;;  %v6514_v4 = vpop.f32.mrb[219].mxu1 }
 0x35c   : > { %10686 = vrot.lane.b32.xlu0 %v16319_v5, %s13695_s18  ;;  %v9356_v42 = vsel %vm9348_vm7, %v9329_v7, %v9331_v6 }
 0x35d   : > { %v6550_v49 = vpop.f32.mrb[220].mxu0  ;;  %13239 = vmatprep.subr.msk.bf16.mxu1 %vm473_vm1, %v9356_v42 }
 0x35e   : > { %v17088_v41 = vadd.f32 %v6550_v49, %v16952_v54  ;;  %v6552_v16 = vpop.f32.mrb[221].mxu0  ;;  %v9333_v21 = vpop.permute.xlu0 %9332  ;;  %10688 = vrot.lane.b32.xlu1 %v16942_v48, %s13695_s18  ;;  %13238 = vmatmul.mubr.msk.bf16.vlgmr.msra.gmra.mrb[68].mxu0 %vm469_vm2, %v17046_v56  ;;  %v9387_v54 = vsel %vm473_vm1, %v9355_v44, 0 }
 0x35f   : > { %v17095_v8 = vadd.f32 %v6552_v16, %v16958_v22  ;;  %v6554_v0 = vpop.f32.mrb[222].mxu0  ;;  %v9357_v15 = vsel %vm9348_vm7, %v9331_v6, %v9333_v21  ;;  %9612 = vmatprep.mubr.bf16.mxu0 %v13673_v17  ;;  %9540 = vmatpush1.bf16.msra.mxu1 %v9387_v54  ;;  %v9335_v20 = vpop.permute.xlu1 %9334 }
 0x360   : > { %v6555_v2 = vpop.f32.mrb[223].mxu0  ;;  %10690 = vrot.lane.b32.xlu0 %v16347_v9, %s13695_s18  ;;  %v6591_v38 = vpop.f32.mrb[220].mxu1  ;;  %v9358_v36 = vsel %vm9348_vm7, %v9333_v21, %v9335_v20  ;;  %v9393_v47 = vsel %vm473_vm1, %v9357_v15, 0  ;;  %s13698_s18 = smov 82  }
 0x361   : > { %v17105_v22 = vadd.f32 %v6591_v38, %v16969_v46  ;;  %v6593_v61 = vpop.f32.mrb[221].mxu1  ;;  %13241 = vmatprep.subr.msk.bf16.mxu0 %vm473_vm1, %v9358_v36 }
 0x362   : > { %v9337_v55 = vpop.permute.xlu0 %9336  ;;  %11106 = vrot.lane.b32.xlu1 %v13934_v18, %s13696_s17  ;;  %v17112_v10 = vadd.f32 %v6593_v61, %v16975_v11  ;;  %13240 = vmatmul.mubr.msk.bf16.vlgmr.msra.gmra.mrb[68].mxu1 %vm469_vm2, %v17046_v56  ;;  %v6595_v26 = vpop.f32.mrb[222].mxu1 }
 0x363   : > { %9581 = vmatpush1.bf16.msra.mxu0 %v9393_v47  ;;  %v9359_v46 = vsel %vm9348_vm7, %v9335_v20, %v9337_v55  ;;  %v9339_v43 = vpop.permute.xlu1 %9338  ;;  %9653 = vmatprep.mubr.bf16.mxu1 %v13673_v17  ;;  %v6596_v11 = vpop.f32.mrb[223].mxu1 }
 0x364   : > { %11108 = vrot.lane.b32.xlu0 %v13940_v19, %s13696_s17  ;;  %v9360_v45 = vsel %vm9348_vm7, %v9337_v55, %v9339_v43 }
 0x365   : > { %v6752_v40 = vpop.f32.mrb[224].mxu0  ;;  %13243 = vmatprep.subr.msk.bf16.mxu1 %vm473_vm1, %v9360_v45 }
 0x366   : > { %v17122_v60 = vadd.f32 %v6752_v40, %v16986_v14  ;;  %v6754_v7 = vpop.f32.mrb[225].mxu0  ;;  %v9341_v1 = vpop.permute.xlu0 %9340  ;;  %11110 = vrot.lane.b32.xlu1 %v13959_v24, %s13696_s17  ;;  %13242 = vmatmul.mubr.msk.bf16.vlgmr.msra.gmra.mrb[72].mxu0 %vm469_vm2, %v17046_v56  ;;  %v9399_v14 = vsel %vm473_vm1, %v9359_v46, 0 }
 0x367   : > { %v17129_v39 = vadd.f32 %v6754_v7, %v16992_v51  ;;  %v6756_v52 = vpop.f32.mrb[226].mxu0  ;;  %v9361_v44 = vsel %vm9348_vm7, %v9339_v43, %v9341_v1  ;;  %9694 = vmatprep.mubr.bf16.mxu0 %v13673_v17  ;;  %9622 = vmatpush1.bf16.msra.mxu1 %v9399_v14  ;;  %v9343_v49 = vpop.permute.xlu1 %9342 }
 0x368   : > { %v6757_v6 = vpop.f32.mrb[227].mxu0  ;;  %11112 = vrot.lane.b32.xlu0 %v13951_v23, %s13696_s17  ;;  %v6793_v42 = vpop.f32.mrb[224].mxu1  ;;  %v9362_v4 = vsel %vm9348_vm7, %v9341_v1, %v9343_v49  ;;  %v9405_v0 = vsel %vm473_vm1, %v9361_v44, 0 }
 0x369   : > { %v17139_v51 = vadd.f32 %v6793_v42, %v17003_v35  ;;  %v6795_v21 = vpop.f32.mrb[225].mxu1  ;;  %13245 = vmatprep.subr.msk.bf16.mxu0 %vm473_vm1, %v9362_v4 }
 0x36a   : > { %v9345_v16 = vpop.permute.xlu0 %9344  ;;  %11114 = vrot.lane.b32.xlu1 %v13970_v27, %s13696_s17  ;;  %v17146_v15 = vadd.f32 %v6795_v21, %v17010_v57  ;;  %13244 = vmatmul.mubr.msk.bf16.vlgmr.msra.gmra.mrb[72].mxu1 %vm469_vm2, %v17046_v56  ;;  %v6797_v54 = vpop.f32.mrb[226].mxu1 }
 0x36b   : > { %9663 = vmatpush1.bf16.msra.mxu0 %v9405_v0  ;;  %v9363_v35 = vsel %vm9348_vm7, %v9343_v49, %v9345_v16  ;;  %v9347_v2 = vpop.permute.xlu1 %9346  ;;  %9735 = vmatprep.mubr.bf16.mxu1 %v13673_v17  ;;  %v6798_v57 = vpop.f32.mrb[227].mxu1 }
 0x36c   : > { %11116 = vrot.lane.b32.xlu0 %v13961_v25, %s13696_s17  ;;  %v9364_v38 = vsel %vm9348_vm7, %v9345_v16, %v9347_v2  ;;  %v9411_v46 = vsel %vm473_vm1, %v9363_v35, 0 }
 0x36d   : > { %v6834_v20 = vpop.f32.mrb[228].mxu0  ;;  %13247 = vmatprep.subr.msk.bf16.mxu1 %vm473_vm1, %v9364_v38 }
 0x36e   : > { %v17156_v36 = vadd.f32 %v6834_v20, %v17019_v37  ;;  %v6836_v55 = vpop.f32.mrb[229].mxu0  ;;  %v9763_v61 = vpop.permute.xlu0 %9762  ;;  %11118 = vrot.lane.b32.xlu1 %v13980_v30, %s13696_s17  ;;  %13246 = vmatmul.mubr.msk.bf16.vlgmr.msra.gmra.mrb[76].mxu0 %vm469_vm2, %v17046_v56 }
 0x36f   : > { %v17163_v47 = vadd.f32 %v6836_v55, %v17025_v58  ;;  %v6838_v26 = vpop.f32.mrb[230].mxu0  ;;  %9896 = vmatprep.mubr.bf16.mxu0 %v13673_v17  ;;  %9704 = vmatpush1.bf16.msra.mxu1 %v9411_v46  ;;  %v9765_v43 = vpop.permute.xlu1 %9764 }
 0x370   : > { %v6839_v37 = vpop.f32.mrb[231].mxu0  ;;  %11120 = vrot.lane.b32.xlu0 %v13972_v29, %s13696_s17  ;;  %v9797_v40 = vsel %vm9796_vm8, %v9763_v61, %v9765_v43  ;;  %v6875_v45 = vpop.f32.mrb[228].mxu1 }
 0x371   : > { %v17172_v58 = vadd.f32 %v6875_v45, %v17034_v62  ;;  %v6877_v7 = vpop.f32.mrb[229].mxu1  ;;  %v9817_v14 = vsel %vm473_vm1, %v9797_v40, 0 }
 0x372   : > { %v9767_v11 = vpop.permute.xlu0 %9766  ;;  %11122 = vrot.lane.b32.xlu1 %v13990_v32, %s13696_s17  ;;  %v17177_v1 = vadd.f32 %v6877_v7, %v17041_v63  ;;  %13248 = vmatmul.mubr.msk.bf16.vlgmr.msra.gmra.mrb[76].mxu1 %vm469_vm2, %v17046_v56  ;;  %v6879_v44 = vpop.f32.mrb[230].mxu1  ;;  %v17192_v56 = vld [vmem:[%s18150_s1 + $0x54] sm:$0xf] }
 0x373   : > { %v9798_v52 = vsel %vm9796_vm8, %v9765_v43, %v9767_v11  ;;  %v9769_v62 = vpop.permute.xlu1 %9768  ;;  %v6880_v63 = vpop.f32.mrb[231].mxu1  ;;  %9937 = vmatprep.mubr.bf16.mxu1 %v13673_v17 }
 0x374   : > { %11124 = vrot.lane.b32.xlu0 %v13982_v31, %s13696_s17  ;;  %13250 = vmatprep.subr.msk.bf16.mxu0 %vm473_vm1, %v9798_v52  ;;  %v9799_v4 = vsel %vm9796_vm8, %v9767_v11, %v9769_v62 }
 0x375   : > { %v6916_v6 = vpop.f32.mrb[232].mxu0  ;;  %9865 = vmatpush1.bf16.msra.mxu0 %v9817_v14  ;;  %v9823_v38 = vsel %vm473_vm1, %v9799_v4, 0 }
 0x376   : > { %v17187_v49 = vadd.f32 %v6916_v6, %v17054_v53  ;;  %v6918_v42 = vpop.f32.mrb[233].mxu0  ;;  %v9771_v16 = vpop.permute.xlu0 %9770  ;;  %11126 = vrot.lane.b32.xlu1 %v14000_v34, %s13696_s17 }
 0x377   : > { %v17199_v21 = vadd.f32 %v6918_v42, %v17061_v59  ;;  %v6920_v53 = vpop.f32.mrb[234].mxu0  ;;  %v9800_v0 = vsel %vm9796_vm8, %v9769_v62, %v9771_v16  ;;  %v9773_v35 = vpop.permute.xlu1 %9772 }
 0x378   : > { %v6921_v54 = vpop.f32.mrb[235].mxu0  ;;  %11128 = vrot.lane.b32.xlu0 %v13992_v33, %s13696_s17  ;;  %13251 = vmatmul.mubr.msk.bf16.vlgmr.msra.gmra.mrb[80].mxu0 %vm469_vm2, %v17192_v56  ;;  %v9801_v2 = vsel %vm9796_vm8, %v9771_v16, %v9773_v35  ;;  %v6957_v20 = vpop.f32.mrb[232].mxu1 }
 0x379   : > { %13252 = vmatprep.subr.msk.bf16.mxu1 %vm473_vm1, %v9800_v0  ;;  %9978 = vmatprep.mubr.bf16.mxu0 %v13673_v17  ;;  %v17211_v59 = vadd.f32 %v6957_v20, %v17071_v12  ;;  %v6959_v55 = vpop.f32.mrb[233].mxu1  ;;  %v9829_v37 = vsel %vm473_vm1, %v9801_v2, 0 }
 0x37a   : > { %9906 = vmatpush1.bf16.msra.mxu1 %v9823_v38  ;;  %v9775_v57 = vpop.permute.xlu0 %9774  ;;  %11130 = vrot.lane.b32.xlu1 %v14835_v28, %s13696_s17  ;;  %v17217_v26 = vadd.f32 %v6959_v55, %v17078_v50  ;;  %v6961_v46 = vpop.f32.mrb[234].mxu1 }
 0x37b   : > { %v9802_v61 = vsel %vm9796_vm8, %v9773_v35, %v9775_v57  ;;  %v9777_v12 = vpop.permute.xlu1 %9776  ;;  %v6962_v45 = vpop.f32.mrb[235].mxu1 }
 0x37c   : > { %11132 = vrot.lane.b32.xlu0 %v13906_v13, %s13696_s17  ;;  %13254 = vmatprep.subr.msk.bf16.mxu0 %vm473_vm1, %v9802_v61  ;;  %v9803_v11 = vsel %vm9796_vm8, %v9775_v57, %v9777_v12 }
 0x37d   : > { %v6998_v43 = vpop.f32.mrb[236].mxu0  ;;  %13253 = vmatmul.mubr.msk.bf16.vlgmr.msra.gmra.mrb[80].mxu1 %vm469_vm2, %v17192_v56  ;;  %9947 = vmatpush1.bf16.msra.mxu0 %v9829_v37  ;;  %v9835_v6 = vsel %vm473_vm1, %v9803_v11, 0 }
 0x37e   : > { %v17226_v40 = vadd.f32 %v6998_v43, %v17088_v41  ;;  %v7000_v50 = vpop.f32.mrb[237].mxu0  ;;  %v9779_v7 = vpop.permute.xlu0 %9778  ;;  %11134 = vrot.lane.b32.xlu1 %v16319_v5, %s13696_s17  ;;  %10019 = vmatprep.mubr.bf16.mxu1 %v13673_v17 }
 0x37f   : > { %v17232_v52 = vadd.f32 %v7000_v50, %v17095_v8  ;;  %v7002_v44 = vpop.f32.mrb[238].mxu0  ;;  %v9804_v62 = vsel %vm9796_vm8, %v9777_v12, %v9779_v7  ;;  %v9781_v41 = vpop.permute.xlu1 %9780 }
 0x380   : > { %v7003_v14 = vpop.f32.mrb[239].mxu0  ;;  %11136 = vrot.lane.b32.xlu0 %v16942_v48, %s13696_s17  ;;  %13255 = vmatmul.mubr.msk.bf16.vlgmr.msra.gmra.mrb[84].mxu0 %vm469_vm2, %v17192_v56  ;;  %v9805_v8 = vsel %vm9796_vm8, %v9779_v7, %v9781_v41  ;;  %v7039_v63 = vpop.f32.mrb[236].mxu1 }
 0x381   : > { %13256 = vmatprep.subr.msk.bf16.mxu1 %vm473_vm1, %v9804_v62  ;;  %10060 = vmatprep.mubr.bf16.mxu0 %v13673_v17  ;;  %v17245_v42 = vadd.f32 %v7039_v63, %v17105_v22  ;;  %v7041_v16 = vpop.f32.mrb[237].mxu1  ;;  %v9841_v35 = vsel %vm473_vm1, %v9805_v8, 0 }
 0x382   : > { %9988 = vmatpush1.bf16.msra.mxu1 %v9835_v6  ;;  %v9783_v4 = vpop.permute.xlu0 %9782  ;;  %11138 = vrot.lane.b32.xlu1 %v16347_v9, %s13696_s17  ;;  %v17251_v0 = vadd.f32 %v7041_v16, %v17112_v10  ;;  %v7043_v54 = vpop.f32.mrb[238].mxu1 }
 0x383   : > { %v9806_v53 = vsel %vm9796_vm8, %v9781_v41, %v9783_v4  ;;  %v9785_v22 = vpop.permute.xlu1 %9784  ;;  %v7044_v10 = vpop.f32.mrb[239].mxu1 }
 0x384   : > { %11554 = vrot.lane.b32.xlu0 %v13934_v18, %s13697_s12  ;;  %13258 = vmatprep.subr.msk.bf16.mxu0 %vm473_vm1, %v9806_v53  ;;  %v9807_v57 = vsel %vm9796_vm8, %v9783_v4, %v9785_v22 }
 0x385   : > { %v7200_v2 = vpop.f32.mrb[240].mxu0  ;;  %13257 = vmatmul.mubr.msk.bf16.vlgmr.msra.gmra.mrb[84].mxu1 %vm469_vm2, %v17192_v56  ;;  %10029 = vmatpush1.bf16.msra.mxu0 %v9841_v35  ;;  %v9847_v43 = vsel %vm473_vm1, %v9807_v57, 0 }
 0x386   : > { %v17260_v20 = vadd.f32 %v7200_v2, %v17122_v60  ;;  %v7202_v38 = vpop.f32.mrb[241].mxu0  ;;  %v9787_v55 = vpop.permute.xlu0 %9786  ;;  %11556 = vrot.lane.b32.xlu1 %v13940_v19, %s13697_s12  ;;  %10101 = vmatprep.mubr.bf16.mxu1 %v13673_v17 }
 0x387   : > { %v17266_v61 = vadd.f32 %v7202_v38, %v17129_v39  ;;  %v7204_v46 = vpop.f32.mrb[242].mxu0  ;;  %v9808_v37 = vsel %vm9796_vm8, %v9785_v22, %v9787_v55  ;;  %v9789_v60 = vpop.permute.xlu1 %9788 }
 0x388   : > { %v7205_v12 = vpop.f32.mrb[243].mxu0  ;;  %11558 = vrot.lane.b32.xlu0 %v13959_v24, %s13697_s12  ;;  %13259 = vmatmul.mubr.msk.bf16.vlgmr.msra.gmra.mrb[88].mxu0 %vm469_vm2, %v17192_v56  ;;  %v9809_v39 = vsel %vm9796_vm8, %v9787_v55, %v9789_v60  ;;  %v7241_v45 = vpop.f32.mrb[240].mxu1 }
 0x389   : > { %13260 = vmatprep.subr.msk.bf16.mxu1 %vm473_vm1, %v9808_v37  ;;  %10142 = vmatprep.mubr.bf16.mxu0 %v13673_v17  ;;  %v17279_v50 = vadd.f32 %v7241_v45, %v17139_v51  ;;  %v7243_v7 = vpop.f32.mrb[241].mxu1  ;;  %v9853_v41 = vsel %vm473_vm1, %v9809_v39, 0 }
 0x38a   : > { %10070 = vmatpush1.bf16.msra.mxu1 %v9847_v43  ;;  %v9791_v11 = vpop.permute.xlu0 %9790  ;;  %11560 = vrot.lane.b32.xlu1 %v13951_v23, %s13697_s12  ;;  %v17285_v62 = vadd.f32 %v7243_v7, %v17146_v15  ;;  %v7245_v14 = vpop.f32.mrb[242].mxu1 }
 0x38b   : > { %v9810_v44 = vsel %vm9796_vm8, %v9789_v60, %v9791_v11  ;;  %v9793_v51 = vpop.permute.xlu1 %9792  ;;  %v7246_v63 = vpop.f32.mrb[243].mxu1 }
 0x38c   : > { %11562 = vrot.lane.b32.xlu0 %v13970_v27, %s13697_s12  ;;  %13262 = vmatprep.subr.msk.bf16.mxu0 %vm473_vm1, %v9810_v44  ;;  %v9811_v4 = vsel %vm9796_vm8, %v9791_v11, %v9793_v51 }
 0x38d   : > { %v7282_v6 = vpop.f32.mrb[244].mxu0  ;;  %13261 = vmatmul.mubr.msk.bf16.vlgmr.msra.gmra.mrb[88].mxu1 %vm469_vm2, %v17192_v56  ;;  %10111 = vmatpush1.bf16.msra.mxu0 %v9853_v41  ;;  %v9859_v2 = vsel %vm473_vm1, %v9811_v4, 0 }
 0x38e   : > { %v17294_v8 = vadd.f32 %v7282_v6, %v17156_v36  ;;  %v7284_v15 = vpop.f32.mrb[245].mxu0  ;;  %v9795_v16 = vpop.permute.xlu0 %9794  ;;  %11564 = vrot.lane.b32.xlu1 %v13961_v25, %s13697_s12  ;;  %10183 = vmatprep.mubr.bf16.mxu1 %v13673_v17 }
 0x38f   : > { %v17300_v53 = vadd.f32 %v7284_v15, %v17163_v47  ;;  %v7286_v54 = vpop.f32.mrb[246].mxu0  ;;  %v9812_v35 = vsel %vm9796_vm8, %v9793_v51, %v9795_v16  ;;  %v10211_v36 = vpop.permute.xlu1 %10210 }
 0x390   : > { %v7287_v22 = vpop.f32.mrb[247].mxu0  ;;  %11566 = vrot.lane.b32.xlu0 %v13980_v30, %s13697_s12  ;;  %13263 = vmatmul.mubr.msk.bf16.vlgmr.msra.gmra.mrb[92].mxu0 %vm469_vm2, %v17192_v56  ;;  %v7323_v47 = vpop.f32.mrb[244].mxu1 }
 0x391   : > { %13264 = vmatprep.subr.msk.bf16.mxu1 %vm473_vm1, %v9812_v35  ;;  %10344 = vmatprep.mubr.bf16.mxu0 %v13673_v17  ;;  %v17312_v10 = vadd.f32 %v7323_v47, %v17172_v58  ;;  %v7325_v57 = vpop.f32.mrb[245].mxu1 }
 0x392   : > { %10152 = vmatpush1.bf16.msra.mxu1 %v9859_v2  ;;  %v10213_v38 = vpop.permute.xlu0 %10212  ;;  %11568 = vrot.lane.b32.xlu1 %v13972_v29, %s13697_s12  ;;  %v17318_v46 = vadd.f32 %v7325_v57, %v17177_v1  ;;  %v7327_v37 = vpop.f32.mrb[246].mxu1 }
 0x393   : > { %v10245_v55 = vsel %vm10244_vm9, %v10211_v36, %v10213_v38  ;;  %v10215_v12 = vpop.permute.xlu1 %10214  ;;  %v7328_v39 = vpop.f32.mrb[247].mxu1 }
 0x394   : > { %11570 = vrot.lane.b32.xlu0 %v13990_v32, %s13697_s12  ;;  %v10246_v58 = vsel %vm10244_vm9, %v10213_v38, %v10215_v12  ;;  %v10265_v11 = vsel %vm473_vm1, %v10245_v55, 0 }
 0x395   : > { %v7364_v60 = vpop.f32.mrb[248].mxu0  ;;  %13265 = vmatmul.mubr.msk.bf16.vlgmr.msra.gmra.mrb[92].mxu1 %vm469_vm2, %v17192_v56  ;;  %13267 = vmatprep.subr.msk.bf16.mxu0 %vm473_vm1, %v10246_v58 }
 0x396   : > { %v17326_v43 = vadd.f32 %v7364_v60, %v17187_v49  ;;  %v7366_v45 = vpop.f32.mrb[249].mxu0  ;;  %v10217_v1 = vpop.permute.xlu0 %10216  ;;  %11572 = vrot.lane.b32.xlu1 %v13982_v31, %s13697_s12  ;;  %10313 = vmatpush1.bf16.msra.mxu0 %v10265_v11  ;;  %v17338_v49 = vld [vmem:[%s18150_s1 + $0x58] sm:$0xf] }
 0x397   : > { %v17333_v7 = vadd.f32 %v7366_v45, %v17199_v21  ;;  %v7368_v44 = vpop.f32.mrb[250].mxu0  ;;  %10385 = vmatprep.mubr.bf16.mxu1 %v13673_v17  ;;  %v10247_v14 = vsel %vm10244_vm9, %v10215_v12, %v10217_v1  ;;  %v10219_v41 = vpop.permute.xlu1 %10218 }
 0x398   : > { %v7369_v56 = vpop.f32.mrb[251].mxu0  ;;  %11574 = vrot.lane.b32.xlu0 %v14000_v34, %s13697_s12  ;;  %v10248_v51 = vsel %vm10244_vm9, %v10217_v1, %v10219_v41  ;;  %v7405_v21 = vpop.f32.mrb[248].mxu1  ;;  %v10271_v4 = vsel %vm473_vm1, %v10247_v14, 0 }
 0x399   : > { %v17346_v6 = vadd.f32 %v7405_v21, %v17211_v59  ;;  %v7407_v15 = vpop.f32.mrb[249].mxu1  ;;  %13268 = vmatmul.mubr.msk.bf16.vlgmr.msra.gmra.mrb[96].mxu0 %vm469_vm2, %v17338_v49  ;;  %13269 = vmatprep.subr.msk.bf16.mxu1 %vm473_vm1, %v10248_v51 }
 0x39a   : > { %v10221_v63 = vpop.permute.xlu0 %10220  ;;  %11576 = vrot.lane.b32.xlu1 %v13992_v33, %s13697_s12  ;;  %v17355_v54 = vadd.f32 %v7407_v15, %v17217_v26  ;;  %v7409_v35 = vpop.f32.mrb[250].mxu1  ;;  %10426 = vmatprep.mubr.bf16.mxu0 %v13673_v17 }
 0x39b   : > { %v10249_v16 = vsel %vm10244_vm9, %v10219_v41, %v10221_v63  ;;  %10354 = vmatpush1.bf16.msra.mxu1 %v10271_v4  ;;  %v10223_v59 = vpop.permute.xlu1 %10222  ;;  %v7410_v47 = vpop.f32.mrb[251].mxu1 }
 0x39c   : > { %11578 = vrot.lane.b32.xlu0 %v14835_v28, %s13697_s12  ;;  %v10250_v36 = vsel %vm10244_vm9, %v10221_v63, %v10223_v59  ;;  %v10277_v26 = vsel %vm473_vm1, %v10249_v16, 0 }
 0x39d   : > { %v7446_v22 = vpop.f32.mrb[252].mxu0  ;;  %13271 = vmatprep.subr.msk.bf16.mxu0 %vm473_vm1, %v10250_v36 }
 0x39e   : > { %v17363_v2 = vadd.f32 %v7446_v22, %v17226_v40  ;;  %v7448_v38 = vpop.f32.mrb[253].mxu0  ;;  %v10225_v57 = vpop.permute.xlu0 %10224  ;;  %11580 = vrot.lane.b32.xlu1 %v13906_v13, %s13697_s12  ;;  %13270 = vmatmul.mubr.msk.bf16.vlgmr.msra.gmra.mrb[96].mxu1 %vm469_vm2, %v17338_v49 }
 0x39f   : > { %v17370_v55 = vadd.f32 %v7448_v38, %v17232_v52  ;;  %v7450_v37 = vpop.f32.mrb[254].mxu0  ;;  %10395 = vmatpush1.bf16.msra.mxu0 %v10277_v26  ;;  %v10251_v12 = vsel %vm10244_vm9, %v10223_v59, %v10225_v57  ;;  %v10227_v60 = vpop.permute.xlu1 %10226  ;;  %10467 = vmatprep.mubr.bf16.mxu1 %v13673_v17 }
 0x3a0   : > { %v7451_v40 = vpop.f32.mrb[255].mxu0  ;;  %11582 = vrot.lane.b32.xlu0 %v16319_v5, %s13697_s12  ;;  %v10252_v58 = vsel %vm10244_vm9, %v10225_v57, %v10227_v60  ;;  %v7487_v39 = vpop.f32.mrb[252].mxu1  ;;  %v10283_v1 = vsel %vm473_vm1, %v10251_v12, 0 }
 0x3a1   : > { %v17380_v52 = vadd.f32 %v7487_v39, %v17245_v42  ;;  %v7489_v11 = vpop.f32.mrb[253].mxu1  ;;  %13273 = vmatprep.subr.msk.bf16.mxu1 %vm473_vm1, %v10252_v58 }
 0x3a2   : > { %v10229_v45 = vpop.permute.xlu0 %10228  ;;  %11584 = vrot.lane.b32.xlu1 %v16942_v48, %s13697_s12  ;;  %13272 = vmatmul.mubr.msk.bf16.vlgmr.msra.gmra.mrb[100].mxu0 %vm469_vm2, %v17338_v49  ;;  %v17389_v56 = vadd.f32 %v7489_v11, %v17251_v0  ;;  %v7491_v14 = vpop.f32.mrb[254].mxu1 }
 0x3a3   : > { %v10253_v44 = vsel %vm10244_vm9, %v10227_v60, %v10229_v45  ;;  %10508 = vmatprep.mubr.bf16.mxu0 %v13673_v17  ;;  %10436 = vmatpush1.bf16.msra.mxu1 %v10283_v1  ;;  %v10231_v48 = vpop.permute.xlu1 %10230  ;;  %v7492_v21 = vpop.f32.mrb[255].mxu1 }
 0x3a4   : > { %11586 = vrot.lane.b32.xlu0 %v16347_v9, %s13697_s12  ;;  %v10254_v41 = vsel %vm10244_vm9, %v10229_v45, %v10231_v48  ;;  %v10289_v0 = vsel %vm473_vm1, %v10253_v44, 0 }
 0x3a5   : > { %v7648_v42 = vpop.f32.mrb[0].mxu0  ;;  %13275 = vmatprep.subr.msk.bf16.mxu0 %vm473_vm1, %v10254_v41 }
 0x3a6   : > { %v17397_v51 = vadd.f32 %v7648_v42, %v17260_v20  ;;  %v7650_v63 = vpop.f32.mrb[1].mxu0  ;;  %v10233_v15 = vpop.permute.xlu0 %10232  ;;  %12002 = vrot.lane.b32.xlu1 %v13934_v18, %s13698_s18  ;;  %13274 = vmatmul.mubr.msk.bf16.vlgmr.msra.gmra.mrb[100].mxu1 %vm469_vm2, %v17338_v49 }
 0x3a7   : > { %v17404_v4 = vadd.f32 %v7650_v63, %v17266_v61  ;;  %v7652_v16 = vpop.f32.mrb[2].mxu0  ;;  %10477 = vmatpush1.bf16.msra.mxu0 %v10289_v0  ;;  %v10255_v35 = vsel %vm10244_vm9, %v10231_v48, %v10233_v15  ;;  %10549 = vmatprep.mubr.bf16.mxu1 %v13673_v17 }
 0x3a8   : > { %v7653_v20 = vpop.f32.mrb[3].mxu0  ;;  %12004 = vrot.lane.b32.xlu0 %v13940_v19, %s13698_s18  ;;  %v10235_v59 = vpop.permute.xlu1 %10234  ;;  %v10295_v38 = vsel %vm473_vm1, %v10255_v35, 0 }
 0x3a9   : > { %v10256_v18 = vsel %vm10244_vm9, %v10233_v15, %v10235_v59  ;;  %v7689_v22 = vpop.f32.mrb[0].mxu1 }
 0x3aa   : > { %v17414_v61 = vadd.f32 %v7689_v22, %v17279_v50  ;;  %v10237_v36 = vpop.permute.xlu0 %10236  ;;  %v7691_v47 = vpop.f32.mrb[1].mxu1  ;;  %12006 = vrot.lane.b32.xlu1 %v13959_v24, %s13698_s18  ;;  %13276 = vmatmul.mubr.msk.bf16.vlgmr.msra.gmra.mrb[104].mxu0 %vm469_vm2, %v17338_v49 }
 0x3ab   : > { %v10257_v19 = vsel %vm10244_vm9, %v10235_v59, %v10237_v36  ;;  %v17423_v26 = vadd.f32 %v7691_v47, %v17285_v62  ;;  %13277 = vmatprep.subr.msk.bf16.mxu1 %vm473_vm1, %v10256_v18  ;;  %v7693_v57 = vpop.f32.mrb[2].mxu1  ;;  %10590 = vmatprep.mubr.bf16.mxu0 %v13673_v17 }
 0x3ac   : > { %10518 = vmatpush1.bf16.msra.mxu1 %v10295_v38  ;;  %12008 = vrot.lane.b32.xlu0 %v13951_v23, %s13698_s18  ;;  %v10239_v24 = vpop.permute.xlu1 %10238  ;;  %v7694_v12 = vpop.f32.mrb[3].mxu1  ;;  %v10301_v62 = vsel %vm473_vm1, %v10257_v19, 0 }
 0x3ad   : > { %v7730_v50 = vpop.f32.mrb[4].mxu0  ;;  %v10258_v37 = vsel %vm10244_vm9, %v10237_v36, %v10239_v24 }
 0x3ae   : > { %v17431_v40 = vadd.f32 %v7730_v50, %v17294_v8  ;;  %v7732_v60 = vpop.f32.mrb[5].mxu0  ;;  %v10241_v58 = vpop.permute.xlu0 %10240  ;;  %12010 = vrot.lane.b32.xlu1 %v13970_v27, %s13698_s18  ;;  %13279 = vmatprep.subr.msk.bf16.mxu0 %vm473_vm1, %v10258_v37 }
 0x3af   : > { %v17438_v39 = vadd.f32 %v7732_v60, %v17300_v53  ;;  %v7734_v23 = vpop.f32.mrb[6].mxu0  ;;  %13278 = vmatmul.mubr.msk.bf16.vlgmr.msra.gmra.mrb[104].mxu1 %vm469_vm2, %v17338_v49  ;;  %10559 = vmatpush1.bf16.msra.mxu0 %v10301_v62  ;;  %v10259_v45 = vsel %vm10244_vm9, %v10239_v24, %v10241_v58 }
 0x3b0   : > { %v7735_v8 = vpop.f32.mrb[7].mxu0  ;;  %12012 = vrot.lane.b32.xlu0 %v13961_v25, %s13698_s18  ;;  %v10243_v11 = vpop.permute.xlu1 %10242  ;;  %10631 = vmatprep.mubr.bf16.mxu1 %v13673_v17  ;;  %v10307_v25 = vsel %vm473_vm1, %v10259_v45, 0 }
 0x3b1   : > { %v10260_v27 = vsel %vm10244_vm9, %v10241_v58, %v10243_v11  ;;  %v7771_v1 = vpop.f32.mrb[4].mxu1 }
 0x3b2   : > { %v17448_v53 = vadd.f32 %v7771_v1, %v17312_v10  ;;  %v10659_v44 = vpop.permute.xlu0 %10658  ;;  %v7773_v14 = vpop.f32.mrb[5].mxu1  ;;  %12014 = vrot.lane.b32.xlu1 %v13980_v30, %s13698_s18  ;;  %13280 = vmatmul.mubr.msk.bf16.vlgmr.msra.gmra.mrb[108].mxu0 %vm469_vm2, %v17338_v49 }
 0x3b3   : > { %v17456_v48 = vadd.f32 %v7773_v14, %v17318_v46  ;;  %13281 = vmatprep.subr.msk.bf16.mxu1 %vm473_vm1, %v10260_v27  ;;  %v7775_v42 = vpop.f32.mrb[6].mxu1  ;;  %10792 = vmatprep.mubr.bf16.mxu0 %v13673_v17  ;;  %v13515_v27 = vld.sshfl [vmem:[%s13887_s13 + $0x28] sm:$0x33 pattern:$0x76325410]  ;;  %s17967_s13 = scalar_lea.vmem [#allocation5], %s12886_s8 }
 0x3b4   : > { %10600 = vmatpush1.bf16.msra.mxu1 %v10307_v25  ;;  %12016 = vrot.lane.b32.xlu0 %v13972_v29, %s13698_s18  ;;  %v10661_v10 = vpop.permute.xlu1 %10660  ;;  %v7776_v63 = vpop.f32.mrb[7].mxu1 }
 0x3b5   : > { %v7812_v30 = vpop.f32.mrb[8].mxu0  ;;  %v10693_v41 = vsel %vm10692_vm10, %v10659_v44, %v10661_v10 }
 0x3b6   : > { %v17464_v21 = vadd.f32 %v7812_v30, %v17326_v43  ;;  %v7814_v0 = vpop.f32.mrb[9].mxu0  ;;  %v10663_v46 = vpop.permute.xlu0 %10662  ;;  %12018 = vrot.lane.b32.xlu1 %v13990_v32, %s13698_s18  ;;  %v10713_v35 = vsel %vm473_vm1, %v10693_v41, 0  ;;  %v17481_v32 = vld [vmem:[%s18150_s1 + $0x5c] sm:$0xf] }
 0x3b7   : > { %v17469_v15 = vadd.f32 %v7814_v0, %v17333_v7  ;;  %v7816_v16 = vpop.f32.mrb[10].mxu0  ;;  %v10694_v20 = vsel %vm10692_vm10, %v10661_v10, %v10663_v46  ;;  %13282 = vmatmul.mubr.msk.bf16.vlgmr.msra.gmra.mrb[108].mxu1 %vm469_vm2, %v17338_v49 }
 0x3b8   : > { %v7817_v29 = vpop.f32.mrb[11].mxu0  ;;  %12020 = vrot.lane.b32.xlu0 %v13982_v31, %s13698_s18  ;;  %13284 = vmatprep.subr.msk.bf16.mxu0 %vm473_vm1, %v10694_v20  ;;  %v10665_v43 = vpop.permute.xlu1 %10664 }
 0x3b9   : > { %v7853_v59 = vpop.f32.mrb[8].mxu1  ;;  %10761 = vmatpush1.bf16.msra.mxu0 %v10713_v35  ;;  %10833 = vmatprep.mubr.bf16.mxu1 %v13673_v17  ;;  %v10695_v7 = vsel %vm10692_vm10, %v10663_v46, %v10665_v43 }
 0x3ba   : > { %v17486_v49 = vadd.f32 %v7853_v59, %v17346_v6  ;;  %v10667_v18 = vpop.permute.xlu0 %10666  ;;  %v7855_v22 = vpop.f32.mrb[9].mxu1  ;;  %12022 = vrot.lane.b32.xlu1 %v14000_v34, %s13698_s18  ;;  %v10719_v19 = vsel %vm473_vm1, %v10695_v7, 0 }
 0x3bb   : > { %v10696_v31 = vsel %vm10692_vm10, %v10665_v43, %v10667_v18  ;;  %v17492_v36 = vadd.f32 %v7855_v22, %v17355_v54  ;;  %v7857_v47 = vpop.f32.mrb[10].mxu1 }
 0x3bc   : > { %12024 = vrot.lane.b32.xlu0 %v13992_v33, %s13698_s18  ;;  %13285 = vmatmul.mubr.msk.bf16.vlgmr.msra.gmra.mrb[112].mxu0 %vm469_vm2, %v17481_v32  ;;  %v10669_v38 = vpop.permute.xlu1 %10668  ;;  %v7858_v54 = vpop.f32.mrb[11].mxu1 }
 0x3bd   : > { %v7894_v6 = vpop.f32.mrb[12].mxu0  ;;  %13286 = vmatprep.subr.msk.bf16.mxu1 %vm473_vm1, %v10696_v31  ;;  %v10697_v34 = vsel %vm10692_vm10, %v10667_v18, %v10669_v38  ;;  %10874 = vmatprep.mubr.bf16.mxu0 %v13673_v17 }
 0x3be   : > { %v17502_v57 = vadd.f32 %v7894_v6, %v17363_v2  ;;  %v7896_v24 = vpop.f32.mrb[13].mxu0  ;;  %10802 = vmatpush1.bf16.msra.mxu1 %v10719_v19  ;;  %v10671_v33 = vpop.permute.xlu0 %10670  ;;  %12026 = vrot.lane.b32.xlu1 %v14835_v28, %s13698_s18  ;;  %v10725_v62 = vsel %vm473_vm1, %v10697_v34, 0 }
 0x3bf   : > { %v17508_v50 = vadd.f32 %v7896_v24, %v17370_v55  ;;  %v7898_v37 = vpop.f32.mrb[14].mxu0  ;;  %v10698_v12 = vsel %vm10692_vm10, %v10669_v38, %v10671_v33 }
 0x3c0   : > { %v7899_v60 = vpop.f32.mrb[15].mxu0  ;;  %12028 = vrot.lane.b32.xlu0 %v13906_v13, %s13698_s18  ;;  %13288 = vmatprep.subr.msk.bf16.mxu0 %vm473_vm1, %v10698_v12  ;;  %v10673_v2 = vpop.permute.xlu1 %10672 }
 0x3c1   : > { %13287 = vmatmul.mubr.msk.bf16.vlgmr.msra.gmra.mrb[112].mxu1 %vm469_vm2, %v17481_v32  ;;  %v7935_v28 = vpop.f32.mrb[12].mxu1  ;;  %10843 = vmatpush1.bf16.msra.mxu0 %v10725_v62  ;;  %v10699_v55 = vsel %vm10692_vm10, %v10671_v33, %v10673_v2 }
 0x3c2   : > { %v17519_v58 = vadd.f32 %v7935_v28, %v17380_v52  ;;  %v10675_v23 = vpop.permute.xlu0 %10674  ;;  %v7937_v8 = vpop.f32.mrb[13].mxu1  ;;  %12030 = vrot.lane.b32.xlu1 %v16319_v5, %s13698_s18  ;;  %10915 = vmatprep.mubr.bf16.mxu1 %v13673_v17  ;;  %v10731_v44 = vsel %vm473_vm1, %v10699_v55, 0 }
 0x3c3   : > { %v10700_v13 = vsel %vm10692_vm10, %v10673_v2, %v10675_v23  ;;  %v17526_v45 = vadd.f32 %v7937_v8, %v17389_v56  ;;  %v7939_v11 = vpop.f32.mrb[14].mxu1 }
 0x3c4   : > { %12032 = vrot.lane.b32.xlu0 %v13515_v27, %s13698_s18  ;;  %13289 = vmatmul.mubr.msk.bf16.vlgmr.msra.gmra.mrb[116].mxu0 %vm469_vm2, %v17481_v32  ;;  %v10677_v52 = vpop.permute.xlu1 %10676  ;;  %v7940_v56 = vpop.f32.mrb[15].mxu1 }
 0x3c5   : > { %v8096_v1 = vpop.f32.mrb[16].mxu0  ;;  %13290 = vmatprep.subr.msk.bf16.mxu1 %vm473_vm1, %v10700_v13  ;;  %v10701_v5 = vsel %vm10692_vm10, %v10675_v23, %v10677_v52  ;;  %10956 = vmatprep.mubr.bf16.mxu0 %v13673_v17 }
 0x3c6   : > { %v17536_v14 = vadd.f32 %v8096_v1, %v17397_v51  ;;  %v8098_v25 = vpop.f32.mrb[17].mxu0  ;;  %10884 = vmatpush1.bf16.msra.mxu1 %v10731_v44  ;;  %v10679_v42 = vpop.permute.xlu0 %10678  ;;  %12034 = vrot.lane.b32.xlu1 %v16347_v9, %s13698_s18  ;;  %v10737_v0 = vsel %vm473_vm1, %v10701_v5, 0 }
 0x3c7   : > { %v17542_v10 = vadd.f32 %v8098_v25, %v17404_v4  ;;  %v8100_v30 = vpop.f32.mrb[18].mxu0  ;;  %v10702_v41 = vsel %vm10692_vm10, %v10677_v52, %v10679_v42 }
 0x3c8   : > { %v8101_v63 = vpop.f32.mrb[19].mxu0  ;;  %13292 = vmatprep.subr.msk.bf16.mxu0 %vm473_vm1, %v10702_v41  ;;  %v10681_v51 = vpop.permute.xlu1 %10680 }
 0x3c9   : > { %13291 = vmatmul.mubr.msk.bf16.vlgmr.msra.gmra.mrb[116].mxu1 %vm469_vm2, %v17481_v32  ;;  %v10703_v46 = vsel %vm10692_vm10, %v10679_v42, %v10681_v51  ;;  %v8137_v16 = vpop.f32.mrb[16].mxu1  ;;  %10925 = vmatpush1.bf16.msra.mxu0 %v10737_v0 }
 0x3ca   : > { %v17551_v9 = vadd.f32 %v8137_v16, %v17414_v61  ;;  %v10683_v4 = vpop.permute.xlu0 %10682  ;;  %v8139_v20 = vpop.f32.mrb[17].mxu1  ;;  %10997 = vmatprep.mubr.bf16.mxu1 %v13673_v17  ;;  %v10743_v59 = vsel %vm473_vm1, %v10703_v46, 0 }
 0x3cb   : > { %v10704_v29 = vsel %vm10692_vm10, %v10681_v51, %v10683_v4  ;;  %v17556_v35 = vadd.f32 %v8139_v20, %v17423_v26  ;;  %v8141_v43 = vpop.f32.mrb[18].mxu1 }
 0x3cc   : > { %13293 = vmatmul.mubr.msk.bf16.vlgmr.msra.gmra.mrb[120].mxu0 %vm469_vm2, %v17481_v32  ;;  %13294 = vmatprep.subr.msk.bf16.mxu1 %vm473_vm1, %v10704_v29  ;;  %v10685_v7 = vpop.permute.xlu1 %10684  ;;  %v8142_v31 = vpop.f32.mrb[19].mxu1 }
 0x3cd   : > { %v8178_v61 = vpop.f32.mrb[20].mxu0  ;;  %v10705_v18 = vsel %vm10692_vm10, %v10683_v4, %v10685_v7  ;;  %10966 = vmatpush1.bf16.msra.mxu1 %v10743_v59  ;;  %11038 = vmatprep.mubr.bf16.mxu0 %v13673_v17 }
 0x3ce   : > { %v17564_v22 = vadd.f32 %v8178_v61, %v17431_v40  ;;  %v8180_v47 = vpop.f32.mrb[21].mxu0  ;;  %v10687_v26 = vpop.permute.xlu0 %10686  ;;  %v10749_v54 = vsel %vm473_vm1, %v10705_v18, 0 }
 0x3cf   : > { %v17568_v38 = vadd.f32 %v8180_v47, %v17438_v39  ;;  %v8182_v6 = vpop.f32.mrb[22].mxu0  ;;  %v10706_v19 = vsel %vm10692_vm10, %v10685_v7, %v10687_v26 }
 0x3d0   : > { %v8183_v34 = vpop.f32.mrb[23].mxu0  ;;  %13296 = vmatprep.subr.msk.bf16.mxu0 %vm473_vm1, %v10706_v19  ;;  %v10689_v24 = vpop.permute.xlu1 %10688 }
 0x3d1   : > { %13295 = vmatmul.mubr.msk.bf16.vlgmr.msra.gmra.mrb[120].mxu1 %vm469_vm2, %v17481_v32  ;;  %v10707_v40 = vsel %vm10692_vm10, %v10687_v26, %v10689_v24  ;;  %v8219_v33 = vpop.f32.mrb[20].mxu1  ;;  %11007 = vmatpush1.bf16.msra.mxu0 %v10749_v54 }
 0x3d2   : > { %v17577_v37 = vadd.f32 %v8219_v33, %v17448_v53  ;;  %v10691_v39 = vpop.permute.xlu0 %10690  ;;  %v8221_v12 = vpop.f32.mrb[21].mxu1  ;;  %11079 = vmatprep.mubr.bf16.mxu1 %v13673_v17  ;;  %v10755_v28 = vsel %vm473_vm1, %v10707_v40, 0 }
 0x3d3   : > { %v10708_v60 = vsel %vm10692_vm10, %v10689_v24, %v10691_v39  ;;  %v17582_v62 = vadd.f32 %v8221_v12, %v17456_v48  ;;  %v8223_v2 = vpop.f32.mrb[22].mxu1 }
 0x3d4   : > { %13297 = vmatmul.mubr.msk.bf16.vlgmr.msra.gmra.mrb[124].mxu0 %vm469_vm2, %v17481_v32  ;;  %13298 = vmatprep.subr.msk.bf16.mxu1 %vm473_vm1, %v10708_v60  ;;  %v11107_v55 = vpop.permute.xlu1 %11106  ;;  %v8224_v8 = vpop.f32.mrb[23].mxu1 }
 0x3d5   : > { %v8260_v53 = vpop.f32.mrb[24].mxu0  ;;  %11048 = vmatpush1.bf16.msra.mxu1 %v10755_v28  ;;  %11240 = vmatprep.mubr.bf16.mxu0 %v13673_v17 }
 0x3d6   : > { %v17589_v23 = vadd.f32 %v8260_v53, %v17464_v21  ;;  %v8262_v13 = vpop.f32.mrb[25].mxu0  ;;  %v11109_v48 = vpop.permute.xlu0 %11108 }
 0x3d7   : > { %v17593_v11 = vadd.f32 %v8262_v13, %v17469_v15  ;;  %v8264_v27 = vpop.f32.mrb[26].mxu0  ;;  %v11141_v52 = vsel %vm11140_vm11, %v11107_v55, %v11109_v48 }
 0x3d8   : > { %v8265_v1 = vpop.f32.mrb[27].mxu0  ;;  %v11111_v44 = vpop.permute.xlu1 %11110  ;;  %v11161_v56 = vsel %vm473_vm1, %v11141_v52, 0 }
 0x3d9   : > { %13299 = vmatmul.mubr.msk.bf16.vlgmr.msra.gmra.mrb[124].mxu1 %vm469_vm2, %v17481_v32  ;;  %v11142_v5 = vsel %vm11140_vm11, %v11109_v48, %v11111_v44  ;;  %v8301_v21 = vpop.f32.mrb[24].mxu1  ;;  %v17612_v32 = vld [vmem:[%s18150_s1 + $0x60] sm:$0xf] }
 0x3da   : > { %v17601_v25 = vadd.f32 %v8301_v21, %v17486_v49  ;;  %v11113_v42 = vpop.permute.xlu0 %11112  ;;  %v8303_v30 = vpop.f32.mrb[25].mxu1  ;;  %13301 = vmatprep.subr.msk.bf16.mxu0 %vm473_vm1, %v11142_v5  ;;  %11281 = vmatprep.mubr.bf16.mxu1 %v13673_v17 }
 0x3db   : > { %v11143_v15 = vsel %vm11140_vm11, %v11111_v44, %v11113_v42  ;;  %v17607_v41 = vadd.f32 %v8303_v30, %v17492_v36  ;;  %11209 = vmatpush1.bf16.msra.mxu0 %v11161_v56  ;;  %v8305_v63 = vpop.f32.mrb[26].mxu1 }
 0x3dc   : > { %v11115_v49 = vpop.permute.xlu1 %11114  ;;  %v8306_v16 = vpop.f32.mrb[27].mxu1  ;;  %v11167_v20 = vsel %vm473_vm1, %v11143_v15, 0 }
 0x3dd   : > { %v8342_v0 = vpop.f32.mrb[28].mxu0  ;;  %v11144_v51 = vsel %vm11140_vm11, %v11113_v42, %v11115_v49 }
 0x3de   : > { %v17616_v46 = vadd.f32 %v8342_v0, %v17502_v57  ;;  %v8344_v4 = vpop.f32.mrb[29].mxu0  ;;  %v11117_v36 = vpop.permute.xlu0 %11116  ;;  %13302 = vmatmul.mubr.msk.bf16.vlgmr.msra.gmra.mrb[128].mxu0 %vm469_vm2, %v17612_v32  ;;  %13303 = vmatprep.subr.msk.bf16.mxu1 %vm473_vm1, %v11144_v51 }
 0x3df   : > { %v17623_v29 = vadd.f32 %v8344_v4, %v17508_v50  ;;  %v8346_v43 = vpop.f32.mrb[30].mxu0  ;;  %v11145_v59 = vsel %vm11140_vm11, %v11115_v49, %v11117_v36  ;;  %11250 = vmatpush1.bf16.msra.mxu1 %v11167_v20  ;;  %11322 = vmatprep.mubr.bf16.mxu0 %v13673_v17 }
 0x3e0   : > { %v8347_v57 = vpop.f32.mrb[31].mxu0  ;;  %v11119_v7 = vpop.permute.xlu1 %11118  ;;  %v11173_v31 = vsel %vm473_vm1, %v11145_v59, 0 }
 0x3e1   : > { %v11146_v61 = vsel %vm11140_vm11, %v11117_v36, %v11119_v7  ;;  %v8383_v18 = vpop.f32.mrb[28].mxu1 }
 0x3e2   : > { %v17630_v47 = vadd.f32 %v8383_v18, %v17519_v58  ;;  %v11121_v26 = vpop.permute.xlu0 %11120  ;;  %v8385_v6 = vpop.f32.mrb[29].mxu1  ;;  %13304 = vmatmul.mubr.msk.bf16.vlgmr.msra.gmra.mrb[128].mxu1 %vm469_vm2, %v17612_v32  ;;  %13305 = vmatprep.subr.msk.bf16.mxu0 %vm473_vm1, %v11146_v61 }
 0x3e3   : > { %v11147_v50 = vsel %vm11140_vm11, %v11119_v7, %v11121_v26  ;;  %v17637_v19 = vadd.f32 %v8385_v6, %v17526_v45  ;;  %11291 = vmatpush1.bf16.msra.mxu0 %v11173_v31  ;;  %v8387_v34 = vpop.f32.mrb[30].mxu1  ;;  %11363 = vmatprep.mubr.bf16.mxu1 %v13673_v17 }
 0x3e4   : > { %v11123_v54 = vpop.permute.xlu1 %11122  ;;  %v8388_v24 = vpop.f32.mrb[31].mxu1  ;;  %v11179_v40 = vsel %vm473_vm1, %v11147_v50, 0  ;;  %v12448_v34 = vld [vmem:[%s18151_s2] sm:$0xff] }
 0x3e5   : > { %v11148_v58 = vsel %vm11140_vm11, %v11121_v26, %v11123_v54  ;;  %v8554_v39 = vpop.f32.mrb[32].mxu0  ;;  %12451 = vperm.xlu0 %13508, %v12448_v34  }
 0x3e6   : > { %v11125_v33 = vpop.permute.xlu0 %11124  ;;  %13306 = vmatmul.mubr.msk.bf16.vlgmr.msra.gmra.mrb[132].mxu0 %vm469_vm2, %v17612_v32  ;;  %13307 = vmatprep.subr.msk.bf16.mxu1 %vm473_vm1, %v11148_v58  ;;  %v17647_v12 = vadd.f32 %v8554_v39, %v17536_v14  ;;  %v8556_v60 = vpop.f32.mrb[33].mxu0 }
 0x3e7   : > { %v11149_v45 = vsel %vm11140_vm11, %v11123_v54, %v11125_v33  ;;  %11332 = vmatpush1.bf16.msra.mxu1 %v11179_v40  ;;  %11404 = vmatprep.mubr.bf16.mxu0 %v13673_v17  ;;  %v17651_v2 = vadd.f32 %v8556_v60, %v17542_v10  ;;  %v8558_v55 = vpop.f32.mrb[34].mxu0 }
 0x3e8   : > { %v11127_v28 = vpop.permute.xlu1 %11126  ;;  %v8559_v13 = vpop.f32.mrb[35].mxu0  ;;  %v11185_v48 = vsel %vm473_vm1, %v11149_v45, 0 }
 0x3e9   : > { %v11150_v53 = vsel %vm11140_vm11, %v11125_v33, %v11127_v28  ;;  %v8595_v8 = vpop.f32.mrb[32].mxu1 }
 0x3ea   : > { %v17656_v27 = vadd.f32 %v8595_v8, %v17551_v9  ;;  %v11129_v14 = vpop.permute.xlu0 %11128  ;;  %v8597_v52 = vpop.f32.mrb[33].mxu1  ;;  %13308 = vmatmul.mubr.msk.bf16.vlgmr.msra.gmra.mrb[132].mxu1 %vm469_vm2, %v17612_v32  ;;  %13309 = vmatprep.subr.msk.bf16.mxu0 %vm473_vm1, %v11150_v53 }
 0x3eb   : > { %v11151_v10 = vsel %vm11140_vm11, %v11127_v28, %v11129_v14  ;;  %v17663_v1 = vadd.f32 %v8597_v52, %v17556_v35  ;;  %11373 = vmatpush1.bf16.msra.mxu0 %v11185_v48  ;;  %v8599_v44 = vpop.f32.mrb[34].mxu1  ;;  %11445 = vmatprep.mubr.bf16.mxu1 %v13673_v17 }
 0x3ec   : > { %v11131_v5 = vpop.permute.xlu1 %11130  ;;  %v8600_v21 = vpop.f32.mrb[35].mxu1  ;;  %v11191_v56 = vsel %vm473_vm1, %v11151_v10, 0 }
 0x3ed   : > { %v11152_v9 = vsel %vm11140_vm11, %v11129_v14, %v11131_v5  ;;  %v8636_v30 = vpop.f32.mrb[36].mxu0 }
 0x3ee   : > { %v11133_v42 = vpop.permute.xlu0 %11132  ;;  %13310 = vmatmul.mubr.msk.bf16.vlgmr.msra.gmra.mrb[136].mxu0 %vm469_vm2, %v17612_v32  ;;  %13311 = vmatprep.subr.msk.bf16.mxu1 %vm473_vm1, %v11152_v9  ;;  %v17673_v15 = vadd.f32 %v8636_v30, %v17564_v22  ;;  %v8638_v63 = vpop.f32.mrb[37].mxu0 }
 0x3ef   : > { %v11153_v35 = vsel %vm11140_vm11, %v11131_v5, %v11133_v42  ;;  %11414 = vmatpush1.bf16.msra.mxu1 %v11191_v56  ;;  %11486 = vmatprep.mubr.bf16.mxu0 %v13673_v17  ;;  %v17677_v49 = vadd.f32 %v8638_v63, %v17568_v38  ;;  %v8640_v51 = vpop.f32.mrb[38].mxu0 }
 0x3f0   : > { %v11135_v0 = vpop.permute.xlu1 %11134  ;;  %v8641_v20 = vpop.f32.mrb[39].mxu0  ;;  %v11197_v36 = vsel %vm473_vm1, %v11153_v35, 0 }
 0x3f1   : > { %v11154_v16 = vsel %vm11140_vm11, %v11133_v42, %v11135_v0  ;;  %v8677_v4 = vpop.f32.mrb[36].mxu1 }
 0x3f2   : > { %v17682_v43 = vadd.f32 %v8677_v4, %v17577_v37  ;;  %v11137_v22 = vpop.permute.xlu0 %11136  ;;  %v8679_v59 = vpop.f32.mrb[37].mxu1  ;;  %13312 = vmatmul.mubr.msk.bf16.vlgmr.msra.gmra.mrb[136].mxu1 %vm469_vm2, %v17612_v32  ;;  %13313 = vmatprep.subr.msk.bf16.mxu0 %vm473_vm1, %v11154_v16 }
 0x3f3   : > { %v11155_v38 = vsel %vm11140_vm11, %v11135_v0, %v11137_v22  ;;  %v17689_v57 = vadd.f32 %v8679_v59, %v17582_v62  ;;  %11455 = vmatpush1.bf16.msra.mxu0 %v11197_v36  ;;  %v8681_v7 = vpop.f32.mrb[38].mxu1  ;;  %11527 = vmatprep.mubr.bf16.mxu1 %v13673_v17 }
 0x3f4   : > { %v11139_v61 = vpop.permute.xlu1 %11138  ;;  %v8682_v18 = vpop.f32.mrb[39].mxu1  ;;  %v11203_v31 = vsel %vm473_vm1, %v11155_v38, 0 }
 0x3f5   : > { %v11156_v37 = vsel %vm11140_vm11, %v11137_v22, %v11139_v61  ;;  %v8718_v6 = vpop.f32.mrb[40].mxu0 }
 0x3f6   : > { %v11555_v26 = vpop.permute.xlu0 %11554  ;;  %13314 = vmatmul.mubr.msk.bf16.vlgmr.msra.gmra.mrb[140].mxu0 %vm469_vm2, %v17612_v32  ;;  %13315 = vmatprep.subr.msk.bf16.mxu1 %vm473_vm1, %v11156_v37  ;;  %v17698_v62 = vadd.f32 %v8718_v6, %v17589_v23  ;;  %v8720_v50 = vpop.f32.mrb[41].mxu0 }
 0x3f7   : > { %11496 = vmatpush1.bf16.msra.mxu1 %v11203_v31  ;;  %11688 = vmatprep.mubr.bf16.mxu0 %v13673_v17  ;;  %v17705_v54 = vadd.f32 %v8720_v50, %v17593_v11  ;;  %v8722_v58 = vpop.f32.mrb[42].mxu0 }
 0x3f8   : > { %v11557_v24 = vpop.permute.xlu1 %11556  ;;  %v8723_v39 = vpop.f32.mrb[43].mxu0 }
 0x3f9   : > { %v11589_v40 = vsel %vm11588_vm12, %v11555_v26, %v11557_v24  ;;  %v8759_v33 = vpop.f32.mrb[40].mxu1 }
 0x3fa   : > { %v17709_v23 = vadd.f32 %v8759_v33, %v17601_v25  ;;  %v11559_v45 = vpop.permute.xlu0 %11558  ;;  %v8761_v60 = vpop.f32.mrb[41].mxu1  ;;  %13316 = vmatmul.mubr.msk.bf16.vlgmr.msra.gmra.mrb[140].mxu1 %vm469_vm2, %v17612_v32  ;;  %v11609_v53 = vsel %vm473_vm1, %v11589_v40, 0  ;;  %v17724_v32 = vld [vmem:[%s18150_s1 + $0x64] sm:$0xf] }
 0x3fb   : > { %v11590_v28 = vsel %vm11588_vm12, %v11557_v24, %v11559_v45  ;;  %v17715_v11 = vadd.f32 %v8761_v60, %v17607_v41  ;;  %v8763_v55 = vpop.f32.mrb[42].mxu1  ;;  %11729 = vmatprep.mubr.bf16.mxu1 %v13673_v17 }
 0x3fc   : > { %13318 = vmatprep.subr.msk.bf16.mxu0 %vm473_vm1, %v11590_v28  ;;  %v11561_v8 = vpop.permute.xlu1 %11560  ;;  %v8764_v25 = vpop.f32.mrb[43].mxu1 }
 0x3fd   : > { %v11591_v13 = vsel %vm11588_vm12, %v11559_v45, %v11561_v8  ;;  %11657 = vmatpush1.bf16.msra.mxu0 %v11609_v53  ;;  %v8800_v41 = vpop.f32.mrb[44].mxu0 }
 0x3fe   : > { %v11563_v48 = vpop.permute.xlu0 %11562  ;;  %v17728_v52 = vadd.f32 %v8800_v41, %v17616_v46  ;;  %v8802_v10 = vpop.f32.mrb[45].mxu0  ;;  %v11615_v44 = vsel %vm473_vm1, %v11591_v13, 0 }
 0x3ff   : > { %v11592_v14 = vsel %vm11588_vm12, %v11561_v8, %v11563_v48  ;;  %v17732_v5 = vadd.f32 %v8802_v10, %v17623_v29  ;;  %v8804_v9 = vpop.f32.mrb[46].mxu0 }
 0x400   : > { %13319 = vmatmul.mubr.msk.bf16.vlgmr.msra.gmra.mrb[144].mxu0 %vm469_vm2, %v17724_v32  ;;  %13320 = vmatprep.subr.msk.bf16.mxu1 %vm473_vm1, %v11592_v14  ;;  %v11565_v21 = vpop.permute.xlu1 %11564  ;;  %v8805_v30 = vpop.f32.mrb[47].mxu0 }
 0x401   : > { %v11593_v56 = vsel %vm11588_vm12, %v11563_v48, %v11565_v21  ;;  %v8841_v42 = vpop.f32.mrb[44].mxu1  ;;  %11698 = vmatpush1.bf16.msra.mxu1 %v11615_v44  ;;  %11770 = vmatprep.mubr.bf16.mxu0 %v13673_v17 }
 0x402   : > { %v17740_v46 = vadd.f32 %v8841_v42, %v17630_v47  ;;  %v11567_v35 = vpop.permute.xlu0 %11566  ;;  %v8843_v29 = vpop.f32.mrb[45].mxu1  ;;  %v11621_v16 = vsel %vm473_vm1, %v11593_v56, 0 }
 0x403   : > { %v11594_v63 = vsel %vm11588_vm12, %v11565_v21, %v11567_v35  ;;  %v17744_v0 = vadd.f32 %v8843_v29, %v17637_v19  ;;  %v8845_v51 = vpop.f32.mrb[46].mxu1 }
 0x404   : > { %13321 = vmatmul.mubr.msk.bf16.vlgmr.msra.gmra.mrb[144].mxu1 %vm469_vm2, %v17724_v32  ;;  %13322 = vmatprep.subr.msk.bf16.mxu0 %vm473_vm1, %v11594_v63  ;;  %v11569_v4 = vpop.permute.xlu1 %11568  ;;  %v8846_v20 = vpop.f32.mrb[47].mxu1 }
 0x405   : > { %v11595_v47 = vsel %vm11588_vm12, %v11567_v35, %v11569_v4  ;;  %11739 = vmatpush1.bf16.msra.mxu0 %v11621_v16  ;;  %11811 = vmatprep.mubr.bf16.mxu1 %v13673_v17 }
 0x406   : > { %v11571_v36 = vpop.permute.xlu0 %11570  ;;  %v11627_v59 = vsel %vm473_vm1, %v11595_v47, 0 }
 0x407   : > { %v11596_v22 = vsel %vm11588_vm12, %v11569_v4, %v11571_v36  ;;  %v9002_v19 = vpop.f32.mrb[48].mxu0 }
 0x408   : > { %v17755_v38 = vadd.f32 %v9002_v19, %v17647_v12  ;;  %v9004_v7 = vpop.f32.mrb[49].mxu0  ;;  %13323 = vmatmul.mubr.msk.bf16.vlgmr.msra.gmra.mrb[148].mxu0 %vm469_vm2, %v17724_v32  ;;  %13324 = vmatprep.subr.msk.bf16.mxu1 %vm473_vm1, %v11596_v22  ;;  %v11573_v61 = vpop.permute.xlu1 %11572 }
 0x409   : > { %v17761_v18 = vadd.f32 %v9004_v7, %v17651_v2  ;;  %v11597_v37 = vsel %vm11588_vm12, %v11571_v36, %v11573_v61  ;;  %11780 = vmatpush1.bf16.msra.mxu1 %v11627_v59  ;;  %v9006_v31 = vpop.f32.mrb[50].mxu0  ;;  %11852 = vmatprep.mubr.bf16.mxu0 %v13673_v17 }
 0x40a   : > { %v11575_v26 = vpop.permute.xlu0 %11574  ;;  %v9007_v6 = vpop.f32.mrb[51].mxu0  ;;  %v11633_v50 = vsel %vm473_vm1, %v11597_v37, 0 }
 0x40b   : > { %v11598_v12 = vsel %vm11588_vm12, %v11573_v61, %v11575_v26 }
 0x40c   : > { %v9043_v34 = vpop.f32.mrb[48].mxu1  ;;  %13325 = vmatmul.mubr.msk.bf16.vlgmr.msra.gmra.mrb[148].mxu1 %vm469_vm2, %v17724_v32  ;;  %13326 = vmatprep.subr.msk.bf16.mxu0 %vm473_vm1, %v11598_v12  ;;  %v11577_v2 = vpop.permute.xlu1 %11576 }
 0x40d   : > { %v17771_v24 = vadd.f32 %v9043_v34, %v17656_v27  ;;  %v9045_v58 = vpop.f32.mrb[49].mxu1  ;;  %v11599_v40 = vsel %vm11588_vm12, %v11575_v26, %v11577_v2  ;;  %11821 = vmatpush1.bf16.msra.mxu0 %v11633_v50  ;;  %11893 = vmatprep.mubr.bf16.mxu1 %v13673_v17  ;;  %v17833_v50 = vld [vmem:[%s18150_s1 + $0x68] sm:$0xf] }
 0x40e   : > { %v17776_v33 = vadd.f32 %v9045_v58, %v17663_v1  ;;  %v11579_v39 = vpop.permute.xlu0 %11578  ;;  %v9047_v45 = vpop.f32.mrb[50].mxu1  ;;  %v11639_v53 = vsel %vm473_vm1, %v11599_v40, 0 }
 0x40f   : > { %v11600_v60 = vsel %vm11588_vm12, %v11577_v2, %v11579_v39  ;;  %v9084_v28 = vpop.f32.mrb[52].mxu0  ;;  %v9048_v55 = vpop.f32.mrb[51].mxu1 }
 0x410   : > { %v17781_v27 = vadd.f32 %v9084_v28, %v17673_v15  ;;  %v9086_v8 = vpop.f32.mrb[53].mxu0  ;;  %13327 = vmatmul.mubr.msk.bf16.vlgmr.msra.gmra.mrb[152].mxu0 %vm469_vm2, %v17724_v32  ;;  %13328 = vmatprep.subr.msk.bf16.mxu1 %vm473_vm1, %v11600_v60  ;;  %v11581_v25 = vpop.permute.xlu1 %11580 }
 0x411   : > { %v17787_v1 = vadd.f32 %v9086_v8, %v17677_v49  ;;  %v11601_v13 = vsel %vm11588_vm12, %v11579_v39, %v11581_v25  ;;  %11862 = vmatpush1.bf16.msra.mxu1 %v11639_v53  ;;  %v9088_v48 = vpop.f32.mrb[54].mxu0  ;;  %11934 = vmatprep.mubr.bf16.mxu0 %v13673_v17 }
 0x412   : > { %v11583_v41 = vpop.permute.xlu0 %11582  ;;  %v9089_v14 = vpop.f32.mrb[55].mxu0  ;;  %v11645_v10 = vsel %vm473_vm1, %v11601_v13, 0 }
 0x413   : > { %v11602_v15 = vsel %vm11588_vm12, %v11581_v25, %v11583_v41 }
 0x414   : > { %v9125_v44 = vpop.f32.mrb[52].mxu1  ;;  %13329 = vmatmul.mubr.msk.bf16.vlgmr.msra.gmra.mrb[152].mxu1 %vm469_vm2, %v17724_v32  ;;  %13330 = vmatprep.subr.msk.bf16.mxu0 %vm473_vm1, %v11602_v15  ;;  %v11585_v49 = vpop.permute.xlu1 %11584 }
 0x415   : > { %v17797_v21 = vadd.f32 %v9125_v44, %v17682_v43  ;;  %v9127_v9 = vpop.f32.mrb[53].mxu1  ;;  %v11603_v56 = vsel %vm11588_vm12, %v11583_v41, %v11585_v49  ;;  %11903 = vmatpush1.bf16.msra.mxu0 %v11645_v10  ;;  %11975 = vmatprep.mubr.bf16.mxu1 %v13673_v17 }
 0x416   : > { %v17802_v42 = vadd.f32 %v9127_v9, %v17689_v57  ;;  %v11587_v30 = vpop.permute.xlu0 %11586  ;;  %v9129_v35 = vpop.f32.mrb[54].mxu1  ;;  %v11651_v16 = vsel %vm473_vm1, %v11603_v56, 0 }
 0x417   : > { %v11604_v29 = vsel %vm11588_vm12, %v11585_v49, %v11587_v30  ;;  %v9166_v63 = vpop.f32.mrb[56].mxu0  ;;  %v9130_v51 = vpop.f32.mrb[55].mxu1 }
 0x418   : > { %v17807_v43 = vadd.f32 %v9166_v63, %v17698_v62  ;;  %v9168_v4 = vpop.f32.mrb[57].mxu0  ;;  %13331 = vmatmul.mubr.msk.bf16.vlgmr.msra.gmra.mrb[156].mxu0 %vm469_vm2, %v17724_v32  ;;  %13332 = vmatprep.subr.msk.bf16.mxu1 %vm473_vm1, %v11604_v29  ;;  %v12003_v20 = vpop.permute.xlu1 %12002 }
 0x419   : > { %v17813_v57 = vadd.f32 %v9168_v4, %v17705_v54  ;;  %11944 = vmatpush1.bf16.msra.mxu1 %v11651_v16  ;;  %v9170_v47 = vpop.f32.mrb[58].mxu0  ;;  %12136 = vmatprep.mubr.bf16.mxu0 %v13673_v17 }
 0x41a   : > { %v12005_v36 = vpop.permute.xlu0 %12004  ;;  %v9171_v22 = vpop.f32.mrb[59].mxu0 }
 0x41b   : > { %v12037_v62 = vsel %vm12036_vm13, %v12003_v20, %v12005_v36 }
 0x41c   : > { %v9207_v19 = vpop.f32.mrb[56].mxu1  ;;  %13333 = vmatmul.mubr.msk.bf16.vlgmr.msra.gmra.mrb[156].mxu1 %vm469_vm2, %v17724_v32  ;;  %v12007_v59 = vpop.permute.xlu1 %12006  ;;  %v12057_v37 = vsel %vm473_vm1, %v12037_v62, 0 }
 0x41d   : > { %v17820_v7 = vadd.f32 %v9207_v19, %v17709_v23  ;;  %v9209_v61 = vpop.f32.mrb[57].mxu1  ;;  %v12038_v54 = vsel %vm12036_vm13, %v12005_v36, %v12007_v59  ;;  %12177 = vmatprep.mubr.bf16.mxu1 %v13673_v17 }
 0x41e   : > { %v17826_v31 = vadd.f32 %v9209_v61, %v17715_v11  ;;  %v12009_v26 = vpop.permute.xlu0 %12008  ;;  %13335 = vmatprep.subr.msk.bf16.mxu0 %vm473_vm1, %v12038_v54  ;;  %v9211_v6 = vpop.f32.mrb[58].mxu1 }
 0x41f   : > { %v12039_v32 = vsel %vm12036_vm13, %v12007_v59, %v12009_v26  ;;  %v9248_v12 = vpop.f32.mrb[60].mxu0  ;;  %12105 = vmatpush1.bf16.msra.mxu0 %v12057_v37  ;;  %v9212_v23 = vpop.f32.mrb[59].mxu1 }
 0x420   : > { %v17836_v34 = vadd.f32 %v9248_v12, %v17728_v52  ;;  %v9250_v2 = vpop.f32.mrb[61].mxu0  ;;  %v12011_v11 = vpop.permute.xlu1 %12010  ;;  %v12063_v45 = vsel %vm473_vm1, %v12039_v32, 0 }
 0x421   : > { %v17839_v58 = vadd.f32 %v9250_v2, %v17732_v5  ;;  %v12040_v40 = vsel %vm12036_vm13, %v12009_v26, %v12011_v11  ;;  %v9252_v39 = vpop.f32.mrb[62].mxu0 }
 0x422   : > { %v12013_v60 = vpop.permute.xlu0 %12012  ;;  %13336 = vmatmul.mubr.msk.bf16.vlgmr.msra.gmra.mrb[160].mxu0 %vm469_vm2, %v17833_v50  ;;  %13337 = vmatprep.subr.msk.bf16.mxu1 %vm473_vm1, %v12040_v40  ;;  %v9253_v28 = vpop.f32.mrb[63].mxu0 }
 0x423   : > { %v12041_v52 = vsel %vm12036_vm13, %v12011_v11, %v12013_v60  ;;  %12146 = vmatpush1.bf16.msra.mxu1 %v12063_v45  ;;  %12218 = vmatprep.mubr.bf16.mxu0 %v13673_v17 }
 0x424   : > { %v9289_v55 = vpop.f32.mrb[60].mxu1  ;;  %v12015_v5 = vpop.permute.xlu1 %12014  ;;  %v12069_v13 = vsel %vm473_vm1, %v12041_v52, 0 }
 0x425   : > { %v17849_v53 = vadd.f32 %v9289_v55, %v17740_v46  ;;  %v9291_v8 = vpop.f32.mrb[61].mxu1  ;;  %v12042_v25 = vsel %vm12036_vm13, %v12013_v60, %v12015_v5 }
 0x426   : > { %v17854_v48 = vadd.f32 %v9291_v8, %v17744_v0  ;;  %v12017_v41 = vpop.permute.xlu0 %12016  ;;  %13338 = vmatmul.mubr.msk.bf16.vlgmr.msra.gmra.mrb[160].mxu1 %vm469_vm2, %v17833_v50  ;;  %13339 = vmatprep.subr.msk.bf16.mxu0 %vm473_vm1, %v12042_v25  ;;  %v9293_v14 = vpop.f32.mrb[62].mxu1 }
 0x427   : > { %v12043_v15 = vsel %vm12036_vm13, %v12015_v5, %v12017_v41  ;;  %12187 = vmatpush1.bf16.msra.mxu0 %v12069_v13  ;;  %v9294_v46 = vpop.f32.mrb[63].mxu1  ;;  %12259 = vmatprep.mubr.bf16.mxu1 %v13673_v17 }
 0x428   : > { %v12019_v10 = vpop.permute.xlu1 %12018  ;;  %v9450_v49 = vpop.f32.mrb[64].mxu0  ;;  %v12075_v0 = vsel %vm473_vm1, %v12043_v15, 0 }
 0x429   : > { %v12044_v44 = vsel %vm12036_vm13, %v12017_v41, %v12019_v10  ;;  %v17864_v9 = vadd.f32 %v9450_v49, %v17755_v38  ;;  %v9452_v30 = vpop.f32.mrb[65].mxu0 }
 0x42a   : > { %v12021_v56 = vpop.permute.xlu0 %12020  ;;  %13340 = vmatmul.mubr.msk.bf16.vlgmr.msra.gmra.mrb[164].mxu0 %vm469_vm2, %v17833_v50  ;;  %13341 = vmatprep.subr.msk.bf16.mxu1 %vm473_vm1, %v12044_v44  ;;  %v17871_v29 = vadd.f32 %v9452_v30, %v17761_v18  ;;  %v9454_v63 = vpop.f32.mrb[66].mxu0 }
 0x42b   : > { %v12045_v35 = vsel %vm12036_vm13, %v12019_v10, %v12021_v56  ;;  %12228 = vmatpush1.bf16.msra.mxu1 %v12075_v0  ;;  %12300 = vmatprep.mubr.bf16.mxu0 %v13673_v17  ;;  %v9455_v16 = vpop.f32.mrb[67].mxu0 }
 0x42c   : > { %v12023_v51 = vpop.permute.xlu1 %12022  ;;  %v12081_v4 = vsel %vm473_vm1, %v12045_v35, 0 }
 0x42d   : > { %v12046_v38 = vsel %vm12036_vm13, %v12021_v56, %v12023_v51  ;;  %v9491_v20 = vpop.f32.mrb[64].mxu1 }
 0x42e   : > { %v12025_v47 = vpop.permute.xlu0 %12024  ;;  %13342 = vmatmul.mubr.msk.bf16.vlgmr.msra.gmra.mrb[164].mxu1 %vm469_vm2, %v17833_v50  ;;  %13343 = vmatprep.subr.msk.bf16.mxu0 %vm473_vm1, %v12046_v38  ;;  %v17880_v18 = vadd.f32 %v9491_v20, %v17771_v24  ;;  %v9493_v22 = vpop.f32.mrb[65].mxu1 }
 0x42f   : > { %v12047_v36 = vsel %vm12036_vm13, %v12023_v51, %v12025_v47  ;;  %12269 = vmatpush1.bf16.msra.mxu0 %v12081_v4  ;;  %12341 = vmatprep.mubr.bf16.mxu1 %v13673_v17  ;;  %v17885_v62 = vadd.f32 %v9493_v22, %v17776_v33  ;;  %v9495_v59 = vpop.f32.mrb[66].mxu1 }
 0x430   : > { %v12027_v19 = vpop.permute.xlu1 %12026  ;;  %v9496_v37 = vpop.f32.mrb[67].mxu1  ;;  %v12087_v26 = vsel %vm473_vm1, %v12047_v36, 0 }
 0x431   : > { %v12048_v61 = vsel %vm12036_vm13, %v12025_v47, %v12027_v19  ;;  %v9532_v54 = vpop.f32.mrb[68].mxu0 }
 0x432   : > { %v17890_v24 = vadd.f32 %v9532_v54, %v17781_v27  ;;  %v12029_v6 = vpop.permute.xlu0 %12028  ;;  %v9534_v32 = vpop.f32.mrb[69].mxu0  ;;  %13344 = vmatmul.mubr.msk.bf16.vlgmr.msra.gmra.mrb[168].mxu0 %vm469_vm2, %v17833_v50  ;;  %13345 = vmatprep.subr.msk.bf16.mxu1 %vm473_vm1, %v12048_v61 }
 0x433   : > { %v12049_v33 = vsel %vm12036_vm13, %v12027_v19, %v12029_v6  ;;  %v17897_v12 = vadd.f32 %v9534_v32, %v17787_v1  ;;  %12310 = vmatpush1.bf16.msra.mxu1 %v12087_v26  ;;  %v9536_v23 = vpop.f32.mrb[70].mxu0  ;;  %12382 = vmatprep.mubr.bf16.mxu0 %v13673_v17 }
 0x434   : > { %v12031_v2 = vpop.permute.xlu1 %12030  ;;  %v9537_v11 = vpop.f32.mrb[71].mxu0  ;;  %v12093_v40 = vsel %vm473_vm1, %v12049_v33, 0 }
 0x435   : > { %v12050_v27 = vsel %vm12036_vm13, %v12029_v6, %v12031_v2  ;;  %v9573_v39 = vpop.f32.mrb[68].mxu1 }
 0x436   : > { %v12033_v45 = vpop.permute.xlu0 %12032  ;;  %13346 = vmatmul.mubr.msk.bf16.vlgmr.msra.gmra.mrb[168].mxu1 %vm469_vm2, %v17833_v50  ;;  %13347 = vmatprep.subr.msk.bf16.mxu0 %vm473_vm1, %v12050_v27  ;;  %v9750_v1 = vadd.f32 %v9573_v39, %v17797_v21  ;;  %v9575_v28 = vpop.f32.mrb[69].mxu1 }
 0x437   : > { %v12051_v60 = vsel %vm12036_vm13, %v12031_v2, %v12033_v45  ;;  %12351 = vmatpush1.bf16.msra.mxu0 %v12093_v40  ;;  %12423 = vmatprep.mubr.bf16.mxu1 %v13673_v17  ;;  %v9751_v52 = vadd.f32 %v9575_v28, %v17802_v42  ;;  %v9577_v5 = vpop.f32.mrb[70].mxu1 }
 0x438   : > { %v12035_v55 = vpop.permute.xlu1 %12034  ;;  %v9578_v13 = vpop.f32.mrb[71].mxu1  ;;  %v12099_v41 = vsel %vm473_vm1, %v12051_v60, 0 }
 0x439   : > { %v12052_v8 = vsel %vm12036_vm13, %v12033_v45, %v12035_v55  ;;  %v9614_v25 = vpop.f32.mrb[72].mxu0 }
 0x43a   : > { %v9752_v14 = vadd.f32 %v9614_v25, %v17807_v43  ;;  %v9616_v15 = vpop.f32.mrb[73].mxu0  ;;  %13348 = vmatmul.mubr.msk.bf16.vlgmr.msra.gmra.mrb[172].mxu0 %vm469_vm2, %v17833_v50  ;;  %13349 = vmatprep.subr.msk.bf16.mxu1 %vm473_vm1, %v12052_v8  ;;  %vm12546_vm1 = vcmask (!%p13359_p2), 7168  }
 0x43b   : > { %v9753_v17 = vadd.f32 %v9616_v15, %v17813_v57  ;;  %12392 = vmatpush1.bf16.msra.mxu1 %v12099_v41  ;;  %v9618_v21 = vpop.f32.mrb[74].mxu0 }
 0x43c   : > { %v9619_v42 = vpop.f32.mrb[75].mxu0 }
 0x43d   : > { %v9655_v46 = vpop.f32.mrb[72].mxu1 }
 0x43e   : > { %13350 = vmatmul.mubr.msk.bf16.vlgmr.msra.gmra.mrb[172].mxu1 %vm469_vm2, %v17833_v50  ;;  %v9754_v10 = vadd.f32 %v9655_v46, %v17820_v7  ;;  %v9657_v44 = vpop.f32.mrb[73].mxu1 }
 0x43f   : > { %v9755_v43 = vadd.f32 %v9657_v44, %v17826_v31  ;;  %v9659_v49 = vpop.f32.mrb[74].mxu1 }
 0x440   : > { %v9660_v56 = vpop.f32.mrb[75].mxu1 }
 0x441   : > { %v9696_v0 = vpop.f32.mrb[76].mxu0 }
 0x442   : > { %v9756_v30 = vadd.f32 %v9696_v0, %v17836_v34  ;;  %v9698_v35 = vpop.f32.mrb[77].mxu0 }
 0x443   : > { %v9757_v57 = vadd.f32 %v9698_v35, %v17839_v58  ;;  %v9700_v63 = vpop.f32.mrb[78].mxu0 }
 0x444   : > { %v9701_v51 = vpop.f32.mrb[79].mxu0 }
 0x445   : > { %v9737_v16 = vpop.f32.mrb[76].mxu1 }
 0x446   : > { %v9758_v38 = vadd.f32 %v9737_v16, %v17849_v53  ;;  %v9739_v4 = vpop.f32.mrb[77].mxu1 }
 0x447   : > { %v9759_v50 = vadd.f32 %v9739_v4, %v17854_v48  ;;  %v9741_v7 = vpop.f32.mrb[78].mxu1 }
 0x448   : > { %v9742_v20 = vpop.f32.mrb[79].mxu1 }
 0x44b   : > { %v9898_v47 = vpop.f32.mrb[80].mxu0 }
 0x44c   : > { %v10192_v31 = vadd.f32 %v9898_v47, %v17864_v9  ;;  %v9900_v36 = vpop.f32.mrb[81].mxu0 }
 0x44d   : > { %v10193_v22 = vadd.f32 %v9900_v36, %v17871_v29  ;;  %v9902_v34 = vpop.f32.mrb[82].mxu0 }
 0x44e   : > { %v9903_v19 = vpop.f32.mrb[83].mxu0 }
 0x450   : > { %v9939_v59 = vpop.f32.mrb[80].mxu1 }
 0x451   : > { %v10194_v58 = vadd.f32 %v9939_v59, %v17880_v18  ;;  %v9941_v61 = vpop.f32.mrb[81].mxu1 }
 0x452   : > { %v10195_v54 = vadd.f32 %v9941_v61, %v17885_v62  ;;  %v9943_v53 = vpop.f32.mrb[82].mxu1 }
 0x453   : > { %v9980_v37 = vpop.f32.mrb[84].mxu0  ;;  %v9944_v26 = vpop.f32.mrb[83].mxu1 }
 0x454   : > { %v10196_v48 = vadd.f32 %v9980_v37, %v17890_v24  ;;  %v9982_v6 = vpop.f32.mrb[85].mxu0 }
 0x455   : > { %v10197_v32 = vadd.f32 %v9982_v6, %v17897_v12  ;;  %v9984_v9 = vpop.f32.mrb[86].mxu0 }
 0x456   : > { %v9985_v33 = vpop.f32.mrb[87].mxu0 }
 0x458   : > { %v10021_v23 = vpop.f32.mrb[84].mxu1 }
 0x459   : > { %v10198_v29 = vadd.f32 %v10021_v23, %v9750_v1  ;;  %v10023_v2 = vpop.f32.mrb[85].mxu1 }
 0x45a   : > { %v10199_v11 = vadd.f32 %v10023_v2, %v9751_v52  ;;  %v10025_v27 = vpop.f32.mrb[86].mxu1 }
 0x45b   : > { %v10062_v40 = vpop.f32.mrb[88].mxu0  ;;  %v10026_v18 = vpop.f32.mrb[87].mxu1 }
 0x45c   : > { %v10200_v39 = vadd.f32 %v10062_v40, %v9752_v14  ;;  %v10064_v45 = vpop.f32.mrb[89].mxu0 }
 0x45d   : > { %v10201_v62 = vadd.f32 %v10064_v45, %v9753_v17  ;;  %v10066_v60 = vpop.f32.mrb[90].mxu0 }
 0x45e   : > { %v10067_v28 = vpop.f32.mrb[91].mxu0 }
 0x460   : > { %v10103_v55 = vpop.f32.mrb[88].mxu1 }
 0x461   : > { %v10202_v5 = vadd.f32 %v10103_v55, %v9754_v10  ;;  %v10105_v24 = vpop.f32.mrb[89].mxu1 }
 0x462   : > { %v10203_v8 = vadd.f32 %v10105_v24, %v9755_v43  ;;  %v10107_v25 = vpop.f32.mrb[90].mxu1 }
 0x463   : > { %v10144_v12 = vpop.f32.mrb[92].mxu0  ;;  %v10108_v13 = vpop.f32.mrb[91].mxu1 }
 0x464   : > { %v10204_v41 = vadd.f32 %v10144_v12, %v9756_v30  ;;  %v10146_v15 = vpop.f32.mrb[93].mxu0 }
 0x465   : > { %v10205_v1 = vadd.f32 %v10146_v15, %v9757_v57  ;;  %v10148_v21 = vpop.f32.mrb[94].mxu0 }
 0x466   : > { %v10149_v52 = vpop.f32.mrb[95].mxu0 }
 0x468   : > { %v10185_v42 = vpop.f32.mrb[92].mxu1 }
 0x469   : > { %v10206_v46 = vadd.f32 %v10185_v42, %v9758_v38  ;;  %v10187_v44 = vpop.f32.mrb[93].mxu1 }
 0x46a   : > { %v10207_v14 = vadd.f32 %v10187_v44, %v9759_v50  ;;  %v10189_v49 = vpop.f32.mrb[94].mxu1 }
 0x46b   : > { %v10190_v17 = vpop.f32.mrb[95].mxu1 }
 0x46c   : > { %v10346_v0 = vpop.f32.mrb[96].mxu0 }
 0x46d   : > { %v10640_v56 = vadd.f32 %v10346_v0, %v10192_v31  ;;  %v10348_v35 = vpop.f32.mrb[97].mxu0 }
 0x46e   : > { %v10641_v10 = vadd.f32 %v10348_v35, %v10193_v22  ;;  %v10350_v63 = vpop.f32.mrb[98].mxu0 }
 0x46f   : > { %v10351_v43 = vpop.f32.mrb[99].mxu0 }
 0x471   : > { %v10387_v51 = vpop.f32.mrb[96].mxu1 }
 0x472   : > { %v10642_v16 = vadd.f32 %v10387_v51, %v10194_v58  ;;  %v10389_v4 = vpop.f32.mrb[97].mxu1 }
 0x473   : > { %v10643_v30 = vadd.f32 %v10389_v4, %v10195_v54  ;;  %v10391_v7 = vpop.f32.mrb[98].mxu1 }
 0x474   : > { %v10392_v20 = vpop.f32.mrb[99].mxu1 }
 0x475   : > { %v10428_v57 = vpop.f32.mrb[100].mxu0 }
 0x476   : > { %v10644_v47 = vadd.f32 %v10428_v57, %v10196_v48  ;;  %v10430_v36 = vpop.f32.mrb[101].mxu0 }
 0x477   : > { %v10645_v38 = vadd.f32 %v10430_v36, %v10197_v32  ;;  %v10432_v34 = vpop.f32.mrb[102].mxu0 }
 0x478   : > { %v10433_v50 = vpop.f32.mrb[103].mxu0 }
 0x479   : > { %v10469_v19 = vpop.f32.mrb[100].mxu1 }
 0x47a   : > { %v10646_v59 = vadd.f32 %v10469_v19, %v10198_v29  ;;  %v10471_v61 = vpop.f32.mrb[101].mxu1 }
 0x47b   : > { %v10647_v31 = vadd.f32 %v10471_v61, %v10199_v11  ;;  %v10473_v53 = vpop.f32.mrb[102].mxu1 }
 0x47c   : > { %v10474_v37 = vpop.f32.mrb[103].mxu1 }
 0x47d   : > { %v10510_v22 = vpop.f32.mrb[104].mxu0 }
 0x47e   : > { %v10648_v26 = vadd.f32 %v10510_v22, %v10200_v39  ;;  %v10512_v6 = vpop.f32.mrb[105].mxu0 }
 0x47f   : > { %v10649_v58 = vadd.f32 %v10512_v6, %v10201_v62  ;;  %v10514_v9 = vpop.f32.mrb[106].mxu0 }
 0x480   : > { %v10515_v54 = vpop.f32.mrb[107].mxu0 }
 0x482   : > { %v10551_v33 = vpop.f32.mrb[104].mxu1 }
 0x483   : > { %v10650_v23 = vadd.f32 %v10551_v33, %v10202_v5  ;;  %v10553_v2 = vpop.f32.mrb[105].mxu1 }
 0x484   : > { %v10651_v48 = vadd.f32 %v10553_v2, %v10203_v8  ;;  %v10555_v27 = vpop.f32.mrb[106].mxu1 }
 0x485   : > { %v10592_v32 = vpop.f32.mrb[108].mxu0  ;;  %v10556_v40 = vpop.f32.mrb[107].mxu1 }
 0x486   : > { %v10652_v18 = vadd.f32 %v10592_v32, %v10204_v41  ;;  %v10594_v45 = vpop.f32.mrb[109].mxu0 }
 0x487   : > { %v10653_v29 = vadd.f32 %v10594_v45, %v10205_v1  ;;  %v10596_v60 = vpop.f32.mrb[110].mxu0 }
 0x488   : > { %v10597_v11 = vpop.f32.mrb[111].mxu0 }
 0x48a   : > { %v10633_v28 = vpop.f32.mrb[108].mxu1 }
 0x48b   : > { %v10654_v55 = vadd.f32 %v10633_v28, %v10206_v46  ;;  %v10635_v24 = vpop.f32.mrb[109].mxu1 }
 0x48c   : > { %v10655_v39 = vadd.f32 %v10635_v24, %v10207_v14  ;;  %v10637_v25 = vpop.f32.mrb[110].mxu1 }
 0x48d   : > { %v10638_v62 = vpop.f32.mrb[111].mxu1 }
 0x48f   : > { %v10794_v12 = vpop.f32.mrb[112].mxu0 }
 0x490   : > { %v11088_v13 = vadd.f32 %v10794_v12, %v10640_v56  ;;  %v10796_v15 = vpop.f32.mrb[113].mxu0 }
 0x491   : > { %v11089_v5 = vadd.f32 %v10796_v15, %v10641_v10  ;;  %v10798_v21 = vpop.f32.mrb[114].mxu0 }
 0x492   : > { %v10799_v8 = vpop.f32.mrb[115].mxu0 }
 0x494   : > { %v10835_v52 = vpop.f32.mrb[112].mxu1 }
 0x495   : > { %v11090_v42 = vadd.f32 %v10835_v52, %v10642_v16  ;;  %v10837_v44 = vpop.f32.mrb[113].mxu1 }
 0x496   : > { %v11091_v41 = vadd.f32 %v10837_v44, %v10643_v30  ;;  %v10839_v49 = vpop.f32.mrb[114].mxu1 }
 0x497   : > { %v10876_v1 = vpop.f32.mrb[116].mxu0  ;;  %v10840_v17 = vpop.f32.mrb[115].mxu1 }
 0x498   : > { %v11092_v0 = vadd.f32 %v10876_v1, %v10644_v47  ;;  %v10878_v35 = vpop.f32.mrb[117].mxu0 }
 0x499   : > { %v11093_v46 = vadd.f32 %v10878_v35, %v10645_v38  ;;  %v10880_v63 = vpop.f32.mrb[118].mxu0 }
 0x49a   : > { %v10881_v14 = vpop.f32.mrb[119].mxu0 }
 0x49c   : > { %v10917_v43 = vpop.f32.mrb[116].mxu1 }
 0x49d   : > { %v11094_v51 = vadd.f32 %v10917_v43, %v10646_v59  ;;  %v10919_v4 = vpop.f32.mrb[117].mxu1 }
 0x49e   : > { %v11095_v56 = vadd.f32 %v10919_v4, %v10647_v31  ;;  %v10921_v7 = vpop.f32.mrb[118].mxu1 }
 0x49f   : > { %v10958_v10 = vpop.f32.mrb[120].mxu0  ;;  %v10922_v57 = vpop.f32.mrb[119].mxu1 }
 0x4a0   : > { %v11096_v20 = vadd.f32 %v10958_v10, %v10648_v26  ;;  %v10960_v36 = vpop.f32.mrb[121].mxu0 }
 0x4a1   : > { %v11097_v16 = vadd.f32 %v10960_v36, %v10649_v58  ;;  %v10962_v34 = vpop.f32.mrb[122].mxu0 }
 0x4a2   : > { %v10963_v30 = vpop.f32.mrb[123].mxu0 }
 0x4a4   : > { %v10999_v50 = vpop.f32.mrb[120].mxu1 }
 0x4a5   : > { %v11098_v19 = vadd.f32 %v10999_v50, %v10650_v23  ;;  %v11001_v61 = vpop.f32.mrb[121].mxu1 }
 0x4a6   : > { %v11099_v47 = vadd.f32 %v11001_v61, %v10651_v48  ;;  %v11003_v53 = vpop.f32.mrb[122].mxu1 }
 0x4a7   : > { %v11040_v38 = vpop.f32.mrb[124].mxu0  ;;  %v11004_v22 = vpop.f32.mrb[123].mxu1 }
 0x4a8   : > { %v11100_v37 = vadd.f32 %v11040_v38, %v10652_v18  ;;  %v11042_v6 = vpop.f32.mrb[125].mxu0 }
 0x4a9   : > { %v11101_v59 = vadd.f32 %v11042_v6, %v10653_v29  ;;  %v11044_v9 = vpop.f32.mrb[126].mxu0 }
 0x4aa   : > { %v11045_v31 = vpop.f32.mrb[127].mxu0 }
 0x4ac   : > { %v11081_v54 = vpop.f32.mrb[124].mxu1 }
 0x4ad   : > { %v11102_v33 = vadd.f32 %v11081_v54, %v10654_v55  ;;  %v11083_v2 = vpop.f32.mrb[125].mxu1 }
 0x4ae   : > { %v11103_v26 = vadd.f32 %v11083_v2, %v10655_v39  ;;  %v11085_v27 = vpop.f32.mrb[126].mxu1 }
 0x4af   : > { %v11086_v58 = vpop.f32.mrb[127].mxu1 }
 0x4b1   : > { %v11242_v32 = vpop.f32.mrb[128].mxu0 }
 0x4b2   : > { %v11536_v40 = vadd.f32 %v11242_v32, %v11088_v13  ;;  %v11244_v45 = vpop.f32.mrb[129].mxu0 }
 0x4b3   : > { %v11537_v23 = vadd.f32 %v11244_v45, %v11089_v5  ;;  %v11246_v60 = vpop.f32.mrb[130].mxu0 }
 0x4b4   : > { %v11247_v48 = vpop.f32.mrb[131].mxu0 }
 0x4b5   : > { %v11283_v11 = vpop.f32.mrb[128].mxu1 }
 0x4b6   : > { %v11538_v28 = vadd.f32 %v11283_v11, %v11090_v42  ;;  %v11285_v24 = vpop.f32.mrb[129].mxu1 }
 0x4b7   : > { %v11539_v18 = vadd.f32 %v11285_v24, %v11091_v41  ;;  %v11287_v25 = vpop.f32.mrb[130].mxu1 }
 0x4b8   : > { %v11288_v29 = vpop.f32.mrb[131].mxu1 }
 0x4b9   : > { %v11324_v62 = vpop.f32.mrb[132].mxu0 }
 0x4ba   : > { %v11540_v12 = vadd.f32 %v11324_v62, %v11092_v0  ;;  %v11326_v15 = vpop.f32.mrb[133].mxu0 }
 0x4bb   : > { %v11541_v55 = vadd.f32 %v11326_v15, %v11093_v46  ;;  %v11328_v21 = vpop.f32.mrb[134].mxu0 }
 0x4bc   : > { %v11329_v39 = vpop.f32.mrb[135].mxu0 }
 0x4bd   : > { %v11365_v8 = vpop.f32.mrb[132].mxu1 }
 0x4be   : > { %v11542_v52 = vadd.f32 %v11365_v8, %v11094_v51  ;;  %v11367_v44 = vpop.f32.mrb[133].mxu1 }
 0x4bf   : > { %v11543_v13 = vadd.f32 %v11367_v44, %v11095_v56  ;;  %v11369_v49 = vpop.f32.mrb[134].mxu1 }
 0x4c0   : > { %v11370_v5 = vpop.f32.mrb[135].mxu1 }
 0x4c1   : > { %v11406_v1 = vpop.f32.mrb[136].mxu0 }
 0x4c2   : > { %v11544_v17 = vadd.f32 %v11406_v1, %v11096_v20  ;;  %v11408_v35 = vpop.f32.mrb[137].mxu0 }
 0x4c3   : > { %v11545_v42 = vadd.f32 %v11408_v35, %v11097_v16  ;;  %v11410_v63 = vpop.f32.mrb[138].mxu0 }
 0x4c4   : > { %v11411_v41 = vpop.f32.mrb[139].mxu0 }
 0x4c5   : > { %v11447_v14 = vpop.f32.mrb[136].mxu1 }
 0x4c6   : > { %v11546_v43 = vadd.f32 %v11447_v14, %v11098_v19  ;;  %v11449_v4 = vpop.f32.mrb[137].mxu1 }
 0x4c7   : > { %v11547_v0 = vadd.f32 %v11449_v4, %v11099_v47  ;;  %v11451_v7 = vpop.f32.mrb[138].mxu1 }
 0x4c8   : > { %v11452_v46 = vpop.f32.mrb[139].mxu1  ;;  %v17949_v7 = vpop.permute.xlu0 %12451 }
 0x4c9   : > { %v11488_v10 = vpop.f32.mrb[140].mxu0 }
 0x4ca   : > { %v11548_v57 = vadd.f32 %v11488_v10, %v11100_v37  ;;  %v11490_v36 = vpop.f32.mrb[141].mxu0 }
 0x4cb   : > { %v11549_v51 = vadd.f32 %v11490_v36, %v11101_v59  ;;  %v11492_v34 = vpop.f32.mrb[142].mxu0 }
 0x4cc   : > { %v11493_v56 = vpop.f32.mrb[143].mxu0 }
 0x4cd   : > { %v11529_v30 = vpop.f32.mrb[140].mxu1 }
 0x4ce   : > { %v11550_v50 = vadd.f32 %v11529_v30, %v11102_v33  ;;  %v11531_v61 = vpop.f32.mrb[141].mxu1 }
 0x4cf   : > { %v11551_v20 = vadd.f32 %v11531_v61, %v11103_v26  ;;  %v11533_v53 = vpop.f32.mrb[142].mxu1 }
 0x4d0   : > { %v11534_v16 = vpop.f32.mrb[143].mxu1 }
 0x4d3   : > { %v11690_v38 = vpop.f32.mrb[144].mxu0 }
 0x4d4   : > { %v11984_v22 = vadd.f32 %v11690_v38, %v11536_v40  ;;  %v11692_v6 = vpop.f32.mrb[145].mxu0 }
 0x4d5   : > { %v11985_v19 = vadd.f32 %v11692_v6, %v11537_v23  ;;  %v11694_v9 = vpop.f32.mrb[146].mxu0 }
 0x4d6   : > { %v11695_v47 = vpop.f32.mrb[147].mxu0 }
 0x4d7   : > { %v11731_v31 = vpop.f32.mrb[144].mxu1 }
 0x4d8   : > { %v11986_v54 = vadd.f32 %v11731_v31, %v11538_v28  ;;  %v11733_v2 = vpop.f32.mrb[145].mxu1 }
 0x4d9   : > { %v11987_v37 = vadd.f32 %v11733_v2, %v11539_v18  ;;  %v11735_v27 = vpop.f32.mrb[146].mxu1 }
 0x4da   : > { %v11736_v59 = vpop.f32.mrb[147].mxu1 }
 0x4db   : > { %v11772_v58 = vpop.f32.mrb[148].mxu0 }
 0x4dc   : > { %v11988_v32 = vadd.f32 %v11772_v58, %v11540_v12  ;;  %v11774_v45 = vpop.f32.mrb[149].mxu0 }
 0x4dd   : > { %v11989_v33 = vadd.f32 %v11774_v45, %v11541_v55  ;;  %v11776_v60 = vpop.f32.mrb[150].mxu0 }
 0x4de   : > { %v11777_v26 = vpop.f32.mrb[151].mxu0 }
 0x4df   : > { %v11813_v48 = vpop.f32.mrb[148].mxu1 }
 0x4e0   : > { %v11990_v11 = vadd.f32 %v11813_v48, %v11542_v52  ;;  %v11815_v24 = vpop.f32.mrb[149].mxu1 }
 0x4e1   : > { %v17930_v40 = vadd.f32 %v11815_v24, %v11543_v13  ;;  %v11817_v23 = vpop.f32.mrb[150].mxu1 }
 0x4e2   : > { %v11818_v25 = vpop.f32.mrb[151].mxu1 }
 0x4e3   : > { %v11854_v29 = vpop.f32.mrb[152].mxu0 }
 0x4e4   : > { %v17932_v62 = vadd.f32 %v11854_v29, %v11544_v17  ;;  %v11856_v28 = vpop.f32.mrb[153].mxu0 }
 0x4e5   : > { %v17934_v18 = vadd.f32 %v11856_v28, %v11545_v42  ;;  %v11858_v15 = vpop.f32.mrb[154].mxu0 }
 0x4e6   : > { %v11859_v21 = vpop.f32.mrb[155].mxu0 }
 0x4e7   : > { %v11895_v12 = vpop.f32.mrb[152].mxu1 }
 0x4e8   : > { %v17936_v39 = vadd.f32 %v11895_v12, %v11546_v43  ;;  %v11897_v55 = vpop.f32.mrb[153].mxu1 }
 0x4e9   : > { %v17938_v8 = vadd.f32 %v11897_v55, %v11547_v0  ;;  %v11899_v52 = vpop.f32.mrb[154].mxu1 }
 0x4ea   : > { %v11900_v44 = vpop.f32.mrb[155].mxu1 }
 0x4eb   : > { %v11936_v13 = vpop.f32.mrb[156].mxu0 }
 0x4ec   : > { %v17940_v49 = vadd.f32 %v11936_v13, %v11548_v57  ;;  %v11938_v5 = vpop.f32.mrb[157].mxu0 }
 0x4ed   : > { %v17942_v1 = vadd.f32 %v11938_v5, %v11549_v51  ;;  %v11940_v17 = vpop.f32.mrb[158].mxu0 }
 0x4ee   : > { %v11941_v35 = vpop.f32.mrb[159].mxu0 }
 0x4ef   : > { %v11977_v42 = vpop.f32.mrb[156].mxu1 }
 0x4f0   : > { %v17944_v63 = vadd.f32 %v11977_v42, %v11550_v50  ;;  %v11979_v41 = vpop.f32.mrb[157].mxu1 }
 0x4f1   : > { %v17946_v14 = vadd.f32 %v11979_v41, %v11551_v20  ;;  %v11981_v43 = vpop.f32.mrb[158].mxu1 }
 0x4f2   : > { %v11982_v4 = vpop.f32.mrb[159].mxu1 }
 0x4f5   : > { %v12138_v0 = vpop.f32.mrb[160].mxu0 }
 0x4f6   : > { %v12432_v46 = vadd.f32 %v12138_v0, %v11984_v22  ;;  %v12140_v10 = vpop.f32.mrb[161].mxu0 }
 0x4f7   : > { %v12433_v57 = vadd.f32 %v12140_v10, %v11985_v19  ;;  %v12142_v36 = vpop.f32.mrb[162].mxu0 }
 0x4f8   : > { %v17954_v51 = vadd.f32 %v17949_v7, %v12432_v46  ;;  %v12143_v34 = vpop.f32.mrb[163].mxu0 }
 0x4f9   : > { %v12179_v56 = vpop.f32.mrb[160].mxu1  ;;  %v17957_v30 = vadd.f32 %v17949_v7, %v12433_v57 }
 0x4fa   : > { %v12434_v50 = vadd.f32 %v12179_v56, %v11986_v54  ;;  %v12181_v61 = vpop.f32.mrb[161].mxu1 }
 0x4fb   : > { %v12435_v20 = vadd.f32 %v12181_v61, %v11987_v37  ;;  %v13366_v53 = vpack.c.bf16 %v17957_v30, %v17954_v51  ;;  %v12183_v16 = vpop.f32.mrb[162].mxu1 }
 0x4fc   : > { %v17962_v38 = vadd.f32 %v17949_v7, %v12434_v50  ;;  %v12184_v22 = vpop.f32.mrb[163].mxu1 }
 0x4fd   : > { %v17965_v6 = vadd.f32 %v17949_v7, %v12435_v20  ;;  %12534 = vst [vmem:[%s17967_s13] sm:$0xff] %v13366_v53  ;;  %v12220_v19 = vpop.f32.mrb[164].mxu0 }
 0x4fe   : > { %v12436_v9 = vadd.f32 %v12220_v19, %v11988_v32  ;;  %v12222_v47 = vpop.f32.mrb[165].mxu0 }
 0x4ff   : > { %v13367_v31 = vpack.c.bf16 %v17965_v6, %v17962_v38  ;;  %v12437_v54 = vadd.f32 %v12222_v47, %v11989_v33  ;;  %v12224_v2 = vpop.f32.mrb[166].mxu0 }
 0x500   : > { %v17973_v37 = vadd.f32 %v17949_v7, %v12436_v9  ;;  %v12225_v27 = vpop.f32.mrb[167].mxu0 }
 0x501   : > { %12535 = vst [vmem:[%s17967_s13 + $0x8] sm:$0xff] %v13367_v31  ;;  %v17977_v59 = vadd.f32 %v17949_v7, %v12437_v54  ;;  %v12261_v58 = vpop.f32.mrb[164].mxu1 }
 0x502   : > { %v12438_v45 = vadd.f32 %v12261_v58, %v11990_v11  ;;  %v12263_v60 = vpop.f32.mrb[165].mxu1 }
 0x503   : > { %v13368_v32 = vpack.c.bf16 %v17977_v59, %v17973_v37  ;;  %v12439_v26 = vadd.f32 %v12263_v60, %v17930_v40  ;;  %v12265_v48 = vpop.f32.mrb[166].mxu1 }
 0x504   : > { %v17983_v33 = vadd.f32 %v17949_v7, %v12438_v45  ;;  %v12266_v24 = vpop.f32.mrb[167].mxu1 }
 0x505   : > { %12536 = vst [vmem:[%s17967_s13 + $0x10] sm:$0xff] %v13368_v32  ;;  %v17987_v23 = vadd.f32 %v17949_v7, %v12439_v26  ;;  %v12302_v25 = vpop.f32.mrb[168].mxu0 }
 0x506   : > { %v12440_v29 = vadd.f32 %v12302_v25, %v17932_v62  ;;  %v12304_v11 = vpop.f32.mrb[169].mxu0 }
 0x507   : > { %v13369_v28 = vpack.c.bf16 %v17987_v23, %v17983_v33  ;;  %v12441_v15 = vadd.f32 %v12304_v11, %v17934_v18  ;;  %v12306_v40 = vpop.f32.mrb[170].mxu0 }
 0x508   : > { %v17994_v21 = vadd.f32 %v17949_v7, %v12440_v29  ;;  %v12307_v12 = vpop.f32.mrb[171].mxu0 }
 0x509   : > { %12537 = vst [vmem:[%s17967_s13 + $0x18] sm:$0xff] %v13369_v28  ;;  %v17998_v55 = vadd.f32 %v17949_v7, %v12441_v15  ;;  %v12343_v52 = vpop.f32.mrb[168].mxu1 }
 0x50a   : > { %v12442_v44 = vadd.f32 %v12343_v52, %v17936_v39  ;;  %v12345_v62 = vpop.f32.mrb[169].mxu1 }
 0x50b   : > { %v13370_v13 = vpack.c.bf16 %v17998_v55, %v17994_v21  ;;  %v12443_v5 = vadd.f32 %v12345_v62, %v17938_v8  ;;  %v12347_v18 = vpop.f32.mrb[170].mxu1 }
 0x50c   : > { %v18005_v17 = vadd.f32 %v17949_v7, %v12442_v44  ;;  %v12348_v35 = vpop.f32.mrb[171].mxu1 }
 0x50d   : > { %12538 = vst [vmem:[%s17967_s13 + $0x20] sm:$0xff] %v13370_v13  ;;  %v18009_v42 = vadd.f32 %v17949_v7, %v12443_v5  ;;  %v12384_v41 = vpop.f32.mrb[172].mxu0 }
 0x50e   : > { %v12444_v43 = vadd.f32 %v12384_v41, %v17940_v49  ;;  %v12386_v39 = vpop.f32.mrb[173].mxu0 }
 0x50f   : > { %v13371_v4 = vpack.c.bf16 %v18009_v42, %v18005_v17  ;;  %v12445_v0 = vadd.f32 %v12386_v39, %v17942_v1  ;;  %v12388_v8 = vpop.f32.mrb[174].mxu0 }
 0x510   : > { %v18016_v46 = vadd.f32 %v17949_v7, %v12444_v43  ;;  %v12389_v10 = vpop.f32.mrb[175].mxu0 }
 0x511   : > { %12539 = vst [vmem:[%s17967_s13 + $0x28] sm:$0xff] %v13371_v4  ;;  %v18020_v57 = vadd.f32 %v17949_v7, %v12445_v0  ;;  %v12425_v36 = vpop.f32.mrb[172].mxu1 }
 0x512   : > { %v12446_v49 = vadd.f32 %v12425_v36, %v17944_v63  ;;  %v12427_v34 = vpop.f32.mrb[173].mxu1  ;;  %v13699_v63 = vmov (!%p13359_p2), 0.0  }
 0x513   : > { %v13372_v56 = vpack.c.bf16 %v18020_v57, %v18016_v46  ;;  %v12447_v50 = vadd.f32 %v12427_v34, %v17946_v14  ;;  %v12429_v1 = vpop.f32.mrb[174].mxu1  ;;  %12545 = sbr.rel (%p13359_p2) target bundleno = 1306 (0x51a), region = 44  ;;  %12547 = vst.msk [vmem:[%s13916_s14] sm:$0xff] (!%p13359_p2), %vm12546_vm1, %v13699_v63  ;;  %12548 = vst.msk [vmem:[%s13923_s11] sm:$0xff] (!%p13359_p2), %vm12546_vm1, %v13699_v63 }
 0x514   : > { %v18027_v61 = vadd.f32 %v17949_v7, %v12446_v49  ;;  %v12430_v20 = vpop.f32.mrb[175].mxu1 }
 0x515   : > { %12540 = vst [vmem:[%s17967_s13 + $0x30] sm:$0xff] %v13372_v56  ;;  %v18031_v53 = vadd.f32 %v17949_v7, %v12447_v50 }
 0x517   : > { %v13373_v16 = vpack.c.bf16 %v18031_v53, %v18027_v61 }
 0x519   : > { %12541 = vst [vmem:[%s17967_s13 + $0x38] sm:$0xff] %v13373_v16 }
 0x51a PF: > { %v12549_v14 = vld [vmem:[%s13911_s20] sm:$0xff]  ;;  %v12555_v22 = vsub.s32 0, %v13885_v3  ;;  %v12559_v7 = vsub.s32 1, %v13885_v3  ;;  %v12563_v19 = vsub.s32 2, %v13885_v3  ;;  %v12567_v9 = vsub.s32 3, %v13885_v3  ;;  %v12550_v52 = vld [vmem:[%s13911_s20 + $0x8] sm:$0xff] }
 0x51b   : > { %v12571_v2 = vsub.s32 4, %v13885_v3  ;;  %v12575_v58 = vsub.s32 5, %v13885_v3  ;;  %v12579_v32 = vsub.s32 6, %v13885_v3  ;;  %v12583_v25 = vsub.s32 7, %v13885_v3  ;;  %s13362_s27 = sshll.u32 %s13656_s28, 5  ;;  %s12731_s26 = sshll.u32 %s17967_s13, 4  ;;  %s12732_s26 = int_to_ptr.vmem [resolvable:$true] %s12731_s26 }
 0x51c   : > { %v12556_v47 = vrot.slane %v12549_v14, %v12555_v22  ;;  %v12560_v31 = vrot.slane %v12549_v14, %v12559_v7  ;;  %v12564_v54 = vrot.slane %v12549_v14, %v12563_v19  ;;  %v12568_v27 = vrot.slane %v12549_v14, %v12567_v9  ;;  %s12727_s20 = sadd.s32 %s13362_s27, %s13893_s16  ;;  %s12707_s9 = scalar_lea.sflag [#allocation4], %s294_s15 }
 0x51d   : > { %v12572_v26 = vrot.slane %v12549_v14, %v12571_v2  ;;  %v12576_v24 = vrot.slane %v12549_v14, %v12575_v58  ;;  %v12580_v12 = vrot.slane %v12549_v14, %v12579_v32  ;;  %v12584_v18 = vrot.slane %v12549_v14, %v12583_v25  ;;  %s13363_s17 = sshll.u32 %s12727_s20, 6  ;;  %s13546_s18 = scalar_lea.vmem %s12732_s26, 1024 }
 0x51e   : > { %v12633_v45 = vmul.f32 %v12556_v47, %v17954_v51  ;;  %v12634_v60 = vmul.f32 %v12560_v31, %v17957_v30  ;;  %v12635_v48 = vmul.f32 %v12564_v54, %v17962_v38  ;;  %v12636_v29 = vmul.f32 %v12568_v27, %v17965_v6  ;;  %s18087_s29 = scalar_lea.hbm %s18153_s4, %s13363_s17  ;;  %p13547_p4 = scmp.ne.s32.totalorder %s12732_s26, %s13546_s18 }
 0x51f   : > { %v12637_v44 = vmul.f32 %v12572_v26, %v17973_v37  ;;  %v12638_v3 = vmul.f32 %v12576_v24, %v17977_v59  ;;  %v12592_v0 = vrot.slane %v12550_v52, %v12559_v7  ;;  %v12640_v8 = vmul.f32 %v12584_v18, %v17987_v23  ;;  %p18179_p0 = scmp.ne.s32.totalorder %s18172_s19, 0  ;;  %s13700_s8 = smov [#allocation5]  }
 0x520   : > { %v12650_v11 = vadd.f32 %v12634_v60, %v12633_v45  ;;  %v12671_v28 = vmul.f32 %v12633_v45, %v17954_v51  ;;  %v12672_v15 = vmul.f32 %v12634_v60, %v17957_v30  ;;  %v12673_v40 = vmul.f32 %v12635_v48, %v17962_v38  ;;  %s13550_s0 = sshll.u32 %s13700_s8, 4  ;;  %s13551_s0 = int_to_ptr.vmem [resolvable:$false] %s13550_s0 }
 0x521   : > { %v12674_v13 = vmul.f32 %v12636_v29, %v17965_v6  ;;  %v12675_v41 = vmul.f32 %v12637_v44, %v17973_v37  ;;  %v12588_v51 = vrot.slane %v12550_v52, %v12555_v22  ;;  %v12639_v30 = vmul.f32 %v12580_v12, %v17983_v33  ;;  %p13548_p1 = pnand %p13547_p4, %p18179_p0  ;;  %s13552_s28 = scalar_lea.vmem %s13551_s0, 2048 }
 0x522   : > { %v12651_v62 = vadd.f32 %v12650_v11, %v12635_v48  ;;  %v12687_v5 = vadd.f32 %v12672_v15, %v12671_v28  ;;  %v12676_v38 = vmul.f32 %v12638_v3, %v17977_v59  ;;  %v12596_v49 = vrot.slane %v12550_v52, %v12563_v19  ;;  %p13553_p8 = scmp.lt.s32.totalorder %s12732_s26, %s13551_s0  ;;  %p13554_p10 = scmp.lt.s32.totalorder %s13552_s28, %s13546_s18 }
 0x523   : > { %v12677_v6 = vmul.f32 %v12639_v30, %v17983_v33  ;;  %v12641_v34 = vmul.f32 %v12588_v51, %v17994_v21  ;;  %v12678_v37 = vmul.f32 %v12640_v8, %v17987_v23  ;;  %v12600_v1 = vrot.slane %v12550_v52, %v12567_v9  ;;  %p13549_p3 = pneg %p13548_p1 }
 0x524   : > { %v12652_v35 = vadd.f32 %v12651_v62, %v12636_v29  ;;  %v12688_v43 = vadd.f32 %v12687_v5, %v12673_v40  ;;  %v12642_v20 = vmul.f32 %v12592_v0, %v17998_v55  ;;  %v12604_v14 = vrot.slane %v12550_v52, %v12571_v2  ;;  %p13555_p11 = por %p13554_p10, %p13553_p8 }
 0x525   : > { %v12679_v59 = vmul.f32 %v12641_v34, %v17994_v21  ;;  %v12643_v22 = vmul.f32 %v12596_v49, %v18005_v17  ;;  %v12608_v47 = vrot.slane %v12550_v52, %v12575_v58  ;;  %v12644_v31 = vmul.f32 %v12600_v1, %v18009_v42 }
 0x526   : > { %v12653_v39 = vadd.f32 %v12652_v35, %v12637_v44  ;;  %v12689_v4 = vadd.f32 %v12688_v43, %v12674_v13  ;;  %v12680_v19 = vmul.f32 %v12642_v20, %v17998_v55  ;;  %v12612_v27 = vrot.slane %v12550_v52, %v12579_v32  ;;  %p13556_p13 = pnand %p13555_p11, %p13549_p3 }
 0x527   : > { %v12681_v9 = vmul.f32 %v12643_v22, %v18005_v17  ;;  %v12645_v45 = vmul.f32 %v12604_v14, %v18016_v46  ;;  %v12682_v21 = vmul.f32 %v12644_v31, %v18009_v42  ;;  %v12616_v26 = vrot.slane %v12550_v52, %v12583_v25 }
 0x528   : > { %v12654_v10 = vadd.f32 %v12653_v39, %v12638_v3  ;;  %v12690_v36 = vadd.f32 %v12689_v4, %v12675_v41  ;;  %v12646_v48 = vmul.f32 %v12608_v47, %v18020_v57  ;;  %v12647_v29 = vmul.f32 %v12612_v27, %v18027_v61 }
 0x529   : > { %v12683_v55 = vmul.f32 %v12645_v45, %v18016_v46  ;;  %v12648_v28 = vmul.f32 %v12616_v26, %v18031_v53 }
 0x52a   : > { %v12655_v56 = vadd.f32 %v12654_v10, %v12639_v30  ;;  %v12691_v50 = vadd.f32 %v12690_v36, %v12676_v38  ;;  %v12684_v17 = vmul.f32 %v12646_v48, %v18020_v57  ;;  %v12685_v25 = vmul.f32 %v12647_v29, %v18027_v61 }
 0x52b   : > { %v12686_v46 = vmul.f32 %v12648_v28, %v18031_v53 }
 0x52c   : > { %v12656_v16 = vadd.f32 %v12655_v56, %v12640_v8  ;;  %v12692_v63 = vadd.f32 %v12691_v50, %v12677_v6 }
 0x52e   : > { %v12657_v7 = vadd.f32 %v12656_v16, %v12641_v34  ;;  %v12693_v33 = vadd.f32 %v12692_v63, %v12678_v37 }
 0x530   : > { %v12658_v54 = vadd.f32 %v12657_v7, %v12642_v20  ;;  %v12694_v23 = vadd.f32 %v12693_v33, %v12679_v59 }
 0x532   : > { %v12659_v60 = vadd.f32 %v12658_v54, %v12643_v22  ;;  %v12695_v2 = vadd.f32 %v12694_v23, %v12680_v19 }
 0x534   : > { %v12660_v24 = vadd.f32 %v12659_v60, %v12644_v31  ;;  %v12696_v58 = vadd.f32 %v12695_v2, %v12681_v9 }
 0x536   : > { %v12661_v11 = vadd.f32 %v12660_v24, %v12645_v45  ;;  %v12697_v32 = vadd.f32 %v12696_v58, %v12682_v21 }
 0x538   : > { %v12662_v42 = vadd.f32 %v12661_v11, %v12646_v48  ;;  %v12698_v15 = vadd.f32 %v12697_v32, %v12683_v55 }
 0x53a   : > { %v12663_v40 = vadd.f32 %v12662_v42, %v12647_v29  ;;  %v12699_v12 = vadd.f32 %v12698_v15, %v12684_v17 }
 0x53c   : > { %v12664_v52 = vadd.f32 %v12663_v40, %v12648_v28  ;;  %v12700_v44 = vadd.f32 %v12699_v12, %v12685_v25 }
 0x53e   : > { %12665 = vadd.xlane.f32.xlu0 %v12664_v52  ;;  %v12701_v62 = vadd.f32 %v12700_v44, %v12686_v46 }
 0x542   : > { %12702 = vadd.xlane.f32.xlu0 %v12701_v62 }
 0x543   : > { %13559 = shalt.err (!%p13556_p13)
}
 0x544   : > { %s13560_s16 = scalar_lea.hbm %s18087_s29, 1024  ;;  %s13564_s27 = scalar_lea.hbm %s18153_s4, 4096 }
 0x545   : > { %p13561_p5 = scmp.ne.s32.totalorder %s18087_s29, %s13560_s16  ;;  %p13565_p7 = scmp.lt.u32.totalorder %s18087_s29, %s18153_s4 }
 0x546   : > { %p13566_p12 = scmp.lt.u32.totalorder %s13564_s27, %s13560_s16  ;;  %p13568_p4 = scmp.lt.u32.totalorder %s13560_s16, %s18087_s29 }
 0x547   : > { %p13562_p9 = pnand %p13561_p5, %p18179_p0 }
 0x548   : > { %p13567_p2 = por %p13566_p12, %p13565_p7 }
 0x549   : > { %p13563_p6 = pneg %p13562_p9 }
 0x54a   : > { %p13569_p1 = por %p13568_p4, %p13567_p2 }
 0x54c   : > { %p13570_p3 = pnand %p13569_p1, %p13563_p6 }
 0x54e   : > { %13573 = shalt.err (!%p13570_p3)
}
 0x54f   : > { %13379 = dma.vmem_to_hbm [thread:$0]  (%p18179_p0), %s12732_s26, 1024, %s18087_s29, %s12707_s9   ;;  %v12649_v57 = vld [vmem:[%s13916_s14] sm:$0xff]  ;;  %vm12668_vm2 = vcmask 7168  }
 0x550   : > { %v12670_v13 = vld [vmem:[%s13923_s11] sm:$0xff] }
 0x5cb   : > { %v12666_v61 = vpop.xlane.xlu0 %12665 }
 0x5cc   : > { %v12667_v53 = vadd.f32 %v12666_v61, %v12649_v57 }
 0x5ce   : > { %12669 = vst.msk [vmem:[%s13916_s14] sm:$0xff] %vm12668_vm2, %v12667_v53 }
 0x5cf   : > { %v12703_v5 = vpop.xlane.xlu0 %12702 }
 0x5d0   : > { %v12704_v18 = vadd.f32 %v12703_v5, %v12670_v13 }
 0x5d2   : > { %12705 = vst.msk [vmem:[%s13923_s11] sm:$0xff] %vm12668_vm2, %v12704_v18 }
 0x5d3 PF: > { %p13390_p8 = scmp.ge.s32.totalorder %s13668_s7, 2  ;;  %s12749_s19 = sand.u32 1, %s13628_s21  }
 0x5d4   : > { %p18180_p10 = scmp.ne.s32.totalorder %s18174_s10, 0  ;;  %s12750_s17 = scalar_lea.sflag [#allocation4], %s12749_s19 }
 0x5d6   : > { %p13386_p11 = pnand %p13390_p8, %p18180_p10 }
 0x5d8   : > { %13623 = dma.done.wait (!%p13386_p11), %s12750_s17, 1024  }
 0x5d9   : > { %13625 = vsyncadd (!%p13386_p11), %s12750_s17, 4294966272  ;;  %s23_s7 = sadd.s32 1, %s13668_s7   ;;  %s18181_s14 = sld [smem:[#allocation8_spill]] }
 0x5da   : > { %p20_p0 = scmp.ge.s32.totalorder %s23_s7, 6   ;;  %s18182_s26 = sld [smem:[#allocation13_spill]] }
 0x5db   : > { %s18183_s27 = sld [smem:[#allocation9_spill]]  ;;  %s18184_s28 = sld [smem:[#allocation10_spill]] }
 0x5dc   : > { %s18185_s29 = sld [smem:[#allocation11_spill]]  ;;  %s18186_s30 = sld [smem:[#allocation12_spill]] }
 0x5dd   : > { %s18187_s21 = smov %s13632_s22  ;;  %s18188_s22 = smov %s13636_s23 }
 0x5de   : > { %s18189_s23 = smov %s13826_s24  ;;  %s18190_s24 = smov %s13644_s25 }
 0x5df   : > { %s18191_s25 = smov %s18181_s14  ;;  %22 = sbr.rel (!%p20_p0) target bundleno = 11 (0xb), region = 139 }
 0x5e6   :  { %12769 = vsyncpa [#allocation3], 1 }
 0x5e7   :  { %12771 = vsyncpa [#allocation3 + $0x1], 1 }
 0x5e8   :  { %12772 = vsyncpa [#allocation4], 1 }
 0x5e9   :  { %12774 = vsyncpa [#allocation4 + $0x1], 1 }

</bundles_post_ra>
